<compile_context>
chip_gen: v7x
topology: tpu7x:2x2x1
jax: 0.10.0
libtpu: 0.0.40
codegen_flags: <defaults>
</compile_context>

<pallas_src>
import functools
import math

import jax
import jax.numpy as jnp
from jax.experimental import pallas as pl
from jax.experimental.pallas import tpu as pltpu


def _round_up(x, m):
    return ((x + m - 1) // m) * m


# ----------------------------------------------------------------------------
# Direct stride-1 conv Pallas kernel (taps folded in-kernel, no im2col in HBM)
#   x block   : (Lp, Cin)  bf16  -- whole padded image, flattened (H*W major)
#   w block   : (kh*kw*Cin, tn) bf16 -- tap-major / channel-minor
#   bias      : (1, tn) f32
#   residual  : optional (Lout, tn) (fused ResBlock skip-add)
#   output    : (Lout, tn) in out dtype (bf16 between layers, f32 at the ends)
# ----------------------------------------------------------------------------
def _conv_kernel(*refs, kh, kw, cin, win, lout, relu_in, relu_out, has_res):
    if has_res:
        x_ref, w_ref, b_ref, res_ref, o_ref = refs
    else:
        x_ref, w_ref, b_ref, o_ref = refs
        res_ref = None

    acc = None
    for t in range(kh * kw):
        i, j = divmod(t, kw)
        start = i * win + j
        patch = x_ref[start:start + lout, :]            # shifted VMEM window
        if relu_in:                                      # fused leading ReLU
            patch = jnp.maximum(patch, 0)
        part = jnp.dot(patch, w_ref[t * cin:(t + 1) * cin, :],
                       preferred_element_type=jnp.float32)
        acc = part if acc is None else acc + part

    out = acc + b_ref[...]
    if res_ref is not None:                              # fused residual add
        out = out + res_ref[...].astype(jnp.float32)
    if relu_out:                                         # fused trailing ReLU
        out = jnp.maximum(out, 0.0)
    o_ref[...] = out.astype(o_ref.dtype)


def _conv_core(xp, w_flat, bias, *, kh, kw, ho, wo, relu_in=False,
               relu_out=False, residual=None, out_dtype=jnp.bfloat16):
    """Direct stride-1 conv on a pre-padded NHWC input.

    xp:     (B, Hin, Win, Cin) bf16, spatially padded, with enough extra bottom
            zero rows that Hin*Win >= ho*Win + (kh-1)*Win + (kw-1).
    w_flat: (kh*kw*Cin, Cout) f32, tap-major / channel-minor.
    Output: (B, ho, wo, Cout) in out_dtype.
    """
    B, Hin, Win, Cin = xp.shape
    KC, Cout = w_flat.shape
    assert KC == kh * kw * Cin
    Lp = Hin * Win
    Lout = ho * Win                       # padded-width grid (garbage cols)
    assert Lp >= Lout + (kh - 1) * Win + (kw - 1)

    xf = xp.reshape(B, Lp, Cin)
    w_bf = w_flat.astype(jnp.bfloat16)
    bias2 = bias.astype(jnp.float32).reshape(1, Cout)

    if Cout > 256 and Cout % 128 == 0:    # keep outputs lane-dense, tile if big
        tn = 128
    else:
        tn = Cout
    nt = Cout // tn

    in_specs = [
        pl.BlockSpec((None, Lp, Cin), lambda b, n: (b, 0, 0)),
        pl.BlockSpec((KC, tn), lambda b, n: (0, n)),
        pl.BlockSpec((1, tn), lambda b, n: (0, n)),
    ]
    args = [xf, w_bf, bias2]
    has_res = residual is not None
    if has_res:
        assert kh == 1 and kw == 1 and wo == Win
        args.append(residual.reshape(B, Lout, Cout))
        in_specs.append(pl.BlockSpec((None, Lout, tn), lambda b, n: (b, 0, n)))

    out = pl.pallas_call(
        functools.partial(_conv_kernel, kh=kh, kw=kw, cin=Cin, win=Win,
                          lout=Lout, relu_in=relu_in, relu_out=relu_out,
                          has_res=has_res),
        out_shape=jax.ShapeDtypeStruct((B, Lout, Cout), out_dtype),
        grid_spec=pltpu.PrefetchScalarGridSpec(
            num_scalar_prefetch=0,
            grid=(B, nt),
            in_specs=in_specs,
            out_specs=pl.BlockSpec((None, Lout, tn), lambda b, n: (b, 0, n)),
        ),
        compiler_params=pltpu.CompilerParams(
            dimension_semantics=("parallel", "parallel")),
    )(*args)

    out = out.reshape(B, ho, Win, Cout)
    if wo != Win:
        out = out[:, :, :wo, :]           # drop garbage cols (fuses w/ next pad)
    return out


# ----------------------------------------------------------------------------
# Conv layer wrappers (all lower onto _conv_core; inputs/outputs NHWC)
# ----------------------------------------------------------------------------
def conv2d_s1(x, w, b, *, padding=0, relu_in=False, relu_out=False,
              residual=None, out_dtype=jnp.bfloat16):
    """PyTorch nn.Conv2d(Cin, Cout, k, stride=1, padding=padding) on NHWC x."""
    B, H, W, Cin = x.shape
    Cout, Cin2, kh, kw = w.shape
    assert Cin == Cin2
    extra = 1 if kw > 1 else 0            # one extra zero row for flat overflow
    xp = x.astype(jnp.bfloat16)
    if padding or extra:
        xp = jnp.pad(xp, ((0, 0), (padding, padding + extra),
                          (padding, padding), (0, 0)))
    ho = H + 2 * padding - kh + 1
    wo = W + 2 * padding - kw + 1
    w_flat = jnp.transpose(w, (2, 3, 1, 0)).reshape(kh * kw * Cin, Cout)
    return _conv_core(xp, w_flat, b, kh=kh, kw=kw, ho=ho, wo=wo,
                      relu_in=relu_in, relu_out=relu_out,
                      residual=residual, out_dtype=out_dtype)


def conv2d_4x4_s2(x, w, b, *, relu_out=False, out_dtype=jnp.bfloat16):
    """PyTorch nn.Conv2d(Cin, Cout, 4, stride=2, padding=1) lowered to a
    space-to-depth pass + a stride-1 2x2 direct conv (no im2col, no strided
    loads, K = 4*Cin)."""
    B, H, W, Cin = x.shape
    Cout = w.shape[0]
    assert H % 2 == 0 and W % 2 == 0
    # conv pad 1 on all sides + 2 extra zero rows (becomes the flat-overflow
    # row after space-to-depth).
    xp = jnp.pad(x.astype(jnp.bfloat16), ((0, 0), (1, 3), (1, 1), (0, 0)))
    Hp, Wp = H + 4, W + 2
    y = xp.reshape(B, Hp // 2, 2, Wp // 2, 2, Cin)
    y = y.transpose(0, 1, 3, 2, 4, 5).reshape(B, Hp // 2, Wp // 2, 4 * Cin)
    # weights: w[co,ci,2di+r,2dj+s] -> w2[di,dj,(r*2+s)*Cin+ci, co]
    wh = jnp.transpose(w, (2, 3, 1, 0))                      # (ky,kx,Cin,Cout)
    w2 = wh.reshape(2, 2, 2, 2, Cin, Cout).transpose(0, 2, 1, 3, 4, 5)
    w_flat = w2.reshape(2 * 2 * 4 * Cin, Cout)
    return _conv_core(y, w_flat, b, kh=2, kw=2, ho=H // 2, wo=W // 2,
                      relu_out=relu_out, out_dtype=out_dtype)


def conv_transpose2d_4x4_s2(x, w, b, *, relu_out=False, out_dtype=jnp.bfloat16):
    """PyTorch nn.ConvTranspose2d(Cin, Cout, 4, stride=2, padding=1) lowered to
    ONE stride-1 3x3 conv with N = 4*Cout (sub-pixel phases embedded as
    zero-padded 3x3 filters) + a pixel shuffle."""
    B, H, W, Cin = x.shape
    Cin2, Cout = w.shape[0], w.shape[1]
    assert Cin == Cin2 and w.shape[2:] == (4, 4)
    wh = jnp.transpose(w, (2, 3, 0, 1))                      # (ky,kx,Cin,Cout)
    zero = jnp.zeros((Cin, Cout), w.dtype)
    groups = []
    for r in (0, 1):
        ky_of = {0: 3, 1: 1} if r == 0 else {1: 2, 2: 0}
        for s in (0, 1):
            kx_of = {0: 3, 1: 1} if s == 0 else {1: 2, 2: 0}
            rows = []
            for a in range(3):
                cols = [wh[ky_of[a], kx_of[c]]
                        if (a in ky_of and c in kx_of) else zero
                        for c in range(3)]
                rows.append(jnp.stack(cols, axis=0))
            groups.append(jnp.stack(rows, axis=0))           # (3,3,Cin,Cout)
    w3 = jnp.stack(groups, axis=3)                           # (3,3,Cin,4,Cout)
    w_flat = w3.reshape(3 * 3 * Cin, 4 * Cout)
    b4 = jnp.tile(b, 4)
    xp = jnp.pad(x.astype(jnp.bfloat16), ((0, 0), (1, 2), (1, 1), (0, 0)))
    y4 = _conv_core(xp, w_flat, b4, kh=3, kw=3, ho=H, wo=W,
                    relu_out=relu_out, out_dtype=out_dtype)  # (B,H,W,4*Cout)
    y4 = y4.reshape(B, H, W, 2, 2, Cout)
    return y4.transpose(0, 1, 3, 2, 4, 5).reshape(B, 2 * H, 2 * W, Cout)


# ----------------------------------------------------------------------------
# Pallas vector-quantization kernel (nearest codebook entry per row)
# ----------------------------------------------------------------------------
def _vq_kernel(z_ref, et_ref, e_ref, e2_ref, q_ref):
    # argmin_k ||z - e_k||^2 == argmin_k (||e_k||^2 - 2 z.e_k); z^2 is a
    # per-row constant and is dropped.  Distance matmul in bf16 (MXU-native).
    zb = z_ref[...].astype(jnp.bfloat16)
    ze = jnp.dot(zb, et_ref[...], preferred_element_type=jnp.float32)   # (T,K)
    dist = e2_ref[...] - 2.0 * ze
    idx = jnp.argmin(dist, axis=1)                                      # (T,)
    onehot = (jax.lax.broadcasted_iota(jnp.int32, dist.shape, 1)
              == idx[:, None]).astype(jnp.bfloat16)
    # TODO(synk): replace the one-hot matmul with an in-kernel row gather
    # (jnp.take) once dynamic-gather lowering is guaranteed on all targets.
    q_ref[...] = jnp.dot(onehot, e_ref[...], preferred_element_type=jnp.float32)


def vector_quantize(z_nhwc, embed, beta=0.25):
    """z_nhwc: (B,H,W,D) f32; embed: (K,D).  Returns (quantized NHWC, vq_loss)."""
    B, H, W, D = z_nhwc.shape
    K = embed.shape[0]
    z32 = z_nhwc.astype(jnp.float32).reshape(-1, D)
    n = z32.shape[0]
    # >= 2 row tiles where possible so both v7x TensorCores get work
    tr = min(512, max(8, _round_up(pl.cdiv(n, 2), 8)))
    mp = _round_up(n, tr)
    z_p = z32 if mp == n else jnp.pad(z32, ((0, mp - n), (0, 0)))

    e32 = embed.astype(jnp.float32)
    et_bf = jnp.transpose(e32).astype(jnp.bfloat16)      # (D,K) for distances
    e_bf = e32.astype(jnp.bfloat16)                      # (K,D) for selection
    e2 = jnp.sum(e32 * e32, axis=1).reshape(1, K)        # hoisted norms

    quant_flat = pl.pallas_call(
        _vq_kernel,
        out_shape=jax.ShapeDtypeStruct((mp, D), jnp.float32),
        grid_spec=pltpu.PrefetchScalarGridSpec(
            num_scalar_prefetch=0,
            grid=(mp // tr,),
            in_specs=[
                pl.BlockSpec((tr, D), lambda i: (i, 0)),
                pl.BlockSpec((D, K), lambda i: (0, 0)),
                pl.BlockSpec((K, D), lambda i: (0, 0)),
                pl.BlockSpec((1, K), lambda i: (0, 0)),
            ],
            out_specs=pl.BlockSpec((tr, D), lambda i: (i, 0)),
        ),
        compiler_params=pltpu.CompilerParams(
            dimension_semantics=("parallel",)),
    )(z_p, et_bf, e_bf, e2)

    quant = quant_flat[:n].reshape(B, H, W, D)
    diff2 = jnp.mean(jnp.square(quant - z32.reshape(B, H, W, D)))
    # forward value of ||sg[q]-z||^2.mean() + beta*||q-sg[z]||^2.mean()
    vq_loss = (1.0 + beta) * diff2
    # straight-through estimator: forward value of z + sg[q - z] is q
    return quant, vq_loss


# ----------------------------------------------------------------------------
# Parameter init (deterministic, PyTorch-like uniform ranges)
# ----------------------------------------------------------------------------
def _init_conv(key, cout, cin, kh, kw):
    k1, k2 = jax.random.split(key)
    bound = 1.0 / math.sqrt(cin * kh * kw)
    w = jax.random.uniform(k1, (cout, cin, kh, kw), jnp.float32, -bound, bound)
    b = jax.random.uniform(k2, (cout,), jnp.float32, -bound, bound)
    return w, b


def _init_deconv(key, cin, cout, kh, kw):
    k1, k2 = jax.random.split(key)
    bound = 1.0 / math.sqrt(cout * kh * kw)
    w = jax.random.uniform(k1, (cin, cout, kh, kw), jnp.float32, -bound, bound)
    b = jax.random.uniform(k2, (cout,), jnp.float32, -bound, bound)
    return w, b


def _init_resblock(key, in_ch, ch):
    k1, k2 = jax.random.split(key)
    return {"c1": _init_conv(k1, ch, in_ch, 3, 3),
            "c2": _init_conv(k2, in_ch, ch, 1, 1)}


def _init_encoder(key, in_ch, ch, n_res_block, n_res_ch, stride):
    ks = iter(jax.random.split(key, 8 + n_res_block))
    p = {}
    if stride == 4:
        p["conv1"] = _init_conv(next(ks), ch // 2, in_ch, 4, 4)
        p["conv2"] = _init_conv(next(ks), ch, ch // 2, 4, 4)
        p["conv3"] = _init_conv(next(ks), ch, ch, 3, 3)
    else:  # stride == 2
        p["conv1"] = _init_conv(next(ks), ch // 2, in_ch, 4, 4)
        p["conv2"] = _init_conv(next(ks), ch, ch // 2, 3, 3)
    p["res"] = [_init_resblock(next(ks), ch, n_res_ch) for _ in range(n_res_block)]
    return p


def _init_decoder(key, in_ch, out_ch, ch, n_res_block, n_res_ch, stride):
    ks = iter(jax.random.split(key, 8 + n_res_block))
    p = {"conv1": _init_conv(next(ks), ch, in_ch, 3, 3),
         "res": [_init_resblock(next(ks), ch, n_res_ch)
                 for _ in range(n_res_block)]}
    if stride == 4:
        p["deconv1"] = _init_deconv(next(ks), ch, ch // 2, 4, 4)
        p["deconv2"] = _init_deconv(next(ks), ch // 2, out_ch, 4, 4)
    else:  # stride == 2
        p["deconv1"] = _init_deconv(next(ks), ch, out_ch, 4, 4)
    return p


def init_vqvae(key, in_channel, channel, n_res_block, n_res_channel,
               embed_dim, n_embed):
    ks = iter(jax.random.split(key, 16))
    p = {}
    p["enc_b"] = _init_encoder(next(ks), in_channel, channel, n_res_block,
                               n_res_channel, 4)
    p["enc_t"] = _init_encoder(next(ks), channel, channel, n_res_block,
                               n_res_channel, 2)
    p["quantize_conv_t"] = _init_conv(next(ks), embed_dim, channel, 1, 1)
    p["embed_t"] = jax.random.uniform(next(ks), (n_embed, embed_dim),
                                      jnp.float32, -1.0 / n_embed, 1.0 / n_embed)
    p["dec_t"] = _init_decoder(next(ks), embed_dim, embed_dim, channel,
                               n_res_block, n_res_channel, 2)
    p["quantize_conv_b"] = _init_conv(next(ks), embed_dim, embed_dim + channel,
                                      1, 1)
    p["embed_b"] = jax.random.uniform(next(ks), (n_embed, embed_dim),
                                      jnp.float32, -1.0 / n_embed, 1.0 / n_embed)
    p["upsample_t"] = _init_deconv(next(ks), embed_dim, embed_dim, 4, 4)
    p["dec_b"] = _init_decoder(next(ks), embed_dim + embed_dim, in_channel,
                               channel, n_res_block, n_res_channel, 4)
    return p


# ----------------------------------------------------------------------------
# Forward passes (all activations NHWC; bf16 between layers)
# ----------------------------------------------------------------------------
def _resblock_fwd(p, x, *, fuse_tail_relu=False):
    # ReLU -> 3x3 conv -> ReLU -> 1x1 conv -> +x ; leading/trailing ReLUs,
    # bias and the residual add are all fused into the conv epilogues.
    h = conv2d_s1(x, *p["c1"], padding=1, relu_in=True, relu_out=True)
    return conv2d_s1(h, *p["c2"], padding=0, residual=x,
                     relu_out=fuse_tail_relu)


def _encoder_fwd(p, x, stride):
    if stride == 4:
        x = conv2d_4x4_s2(x, *p["conv1"], relu_out=True)
        x = conv2d_4x4_s2(x, *p["conv2"], relu_out=True)
        x = conv2d_s1(x, *p["conv3"], padding=1)
    else:
        x = conv2d_4x4_s2(x, *p["conv1"], relu_out=True)
        x = conv2d_s1(x, *p["conv2"], padding=1)
    nres = len(p["res"])
    for i, rp in enumerate(p["res"]):
        x = _resblock_fwd(rp, x, fuse_tail_relu=(i == nres - 1))
    if nres == 0:
        x = jax.nn.relu(x)
    return x


def _decoder_fwd(p, x, stride, *, final_dtype=jnp.bfloat16):
    x = conv2d_s1(x, *p["conv1"], padding=1)
    nres = len(p["res"])
    for i, rp in enumerate(p["res"]):
        x = _resblock_fwd(rp, x, fuse_tail_relu=(i == nres - 1))
    if nres == 0:
        x = jax.nn.relu(x)
    if stride == 4:
        x = conv_transpose2d_4x4_s2(x, *p["deconv1"], relu_out=True)
        x = conv_transpose2d_4x4_s2(x, *p["deconv2"], out_dtype=final_dtype)
    else:
        x = conv_transpose2d_4x4_s2(x, *p["deconv1"], out_dtype=final_dtype)
    return x


def vqvae_forward(params, x_nchw, beta=0.25):
    x = jnp.transpose(x_nchw, (0, 2, 3, 1))               # NCHW -> NHWC once
    # encode
    z = _encoder_fwd(params["enc_b"], x, 4)
    # encode_encode
    enc_t = _encoder_fwd(params["enc_t"], z, 2)
    quant_t_pre = conv2d_s1(enc_t, *params["quantize_conv_t"], padding=0,
                            out_dtype=jnp.float32)
    quant_t, vq_loss_t = vector_quantize(quant_t_pre, params["embed_t"], beta)
    dec_t = _decoder_fwd(params["dec_t"], quant_t, 2)
    enc_b = jnp.concatenate([dec_t, z], axis=-1)
    quant_b_pre = conv2d_s1(enc_b, *params["quantize_conv_b"], padding=0,
                            out_dtype=jnp.float32)
    quant_b, vq_loss_b = vector_quantize(quant_b_pre, params["embed_b"], beta)
    vq_loss = vq_loss_t + vq_loss_b
    upsample_t = conv_transpose2d_4x4_s2(quant_t, *params["upsample_t"])
    quant = jnp.concatenate([upsample_t, quant_b.astype(jnp.bfloat16)], axis=-1)
    # decode
    rec = _decoder_fwd(params["dec_b"], quant, 4, final_dtype=jnp.float32)
    return jnp.transpose(rec, (0, 3, 1, 2)), vq_loss      # NHWC -> NCHW once


# ----------------------------------------------------------------------------
# Main
# ----------------------------------------------------------------------------
if __name__ == "__main__":
    # small config consistent with VQVAE_v2's constructor
    in_channel, channel = 1, 32
    n_res_block, n_res_channel = 1, 16
    embed_dim, n_embed = 16, 32
    B, H, W = 2, 16, 16

    key = jax.random.PRNGKey(0)
    k_params, k_x = jax.random.split(key)
    params = init_vqvae(k_params, in_channel, channel, n_res_block,
                        n_res_channel, embed_dim, n_embed)
    x = jax.random.normal(k_x, (B, in_channel, H, W), jnp.float32)

    fwd = jax.jit(lambda inp: vqvae_forward(params, inp))
    rec, vq_loss = fwd(x)
    jax.block_until_ready((rec, vq_loss))

    assert rec.shape == (B, in_channel, H, W)
    assert vq_loss.shape == ()
    assert bool(jnp.all(jnp.isfinite(rec))) and bool(jnp.isfinite(vq_loss))
    print("KERNEL_OK")
</pallas_src>

<mosaic_0001>
module attributes {stable_mosaic.version = 11 : i64} {
  func.func @_conv_kernel(%arg0: i32, %arg1: i32, %arg2: memref<1x90x4xbf16, #tpu.memory_space<vmem>>, %arg3: memref<16x16xbf16, #tpu.memory_space<vmem>>, %arg4: memref<1x16xf32, #tpu.memory_space<vmem>>, %arg5: memref<1x72x16xbf16, #tpu.memory_space<vmem>>) attributes {dimension_semantics = [#tpu.dimension_semantics<parallel>, #tpu.dimension_semantics<parallel>], iteration_bounds = array<i64: 2, 1>, scalar_prefetch = 0 : i64, scratch_operands = 0 : i64, tpu.core_type = #tpu.core_type<tc>, window_params = [{transform_indices = @transform_0, window_bounds = array<i64: 1, 90, 4>}, {transform_indices = @transform_1, window_bounds = array<i64: 16, 16>}, {transform_indices = @transform_2, window_bounds = array<i64: 1, 16>}, {transform_indices = @transform_3, window_bounds = array<i64: 1, 72, 16>}]} {
    %c0 = arith.constant 0 : index
    %c0_0 = arith.constant 0 : index
    %c0_1 = arith.constant 0 : index
    %0 = vector.load %arg2[%c0, %c0_0, %c0_1] : memref<1x90x4xbf16, #tpu.memory_space<vmem>>, vector<1x72x4xbf16>
    %1 = vector.shape_cast %0 : vector<1x72x4xbf16> to vector<72x4xbf16>
    %c0_2 = arith.constant 0 : index
    %c0_3 = arith.constant 0 : index
    %2 = vector.load %arg3[%c0_2, %c0_3] : memref<16x16xbf16, #tpu.memory_space<vmem>>, vector<4x16xbf16>
    %cst = arith.constant dense<0.000000e+00> : vector<72x16xf32>
    %3 = tpu.matmul %1, %2, %cst {dimension_numbers = #tpu.dot_dimension_numbers<[1], [0], [0], [1], [0, 0, 1, 1], [], []>} : vector<72x4xbf16>, vector<4x16xbf16>, vector<72x16xf32> -> vector<72x16xf32>
    %c0_4 = arith.constant 0 : index
    %c1 = arith.constant 1 : index
    %c0_5 = arith.constant 0 : index
    %4 = vector.load %arg2[%c0_4, %c1, %c0_5] : memref<1x90x4xbf16, #tpu.memory_space<vmem>>, vector<1x72x4xbf16>
    %5 = vector.shape_cast %4 : vector<1x72x4xbf16> to vector<72x4xbf16>
    %c4 = arith.constant 4 : index
    %c0_6 = arith.constant 0 : index
    %6 = vector.load %arg3[%c4, %c0_6] : memref<16x16xbf16, #tpu.memory_space<vmem>>, vector<4x16xbf16>
    %cst_7 = arith.constant dense<0.000000e+00> : vector<72x16xf32>
    %7 = tpu.matmul %5, %6, %cst_7 {dimension_numbers = #tpu.dot_dimension_numbers<[1], [0], [0], [1], [0, 0, 1, 1], [], []>} : vector<72x4xbf16>, vector<4x16xbf16>, vector<72x16xf32> -> vector<72x16xf32>
    %8 = arith.addf %3, %7 : vector<72x16xf32>
    %c0_8 = arith.constant 0 : index
    %c9 = arith.constant 9 : index
    %c0_9 = arith.constant 0 : index
    %9 = vector.load %arg2[%c0_8, %c9, %c0_9] : memref<1x90x4xbf16, #tpu.memory_space<vmem>>, vector<1x72x4xbf16>
    %10 = vector.shape_cast %9 : vector<1x72x4xbf16> to vector<72x4xbf16>
    %c8 = arith.constant 8 : index
    %c0_10 = arith.constant 0 : index
    %11 = vector.load %arg3[%c8, %c0_10] : memref<16x16xbf16, #tpu.memory_space<vmem>>, vector<4x16xbf16>
    %cst_11 = arith.constant dense<0.000000e+00> : vector<72x16xf32>
    %12 = tpu.matmul %10, %11, %cst_11 {dimension_numbers = #tpu.dot_dimension_numbers<[1], [0], [0], [1], [0, 0, 1, 1], [], []>} : vector<72x4xbf16>, vector<4x16xbf16>, vector<72x16xf32> -> vector<72x16xf32>
    %13 = arith.addf %8, %12 : vector<72x16xf32>
    %c0_12 = arith.constant 0 : index
    %c10 = arith.constant 10 : index
    %c0_13 = arith.constant 0 : index
    %14 = vector.load %arg2[%c0_12, %c10, %c0_13] : memref<1x90x4xbf16, #tpu.memory_space<vmem>>, vector<1x72x4xbf16>
    %15 = vector.shape_cast %14 : vector<1x72x4xbf16> to vector<72x4xbf16>
    %c12 = arith.constant 12 : index
    %c0_14 = arith.constant 0 : index
    %16 = vector.load %arg3[%c12, %c0_14] : memref<16x16xbf16, #tpu.memory_space<vmem>>, vector<4x16xbf16>
    %cst_15 = arith.constant dense<0.000000e+00> : vector<72x16xf32>
    %17 = tpu.matmul %15, %16, %cst_15 {dimension_numbers = #tpu.dot_dimension_numbers<[1], [0], [0], [1], [0, 0, 1, 1], [], []>} : vector<72x4xbf16>, vector<4x16xbf16>, vector<72x16xf32> -> vector<72x16xf32>
    %18 = arith.addf %13, %17 : vector<72x16xf32>
    %c0_16 = arith.constant 0 : index
    %c0_17 = arith.constant 0 : index
    %19 = vector.load %arg4[%c0_16, %c0_17] : memref<1x16xf32, #tpu.memory_space<vmem>>, vector<1x16xf32>
    %20 = vector.broadcast %19 : vector<1x16xf32> to vector<72x16xf32>
    %21 = arith.addf %18, %20 : vector<72x16xf32>
    %cst_18 = arith.constant 0.000000e+00 : f32
    %22 = vector.broadcast %cst_18 : f32 to vector<72x16xf32>
    %23 = arith.maximumf %21, %22 : vector<72x16xf32>
    %24 = arith.truncf %23 : vector<72x16xf32> to vector<72x16xbf16>
    %c0_19 = arith.constant 0 : index
    %c0_20 = arith.constant 0 : index
    %c0_21 = arith.constant 0 : index
    %25 = vector.load %arg5[%c0_19, %c0_20, %c0_21] : memref<1x72x16xbf16, #tpu.memory_space<vmem>>, vector<1x72x16xbf16>
    %26 = vector.shape_cast %25 : vector<1x72x16xbf16> to vector<72x16xbf16>
    %27 = vector.shape_cast %24 : vector<72x16xbf16> to vector<1x72x16xbf16>
    tpu.vector_store %arg5[%c0_19, %c0_20, %c0_21], %27 {strides = array<i32>} : memref<1x72x16xbf16, #tpu.memory_space<vmem>>, vector<1x72x16xbf16>,
    return
  }
  func.func @transform_0(%arg0: i32, %arg1: i32) -> (i32, i32, i32) {
    %c0_i32 = arith.constant 0 : i32
    %c0_i32_0 = arith.constant 0 : i32
    %c0_i32_1 = arith.constant 0 : i32
    return %arg0, %c0_i32, %c0_i32_0 : i32, i32, i32
  }
  func.func @transform_1(%arg0: i32, %arg1: i32) -> (i32, i32) {
    %c0_i32 = arith.constant 0 : i32
    %c0_i32_0 = arith.constant 0 : i32
    return %c0_i32, %arg1 : i32, i32
  }
  func.func @transform_2(%arg0: i32, %arg1: i32) -> (i32, i32) {
    %c0_i32 = arith.constant 0 : i32
    %c0_i32_0 = arith.constant 0 : i32
    return %c0_i32, %arg1 : i32, i32
  }
  func.func @transform_3(%arg0: i32, %arg1: i32) -> (i32, i32, i32) {
    %c0_i32 = arith.constant 0 : i32
    %c0_i32_0 = arith.constant 0 : i32
    return %arg0, %c0_i32, %arg1 : i32, i32, i32
  }
}

module attributes {stable_mosaic.version = 11 : i64} {
  func.func @_conv_kernel(%arg0: i32, %arg1: i32, %arg2: memref<1x30x64xbf16, #tpu.memory_space<vmem>>, %arg3: memref<256x32xbf16, #tpu.memory_space<vmem>>, %arg4: memref<1x32xf32, #tpu.memory_space<vmem>>, %arg5: memref<1x20x32xbf16, #tpu.memory_space<vmem>>) attributes {dimension_semantics = [#tpu.dimension_semantics<parallel>, #tpu.dimension_semantics<parallel>], iteration_bounds = array<i64: 2, 1>, scalar_prefetch = 0 : i64, scratch_operands = 0 : i64, tpu.core_type = #tpu.core_type<tc>, window_params = [{transform_indices = @transform_0, window_bounds = array<i64: 1, 30, 64>}, {transform_indices = @transform_1, window_bounds = array<i64: 256, 32>}, {transform_indices = @transform_2, window_bounds = array<i64: 1, 32>}, {transform_indices = @transform_3, window_bounds = array<i64: 1, 20, 32>}]} {
    %c0 = arith.constant 0 : index
    %c0_0 = arith.constant 0 : index
    %c0_1 = arith.constant 0 : index
    %0 = vector.load %arg2[%c0, %c0_0, %c0_1] : memref<1x30x64xbf16, #tpu.memory_space<vmem>>, vector<1x20x64xbf16>
    %1 = vector.shape_cast %0 : vector<1x20x64xbf16> to vector<20x64xbf16>
    %c0_2 = arith.constant 0 : index
    %c0_3 = arith.constant 0 : index
    %2 = vector.load %arg3[%c0_2, %c0_3] : memref<256x32xbf16, #tpu.memory_space<vmem>>, vector<64x32xbf16>
    %cst = arith.constant dense<0.000000e+00> : vector<20x32xf32>
    %3 = tpu.matmul %1, %2, %cst {dimension_numbers = #tpu.dot_dimension_numbers<[1], [0], [0], [1], [0, 0, 1, 1], [], []>} : vector<20x64xbf16>, vector<64x32xbf16>, vector<20x32xf32> -> vector<20x32xf32>
    %c0_4 = arith.constant 0 : index
    %c1 = arith.constant 1 : index
    %c0_5 = arith.constant 0 : index
    %4 = vector.load %arg2[%c0_4, %c1, %c0_5] : memref<1x30x64xbf16, #tpu.memory_space<vmem>>, vector<1x20x64xbf16>
    %5 = vector.shape_cast %4 : vector<1x20x64xbf16> to vector<20x64xbf16>
    %c64 = arith.constant 64 : index
    %c0_6 = arith.constant 0 : index
    %6 = vector.load %arg3[%c64, %c0_6] : memref<256x32xbf16, #tpu.memory_space<vmem>>, vector<64x32xbf16>
    %cst_7 = arith.constant dense<0.000000e+00> : vector<20x32xf32>
    %7 = tpu.matmul %5, %6, %cst_7 {dimension_numbers = #tpu.dot_dimension_numbers<[1], [0], [0], [1], [0, 0, 1, 1], [], []>} : vector<20x64xbf16>, vector<64x32xbf16>, vector<20x32xf32> -> vector<20x32xf32>
    %8 = arith.addf %3, %7 : vector<20x32xf32>
    %c0_8 = arith.constant 0 : index
    %c5 = arith.constant 5 : index
    %c0_9 = arith.constant 0 : index
    %9 = vector.load %arg2[%c0_8, %c5, %c0_9] : memref<1x30x64xbf16, #tpu.memory_space<vmem>>, vector<1x20x64xbf16>
    %10 = vector.shape_cast %9 : vector<1x20x64xbf16> to vector<20x64xbf16>
    %c128 = arith.constant 128 : index
    %c0_10 = arith.constant 0 : index
    %11 = vector.load %arg3[%c128, %c0_10] : memref<256x32xbf16, #tpu.memory_space<vmem>>, vector<64x32xbf16>
    %cst_11 = arith.constant dense<0.000000e+00> : vector<20x32xf32>
    %12 = tpu.matmul %10, %11, %cst_11 {dimension_numbers = #tpu.dot_dimension_numbers<[1], [0], [0], [1], [0, 0, 1, 1], [], []>} : vector<20x64xbf16>, vector<64x32xbf16>, vector<20x32xf32> -> vector<20x32xf32>
    %13 = arith.addf %8, %12 : vector<20x32xf32>
    %c0_12 = arith.constant 0 : index
    %c6 = arith.constant 6 : index
    %c0_13 = arith.constant 0 : index
    %14 = vector.load %arg2[%c0_12, %c6, %c0_13] : memref<1x30x64xbf16, #tpu.memory_space<vmem>>, vector<1x20x64xbf16>
    %15 = vector.shape_cast %14 : vector<1x20x64xbf16> to vector<20x64xbf16>
    %c192 = arith.constant 192 : index
    %c0_14 = arith.constant 0 : index
    %16 = vector.load %arg3[%c192, %c0_14] : memref<256x32xbf16, #tpu.memory_space<vmem>>, vector<64x32xbf16>
    %cst_15 = arith.constant dense<0.000000e+00> : vector<20x32xf32>
    %17 = tpu.matmul %15, %16, %cst_15 {dimension_numbers = #tpu.dot_dimension_numbers<[1], [0], [0], [1], [0, 0, 1, 1], [], []>} : vector<20x64xbf16>, vector<64x32xbf16>, vector<20x32xf32> -> vector<20x32xf32>
    %18 = arith.addf %13, %17 : vector<20x32xf32>
    %c0_16 = arith.constant 0 : index
    %c0_17 = arith.constant 0 : index
    %19 = vector.load %arg4[%c0_16, %c0_17] : memref<1x32xf32, #tpu.memory_space<vmem>>, vector<1x32xf32>
    %20 = vector.broadcast %19 : vector<1x32xf32> to vector<20x32xf32>
    %21 = arith.addf %18, %20 : vector<20x32xf32>
    %cst_18 = arith.constant 0.000000e+00 : f32
    %22 = vector.broadcast %cst_18 : f32 to vector<20x32xf32>
    %23 = arith.maximumf %21, %22 : vector<20x32xf32>
    %24 = arith.truncf %23 : vector<20x32xf32> to vector<20x32xbf16>
    %c0_19 = arith.constant 0 : index
    %c0_20 = arith.constant 0 : index
    %c0_21 = arith.constant 0 : index
    %25 = vector.load %arg5[%c0_19, %c0_20, %c0_21] : memref<1x20x32xbf16, #tpu.memory_space<vmem>>, vector<1x20x32xbf16>
    %26 = vector.shape_cast %25 : vector<1x20x32xbf16> to vector<20x32xbf16>
    %27 = vector.shape_cast %24 : vector<20x32xbf16> to vector<1x20x32xbf16>
    tpu.vector_store %arg5[%c0_19, %c0_20, %c0_21], %27 {strides = array<i32>} : memref<1x20x32xbf16, #tpu.memory_space<vmem>>, vector<1x20x32xbf16>,
    return
  }
  func.func @transform_0(%arg0: i32, %arg1: i32) -> (i32, i32, i32) {
    %c0_i32 = arith.constant 0 : i32
    %c0_i32_0 = arith.constant 0 : i32
    %c0_i32_1 = arith.constant 0 : i32
    return %arg0, %c0_i32, %c0_i32_0 : i32, i32, i32
  }
  func.func @transform_1(%arg0: i32, %arg1: i32) -> (i32, i32) {
    %c0_i32 = arith.constant 0 : i32
    %c0_i32_0 = arith.constant 0 : i32
    return %c0_i32, %arg1 : i32, i32
  }
  func.func @transform_2(%arg0: i32, %arg1: i32) -> (i32, i32) {
    %c0_i32 = arith.constant 0 : i32
    %c0_i32_0 = arith.constant 0 : i32
    return %c0_i32, %arg1 : i32, i32
  }
  func.func @transform_3(%arg0: i32, %arg1: i32) -> (i32, i32, i32) {
    %c0_i32 = arith.constant 0 : i32
    %c0_i32_0 = arith.constant 0 : i32
    return %arg0, %c0_i32, %arg1 : i32, i32, i32
  }
}

module attributes {stable_mosaic.version = 11 : i64} {
  func.func @_conv_kernel(%arg0: i32, %arg1: i32, %arg2: memref<1x42x32xbf16, #tpu.memory_space<vmem>>, %arg3: memref<288x16xbf16, #tpu.memory_space<vmem>>, %arg4: memref<1x16xf32, #tpu.memory_space<vmem>>, %arg5: memref<1x24x16xbf16, #tpu.memory_space<vmem>>) attributes {dimension_semantics = [#tpu.dimension_semantics<parallel>, #tpu.dimension_semantics<parallel>], iteration_bounds = array<i64: 2, 1>, scalar_prefetch = 0 : i64, scratch_operands = 0 : i64, tpu.core_type = #tpu.core_type<tc>, window_params = [{transform_indices = @transform_0, window_bounds = array<i64: 1, 42, 32>}, {transform_indices = @transform_1, window_bounds = array<i64: 288, 16>}, {transform_indices = @transform_2, window_bounds = array<i64: 1, 16>}, {transform_indices = @transform_3, window_bounds = array<i64: 1, 24, 16>}]} {
    %c0 = arith.constant 0 : index
    %c0_0 = arith.constant 0 : index
    %c0_1 = arith.constant 0 : index
    %0 = vector.load %arg2[%c0, %c0_0, %c0_1] : memref<1x42x32xbf16, #tpu.memory_space<vmem>>, vector<1x24x32xbf16>
    %1 = vector.shape_cast %0 : vector<1x24x32xbf16> to vector<24x32xbf16>
    %cst = arith.constant 0.000000e+00 : bf16
    %2 = vector.broadcast %cst : bf16 to vector<24x32xbf16>
    %3 = arith.maximumf %1, %2 : vector<24x32xbf16>
    %c0_2 = arith.constant 0 : index
    %c0_3 = arith.constant 0 : index
    %4 = vector.load %arg3[%c0_2, %c0_3] : memref<288x16xbf16, #tpu.memory_space<vmem>>, vector<32x16xbf16>
    %cst_4 = arith.constant dense<0.000000e+00> : vector<24x16xf32>
    %5 = tpu.matmul %3, %4, %cst_4 {dimension_numbers = #tpu.dot_dimension_numbers<[1], [0], [0], [1], [0, 0, 1, 1], [], []>} : vector<24x32xbf16>, vector<32x16xbf16>, vector<24x16xf32> -> vector<24x16xf32>
    %c0_5 = arith.constant 0 : index
    %c1 = arith.constant 1 : index
    %c0_6 = arith.constant 0 : index
    %6 = vector.load %arg2[%c0_5, %c1, %c0_6] : memref<1x42x32xbf16, #tpu.memory_space<vmem>>, vector<1x24x32xbf16>
    %7 = vector.shape_cast %6 : vector<1x24x32xbf16> to vector<24x32xbf16>
    %cst_7 = arith.constant 0.000000e+00 : bf16
    %8 = vector.broadcast %cst_7 : bf16 to vector<24x32xbf16>
    %9 = arith.maximumf %7, %8 : vector<24x32xbf16>
    %c32 = arith.constant 32 : index
    %c0_8 = arith.constant 0 : index
    %10 = vector.load %arg3[%c32, %c0_8] : memref<288x16xbf16, #tpu.memory_space<vmem>>, vector<32x16xbf16>
    %cst_9 = arith.constant dense<0.000000e+00> : vector<24x16xf32>
    %11 = tpu.matmul %9, %10, %cst_9 {dimension_numbers = #tpu.dot_dimension_numbers<[1], [0], [0], [1], [0, 0, 1, 1], [], []>} : vector<24x32xbf16>, vector<32x16xbf16>, vector<24x16xf32> -> vector<24x16xf32>
    %12 = arith.addf %5, %11 : vector<24x16xf32>
    %c0_10 = arith.constant 0 : index
    %c2 = arith.constant 2 : index
    %c0_11 = arith.constant 0 : index
    %13 = vector.load %arg2[%c0_10, %c2, %c0_11] : memref<1x42x32xbf16, #tpu.memory_space<vmem>>, vector<1x24x32xbf16>
    %14 = vector.shape_cast %13 : vector<1x24x32xbf16> to vector<24x32xbf16>
    %cst_12 = arith.constant 0.000000e+00 : bf16
    %15 = vector.broadcast %cst_12 : bf16 to vector<24x32xbf16>
    %16 = arith.maximumf %14, %15 : vector<24x32xbf16>
    %c64 = arith.constant 64 : index
    %c0_13 = arith.constant 0 : index
    %17 = vector.load %arg3[%c64, %c0_13] : memref<288x16xbf16, #tpu.memory_space<vmem>>, vector<32x16xbf16>
    %cst_14 = arith.constant dense<0.000000e+00> : vector<24x16xf32>
    %18 = tpu.matmul %16, %17, %cst_14 {dimension_numbers = #tpu.dot_dimension_numbers<[1], [0], [0], [1], [0, 0, 1, 1], [], []>} : vector<24x32xbf16>, vector<32x16xbf16>, vector<24x16xf32> -> vector<24x16xf32>
    %19 = arith.addf %12, %18 : vector<24x16xf32>
    %c0_15 = arith.constant 0 : index
    %c6 = arith.constant 6 : index
    %c0_16 = arith.constant 0 : index
    %20 = vector.load %arg2[%c0_15, %c6, %c0_16] : memref<1x42x32xbf16, #tpu.memory_space<vmem>>, vector<1x24x32xbf16>
    %21 = vector.shape_cast %20 : vector<1x24x32xbf16> to vector<24x32xbf16>
    %cst_17 = arith.constant 0.000000e+00 : bf16
    %22 = vector.broadcast %cst_17 : bf16 to vector<24x32xbf16>
    %23 = arith.maximumf %21, %22 : vector<24x32xbf16>
    %c96 = arith.constant 96 : index
    %c0_18 = arith.constant 0 : index
    %24 = vector.load %arg3[%c96, %c0_18] : memref<288x16xbf16, #tpu.memory_space<vmem>>, vector<32x16xbf16>
    %cst_19 = arith.constant dense<0.000000e+00> : vector<24x16xf32>
    %25 = tpu.matmul %23, %24, %cst_19 {dimension_numbers = #tpu.dot_dimension_numbers<[1], [0], [0], [1], [0, 0, 1, 1], [], []>} : vector<24x32xbf16>, vector<32x16xbf16>, vector<24x16xf32> -> vector<24x16xf32>
    %26 = arith.addf %19, %25 : vector<24x16xf32>
    %c0_20 = arith.constant 0 : index
    %c7 = arith.constant 7 : index
    %c0_21 = arith.constant 0 : index
    %27 = vector.load %arg2[%c0_20, %c7, %c0_21] : memref<1x42x32xbf16, #tpu.memory_space<vmem>>, vector<1x24x32xbf16>
    %28 = vector.shape_cast %27 : vector<1x24x32xbf16> to vector<24x32xbf16>
    %cst_22 = arith.constant 0.000000e+00 : bf16
    %29 = vector.broadcast %cst_22 : bf16 to vector<24x32xbf16>
    %30 = arith.maximumf %28, %29 : vector<24x32xbf16>
    %c128 = arith.constant 128 : index
    %c0_23 = arith.constant 0 : index
    %31 = vector.load %arg3[%c128, %c0_23] : memref<288x16xbf16, #tpu.memory_space<vmem>>, vector<32x16xbf16>
    %cst_24 = arith.constant dense<0.000000e+00> : vector<24x16xf32>
    %32 = tpu.matmul %30, %31, %cst_24 {dimension_numbers = #tpu.dot_dimension_numbers<[1], [0], [0], [1], [0, 0, 1, 1], [], []>} : vector<24x32xbf16>, vector<32x16xbf16>, vector<24x16xf32> -> vector<24x16xf32>
    %33 = arith.addf %26, %32 : vector<24x16xf32>
    %c0_25 = arith.constant 0 : index
    %c8 = arith.constant 8 : index
    %c0_26 = arith.constant 0 : index
    %34 = vector.load %arg2[%c0_25, %c8, %c0_26] : memref<1x42x32xbf16, #tpu.memory_space<vmem>>, vector<1x24x32xbf16>
    %35 = vector.shape_cast %34 : vector<1x24x32xbf16> to vector<24x32xbf16>
    %cst_27 = arith.constant 0.000000e+00 : bf16
    %36 = vector.broadcast %cst_27 : bf16 to vector<24x32xbf16>
    %37 = arith.maximumf %35, %36 : vector<24x32xbf16>
    %c160 = arith.constant 160 : index
    %c0_28 = arith.constant 0 : index
    %38 = vector.load %arg3[%c160, %c0_28] : memref<288x16xbf16, #tpu.memory_space<vmem>>, vector<32x16xbf16>
    %cst_29 = arith.constant dense<0.000000e+00> : vector<24x16xf32>
    %39 = tpu.matmul %37, %38, %cst_29 {dimension_numbers = #tpu.dot_dimension_numbers<[1], [0], [0], [1], [0, 0, 1, 1], [], []>} : vector<24x32xbf16>, vector<32x16xbf16>, vector<24x16xf32> -> vector<24x16xf32>
    %40 = arith.addf %33, %39 : vector<24x16xf32>
    %c0_30 = arith.constant 0 : index
    %c12 = arith.constant 12 : index
    %c0_31 = arith.constant 0 : index
    %41 = vector.load %arg2[%c0_30, %c12, %c0_31] : memref<1x42x32xbf16, #tpu.memory_space<vmem>>, vector<1x24x32xbf16>
    %42 = vector.shape_cast %41 : vector<1x24x32xbf16> to vector<24x32xbf16>
    %cst_32 = arith.constant 0.000000e+00 : bf16
    %43 = vector.broadcast %cst_32 : bf16 to vector<24x32xbf16>
    %44 = arith.maximumf %42, %43 : vector<24x32xbf16>
    %c192 = arith.constant 192 : index
    %c0_33 = arith.constant 0 : index
    %45 = vector.load %arg3[%c192, %c0_33] : memref<288x16xbf16, #tpu.memory_space<vmem>>, vector<32x16xbf16>
    %cst_34 = arith.constant dense<0.000000e+00> : vector<24x16xf32>
    %46 = tpu.matmul %44, %45, %cst_34 {dimension_numbers = #tpu.dot_dimension_numbers<[1], [0], [0], [1], [0, 0, 1, 1], [], []>} : vector<24x32xbf16>, vector<32x16xbf16>, vector<24x16xf32> -> vector<24x16xf32>
    %47 = arith.addf %40, %46 : vector<24x16xf32>
    %c0_35 = arith.constant 0 : index
    %c13 = arith.constant 13 : index
    %c0_36 = arith.constant 0 : index
    %48 = vector.load %arg2[%c0_35, %c13, %c0_36] : memref<1x42x32xbf16, #tpu.memory_space<vmem>>, vector<1x24x32xbf16>
    %49 = vector.shape_cast %48 : vector<1x24x32xbf16> to vector<24x32xbf16>
    %cst_37 = arith.constant 0.000000e+00 : bf16
    %50 = vector.broadcast %cst_37 : bf16 to vector<24x32xbf16>
    %51 = arith.maximumf %49, %50 : vector<24x32xbf16>
    %c224 = arith.constant 224 : index
    %c0_38 = arith.constant 0 : index
    %52 = vector.load %arg3[%c224, %c0_38] : memref<288x16xbf16, #tpu.memory_space<vmem>>, vector<32x16xbf16>
    %cst_39 = arith.constant dense<0.000000e+00> : vector<24x16xf32>
    %53 = tpu.matmul %51, %52, %cst_39 {dimension_numbers = #tpu.dot_dimension_numbers<[1], [0], [0], [1], [0, 0, 1, 1], [], []>} : vector<24x32xbf16>, vector<32x16xbf16>, vector<24x16xf32> -> vector<24x16xf32>
    %54 = arith.addf %47, %53 : vector<24x16xf32>
    %c0_40 = arith.constant 0 : index
    %c14 = arith.constant 14 : index
    %c0_41 = arith.constant 0 : index
    %55 = vector.load %arg2[%c0_40, %c14, %c0_41] : memref<1x42x32xbf16, #tpu.memory_space<vmem>>, vector<1x24x32xbf16>
    %56 = vector.shape_cast %55 : vector<1x24x32xbf16> to vector<24x32xbf16>
    %cst_42 = arith.constant 0.000000e+00 : bf16
    %57 = vector.broadcast %cst_42 : bf16 to vector<24x32xbf16>
    %58 = arith.maximumf %56, %57 : vector<24x32xbf16>
    %c256 = arith.constant 256 : index
    %c0_43 = arith.constant 0 : index
    %59 = vector.load %arg3[%c256, %c0_43] : memref<288x16xbf16, #tpu.memory_space<vmem>>, vector<32x16xbf16>
    %cst_44 = arith.constant dense<0.000000e+00> : vector<24x16xf32>
    %60 = tpu.matmul %58, %59, %cst_44 {dimension_numbers = #tpu.dot_dimension_numbers<[1], [0], [0], [1], [0, 0, 1, 1], [], []>} : vector<24x32xbf16>, vector<32x16xbf16>, vector<24x16xf32> -> vector<24x16xf32>
    %61 = arith.addf %54, %60 : vector<24x16xf32>
    %c0_45 = arith.constant 0 : index
    %c0_46 = arith.constant 0 : index
    %62 = vector.load %arg4[%c0_45, %c0_46] : memref<1x16xf32, #tpu.memory_space<vmem>>, vector<1x16xf32>
    %63 = vector.broadcast %62 : vector<1x16xf32> to vector<24x16xf32>
    %64 = arith.addf %61, %63 : vector<24x16xf32>
    %cst_47 = arith.constant 0.000000e+00 : f32
    %65 = vector.broadcast %cst_47 : f32 to vector<24x16xf32>
    %66 = arith.maximumf %64, %65 : vector<24x16xf32>
    %67 = arith.truncf %66 : vector<24x16xf32> to vector<24x16xbf16>
    %c0_48 = arith.constant 0 : index
    %c0_49 = arith.constant 0 : index
    %c0_50 = arith.constant 0 : index
    %68 = vector.load %arg5[%c0_48, %c0_49, %c0_50] : memref<1x24x16xbf16, #tpu.memory_space<vmem>>, vector<1x24x16xbf16>
    %69 = vector.shape_cast %68 : vector<1x24x16xbf16> to vector<24x16xbf16>
    %70 = vector.shape_cast %67 : vector<24x16xbf16> to vector<1x24x16xbf16>
    tpu.vector_store %arg5[%c0_48, %c0_49, %c0_50], %70 {strides = array<i32>} : memref<1x24x16xbf16, #tpu.memory_space<vmem>>, vector<1x24x16xbf16>,
    return
  }
  func.func @transform_0(%arg0: i32, %arg1: i32) -> (i32, i32, i32) {
    %c0_i32 = arith.constant 0 : i32
    %c0_i32_0 = arith.constant 0 : i32
    %c0_i32_1 = arith.constant 0 : i32
    return %arg0, %c0_i32, %c0_i32_0 : i32, i32, i32
  }
  func.func @transform_1(%arg0: i32, %arg1: i32) -> (i32, i32) {
    %c0_i32 = arith.constant 0 : i32
    %c0_i32_0 = arith.constant 0 : i32
    return %c0_i32, %arg1 : i32, i32
  }
  func.func @transform_2(%arg0: i32, %arg1: i32) -> (i32, i32) {
    %c0_i32 = arith.constant 0 : i32
    %c0_i32_0 = arith.constant 0 : i32
    return %c0_i32, %arg1 : i32, i32
  }
  func.func @transform_3(%arg0: i32, %arg1: i32) -> (i32, i32, i32) {
    %c0_i32 = arith.constant 0 : i32
    %c0_i32_0 = arith.constant 0 : i32
    return %arg0, %c0_i32, %arg1 : i32, i32, i32
  }
}

module attributes {stable_mosaic.version = 11 : i64} {
  func.func @_conv_kernel(%arg0: i32, %arg1: i32, %arg2: memref<1x42x32xbf16, #tpu.memory_space<vmem>>, %arg3: memref<288x32xbf16, #tpu.memory_space<vmem>>, %arg4: memref<1x32xf32, #tpu.memory_space<vmem>>, %arg5: memref<1x24x32xbf16, #tpu.memory_space<vmem>>) attributes {dimension_semantics = [#tpu.dimension_semantics<parallel>, #tpu.dimension_semantics<parallel>], iteration_bounds = array<i64: 2, 1>, scalar_prefetch = 0 : i64, scratch_operands = 0 : i64, tpu.core_type = #tpu.core_type<tc>, window_params = [{transform_indices = @transform_0, window_bounds = array<i64: 1, 42, 32>}, {transform_indices = @transform_1, window_bounds = array<i64: 288, 32>}, {transform_indices = @transform_2, window_bounds = array<i64: 1, 32>}, {transform_indices = @transform_3, window_bounds = array<i64: 1, 24, 32>}]} {
    %c0 = arith.constant 0 : index
    %c0_0 = arith.constant 0 : index
    %c0_1 = arith.constant 0 : index
    %0 = vector.load %arg2[%c0, %c0_0, %c0_1] : memref<1x42x32xbf16, #tpu.memory_space<vmem>>, vector<1x24x32xbf16>
    %1 = vector.shape_cast %0 : vector<1x24x32xbf16> to vector<24x32xbf16>
    %c0_2 = arith.constant 0 : index
    %c0_3 = arith.constant 0 : index
    %2 = vector.load %arg3[%c0_2, %c0_3] : memref<288x32xbf16, #tpu.memory_space<vmem>>, vector<32x32xbf16>
    %cst = arith.constant dense<0.000000e+00> : vector<24x32xf32>
    %3 = tpu.matmul %1, %2, %cst {dimension_numbers = #tpu.dot_dimension_numbers<[1], [0], [0], [1], [0, 0, 1, 1], [], []>} : vector<24x32xbf16>, vector<32x32xbf16>, vector<24x32xf32> -> vector<24x32xf32>
    %c0_4 = arith.constant 0 : index
    %c1 = arith.constant 1 : index
    %c0_5 = arith.constant 0 : index
    %4 = vector.load %arg2[%c0_4, %c1, %c0_5] : memref<1x42x32xbf16, #tpu.memory_space<vmem>>, vector<1x24x32xbf16>
    %5 = vector.shape_cast %4 : vector<1x24x32xbf16> to vector<24x32xbf16>
    %c32 = arith.constant 32 : index
    %c0_6 = arith.constant 0 : index
    %6 = vector.load %arg3[%c32, %c0_6] : memref<288x32xbf16, #tpu.memory_space<vmem>>, vector<32x32xbf16>
    %cst_7 = arith.constant dense<0.000000e+00> : vector<24x32xf32>
    %7 = tpu.matmul %5, %6, %cst_7 {dimension_numbers = #tpu.dot_dimension_numbers<[1], [0], [0], [1], [0, 0, 1, 1], [], []>} : vector<24x32xbf16>, vector<32x32xbf16>, vector<24x32xf32> -> vector<24x32xf32>
    %8 = arith.addf %3, %7 : vector<24x32xf32>
    %c0_8 = arith.constant 0 : index
    %c2 = arith.constant 2 : index
    %c0_9 = arith.constant 0 : index
    %9 = vector.load %arg2[%c0_8, %c2, %c0_9] : memref<1x42x32xbf16, #tpu.memory_space<vmem>>, vector<1x24x32xbf16>
    %10 = vector.shape_cast %9 : vector<1x24x32xbf16> to vector<24x32xbf16>
    %c64 = arith.constant 64 : index
    %c0_10 = arith.constant 0 : index
    %11 = vector.load %arg3[%c64, %c0_10] : memref<288x32xbf16, #tpu.memory_space<vmem>>, vector<32x32xbf16>
    %cst_11 = arith.constant dense<0.000000e+00> : vector<24x32xf32>
    %12 = tpu.matmul %10, %11, %cst_11 {dimension_numbers = #tpu.dot_dimension_numbers<[1], [0], [0], [1], [0, 0, 1, 1], [], []>} : vector<24x32xbf16>, vector<32x32xbf16>, vector<24x32xf32> -> vector<24x32xf32>
    %13 = arith.addf %8, %12 : vector<24x32xf32>
    %c0_12 = arith.constant 0 : index
    %c6 = arith.constant 6 : index
    %c0_13 = arith.constant 0 : index
    %14 = vector.load %arg2[%c0_12, %c6, %c0_13] : memref<1x42x32xbf16, #tpu.memory_space<vmem>>, vector<1x24x32xbf16>
    %15 = vector.shape_cast %14 : vector<1x24x32xbf16> to vector<24x32xbf16>
    %c96 = arith.constant 96 : index
    %c0_14 = arith.constant 0 : index
    %16 = vector.load %arg3[%c96, %c0_14] : memref<288x32xbf16, #tpu.memory_space<vmem>>, vector<32x32xbf16>
    %cst_15 = arith.constant dense<0.000000e+00> : vector<24x32xf32>
    %17 = tpu.matmul %15, %16, %cst_15 {dimension_numbers = #tpu.dot_dimension_numbers<[1], [0], [0], [1], [0, 0, 1, 1], [], []>} : vector<24x32xbf16>, vector<32x32xbf16>, vector<24x32xf32> -> vector<24x32xf32>
    %18 = arith.addf %13, %17 : vector<24x32xf32>
    %c0_16 = arith.constant 0 : index
    %c7 = arith.constant 7 : index
    %c0_17 = arith.constant 0 : index
    %19 = vector.load %arg2[%c0_16, %c7, %c0_17] : memref<1x42x32xbf16, #tpu.memory_space<vmem>>, vector<1x24x32xbf16>
    %20 = vector.shape_cast %19 : vector<1x24x32xbf16> to vector<24x32xbf16>
    %c128 = arith.constant 128 : index
    %c0_18 = arith.constant 0 : index
    %21 = vector.load %arg3[%c128, %c0_18] : memref<288x32xbf16, #tpu.memory_space<vmem>>, vector<32x32xbf16>
    %cst_19 = arith.constant dense<0.000000e+00> : vector<24x32xf32>
    %22 = tpu.matmul %20, %21, %cst_19 {dimension_numbers = #tpu.dot_dimension_numbers<[1], [0], [0], [1], [0, 0, 1, 1], [], []>} : vector<24x32xbf16>, vector<32x32xbf16>, vector<24x32xf32> -> vector<24x32xf32>
    %23 = arith.addf %18, %22 : vector<24x32xf32>
    %c0_20 = arith.constant 0 : index
    %c8 = arith.constant 8 : index
    %c0_21 = arith.constant 0 : index
    %24 = vector.load %arg2[%c0_20, %c8, %c0_21] : memref<1x42x32xbf16, #tpu.memory_space<vmem>>, vector<1x24x32xbf16>
    %25 = vector.shape_cast %24 : vector<1x24x32xbf16> to vector<24x32xbf16>
    %c160 = arith.constant 160 : index
    %c0_22 = arith.constant 0 : index
    %26 = vector.load %arg3[%c160, %c0_22] : memref<288x32xbf16, #tpu.memory_space<vmem>>, vector<32x32xbf16>
    %cst_23 = arith.constant dense<0.000000e+00> : vector<24x32xf32>
    %27 = tpu.matmul %25, %26, %cst_23 {dimension_numbers = #tpu.dot_dimension_numbers<[1], [0], [0], [1], [0, 0, 1, 1], [], []>} : vector<24x32xbf16>, vector<32x32xbf16>, vector<24x32xf32> -> vector<24x32xf32>
    %28 = arith.addf %23, %27 : vector<24x32xf32>
    %c0_24 = arith.constant 0 : index
    %c12 = arith.constant 12 : index
    %c0_25 = arith.constant 0 : index
    %29 = vector.load %arg2[%c0_24, %c12, %c0_25] : memref<1x42x32xbf16, #tpu.memory_space<vmem>>, vector<1x24x32xbf16>
    %30 = vector.shape_cast %29 : vector<1x24x32xbf16> to vector<24x32xbf16>
    %c192 = arith.constant 192 : index
    %c0_26 = arith.constant 0 : index
    %31 = vector.load %arg3[%c192, %c0_26] : memref<288x32xbf16, #tpu.memory_space<vmem>>, vector<32x32xbf16>
    %cst_27 = arith.constant dense<0.000000e+00> : vector<24x32xf32>
    %32 = tpu.matmul %30, %31, %cst_27 {dimension_numbers = #tpu.dot_dimension_numbers<[1], [0], [0], [1], [0, 0, 1, 1], [], []>} : vector<24x32xbf16>, vector<32x32xbf16>, vector<24x32xf32> -> vector<24x32xf32>
    %33 = arith.addf %28, %32 : vector<24x32xf32>
    %c0_28 = arith.constant 0 : index
    %c13 = arith.constant 13 : index
    %c0_29 = arith.constant 0 : index
    %34 = vector.load %arg2[%c0_28, %c13, %c0_29] : memref<1x42x32xbf16, #tpu.memory_space<vmem>>, vector<1x24x32xbf16>
    %35 = vector.shape_cast %34 : vector<1x24x32xbf16> to vector<24x32xbf16>
    %c224 = arith.constant 224 : index
    %c0_30 = arith.constant 0 : index
    %36 = vector.load %arg3[%c224, %c0_30] : memref<288x32xbf16, #tpu.memory_space<vmem>>, vector<32x32xbf16>
    %cst_31 = arith.constant dense<0.000000e+00> : vector<24x32xf32>
    %37 = tpu.matmul %35, %36, %cst_31 {dimension_numbers = #tpu.dot_dimension_numbers<[1], [0], [0], [1], [0, 0, 1, 1], [], []>} : vector<24x32xbf16>, vector<32x32xbf16>, vector<24x32xf32> -> vector<24x32xf32>
    %38 = arith.addf %33, %37 : vector<24x32xf32>
    %c0_32 = arith.constant 0 : index
    %c14 = arith.constant 14 : index
    %c0_33 = arith.constant 0 : index
    %39 = vector.load %arg2[%c0_32, %c14, %c0_33] : memref<1x42x32xbf16, #tpu.memory_space<vmem>>, vector<1x24x32xbf16>
    %40 = vector.shape_cast %39 : vector<1x24x32xbf16> to vector<24x32xbf16>
    %c256 = arith.constant 256 : index
    %c0_34 = arith.constant 0 : index
    %41 = vector.load %arg3[%c256, %c0_34] : memref<288x32xbf16, #tpu.memory_space<vmem>>, vector<32x32xbf16>
    %cst_35 = arith.constant dense<0.000000e+00> : vector<24x32xf32>
    %42 = tpu.matmul %40, %41, %cst_35 {dimension_numbers = #tpu.dot_dimension_numbers<[1], [0], [0], [1], [0, 0, 1, 1], [], []>} : vector<24x32xbf16>, vector<32x32xbf16>, vector<24x32xf32> -> vector<24x32xf32>
    %43 = arith.addf %38, %42 : vector<24x32xf32>
    %c0_36 = arith.constant 0 : index
    %c0_37 = arith.constant 0 : index
    %44 = vector.load %arg4[%c0_36, %c0_37] : memref<1x32xf32, #tpu.memory_space<vmem>>, vector<1x32xf32>
    %45 = vector.broadcast %44 : vector<1x32xf32> to vector<24x32xf32>
    %46 = arith.addf %43, %45 : vector<24x32xf32>
    %47 = arith.truncf %46 : vector<24x32xf32> to vector<24x32xbf16>
    %c0_38 = arith.constant 0 : index
    %c0_39 = arith.constant 0 : index
    %c0_40 = arith.constant 0 : index
    %48 = vector.load %arg5[%c0_38, %c0_39, %c0_40] : memref<1x24x32xbf16, #tpu.memory_space<vmem>>, vector<1x24x32xbf16>
    %49 = vector.shape_cast %48 : vector<1x24x32xbf16> to vector<24x32xbf16>
    %50 = vector.shape_cast %47 : vector<24x32xbf16> to vector<1x24x32xbf16>
    tpu.vector_store %arg5[%c0_38, %c0_39, %c0_40], %50 {strides = array<i32>} : memref<1x24x32xbf16, #tpu.memory_space<vmem>>, vector<1x24x32xbf16>,
    return
  }
  func.func @transform_0(%arg0: i32, %arg1: i32) -> (i32, i32, i32) {
    %c0_i32 = arith.constant 0 : i32
    %c0_i32_0 = arith.constant 0 : i32
    %c0_i32_1 = arith.constant 0 : i32
    return %arg0, %c0_i32, %c0_i32_0 : i32, i32, i32
  }
  func.func @transform_1(%arg0: i32, %arg1: i32) -> (i32, i32) {
    %c0_i32 = arith.constant 0 : i32
    %c0_i32_0 = arith.constant 0 : i32
    return %c0_i32, %arg1 : i32, i32
  }
  func.func @transform_2(%arg0: i32, %arg1: i32) -> (i32, i32) {
    %c0_i32 = arith.constant 0 : i32
    %c0_i32_0 = arith.constant 0 : i32
    return %c0_i32, %arg1 : i32, i32
  }
  func.func @transform_3(%arg0: i32, %arg1: i32) -> (i32, i32, i32) {
    %c0_i32 = arith.constant 0 : i32
    %c0_i32_0 = arith.constant 0 : i32
    return %arg0, %c0_i32, %arg1 : i32, i32, i32
  }
}

module attributes {stable_mosaic.version = 11 : i64} {
  func.func @_conv_kernel(%arg0: i32, %arg1: i32, %arg2: memref<1x16x16xbf16, #tpu.memory_space<vmem>>, %arg3: memref<16x32xbf16, #tpu.memory_space<vmem>>, %arg4: memref<1x32xf32, #tpu.memory_space<vmem>>, %arg5: memref<1x16x32xbf16, #tpu.memory_space<vmem>>, %arg6: memref<1x16x32xbf16, #tpu.memory_space<vmem>>) attributes {dimension_semantics = [#tpu.dimension_semantics<parallel>, #tpu.dimension_semantics<parallel>], iteration_bounds = array<i64: 2, 1>, scalar_prefetch = 0 : i64, scratch_operands = 0 : i64, tpu.core_type = #tpu.core_type<tc>, window_params = [{transform_indices = @transform_0, window_bounds = array<i64: 1, 16, 16>}, {transform_indices = @transform_1, window_bounds = array<i64: 16, 32>}, {transform_indices = @transform_2, window_bounds = array<i64: 1, 32>}, {transform_indices = @transform_3, window_bounds = array<i64: 1, 16, 32>}, {transform_indices = @transform_4, window_bounds = array<i64: 1, 16, 32>}]} {
    %c0 = arith.constant 0 : index
    %c0_0 = arith.constant 0 : index
    %c0_1 = arith.constant 0 : index
    %0 = vector.load %arg2[%c0, %c0_0, %c0_1] : memref<1x16x16xbf16, #tpu.memory_space<vmem>>, vector<1x16x16xbf16>
    %1 = vector.shape_cast %0 : vector<1x16x16xbf16> to vector<16x16xbf16>
    %c0_2 = arith.constant 0 : index
    %c0_3 = arith.constant 0 : index
    %2 = vector.load %arg3[%c0_2, %c0_3] : memref<16x32xbf16, #tpu.memory_space<vmem>>, vector<16x32xbf16>
    %cst = arith.constant dense<0.000000e+00> : vector<16x32xf32>
    %3 = tpu.matmul %1, %2, %cst {dimension_numbers = #tpu.dot_dimension_numbers<[1], [0], [0], [1], [0, 0, 1, 1], [], []>} : vector<16x16xbf16>, vector<16x32xbf16>, vector<16x32xf32> -> vector<16x32xf32>
    %c0_4 = arith.constant 0 : index
    %c0_5 = arith.constant 0 : index
    %4 = vector.load %arg4[%c0_4, %c0_5] : memref<1x32xf32, #tpu.memory_space<vmem>>, vector<1x32xf32>
    %5 = vector.broadcast %4 : vector<1x32xf32> to vector<16x32xf32>
    %6 = arith.addf %3, %5 : vector<16x32xf32>
    %c0_6 = arith.constant 0 : index
    %c0_7 = arith.constant 0 : index
    %c0_8 = arith.constant 0 : index
    %7 = vector.load %arg5[%c0_6, %c0_7, %c0_8] : memref<1x16x32xbf16, #tpu.memory_space<vmem>>, vector<1x16x32xbf16>
    %8 = vector.shape_cast %7 : vector<1x16x32xbf16> to vector<16x32xbf16>
    %9 = arith.extf %8 : vector<16x32xbf16> to vector<16x32xf32>
    %10 = arith.addf %6, %9 : vector<16x32xf32>
    %cst_9 = arith.constant 0.000000e+00 : f32
    %11 = vector.broadcast %cst_9 : f32 to vector<16x32xf32>
    %12 = arith.maximumf %10, %11 : vector<16x32xf32>
    %13 = arith.truncf %12 : vector<16x32xf32> to vector<16x32xbf16>
    %c0_10 = arith.constant 0 : index
    %c0_11 = arith.constant 0 : index
    %c0_12 = arith.constant 0 : index
    %14 = vector.load %arg6[%c0_10, %c0_11, %c0_12] : memref<1x16x32xbf16, #tpu.memory_space<vmem>>, vector<1x16x32xbf16>
    %15 = vector.shape_cast %14 : vector<1x16x32xbf16> to vector<16x32xbf16>
    %16 = vector.shape_cast %13 : vector<16x32xbf16> to vector<1x16x32xbf16>
    tpu.vector_store %arg6[%c0_10, %c0_11, %c0_12], %16 {strides = array<i32>} : memref<1x16x32xbf16, #tpu.memory_space<vmem>>, vector<1x16x32xbf16>,
    return
  }
  func.func @transform_0(%arg0: i32, %arg1: i32) -> (i32, i32, i32) {
    %c0_i32 = arith.constant 0 : i32
    %c0_i32_0 = arith.constant 0 : i32
    %c0_i32_1 = arith.constant 0 : i32
    return %arg0, %c0_i32, %c0_i32_0 : i32, i32, i32
  }
  func.func @transform_1(%arg0: i32, %arg1: i32) -> (i32, i32) {
    %c0_i32 = arith.constant 0 : i32
    %c0_i32_0 = arith.constant 0 : i32
    return %c0_i32, %arg1 : i32, i32
  }
  func.func @transform_2(%arg0: i32, %arg1: i32) -> (i32, i32) {
    %c0_i32 = arith.constant 0 : i32
    %c0_i32_0 = arith.constant 0 : i32
    return %c0_i32, %arg1 : i32, i32
  }
  func.func @transform_3(%arg0: i32, %arg1: i32) -> (i32, i32, i32) {
    %c0_i32 = arith.constant 0 : i32
    %c0_i32_0 = arith.constant 0 : i32
    return %arg0, %c0_i32, %arg1 : i32, i32, i32
  }
  func.func @transform_4(%arg0: i32, %arg1: i32) -> (i32, i32, i32) {
    %c0_i32 = arith.constant 0 : i32
    %c0_i32_0 = arith.constant 0 : i32
    return %arg0, %c0_i32, %arg1 : i32, i32, i32
  }
}

module attributes {stable_mosaic.version = 11 : i64} {
  func.func @_conv_kernel(%arg0: i32, %arg1: i32, %arg2: memref<1x20x16xbf16, #tpu.memory_space<vmem>>, %arg3: memref<144x32xbf16, #tpu.memory_space<vmem>>, %arg4: memref<1x32xf32, #tpu.memory_space<vmem>>, %arg5: memref<1x8x32xbf16, #tpu.memory_space<vmem>>) attributes {dimension_semantics = [#tpu.dimension_semantics<parallel>, #tpu.dimension_semantics<parallel>], iteration_bounds = array<i64: 2, 1>, scalar_prefetch = 0 : i64, scratch_operands = 0 : i64, tpu.core_type = #tpu.core_type<tc>, window_params = [{transform_indices = @transform_0, window_bounds = array<i64: 1, 20, 16>}, {transform_indices = @transform_1, window_bounds = array<i64: 144, 32>}, {transform_indices = @transform_2, window_bounds = array<i64: 1, 32>}, {transform_indices = @transform_3, window_bounds = array<i64: 1, 8, 32>}]} {
    %c0 = arith.constant 0 : index
    %c0_0 = arith.constant 0 : index
    %c0_1 = arith.constant 0 : index
    %0 = vector.load %arg2[%c0, %c0_0, %c0_1] : memref<1x20x16xbf16, #tpu.memory_space<vmem>>, vector<1x8x16xbf16>
    %1 = vector.shape_cast %0 : vector<1x8x16xbf16> to vector<8x16xbf16>
    %c0_2 = arith.constant 0 : index
    %c0_3 = arith.constant 0 : index
    %2 = vector.load %arg3[%c0_2, %c0_3] : memref<144x32xbf16, #tpu.memory_space<vmem>>, vector<16x32xbf16>
    %cst = arith.constant dense<0.000000e+00> : vector<8x32xf32>
    %3 = tpu.matmul %1, %2, %cst {dimension_numbers = #tpu.dot_dimension_numbers<[1], [0], [0], [1], [0, 0, 1, 1], [], []>} : vector<8x16xbf16>, vector<16x32xbf16>, vector<8x32xf32> -> vector<8x32xf32>
    %c0_4 = arith.constant 0 : index
    %c1 = arith.constant 1 : index
    %c0_5 = arith.constant 0 : index
    %4 = vector.load %arg2[%c0_4, %c1, %c0_5] : memref<1x20x16xbf16, #tpu.memory_space<vmem>>, vector<1x8x16xbf16>
    %5 = vector.shape_cast %4 : vector<1x8x16xbf16> to vector<8x16xbf16>
    %c16 = arith.constant 16 : index
    %c0_6 = arith.constant 0 : index
    %6 = vector.load %arg3[%c16, %c0_6] : memref<144x32xbf16, #tpu.memory_space<vmem>>, vector<16x32xbf16>
    %cst_7 = arith.constant dense<0.000000e+00> : vector<8x32xf32>
    %7 = tpu.matmul %5, %6, %cst_7 {dimension_numbers = #tpu.dot_dimension_numbers<[1], [0], [0], [1], [0, 0, 1, 1], [], []>} : vector<8x16xbf16>, vector<16x32xbf16>, vector<8x32xf32> -> vector<8x32xf32>
    %8 = arith.addf %3, %7 : vector<8x32xf32>
    %c0_8 = arith.constant 0 : index
    %c2 = arith.constant 2 : index
    %c0_9 = arith.constant 0 : index
    %9 = vector.load %arg2[%c0_8, %c2, %c0_9] : memref<1x20x16xbf16, #tpu.memory_space<vmem>>, vector<1x8x16xbf16>
    %10 = vector.shape_cast %9 : vector<1x8x16xbf16> to vector<8x16xbf16>
    %c32 = arith.constant 32 : index
    %c0_10 = arith.constant 0 : index
    %11 = vector.load %arg3[%c32, %c0_10] : memref<144x32xbf16, #tpu.memory_space<vmem>>, vector<16x32xbf16>
    %cst_11 = arith.constant dense<0.000000e+00> : vector<8x32xf32>
    %12 = tpu.matmul %10, %11, %cst_11 {dimension_numbers = #tpu.dot_dimension_numbers<[1], [0], [0], [1], [0, 0, 1, 1], [], []>} : vector<8x16xbf16>, vector<16x32xbf16>, vector<8x32xf32> -> vector<8x32xf32>
    %13 = arith.addf %8, %12 : vector<8x32xf32>
    %c0_12 = arith.constant 0 : index
    %c4 = arith.constant 4 : index
    %c0_13 = arith.constant 0 : index
    %14 = vector.load %arg2[%c0_12, %c4, %c0_13] : memref<1x20x16xbf16, #tpu.memory_space<vmem>>, vector<1x8x16xbf16>
    %15 = vector.shape_cast %14 : vector<1x8x16xbf16> to vector<8x16xbf16>
    %c48 = arith.constant 48 : index
    %c0_14 = arith.constant 0 : index
    %16 = vector.load %arg3[%c48, %c0_14] : memref<144x32xbf16, #tpu.memory_space<vmem>>, vector<16x32xbf16>
    %cst_15 = arith.constant dense<0.000000e+00> : vector<8x32xf32>
    %17 = tpu.matmul %15, %16, %cst_15 {dimension_numbers = #tpu.dot_dimension_numbers<[1], [0], [0], [1], [0, 0, 1, 1], [], []>} : vector<8x16xbf16>, vector<16x32xbf16>, vector<8x32xf32> -> vector<8x32xf32>
    %18 = arith.addf %13, %17 : vector<8x32xf32>
    %c0_16 = arith.constant 0 : index
    %c5 = arith.constant 5 : index
    %c0_17 = arith.constant 0 : index
    %19 = vector.load %arg2[%c0_16, %c5, %c0_17] : memref<1x20x16xbf16, #tpu.memory_space<vmem>>, vector<1x8x16xbf16>
    %20 = vector.shape_cast %19 : vector<1x8x16xbf16> to vector<8x16xbf16>
    %c64 = arith.constant 64 : index
    %c0_18 = arith.constant 0 : index
    %21 = vector.load %arg3[%c64, %c0_18] : memref<144x32xbf16, #tpu.memory_space<vmem>>, vector<16x32xbf16>
    %cst_19 = arith.constant dense<0.000000e+00> : vector<8x32xf32>
    %22 = tpu.matmul %20, %21, %cst_19 {dimension_numbers = #tpu.dot_dimension_numbers<[1], [0], [0], [1], [0, 0, 1, 1], [], []>} : vector<8x16xbf16>, vector<16x32xbf16>, vector<8x32xf32> -> vector<8x32xf32>
    %23 = arith.addf %18, %22 : vector<8x32xf32>
    %c0_20 = arith.constant 0 : index
    %c6 = arith.constant 6 : index
    %c0_21 = arith.constant 0 : index
    %24 = vector.load %arg2[%c0_20, %c6, %c0_21] : memref<1x20x16xbf16, #tpu.memory_space<vmem>>, vector<1x8x16xbf16>
    %25 = vector.shape_cast %24 : vector<1x8x16xbf16> to vector<8x16xbf16>
    %c80 = arith.constant 80 : index
    %c0_22 = arith.constant 0 : index
    %26 = vector.load %arg3[%c80, %c0_22] : memref<144x32xbf16, #tpu.memory_space<vmem>>, vector<16x32xbf16>
    %cst_23 = arith.constant dense<0.000000e+00> : vector<8x32xf32>
    %27 = tpu.matmul %25, %26, %cst_23 {dimension_numbers = #tpu.dot_dimension_numbers<[1], [0], [0], [1], [0, 0, 1, 1], [], []>} : vector<8x16xbf16>, vector<16x32xbf16>, vector<8x32xf32> -> vector<8x32xf32>
    %28 = arith.addf %23, %27 : vector<8x32xf32>
    %c0_24 = arith.constant 0 : index
    %c8 = arith.constant 8 : index
    %c0_25 = arith.constant 0 : index
    %29 = vector.load %arg2[%c0_24, %c8, %c0_25] : memref<1x20x16xbf16, #tpu.memory_space<vmem>>, vector<1x8x16xbf16>
    %30 = vector.shape_cast %29 : vector<1x8x16xbf16> to vector<8x16xbf16>
    %c96 = arith.constant 96 : index
    %c0_26 = arith.constant 0 : index
    %31 = vector.load %arg3[%c96, %c0_26] : memref<144x32xbf16, #tpu.memory_space<vmem>>, vector<16x32xbf16>
    %cst_27 = arith.constant dense<0.000000e+00> : vector<8x32xf32>
    %32 = tpu.matmul %30, %31, %cst_27 {dimension_numbers = #tpu.dot_dimension_numbers<[1], [0], [0], [1], [0, 0, 1, 1], [], []>} : vector<8x16xbf16>, vector<16x32xbf16>, vector<8x32xf32> -> vector<8x32xf32>
    %33 = arith.addf %28, %32 : vector<8x32xf32>
    %c0_28 = arith.constant 0 : index
    %c9 = arith.constant 9 : index
    %c0_29 = arith.constant 0 : index
    %34 = vector.load %arg2[%c0_28, %c9, %c0_29] : memref<1x20x16xbf16, #tpu.memory_space<vmem>>, vector<1x8x16xbf16>
    %35 = vector.shape_cast %34 : vector<1x8x16xbf16> to vector<8x16xbf16>
    %c112 = arith.constant 112 : index
    %c0_30 = arith.constant 0 : index
    %36 = vector.load %arg3[%c112, %c0_30] : memref<144x32xbf16, #tpu.memory_space<vmem>>, vector<16x32xbf16>
    %cst_31 = arith.constant dense<0.000000e+00> : vector<8x32xf32>
    %37 = tpu.matmul %35, %36, %cst_31 {dimension_numbers = #tpu.dot_dimension_numbers<[1], [0], [0], [1], [0, 0, 1, 1], [], []>} : vector<8x16xbf16>, vector<16x32xbf16>, vector<8x32xf32> -> vector<8x32xf32>
    %38 = arith.addf %33, %37 : vector<8x32xf32>
    %c0_32 = arith.constant 0 : index
    %c10 = arith.constant 10 : index
    %c0_33 = arith.constant 0 : index
    %39 = vector.load %arg2[%c0_32, %c10, %c0_33] : memref<1x20x16xbf16, #tpu.memory_space<vmem>>, vector<1x8x16xbf16>
    %40 = vector.shape_cast %39 : vector<1x8x16xbf16> to vector<8x16xbf16>
    %c128 = arith.constant 128 : index
    %c0_34 = arith.constant 0 : index
    %41 = vector.load %arg3[%c128, %c0_34] : memref<144x32xbf16, #tpu.memory_space<vmem>>, vector<16x32xbf16>
    %cst_35 = arith.constant dense<0.000000e+00> : vector<8x32xf32>
    %42 = tpu.matmul %40, %41, %cst_35 {dimension_numbers = #tpu.dot_dimension_numbers<[1], [0], [0], [1], [0, 0, 1, 1], [], []>} : vector<8x16xbf16>, vector<16x32xbf16>, vector<8x32xf32> -> vector<8x32xf32>
    %43 = arith.addf %38, %42 : vector<8x32xf32>
    %c0_36 = arith.constant 0 : index
    %c0_37 = arith.constant 0 : index
    %44 = vector.load %arg4[%c0_36, %c0_37] : memref<1x32xf32, #tpu.memory_space<vmem>>, vector<1x32xf32>
    %45 = vector.broadcast %44 : vector<1x32xf32> to vector<8x32xf32>
    %46 = arith.addf %43, %45 : vector<8x32xf32>
    %47 = arith.truncf %46 : vector<8x32xf32> to vector<8x32xbf16>
    %c0_38 = arith.constant 0 : index
    %c0_39 = arith.constant 0 : index
    %c0_40 = arith.constant 0 : index
    %48 = vector.load %arg5[%c0_38, %c0_39, %c0_40] : memref<1x8x32xbf16, #tpu.memory_space<vmem>>, vector<1x8x32xbf16>
    %49 = vector.shape_cast %48 : vector<1x8x32xbf16> to vector<8x32xbf16>
    %50 = vector.shape_cast %47 : vector<8x32xbf16> to vector<1x8x32xbf16>
    tpu.vector_store %arg5[%c0_38, %c0_39, %c0_40], %50 {strides = array<i32>} : memref<1x8x32xbf16, #tpu.memory_space<vmem>>, vector<1x8x32xbf16>,
    return
  }
  func.func @transform_0(%arg0: i32, %arg1: i32) -> (i32, i32, i32) {
    %c0_i32 = arith.constant 0 : i32
    %c0_i32_0 = arith.constant 0 : i32
    %c0_i32_1 = arith.constant 0 : i32
    return %arg0, %c0_i32, %c0_i32_0 : i32, i32, i32
  }
  func.func @transform_1(%arg0: i32, %arg1: i32) -> (i32, i32) {
    %c0_i32 = arith.constant 0 : i32
    %c0_i32_0 = arith.constant 0 : i32
    return %c0_i32, %arg1 : i32, i32
  }
  func.func @transform_2(%arg0: i32, %arg1: i32) -> (i32, i32) {
    %c0_i32 = arith.constant 0 : i32
    %c0_i32_0 = arith.constant 0 : i32
    return %c0_i32, %arg1 : i32, i32
  }
  func.func @transform_3(%arg0: i32, %arg1: i32) -> (i32, i32, i32) {
    %c0_i32 = arith.constant 0 : i32
    %c0_i32_0 = arith.constant 0 : i32
    return %arg0, %c0_i32, %arg1 : i32, i32, i32
  }
}

module attributes {stable_mosaic.version = 11 : i64} {
  func.func @_conv_kernel(%arg0: i32, %arg1: i32, %arg2: memref<1x12x128xbf16, #tpu.memory_space<vmem>>, %arg3: memref<512x16xbf16, #tpu.memory_space<vmem>>, %arg4: memref<1x16xf32, #tpu.memory_space<vmem>>, %arg5: memref<1x6x16xbf16, #tpu.memory_space<vmem>>) attributes {dimension_semantics = [#tpu.dimension_semantics<parallel>, #tpu.dimension_semantics<parallel>], iteration_bounds = array<i64: 2, 1>, scalar_prefetch = 0 : i64, scratch_operands = 0 : i64, tpu.core_type = #tpu.core_type<tc>, window_params = [{transform_indices = @transform_0, window_bounds = array<i64: 1, 12, 128>}, {transform_indices = @transform_1, window_bounds = array<i64: 512, 16>}, {transform_indices = @transform_2, window_bounds = array<i64: 1, 16>}, {transform_indices = @transform_3, window_bounds = array<i64: 1, 6, 16>}]} {
    %c0 = arith.constant 0 : index
    %c0_0 = arith.constant 0 : index
    %c0_1 = arith.constant 0 : index
    %0 = vector.load %arg2[%c0, %c0_0, %c0_1] : memref<1x12x128xbf16, #tpu.memory_space<vmem>>, vector<1x6x128xbf16>
    %1 = vector.shape_cast %0 : vector<1x6x128xbf16> to vector<6x128xbf16>
    %c0_2 = arith.constant 0 : index
    %c0_3 = arith.constant 0 : index
    %2 = vector.load %arg3[%c0_2, %c0_3] : memref<512x16xbf16, #tpu.memory_space<vmem>>, vector<128x16xbf16>
    %cst = arith.constant dense<0.000000e+00> : vector<6x16xf32>
    %3 = tpu.matmul %1, %2, %cst {dimension_numbers = #tpu.dot_dimension_numbers<[1], [0], [0], [1], [0, 0, 1, 1], [], []>} : vector<6x128xbf16>, vector<128x16xbf16>, vector<6x16xf32> -> vector<6x16xf32>
    %c0_4 = arith.constant 0 : index
    %c1 = arith.constant 1 : index
    %c0_5 = arith.constant 0 : index
    %4 = vector.load %arg2[%c0_4, %c1, %c0_5] : memref<1x12x128xbf16, #tpu.memory_space<vmem>>, vector<1x6x128xbf16>
    %5 = vector.shape_cast %4 : vector<1x6x128xbf16> to vector<6x128xbf16>
    %c128 = arith.constant 128 : index
    %c0_6 = arith.constant 0 : index
    %6 = vector.load %arg3[%c128, %c0_6] : memref<512x16xbf16, #tpu.memory_space<vmem>>, vector<128x16xbf16>
    %cst_7 = arith.constant dense<0.000000e+00> : vector<6x16xf32>
    %7 = tpu.matmul %5, %6, %cst_7 {dimension_numbers = #tpu.dot_dimension_numbers<[1], [0], [0], [1], [0, 0, 1, 1], [], []>} : vector<6x128xbf16>, vector<128x16xbf16>, vector<6x16xf32> -> vector<6x16xf32>
    %8 = arith.addf %3, %7 : vector<6x16xf32>
    %c0_8 = arith.constant 0 : index
    %c3 = arith.constant 3 : index
    %c0_9 = arith.constant 0 : index
    %9 = vector.load %arg2[%c0_8, %c3, %c0_9] : memref<1x12x128xbf16, #tpu.memory_space<vmem>>, vector<1x6x128xbf16>
    %10 = vector.shape_cast %9 : vector<1x6x128xbf16> to vector<6x128xbf16>
    %c256 = arith.constant 256 : index
    %c0_10 = arith.constant 0 : index
    %11 = vector.load %arg3[%c256, %c0_10] : memref<512x16xbf16, #tpu.memory_space<vmem>>, vector<128x16xbf16>
    %cst_11 = arith.constant dense<0.000000e+00> : vector<6x16xf32>
    %12 = tpu.matmul %10, %11, %cst_11 {dimension_numbers = #tpu.dot_dimension_numbers<[1], [0], [0], [1], [0, 0, 1, 1], [], []>} : vector<6x128xbf16>, vector<128x16xbf16>, vector<6x16xf32> -> vector<6x16xf32>
    %13 = arith.addf %8, %12 : vector<6x16xf32>
    %c0_12 = arith.constant 0 : index
    %c4 = arith.constant 4 : index
    %c0_13 = arith.constant 0 : index
    %14 = vector.load %arg2[%c0_12, %c4, %c0_13] : memref<1x12x128xbf16, #tpu.memory_space<vmem>>, vector<1x6x128xbf16>
    %15 = vector.shape_cast %14 : vector<1x6x128xbf16> to vector<6x128xbf16>
    %c384 = arith.constant 384 : index
    %c0_14 = arith.constant 0 : index
    %16 = vector.load %arg3[%c384, %c0_14] : memref<512x16xbf16, #tpu.memory_space<vmem>>, vector<128x16xbf16>
    %cst_15 = arith.constant dense<0.000000e+00> : vector<6x16xf32>
    %17 = tpu.matmul %15, %16, %cst_15 {dimension_numbers = #tpu.dot_dimension_numbers<[1], [0], [0], [1], [0, 0, 1, 1], [], []>} : vector<6x128xbf16>, vector<128x16xbf16>, vector<6x16xf32> -> vector<6x16xf32>
    %18 = arith.addf %13, %17 : vector<6x16xf32>
    %c0_16 = arith.constant 0 : index
    %c0_17 = arith.constant 0 : index
    %19 = vector.load %arg4[%c0_16, %c0_17] : memref<1x16xf32, #tpu.memory_space<vmem>>, vector<1x16xf32>
    %20 = vector.broadcast %19 : vector<1x16xf32> to vector<6x16xf32>
    %21 = arith.addf %18, %20 : vector<6x16xf32>
    %cst_18 = arith.constant 0.000000e+00 : f32
    %22 = vector.broadcast %cst_18 : f32 to vector<6x16xf32>
    %23 = arith.maximumf %21, %22 : vector<6x16xf32>
    %24 = arith.truncf %23 : vector<6x16xf32> to vector<6x16xbf16>
    %c0_19 = arith.constant 0 : index
    %c0_20 = arith.constant 0 : index
    %c0_21 = arith.constant 0 : index
    %25 = vector.load %arg5[%c0_19, %c0_20, %c0_21] : memref<1x6x16xbf16, #tpu.memory_space<vmem>>, vector<1x6x16xbf16>
    %26 = vector.shape_cast %25 : vector<1x6x16xbf16> to vector<6x16xbf16>
    %27 = vector.shape_cast %24 : vector<6x16xbf16> to vector<1x6x16xbf16>
    tpu.vector_store %arg5[%c0_19, %c0_20, %c0_21], %27 {strides = array<i32>} : memref<1x6x16xbf16, #tpu.memory_space<vmem>>, vector<1x6x16xbf16>,
    return
  }
  func.func @transform_0(%arg0: i32, %arg1: i32) -> (i32, i32, i32) {
    %c0_i32 = arith.constant 0 : i32
    %c0_i32_0 = arith.constant 0 : i32
    %c0_i32_1 = arith.constant 0 : i32
    return %arg0, %c0_i32, %c0_i32_0 : i32, i32, i32
  }
  func.func @transform_1(%arg0: i32, %arg1: i32) -> (i32, i32) {
    %c0_i32 = arith.constant 0 : i32
    %c0_i32_0 = arith.constant 0 : i32
    return %c0_i32, %arg1 : i32, i32
  }
  func.func @transform_2(%arg0: i32, %arg1: i32) -> (i32, i32) {
    %c0_i32 = arith.constant 0 : i32
    %c0_i32_0 = arith.constant 0 : i32
    return %c0_i32, %arg1 : i32, i32
  }
  func.func @transform_3(%arg0: i32, %arg1: i32) -> (i32, i32, i32) {
    %c0_i32 = arith.constant 0 : i32
    %c0_i32_0 = arith.constant 0 : i32
    return %arg0, %c0_i32, %arg1 : i32, i32, i32
  }
}

module attributes {stable_mosaic.version = 11 : i64} {
  func.func @_conv_kernel(%arg0: i32, %arg1: i32, %arg2: memref<1x4x16xbf16, #tpu.memory_space<vmem>>, %arg3: memref<16x32xbf16, #tpu.memory_space<vmem>>, %arg4: memref<1x32xf32, #tpu.memory_space<vmem>>, %arg5: memref<1x4x32xbf16, #tpu.memory_space<vmem>>, %arg6: memref<1x4x32xbf16, #tpu.memory_space<vmem>>) attributes {dimension_semantics = [#tpu.dimension_semantics<parallel>, #tpu.dimension_semantics<parallel>], iteration_bounds = array<i64: 2, 1>, scalar_prefetch = 0 : i64, scratch_operands = 0 : i64, tpu.core_type = #tpu.core_type<tc>, window_params = [{transform_indices = @transform_0, window_bounds = array<i64: 1, 4, 16>}, {transform_indices = @transform_1, window_bounds = array<i64: 16, 32>}, {transform_indices = @transform_2, window_bounds = array<i64: 1, 32>}, {transform_indices = @transform_3, window_bounds = array<i64: 1, 4, 32>}, {transform_indices = @transform_4, window_bounds = array<i64: 1, 4, 32>}]} {
    %c0 = arith.constant 0 : index
    %c0_0 = arith.constant 0 : index
    %c0_1 = arith.constant 0 : index
    %0 = vector.load %arg2[%c0, %c0_0, %c0_1] : memref<1x4x16xbf16, #tpu.memory_space<vmem>>, vector<1x4x16xbf16>
    %1 = vector.shape_cast %0 : vector<1x4x16xbf16> to vector<4x16xbf16>
    %c0_2 = arith.constant 0 : index
    %c0_3 = arith.constant 0 : index
    %2 = vector.load %arg3[%c0_2, %c0_3] : memref<16x32xbf16, #tpu.memory_space<vmem>>, vector<16x32xbf16>
    %cst = arith.constant dense<0.000000e+00> : vector<4x32xf32>
    %3 = tpu.matmul %1, %2, %cst {dimension_numbers = #tpu.dot_dimension_numbers<[1], [0], [0], [1], [0, 0, 1, 1], [], []>} : vector<4x16xbf16>, vector<16x32xbf16>, vector<4x32xf32> -> vector<4x32xf32>
    %c0_4 = arith.constant 0 : index
    %c0_5 = arith.constant 0 : index
    %4 = vector.load %arg4[%c0_4, %c0_5] : memref<1x32xf32, #tpu.memory_space<vmem>>, vector<1x32xf32>
    %5 = vector.broadcast %4 : vector<1x32xf32> to vector<4x32xf32>
    %6 = arith.addf %3, %5 : vector<4x32xf32>
    %c0_6 = arith.constant 0 : index
    %c0_7 = arith.constant 0 : index
    %c0_8 = arith.constant 0 : index
    %7 = vector.load %arg5[%c0_6, %c0_7, %c0_8] : memref<1x4x32xbf16, #tpu.memory_space<vmem>>, vector<1x4x32xbf16>
    %8 = vector.shape_cast %7 : vector<1x4x32xbf16> to vector<4x32xbf16>
    %9 = arith.extf %8 : vector<4x32xbf16> to vector<4x32xf32>
    %10 = arith.addf %6, %9 : vector<4x32xf32>
    %cst_9 = arith.constant 0.000000e+00 : f32
    %11 = vector.broadcast %cst_9 : f32 to vector<4x32xf32>
    %12 = arith.maximumf %10, %11 : vector<4x32xf32>
    %13 = arith.truncf %12 : vector<4x32xf32> to vector<4x32xbf16>
    %c0_10 = arith.constant 0 : index
    %c0_11 = arith.constant 0 : index
    %c0_12 = arith.constant 0 : index
    %14 = vector.load %arg6[%c0_10, %c0_11, %c0_12] : memref<1x4x32xbf16, #tpu.memory_space<vmem>>, vector<1x4x32xbf16>
    %15 = vector.shape_cast %14 : vector<1x4x32xbf16> to vector<4x32xbf16>
    %16 = vector.shape_cast %13 : vector<4x32xbf16> to vector<1x4x32xbf16>
    tpu.vector_store %arg6[%c0_10, %c0_11, %c0_12], %16 {strides = array<i32>} : memref<1x4x32xbf16, #tpu.memory_space<vmem>>, vector<1x4x32xbf16>,
    return
  }
  func.func @transform_0(%arg0: i32, %arg1: i32) -> (i32, i32, i32) {
    %c0_i32 = arith.constant 0 : i32
    %c0_i32_0 = arith.constant 0 : i32
    %c0_i32_1 = arith.constant 0 : i32
    return %arg0, %c0_i32, %c0_i32_0 : i32, i32, i32
  }
  func.func @transform_1(%arg0: i32, %arg1: i32) -> (i32, i32) {
    %c0_i32 = arith.constant 0 : i32
    %c0_i32_0 = arith.constant 0 : i32
    return %c0_i32, %arg1 : i32, i32
  }
  func.func @transform_2(%arg0: i32, %arg1: i32) -> (i32, i32) {
    %c0_i32 = arith.constant 0 : i32
    %c0_i32_0 = arith.constant 0 : i32
    return %c0_i32, %arg1 : i32, i32
  }
  func.func @transform_3(%arg0: i32, %arg1: i32) -> (i32, i32, i32) {
    %c0_i32 = arith.constant 0 : i32
    %c0_i32_0 = arith.constant 0 : i32
    return %arg0, %c0_i32, %arg1 : i32, i32, i32
  }
  func.func @transform_4(%arg0: i32, %arg1: i32) -> (i32, i32, i32) {
    %c0_i32 = arith.constant 0 : i32
    %c0_i32_0 = arith.constant 0 : i32
    return %arg0, %c0_i32, %arg1 : i32, i32, i32
  }
}

module attributes {stable_mosaic.version = 11 : i64} {
  func.func @_conv_kernel(%arg0: i32, %arg1: i32, %arg2: memref<1x20x32xbf16, #tpu.memory_space<vmem>>, %arg3: memref<288x16xbf16, #tpu.memory_space<vmem>>, %arg4: memref<1x16xf32, #tpu.memory_space<vmem>>, %arg5: memref<1x8x16xbf16, #tpu.memory_space<vmem>>) attributes {dimension_semantics = [#tpu.dimension_semantics<parallel>, #tpu.dimension_semantics<parallel>], iteration_bounds = array<i64: 2, 1>, scalar_prefetch = 0 : i64, scratch_operands = 0 : i64, tpu.core_type = #tpu.core_type<tc>, window_params = [{transform_indices = @transform_0, window_bounds = array<i64: 1, 20, 32>}, {transform_indices = @transform_1, window_bounds = array<i64: 288, 16>}, {transform_indices = @transform_2, window_bounds = array<i64: 1, 16>}, {transform_indices = @transform_3, window_bounds = array<i64: 1, 8, 16>}]} {
    %c0 = arith.constant 0 : index
    %c0_0 = arith.constant 0 : index
    %c0_1 = arith.constant 0 : index
    %0 = vector.load %arg2[%c0, %c0_0, %c0_1] : memref<1x20x32xbf16, #tpu.memory_space<vmem>>, vector<1x8x32xbf16>
    %1 = vector.shape_cast %0 : vector<1x8x32xbf16> to vector<8x32xbf16>
    %cst = arith.constant 0.000000e+00 : bf16
    %2 = vector.broadcast %cst : bf16 to vector<8x32xbf16>
    %3 = arith.maximumf %1, %2 : vector<8x32xbf16>
    %c0_2 = arith.constant 0 : index
    %c0_3 = arith.constant 0 : index
    %4 = vector.load %arg3[%c0_2, %c0_3] : memref<288x16xbf16, #tpu.memory_space<vmem>>, vector<32x16xbf16>
    %cst_4 = arith.constant dense<0.000000e+00> : vector<8x16xf32>
    %5 = tpu.matmul %3, %4, %cst_4 {dimension_numbers = #tpu.dot_dimension_numbers<[1], [0], [0], [1], [0, 0, 1, 1], [], []>} : vector<8x32xbf16>, vector<32x16xbf16>, vector<8x16xf32> -> vector<8x16xf32>
    %c0_5 = arith.constant 0 : index
    %c1 = arith.constant 1 : index
    %c0_6 = arith.constant 0 : index
    %6 = vector.load %arg2[%c0_5, %c1, %c0_6] : memref<1x20x32xbf16, #tpu.memory_space<vmem>>, vector<1x8x32xbf16>
    %7 = vector.shape_cast %6 : vector<1x8x32xbf16> to vector<8x32xbf16>
    %cst_7 = arith.constant 0.000000e+00 : bf16
    %8 = vector.broadcast %cst_7 : bf16 to vector<8x32xbf16>
    %9 = arith.maximumf %7, %8 : vector<8x32xbf16>
    %c32 = arith.constant 32 : index
    %c0_8 = arith.constant 0 : index
    %10 = vector.load %arg3[%c32, %c0_8] : memref<288x16xbf16, #tpu.memory_space<vmem>>, vector<32x16xbf16>
    %cst_9 = arith.constant dense<0.000000e+00> : vector<8x16xf32>
    %11 = tpu.matmul %9, %10, %cst_9 {dimension_numbers = #tpu.dot_dimension_numbers<[1], [0], [0], [1], [0, 0, 1, 1], [], []>} : vector<8x32xbf16>, vector<32x16xbf16>, vector<8x16xf32> -> vector<8x16xf32>
    %12 = arith.addf %5, %11 : vector<8x16xf32>
    %c0_10 = arith.constant 0 : index
    %c2 = arith.constant 2 : index
    %c0_11 = arith.constant 0 : index
    %13 = vector.load %arg2[%c0_10, %c2, %c0_11] : memref<1x20x32xbf16, #tpu.memory_space<vmem>>, vector<1x8x32xbf16>
    %14 = vector.shape_cast %13 : vector<1x8x32xbf16> to vector<8x32xbf16>
    %cst_12 = arith.constant 0.000000e+00 : bf16
    %15 = vector.broadcast %cst_12 : bf16 to vector<8x32xbf16>
    %16 = arith.maximumf %14, %15 : vector<8x32xbf16>
    %c64 = arith.constant 64 : index
    %c0_13 = arith.constant 0 : index
    %17 = vector.load %arg3[%c64, %c0_13] : memref<288x16xbf16, #tpu.memory_space<vmem>>, vector<32x16xbf16>
    %cst_14 = arith.constant dense<0.000000e+00> : vector<8x16xf32>
    %18 = tpu.matmul %16, %17, %cst_14 {dimension_numbers = #tpu.dot_dimension_numbers<[1], [0], [0], [1], [0, 0, 1, 1], [], []>} : vector<8x32xbf16>, vector<32x16xbf16>, vector<8x16xf32> -> vector<8x16xf32>
    %19 = arith.addf %12, %18 : vector<8x16xf32>
    %c0_15 = arith.constant 0 : index
    %c4 = arith.constant 4 : index
    %c0_16 = arith.constant 0 : index
    %20 = vector.load %arg2[%c0_15, %c4, %c0_16] : memref<1x20x32xbf16, #tpu.memory_space<vmem>>, vector<1x8x32xbf16>
    %21 = vector.shape_cast %20 : vector<1x8x32xbf16> to vector<8x32xbf16>
    %cst_17 = arith.constant 0.000000e+00 : bf16
    %22 = vector.broadcast %cst_17 : bf16 to vector<8x32xbf16>
    %23 = arith.maximumf %21, %22 : vector<8x32xbf16>
    %c96 = arith.constant 96 : index
    %c0_18 = arith.constant 0 : index
    %24 = vector.load %arg3[%c96, %c0_18] : memref<288x16xbf16, #tpu.memory_space<vmem>>, vector<32x16xbf16>
    %cst_19 = arith.constant dense<0.000000e+00> : vector<8x16xf32>
    %25 = tpu.matmul %23, %24, %cst_19 {dimension_numbers = #tpu.dot_dimension_numbers<[1], [0], [0], [1], [0, 0, 1, 1], [], []>} : vector<8x32xbf16>, vector<32x16xbf16>, vector<8x16xf32> -> vector<8x16xf32>
    %26 = arith.addf %19, %25 : vector<8x16xf32>
    %c0_20 = arith.constant 0 : index
    %c5 = arith.constant 5 : index
    %c0_21 = arith.constant 0 : index
    %27 = vector.load %arg2[%c0_20, %c5, %c0_21] : memref<1x20x32xbf16, #tpu.memory_space<vmem>>, vector<1x8x32xbf16>
    %28 = vector.shape_cast %27 : vector<1x8x32xbf16> to vector<8x32xbf16>
    %cst_22 = arith.constant 0.000000e+00 : bf16
    %29 = vector.broadcast %cst_22 : bf16 to vector<8x32xbf16>
    %30 = arith.maximumf %28, %29 : vector<8x32xbf16>
    %c128 = arith.constant 128 : index
    %c0_23 = arith.constant 0 : index
    %31 = vector.load %arg3[%c128, %c0_23] : memref<288x16xbf16, #tpu.memory_space<vmem>>, vector<32x16xbf16>
    %cst_24 = arith.constant dense<0.000000e+00> : vector<8x16xf32>
    %32 = tpu.matmul %30, %31, %cst_24 {dimension_numbers = #tpu.dot_dimension_numbers<[1], [0], [0], [1], [0, 0, 1, 1], [], []>} : vector<8x32xbf16>, vector<32x16xbf16>, vector<8x16xf32> -> vector<8x16xf32>
    %33 = arith.addf %26, %32 : vector<8x16xf32>
    %c0_25 = arith.constant 0 : index
    %c6 = arith.constant 6 : index
    %c0_26 = arith.constant 0 : index
    %34 = vector.load %arg2[%c0_25, %c6, %c0_26] : memref<1x20x32xbf16, #tpu.memory_space<vmem>>, vector<1x8x32xbf16>
    %35 = vector.shape_cast %34 : vector<1x8x32xbf16> to vector<8x32xbf16>
    %cst_27 = arith.constant 0.000000e+00 : bf16
    %36 = vector.broadcast %cst_27 : bf16 to vector<8x32xbf16>
    %37 = arith.maximumf %35, %36 : vector<8x32xbf16>
    %c160 = arith.constant 160 : index
    %c0_28 = arith.constant 0 : index
    %38 = vector.load %arg3[%c160, %c0_28] : memref<288x16xbf16, #tpu.memory_space<vmem>>, vector<32x16xbf16>
    %cst_29 = arith.constant dense<0.000000e+00> : vector<8x16xf32>
    %39 = tpu.matmul %37, %38, %cst_29 {dimension_numbers = #tpu.dot_dimension_numbers<[1], [0], [0], [1], [0, 0, 1, 1], [], []>} : vector<8x32xbf16>, vector<32x16xbf16>, vector<8x16xf32> -> vector<8x16xf32>
    %40 = arith.addf %33, %39 : vector<8x16xf32>
    %c0_30 = arith.constant 0 : index
    %c8 = arith.constant 8 : index
    %c0_31 = arith.constant 0 : index
    %41 = vector.load %arg2[%c0_30, %c8, %c0_31] : memref<1x20x32xbf16, #tpu.memory_space<vmem>>, vector<1x8x32xbf16>
    %42 = vector.shape_cast %41 : vector<1x8x32xbf16> to vector<8x32xbf16>
    %cst_32 = arith.constant 0.000000e+00 : bf16
    %43 = vector.broadcast %cst_32 : bf16 to vector<8x32xbf16>
    %44 = arith.maximumf %42, %43 : vector<8x32xbf16>
    %c192 = arith.constant 192 : index
    %c0_33 = arith.constant 0 : index
    %45 = vector.load %arg3[%c192, %c0_33] : memref<288x16xbf16, #tpu.memory_space<vmem>>, vector<32x16xbf16>
    %cst_34 = arith.constant dense<0.000000e+00> : vector<8x16xf32>
    %46 = tpu.matmul %44, %45, %cst_34 {dimension_numbers = #tpu.dot_dimension_numbers<[1], [0], [0], [1], [0, 0, 1, 1], [], []>} : vector<8x32xbf16>, vector<32x16xbf16>, vector<8x16xf32> -> vector<8x16xf32>
    %47 = arith.addf %40, %46 : vector<8x16xf32>
    %c0_35 = arith.constant 0 : index
    %c9 = arith.constant 9 : index
    %c0_36 = arith.constant 0 : index
    %48 = vector.load %arg2[%c0_35, %c9, %c0_36] : memref<1x20x32xbf16, #tpu.memory_space<vmem>>, vector<1x8x32xbf16>
    %49 = vector.shape_cast %48 : vector<1x8x32xbf16> to vector<8x32xbf16>
    %cst_37 = arith.constant 0.000000e+00 : bf16
    %50 = vector.broadcast %cst_37 : bf16 to vector<8x32xbf16>
    %51 = arith.maximumf %49, %50 : vector<8x32xbf16>
    %c224 = arith.constant 224 : index
    %c0_38 = arith.constant 0 : index
    %52 = vector.load %arg3[%c224, %c0_38] : memref<288x16xbf16, #tpu.memory_space<vmem>>, vector<32x16xbf16>
    %cst_39 = arith.constant dense<0.000000e+00> : vector<8x16xf32>
    %53 = tpu.matmul %51, %52, %cst_39 {dimension_numbers = #tpu.dot_dimension_numbers<[1], [0], [0], [1], [0, 0, 1, 1], [], []>} : vector<8x32xbf16>, vector<32x16xbf16>, vector<8x16xf32> -> vector<8x16xf32>
    %54 = arith.addf %47, %53 : vector<8x16xf32>
    %c0_40 = arith.constant 0 : index
    %c10 = arith.constant 10 : index
    %c0_41 = arith.constant 0 : index
    %55 = vector.load %arg2[%c0_40, %c10, %c0_41] : memref<1x20x32xbf16, #tpu.memory_space<vmem>>, vector<1x8x32xbf16>
    %56 = vector.shape_cast %55 : vector<1x8x32xbf16> to vector<8x32xbf16>
    %cst_42 = arith.constant 0.000000e+00 : bf16
    %57 = vector.broadcast %cst_42 : bf16 to vector<8x32xbf16>
    %58 = arith.maximumf %56, %57 : vector<8x32xbf16>
    %c256 = arith.constant 256 : index
    %c0_43 = arith.constant 0 : index
    %59 = vector.load %arg3[%c256, %c0_43] : memref<288x16xbf16, #tpu.memory_space<vmem>>, vector<32x16xbf16>
    %cst_44 = arith.constant dense<0.000000e+00> : vector<8x16xf32>
    %60 = tpu.matmul %58, %59, %cst_44 {dimension_numbers = #tpu.dot_dimension_numbers<[1], [0], [0], [1], [0, 0, 1, 1], [], []>} : vector<8x32xbf16>, vector<32x16xbf16>, vector<8x16xf32> -> vector<8x16xf32>
    %61 = arith.addf %54, %60 : vector<8x16xf32>
    %c0_45 = arith.constant 0 : index
    %c0_46 = arith.constant 0 : index
    %62 = vector.load %arg4[%c0_45, %c0_46] : memref<1x16xf32, #tpu.memory_space<vmem>>, vector<1x16xf32>
    %63 = vector.broadcast %62 : vector<1x16xf32> to vector<8x16xf32>
    %64 = arith.addf %61, %63 : vector<8x16xf32>
    %cst_47 = arith.constant 0.000000e+00 : f32
    %65 = vector.broadcast %cst_47 : f32 to vector<8x16xf32>
    %66 = arith.maximumf %64, %65 : vector<8x16xf32>
    %67 = arith.truncf %66 : vector<8x16xf32> to vector<8x16xbf16>
    %c0_48 = arith.constant 0 : index
    %c0_49 = arith.constant 0 : index
    %c0_50 = arith.constant 0 : index
    %68 = vector.load %arg5[%c0_48, %c0_49, %c0_50] : memref<1x8x16xbf16, #tpu.memory_space<vmem>>, vector<1x8x16xbf16>
    %69 = vector.shape_cast %68 : vector<1x8x16xbf16> to vector<8x16xbf16>
    %70 = vector.shape_cast %67 : vector<8x16xbf16> to vector<1x8x16xbf16>
    tpu.vector_store %arg5[%c0_48, %c0_49, %c0_50], %70 {strides = array<i32>} : memref<1x8x16xbf16, #tpu.memory_space<vmem>>, vector<1x8x16xbf16>,
    return
  }
  func.func @transform_0(%arg0: i32, %arg1: i32) -> (i32, i32, i32) {
    %c0_i32 = arith.constant 0 : i32
    %c0_i32_0 = arith.constant 0 : i32
    %c0_i32_1 = arith.constant 0 : i32
    return %arg0, %c0_i32, %c0_i32_0 : i32, i32, i32
  }
  func.func @transform_1(%arg0: i32, %arg1: i32) -> (i32, i32) {
    %c0_i32 = arith.constant 0 : i32
    %c0_i32_0 = arith.constant 0 : i32
    return %c0_i32, %arg1 : i32, i32
  }
  func.func @transform_2(%arg0: i32, %arg1: i32) -> (i32, i32) {
    %c0_i32 = arith.constant 0 : i32
    %c0_i32_0 = arith.constant 0 : i32
    return %c0_i32, %arg1 : i32, i32
  }
  func.func @transform_3(%arg0: i32, %arg1: i32) -> (i32, i32, i32) {
    %c0_i32 = arith.constant 0 : i32
    %c0_i32_0 = arith.constant 0 : i32
    return %arg0, %c0_i32, %arg1 : i32, i32, i32
  }
}

module attributes {stable_mosaic.version = 11 : i64} {
  func.func @_conv_kernel(%arg0: i32, %arg1: i32, %arg2: memref<1x4x32xbf16, #tpu.memory_space<vmem>>, %arg3: memref<32x16xbf16, #tpu.memory_space<vmem>>, %arg4: memref<1x16xf32, #tpu.memory_space<vmem>>, %arg5: memref<1x4x16xf32, #tpu.memory_space<vmem>>) attributes {dimension_semantics = [#tpu.dimension_semantics<parallel>, #tpu.dimension_semantics<parallel>], iteration_bounds = array<i64: 2, 1>, scalar_prefetch = 0 : i64, scratch_operands = 0 : i64, tpu.core_type = #tpu.core_type<tc>, window_params = [{transform_indices = @transform_0, window_bounds = array<i64: 1, 4, 32>}, {transform_indices = @transform_1, window_bounds = array<i64: 32, 16>}, {transform_indices = @transform_2, window_bounds = array<i64: 1, 16>}, {transform_indices = @transform_3, window_bounds = array<i64: 1, 4, 16>}]} {
    %c0 = arith.constant 0 : index
    %c0_0 = arith.constant 0 : index
    %c0_1 = arith.constant 0 : index
    %0 = vector.load %arg2[%c0, %c0_0, %c0_1] : memref<1x4x32xbf16, #tpu.memory_space<vmem>>, vector<1x4x32xbf16>
    %1 = vector.shape_cast %0 : vector<1x4x32xbf16> to vector<4x32xbf16>
    %c0_2 = arith.constant 0 : index
    %c0_3 = arith.constant 0 : index
    %2 = vector.load %arg3[%c0_2, %c0_3] : memref<32x16xbf16, #tpu.memory_space<vmem>>, vector<32x16xbf16>
    %cst = arith.constant dense<0.000000e+00> : vector<4x16xf32>
    %3 = tpu.matmul %1, %2, %cst {dimension_numbers = #tpu.dot_dimension_numbers<[1], [0], [0], [1], [0, 0, 1, 1], [], []>} : vector<4x32xbf16>, vector<32x16xbf16>, vector<4x16xf32> -> vector<4x16xf32>
    %c0_4 = arith.constant 0 : index
    %c0_5 = arith.constant 0 : index
    %4 = vector.load %arg4[%c0_4, %c0_5] : memref<1x16xf32, #tpu.memory_space<vmem>>, vector<1x16xf32>
    %5 = vector.broadcast %4 : vector<1x16xf32> to vector<4x16xf32>
    %6 = arith.addf %3, %5 : vector<4x16xf32>
    %c0_6 = arith.constant 0 : index
    %c0_7 = arith.constant 0 : index
    %c0_8 = arith.constant 0 : index
    %7 = vector.load %arg5[%c0_6, %c0_7, %c0_8] : memref<1x4x16xf32, #tpu.memory_space<vmem>>, vector<1x4x16xf32>
    %8 = vector.shape_cast %7 : vector<1x4x16xf32> to vector<4x16xf32>
    %9 = vector.shape_cast %6 : vector<4x16xf32> to vector<1x4x16xf32>
    tpu.vector_store %arg5[%c0_6, %c0_7, %c0_8], %9 {strides = array<i32>} : memref<1x4x16xf32, #tpu.memory_space<vmem>>, vector<1x4x16xf32>,
    return
  }
  func.func @transform_0(%arg0: i32, %arg1: i32) -> (i32, i32, i32) {
    %c0_i32 = arith.constant 0 : i32
    %c0_i32_0 = arith.constant 0 : i32
    %c0_i32_1 = arith.constant 0 : i32
    return %arg0, %c0_i32, %c0_i32_0 : i32, i32, i32
  }
  func.func @transform_1(%arg0: i32, %arg1: i32) -> (i32, i32) {
    %c0_i32 = arith.constant 0 : i32
    %c0_i32_0 = arith.constant 0 : i32
    return %c0_i32, %arg1 : i32, i32
  }
  func.func @transform_2(%arg0: i32, %arg1: i32) -> (i32, i32) {
    %c0_i32 = arith.constant 0 : i32
    %c0_i32_0 = arith.constant 0 : i32
    return %c0_i32, %arg1 : i32, i32
  }
  func.func @transform_3(%arg0: i32, %arg1: i32) -> (i32, i32, i32) {
    %c0_i32 = arith.constant 0 : i32
    %c0_i32_0 = arith.constant 0 : i32
    return %arg0, %c0_i32, %arg1 : i32, i32, i32
  }
}

module attributes {stable_mosaic.version = 11 : i64} {
  func.func @_vq_kernel(%arg0: i32, %arg1: memref<8x16xf32, #tpu.memory_space<vmem>>, %arg2: memref<16x32xbf16, #tpu.memory_space<vmem>>, %arg3: memref<32x16xbf16, #tpu.memory_space<vmem>>, %arg4: memref<1x32xf32, #tpu.memory_space<vmem>>, %arg5: memref<8x16xf32, #tpu.memory_space<vmem>>) attributes {dimension_semantics = [#tpu.dimension_semantics<parallel>], iteration_bounds = array<i64: 1>, scalar_prefetch = 0 : i64, scratch_operands = 0 : i64, tpu.core_type = #tpu.core_type<tc>, window_params = [{transform_indices = @transform_0, window_bounds = array<i64: 8, 16>}, {pipeline_mode = #tpu.pipeline_mode<synchronous>, transform_indices = @transform_1, window_bounds = array<i64: 16, 32>}, {pipeline_mode = #tpu.pipeline_mode<synchronous>, transform_indices = @transform_2, window_bounds = array<i64: 32, 16>}, {pipeline_mode = #tpu.pipeline_mode<synchronous>, transform_indices = @transform_3, window_bounds = array<i64: 1, 32>}, {transform_indices = @transform_4, window_bounds = array<i64: 8, 16>}]} {
    %c0 = arith.constant 0 : index
    %c0_0 = arith.constant 0 : index
    %0 = vector.load %arg1[%c0, %c0_0] : memref<8x16xf32, #tpu.memory_space<vmem>>, vector<8x16xf32>
    %1 = arith.truncf %0 : vector<8x16xf32> to vector<8x16xbf16>
    %c0_1 = arith.constant 0 : index
    %c0_2 = arith.constant 0 : index
    %2 = vector.load %arg2[%c0_1, %c0_2] : memref<16x32xbf16, #tpu.memory_space<vmem>>, vector<16x32xbf16>
    %cst = arith.constant dense<0.000000e+00> : vector<8x32xf32>
    %3 = tpu.matmul %1, %2, %cst {dimension_numbers = #tpu.dot_dimension_numbers<[1], [0], [0], [1], [0, 0, 1, 1], [], []>} : vector<8x16xbf16>, vector<16x32xbf16>, vector<8x32xf32> -> vector<8x32xf32>
    %c0_3 = arith.constant 0 : index
    %c0_4 = arith.constant 0 : index
    %4 = vector.load %arg4[%c0_3, %c0_4] : memref<1x32xf32, #tpu.memory_space<vmem>>, vector<1x32xf32>
    %cst_5 = arith.constant 2.000000e+00 : f32
    %5 = vector.broadcast %cst_5 : f32 to vector<8x32xf32>
    %6 = arith.mulf %5, %3 : vector<8x32xf32>
    %7 = vector.broadcast %4 : vector<1x32xf32> to vector<8x32xf32>
    %8 = arith.subf %7, %6 : vector<8x32xf32>
    %9 = tpu.reduce_index %8 {axis = 1 : i32, kind = #tpu.reduction_kind<arg_min>} : vector<8x32xf32> -> vector<8xi32>
    %10 = tpu.iota {dimensions = array<i32: 1>} : vector<8x32xi32>
    %11 = vector.shape_cast %9 : vector<8xi32> to vector<8x1xi32>
    %12 = vector.broadcast %11 : vector<8x1xi32> to vector<8x32xi32>
    %13 = arith.cmpi eq, %10, %12 : vector<8x32xi32>
    %14 = arith.extui %13 : vector<8x32xi1> to vector<8x32xi32>
    %15 = arith.sitofp %14 : vector<8x32xi32> to vector<8x32xf32>
    %16 = arith.truncf %15 : vector<8x32xf32> to vector<8x32xbf16>
    %c0_6 = arith.constant 0 : index
    %c0_7 = arith.constant 0 : index
    %17 = vector.load %arg3[%c0_6, %c0_7] : memref<32x16xbf16, #tpu.memory_space<vmem>>, vector<32x16xbf16>
    %cst_8 = arith.constant dense<0.000000e+00> : vector<8x16xf32>
    %18 = tpu.matmul %16, %17, %cst_8 {dimension_numbers = #tpu.dot_dimension_numbers<[1], [0], [0], [1], [0, 0, 1, 1], [], []>} : vector<8x32xbf16>, vector<32x16xbf16>, vector<8x16xf32> -> vector<8x16xf32>
    %c0_9 = arith.constant 0 : index
    %c0_10 = arith.constant 0 : index
    %19 = vector.load %arg5[%c0_9, %c0_10] : memref<8x16xf32, #tpu.memory_space<vmem>>, vector<8x16xf32>
    tpu.vector_store %arg5[%c0_9, %c0_10], %18 {strides = array<i32>} : memref<8x16xf32, #tpu.memory_space<vmem>>, vector<8x16xf32>,
    return
  }
  func.func @transform_0(%arg0: i32) -> (i32, i32) {
    %c0_i32 = arith.constant 0 : i32
    %c0_i32_0 = arith.constant 0 : i32
    return %arg0, %c0_i32 : i32, i32
  }
  func.func @transform_1(%arg0: i32) -> (i32, i32) {
    %c0_i32 = arith.constant 0 : i32
    %c0_i32_0 = arith.constant 0 : i32
    %c0_i32_1 = arith.constant 0 : i32
    return %c0_i32, %c0_i32_0 : i32, i32
  }
  func.func @transform_2(%arg0: i32) -> (i32, i32) {
    %c0_i32 = arith.constant 0 : i32
    %c0_i32_0 = arith.constant 0 : i32
    %c0_i32_1 = arith.constant 0 : i32
    return %c0_i32, %c0_i32_0 : i32, i32
  }
  func.func @transform_3(%arg0: i32) -> (i32, i32) {
    %c0_i32 = arith.constant 0 : i32
    %c0_i32_0 = arith.constant 0 : i32
    %c0_i32_1 = arith.constant 0 : i32
    return %c0_i32, %c0_i32_0 : i32, i32
  }
  func.func @transform_4(%arg0: i32) -> (i32, i32) {
    %c0_i32 = arith.constant 0 : i32
    %c0_i32_0 = arith.constant 0 : i32
    return %arg0, %c0_i32 : i32, i32
  }
}

module attributes {stable_mosaic.version = 11 : i64} {
  func.func @_conv_kernel(%arg0: i32, %arg1: i32, %arg2: memref<1x20x32xbf16, #tpu.memory_space<vmem>>, %arg3: memref<288x64xbf16, #tpu.memory_space<vmem>>, %arg4: memref<1x64xf32, #tpu.memory_space<vmem>>, %arg5: memref<1x8x64xbf16, #tpu.memory_space<vmem>>) attributes {dimension_semantics = [#tpu.dimension_semantics<parallel>, #tpu.dimension_semantics<parallel>], iteration_bounds = array<i64: 2, 1>, scalar_prefetch = 0 : i64, scratch_operands = 0 : i64, tpu.core_type = #tpu.core_type<tc>, window_params = [{transform_indices = @transform_0, window_bounds = array<i64: 1, 20, 32>}, {transform_indices = @transform_1, window_bounds = array<i64: 288, 64>}, {transform_indices = @transform_2, window_bounds = array<i64: 1, 64>}, {transform_indices = @transform_3, window_bounds = array<i64: 1, 8, 64>}]} {
    %c0 = arith.constant 0 : index
    %c0_0 = arith.constant 0 : index
    %c0_1 = arith.constant 0 : index
    %0 = vector.load %arg2[%c0, %c0_0, %c0_1] : memref<1x20x32xbf16, #tpu.memory_space<vmem>>, vector<1x8x32xbf16>
    %1 = vector.shape_cast %0 : vector<1x8x32xbf16> to vector<8x32xbf16>
    %c0_2 = arith.constant 0 : index
    %c0_3 = arith.constant 0 : index
    %2 = vector.load %arg3[%c0_2, %c0_3] : memref<288x64xbf16, #tpu.memory_space<vmem>>, vector<32x64xbf16>
    %cst = arith.constant dense<0.000000e+00> : vector<8x64xf32>
    %3 = tpu.matmul %1, %2, %cst {dimension_numbers = #tpu.dot_dimension_numbers<[1], [0], [0], [1], [0, 0, 1, 1], [], []>} : vector<8x32xbf16>, vector<32x64xbf16>, vector<8x64xf32> -> vector<8x64xf32>
    %c0_4 = arith.constant 0 : index
    %c1 = arith.constant 1 : index
    %c0_5 = arith.constant 0 : index
    %4 = vector.load %arg2[%c0_4, %c1, %c0_5] : memref<1x20x32xbf16, #tpu.memory_space<vmem>>, vector<1x8x32xbf16>
    %5 = vector.shape_cast %4 : vector<1x8x32xbf16> to vector<8x32xbf16>
    %c32 = arith.constant 32 : index
    %c0_6 = arith.constant 0 : index
    %6 = vector.load %arg3[%c32, %c0_6] : memref<288x64xbf16, #tpu.memory_space<vmem>>, vector<32x64xbf16>
    %cst_7 = arith.constant dense<0.000000e+00> : vector<8x64xf32>
    %7 = tpu.matmul %5, %6, %cst_7 {dimension_numbers = #tpu.dot_dimension_numbers<[1], [0], [0], [1], [0, 0, 1, 1], [], []>} : vector<8x32xbf16>, vector<32x64xbf16>, vector<8x64xf32> -> vector<8x64xf32>
    %8 = arith.addf %3, %7 : vector<8x64xf32>
    %c0_8 = arith.constant 0 : index
    %c2 = arith.constant 2 : index
    %c0_9 = arith.constant 0 : index
    %9 = vector.load %arg2[%c0_8, %c2, %c0_9] : memref<1x20x32xbf16, #tpu.memory_space<vmem>>, vector<1x8x32xbf16>
    %10 = vector.shape_cast %9 : vector<1x8x32xbf16> to vector<8x32xbf16>
    %c64 = arith.constant 64 : index
    %c0_10 = arith.constant 0 : index
    %11 = vector.load %arg3[%c64, %c0_10] : memref<288x64xbf16, #tpu.memory_space<vmem>>, vector<32x64xbf16>
    %cst_11 = arith.constant dense<0.000000e+00> : vector<8x64xf32>
    %12 = tpu.matmul %10, %11, %cst_11 {dimension_numbers = #tpu.dot_dimension_numbers<[1], [0], [0], [1], [0, 0, 1, 1], [], []>} : vector<8x32xbf16>, vector<32x64xbf16>, vector<8x64xf32> -> vector<8x64xf32>
    %13 = arith.addf %8, %12 : vector<8x64xf32>
    %c0_12 = arith.constant 0 : index
    %c4 = arith.constant 4 : index
    %c0_13 = arith.constant 0 : index
    %14 = vector.load %arg2[%c0_12, %c4, %c0_13] : memref<1x20x32xbf16, #tpu.memory_space<vmem>>, vector<1x8x32xbf16>
    %15 = vector.shape_cast %14 : vector<1x8x32xbf16> to vector<8x32xbf16>
    %c96 = arith.constant 96 : index
    %c0_14 = arith.constant 0 : index
    %16 = vector.load %arg3[%c96, %c0_14] : memref<288x64xbf16, #tpu.memory_space<vmem>>, vector<32x64xbf16>
    %cst_15 = arith.constant dense<0.000000e+00> : vector<8x64xf32>
    %17 = tpu.matmul %15, %16, %cst_15 {dimension_numbers = #tpu.dot_dimension_numbers<[1], [0], [0], [1], [0, 0, 1, 1], [], []>} : vector<8x32xbf16>, vector<32x64xbf16>, vector<8x64xf32> -> vector<8x64xf32>
    %18 = arith.addf %13, %17 : vector<8x64xf32>
    %c0_16 = arith.constant 0 : index
    %c5 = arith.constant 5 : index
    %c0_17 = arith.constant 0 : index
    %19 = vector.load %arg2[%c0_16, %c5, %c0_17] : memref<1x20x32xbf16, #tpu.memory_space<vmem>>, vector<1x8x32xbf16>
    %20 = vector.shape_cast %19 : vector<1x8x32xbf16> to vector<8x32xbf16>
    %c128 = arith.constant 128 : index
    %c0_18 = arith.constant 0 : index
    %21 = vector.load %arg3[%c128, %c0_18] : memref<288x64xbf16, #tpu.memory_space<vmem>>, vector<32x64xbf16>
    %cst_19 = arith.constant dense<0.000000e+00> : vector<8x64xf32>
    %22 = tpu.matmul %20, %21, %cst_19 {dimension_numbers = #tpu.dot_dimension_numbers<[1], [0], [0], [1], [0, 0, 1, 1], [], []>} : vector<8x32xbf16>, vector<32x64xbf16>, vector<8x64xf32> -> vector<8x64xf32>
    %23 = arith.addf %18, %22 : vector<8x64xf32>
    %c0_20 = arith.constant 0 : index
    %c6 = arith.constant 6 : index
    %c0_21 = arith.constant 0 : index
    %24 = vector.load %arg2[%c0_20, %c6, %c0_21] : memref<1x20x32xbf16, #tpu.memory_space<vmem>>, vector<1x8x32xbf16>
    %25 = vector.shape_cast %24 : vector<1x8x32xbf16> to vector<8x32xbf16>
    %c160 = arith.constant 160 : index
    %c0_22 = arith.constant 0 : index
    %26 = vector.load %arg3[%c160, %c0_22] : memref<288x64xbf16, #tpu.memory_space<vmem>>, vector<32x64xbf16>
    %cst_23 = arith.constant dense<0.000000e+00> : vector<8x64xf32>
    %27 = tpu.matmul %25, %26, %cst_23 {dimension_numbers = #tpu.dot_dimension_numbers<[1], [0], [0], [1], [0, 0, 1, 1], [], []>} : vector<8x32xbf16>, vector<32x64xbf16>, vector<8x64xf32> -> vector<8x64xf32>
    %28 = arith.addf %23, %27 : vector<8x64xf32>
    %c0_24 = arith.constant 0 : index
    %c8 = arith.constant 8 : index
    %c0_25 = arith.constant 0 : index
    %29 = vector.load %arg2[%c0_24, %c8, %c0_25] : memref<1x20x32xbf16, #tpu.memory_space<vmem>>, vector<1x8x32xbf16>
    %30 = vector.shape_cast %29 : vector<1x8x32xbf16> to vector<8x32xbf16>
    %c192 = arith.constant 192 : index
    %c0_26 = arith.constant 0 : index
    %31 = vector.load %arg3[%c192, %c0_26] : memref<288x64xbf16, #tpu.memory_space<vmem>>, vector<32x64xbf16>
    %cst_27 = arith.constant dense<0.000000e+00> : vector<8x64xf32>
    %32 = tpu.matmul %30, %31, %cst_27 {dimension_numbers = #tpu.dot_dimension_numbers<[1], [0], [0], [1], [0, 0, 1, 1], [], []>} : vector<8x32xbf16>, vector<32x64xbf16>, vector<8x64xf32> -> vector<8x64xf32>
    %33 = arith.addf %28, %32 : vector<8x64xf32>
    %c0_28 = arith.constant 0 : index
    %c9 = arith.constant 9 : index
    %c0_29 = arith.constant 0 : index
    %34 = vector.load %arg2[%c0_28, %c9, %c0_29] : memref<1x20x32xbf16, #tpu.memory_space<vmem>>, vector<1x8x32xbf16>
    %35 = vector.shape_cast %34 : vector<1x8x32xbf16> to vector<8x32xbf16>
    %c224 = arith.constant 224 : index
    %c0_30 = arith.constant 0 : index
    %36 = vector.load %arg3[%c224, %c0_30] : memref<288x64xbf16, #tpu.memory_space<vmem>>, vector<32x64xbf16>
    %cst_31 = arith.constant dense<0.000000e+00> : vector<8x64xf32>
    %37 = tpu.matmul %35, %36, %cst_31 {dimension_numbers = #tpu.dot_dimension_numbers<[1], [0], [0], [1], [0, 0, 1, 1], [], []>} : vector<8x32xbf16>, vector<32x64xbf16>, vector<8x64xf32> -> vector<8x64xf32>
    %38 = arith.addf %33, %37 : vector<8x64xf32>
    %c0_32 = arith.constant 0 : index
    %c10 = arith.constant 10 : index
    %c0_33 = arith.constant 0 : index
    %39 = vector.load %arg2[%c0_32, %c10, %c0_33] : memref<1x20x32xbf16, #tpu.memory_space<vmem>>, vector<1x8x32xbf16>
    %40 = vector.shape_cast %39 : vector<1x8x32xbf16> to vector<8x32xbf16>
    %c256 = arith.constant 256 : index
    %c0_34 = arith.constant 0 : index
    %41 = vector.load %arg3[%c256, %c0_34] : memref<288x64xbf16, #tpu.memory_space<vmem>>, vector<32x64xbf16>
    %cst_35 = arith.constant dense<0.000000e+00> : vector<8x64xf32>
    %42 = tpu.matmul %40, %41, %cst_35 {dimension_numbers = #tpu.dot_dimension_numbers<[1], [0], [0], [1], [0, 0, 1, 1], [], []>} : vector<8x32xbf16>, vector<32x64xbf16>, vector<8x64xf32> -> vector<8x64xf32>
    %43 = arith.addf %38, %42 : vector<8x64xf32>
    %c0_36 = arith.constant 0 : index
    %c0_37 = arith.constant 0 : index
    %44 = vector.load %arg4[%c0_36, %c0_37] : memref<1x64xf32, #tpu.memory_space<vmem>>, vector<1x64xf32>
    %45 = vector.broadcast %44 : vector<1x64xf32> to vector<8x64xf32>
    %46 = arith.addf %43, %45 : vector<8x64xf32>
    %47 = arith.truncf %46 : vector<8x64xf32> to vector<8x64xbf16>
    %c0_38 = arith.constant 0 : index
    %c0_39 = arith.constant 0 : index
    %c0_40 = arith.constant 0 : index
    %48 = vector.load %arg5[%c0_38, %c0_39, %c0_40] : memref<1x8x64xbf16, #tpu.memory_space<vmem>>, vector<1x8x64xbf16>
    %49 = vector.shape_cast %48 : vector<1x8x64xbf16> to vector<8x64xbf16>
    %50 = vector.shape_cast %47 : vector<8x64xbf16> to vector<1x8x64xbf16>
    tpu.vector_store %arg5[%c0_38, %c0_39, %c0_40], %50 {strides = array<i32>} : memref<1x8x64xbf16, #tpu.memory_space<vmem>>, vector<1x8x64xbf16>,
    return
  }
  func.func @transform_0(%arg0: i32, %arg1: i32) -> (i32, i32, i32) {
    %c0_i32 = arith.constant 0 : i32
    %c0_i32_0 = arith.constant 0 : i32
    %c0_i32_1 = arith.constant 0 : i32
    return %arg0, %c0_i32, %c0_i32_0 : i32, i32, i32
  }
  func.func @transform_1(%arg0: i32, %arg1: i32) -> (i32, i32) {
    %c0_i32 = arith.constant 0 : i32
    %c0_i32_0 = arith.constant 0 : i32
    return %c0_i32, %arg1 : i32, i32
  }
  func.func @transform_2(%arg0: i32, %arg1: i32) -> (i32, i32) {
    %c0_i32 = arith.constant 0 : i32
    %c0_i32_0 = arith.constant 0 : i32
    return %c0_i32, %arg1 : i32, i32
  }
  func.func @transform_3(%arg0: i32, %arg1: i32) -> (i32, i32, i32) {
    %c0_i32 = arith.constant 0 : i32
    %c0_i32_0 = arith.constant 0 : i32
    return %arg0, %c0_i32, %arg1 : i32, i32, i32
  }
}

module attributes {stable_mosaic.version = 11 : i64} {
  func.func @_conv_kernel(%arg0: i32, %arg1: i32, %arg2: memref<1x16x48xbf16, #tpu.memory_space<vmem>>, %arg3: memref<48x16xbf16, #tpu.memory_space<vmem>>, %arg4: memref<1x16xf32, #tpu.memory_space<vmem>>, %arg5: memref<1x16x16xf32, #tpu.memory_space<vmem>>) attributes {dimension_semantics = [#tpu.dimension_semantics<parallel>, #tpu.dimension_semantics<parallel>], iteration_bounds = array<i64: 2, 1>, scalar_prefetch = 0 : i64, scratch_operands = 0 : i64, tpu.core_type = #tpu.core_type<tc>, window_params = [{transform_indices = @transform_0, window_bounds = array<i64: 1, 16, 48>}, {transform_indices = @transform_1, window_bounds = array<i64: 48, 16>}, {transform_indices = @transform_2, window_bounds = array<i64: 1, 16>}, {transform_indices = @transform_3, window_bounds = array<i64: 1, 16, 16>}]} {
    %c0 = arith.constant 0 : index
    %c0_0 = arith.constant 0 : index
    %c0_1 = arith.constant 0 : index
    %0 = vector.load %arg2[%c0, %c0_0, %c0_1] : memref<1x16x48xbf16, #tpu.memory_space<vmem>>, vector<1x16x48xbf16>
    %1 = vector.shape_cast %0 : vector<1x16x48xbf16> to vector<16x48xbf16>
    %c0_2 = arith.constant 0 : index
    %c0_3 = arith.constant 0 : index
    %2 = vector.load %arg3[%c0_2, %c0_3] : memref<48x16xbf16, #tpu.memory_space<vmem>>, vector<48x16xbf16>
    %cst = arith.constant dense<0.000000e+00> : vector<16x16xf32>
    %3 = tpu.matmul %1, %2, %cst {dimension_numbers = #tpu.dot_dimension_numbers<[1], [0], [0], [1], [0, 0, 1, 1], [], []>} : vector<16x48xbf16>, vector<48x16xbf16>, vector<16x16xf32> -> vector<16x16xf32>
    %c0_4 = arith.constant 0 : index
    %c0_5 = arith.constant 0 : index
    %4 = vector.load %arg4[%c0_4, %c0_5] : memref<1x16xf32, #tpu.memory_space<vmem>>, vector<1x16xf32>
    %5 = vector.broadcast %4 : vector<1x16xf32> to vector<16x16xf32>
    %6 = arith.addf %3, %5 : vector<16x16xf32>
    %c0_6 = arith.constant 0 : index
    %c0_7 = arith.constant 0 : index
    %c0_8 = arith.constant 0 : index
    %7 = vector.load %arg5[%c0_6, %c0_7, %c0_8] : memref<1x16x16xf32, #tpu.memory_space<vmem>>, vector<1x16x16xf32>
    %8 = vector.shape_cast %7 : vector<1x16x16xf32> to vector<16x16xf32>
    %9 = vector.shape_cast %6 : vector<16x16xf32> to vector<1x16x16xf32>
    tpu.vector_store %arg5[%c0_6, %c0_7, %c0_8], %9 {strides = array<i32>} : memref<1x16x16xf32, #tpu.memory_space<vmem>>, vector<1x16x16xf32>,
    return
  }
  func.func @transform_0(%arg0: i32, %arg1: i32) -> (i32, i32, i32) {
    %c0_i32 = arith.constant 0 : i32
    %c0_i32_0 = arith.constant 0 : i32
    %c0_i32_1 = arith.constant 0 : i32
    return %arg0, %c0_i32, %c0_i32_0 : i32, i32, i32
  }
  func.func @transform_1(%arg0: i32, %arg1: i32) -> (i32, i32) {
    %c0_i32 = arith.constant 0 : i32
    %c0_i32_0 = arith.constant 0 : i32
    return %c0_i32, %arg1 : i32, i32
  }
  func.func @transform_2(%arg0: i32, %arg1: i32) -> (i32, i32) {
    %c0_i32 = arith.constant 0 : i32
    %c0_i32_0 = arith.constant 0 : i32
    return %c0_i32, %arg1 : i32, i32
  }
  func.func @transform_3(%arg0: i32, %arg1: i32) -> (i32, i32, i32) {
    %c0_i32 = arith.constant 0 : i32
    %c0_i32_0 = arith.constant 0 : i32
    return %arg0, %c0_i32, %arg1 : i32, i32, i32
  }
}

module attributes {stable_mosaic.version = 11 : i64} {
  func.func @_vq_kernel(%arg0: i32, %arg1: memref<16x16xf32, #tpu.memory_space<vmem>>, %arg2: memref<16x32xbf16, #tpu.memory_space<vmem>>, %arg3: memref<32x16xbf16, #tpu.memory_space<vmem>>, %arg4: memref<1x32xf32, #tpu.memory_space<vmem>>, %arg5: memref<16x16xf32, #tpu.memory_space<vmem>>) attributes {dimension_semantics = [#tpu.dimension_semantics<parallel>], iteration_bounds = array<i64: 2>, scalar_prefetch = 0 : i64, scratch_operands = 0 : i64, tpu.core_type = #tpu.core_type<tc>, window_params = [{transform_indices = @transform_0, window_bounds = array<i64: 16, 16>}, {pipeline_mode = #tpu.pipeline_mode<synchronous>, transform_indices = @transform_1, window_bounds = array<i64: 16, 32>}, {pipeline_mode = #tpu.pipeline_mode<synchronous>, transform_indices = @transform_2, window_bounds = array<i64: 32, 16>}, {pipeline_mode = #tpu.pipeline_mode<synchronous>, transform_indices = @transform_3, window_bounds = array<i64: 1, 32>}, {transform_indices = @transform_4, window_bounds = array<i64: 16, 16>}]} {
    %c0 = arith.constant 0 : index
    %c0_0 = arith.constant 0 : index
    %0 = vector.load %arg1[%c0, %c0_0] : memref<16x16xf32, #tpu.memory_space<vmem>>, vector<16x16xf32>
    %1 = arith.truncf %0 : vector<16x16xf32> to vector<16x16xbf16>
    %c0_1 = arith.constant 0 : index
    %c0_2 = arith.constant 0 : index
    %2 = vector.load %arg2[%c0_1, %c0_2] : memref<16x32xbf16, #tpu.memory_space<vmem>>, vector<16x32xbf16>
    %cst = arith.constant dense<0.000000e+00> : vector<16x32xf32>
    %3 = tpu.matmul %1, %2, %cst {dimension_numbers = #tpu.dot_dimension_numbers<[1], [0], [0], [1], [0, 0, 1, 1], [], []>} : vector<16x16xbf16>, vector<16x32xbf16>, vector<16x32xf32> -> vector<16x32xf32>
    %c0_3 = arith.constant 0 : index
    %c0_4 = arith.constant 0 : index
    %4 = vector.load %arg4[%c0_3, %c0_4] : memref<1x32xf32, #tpu.memory_space<vmem>>, vector<1x32xf32>
    %cst_5 = arith.constant 2.000000e+00 : f32
    %5 = vector.broadcast %cst_5 : f32 to vector<16x32xf32>
    %6 = arith.mulf %5, %3 : vector<16x32xf32>
    %7 = vector.broadcast %4 : vector<1x32xf32> to vector<16x32xf32>
    %8 = arith.subf %7, %6 : vector<16x32xf32>
    %9 = tpu.reduce_index %8 {axis = 1 : i32, kind = #tpu.reduction_kind<arg_min>} : vector<16x32xf32> -> vector<16xi32>
    %10 = tpu.iota {dimensions = array<i32: 1>} : vector<16x32xi32>
    %11 = vector.shape_cast %9 : vector<16xi32> to vector<16x1xi32>
    %12 = vector.broadcast %11 : vector<16x1xi32> to vector<16x32xi32>
    %13 = arith.cmpi eq, %10, %12 : vector<16x32xi32>
    %14 = arith.extui %13 : vector<16x32xi1> to vector<16x32xi32>
    %15 = arith.sitofp %14 : vector<16x32xi32> to vector<16x32xf32>
    %16 = arith.truncf %15 : vector<16x32xf32> to vector<16x32xbf16>
    %c0_6 = arith.constant 0 : index
    %c0_7 = arith.constant 0 : index
    %17 = vector.load %arg3[%c0_6, %c0_7] : memref<32x16xbf16, #tpu.memory_space<vmem>>, vector<32x16xbf16>
    %cst_8 = arith.constant dense<0.000000e+00> : vector<16x16xf32>
    %18 = tpu.matmul %16, %17, %cst_8 {dimension_numbers = #tpu.dot_dimension_numbers<[1], [0], [0], [1], [0, 0, 1, 1], [], []>} : vector<16x32xbf16>, vector<32x16xbf16>, vector<16x16xf32> -> vector<16x16xf32>
    %c0_9 = arith.constant 0 : index
    %c0_10 = arith.constant 0 : index
    %19 = vector.load %arg5[%c0_9, %c0_10] : memref<16x16xf32, #tpu.memory_space<vmem>>, vector<16x16xf32>
    tpu.vector_store %arg5[%c0_9, %c0_10], %18 {strides = array<i32>} : memref<16x16xf32, #tpu.memory_space<vmem>>, vector<16x16xf32>,
    return
  }
  func.func @transform_0(%arg0: i32) -> (i32, i32) {
    %c0_i32 = arith.constant 0 : i32
    %c0_i32_0 = arith.constant 0 : i32
    return %arg0, %c0_i32 : i32, i32
  }
  func.func @transform_1(%arg0: i32) -> (i32, i32) {
    %c0_i32 = arith.constant 0 : i32
    %c0_i32_0 = arith.constant 0 : i32
    %c0_i32_1 = arith.constant 0 : i32
    return %c0_i32, %c0_i32_0 : i32, i32
  }
  func.func @transform_2(%arg0: i32) -> (i32, i32) {
    %c0_i32 = arith.constant 0 : i32
    %c0_i32_0 = arith.constant 0 : i32
    %c0_i32_1 = arith.constant 0 : i32
    return %c0_i32, %c0_i32_0 : i32, i32
  }
  func.func @transform_3(%arg0: i32) -> (i32, i32) {
    %c0_i32 = arith.constant 0 : i32
    %c0_i32_0 = arith.constant 0 : i32
    %c0_i32_1 = arith.constant 0 : i32
    return %c0_i32, %c0_i32_0 : i32, i32
  }
  func.func @transform_4(%arg0: i32) -> (i32, i32) {
    %c0_i32 = arith.constant 0 : i32
    %c0_i32_0 = arith.constant 0 : i32
    return %arg0, %c0_i32 : i32, i32
  }
}

module attributes {stable_mosaic.version = 11 : i64} {
  func.func @_conv_kernel(%arg0: i32, %arg1: i32, %arg2: memref<1x20x16xbf16, #tpu.memory_space<vmem>>, %arg3: memref<144x64xbf16, #tpu.memory_space<vmem>>, %arg4: memref<1x64xf32, #tpu.memory_space<vmem>>, %arg5: memref<1x8x64xbf16, #tpu.memory_space<vmem>>) attributes {dimension_semantics = [#tpu.dimension_semantics<parallel>, #tpu.dimension_semantics<parallel>], iteration_bounds = array<i64: 2, 1>, scalar_prefetch = 0 : i64, scratch_operands = 0 : i64, tpu.core_type = #tpu.core_type<tc>, window_params = [{transform_indices = @transform_0, window_bounds = array<i64: 1, 20, 16>}, {transform_indices = @transform_1, window_bounds = array<i64: 144, 64>}, {transform_indices = @transform_2, window_bounds = array<i64: 1, 64>}, {transform_indices = @transform_3, window_bounds = array<i64: 1, 8, 64>}]} {
    %c0 = arith.constant 0 : index
    %c0_0 = arith.constant 0 : index
    %c0_1 = arith.constant 0 : index
    %0 = vector.load %arg2[%c0, %c0_0, %c0_1] : memref<1x20x16xbf16, #tpu.memory_space<vmem>>, vector<1x8x16xbf16>
    %1 = vector.shape_cast %0 : vector<1x8x16xbf16> to vector<8x16xbf16>
    %c0_2 = arith.constant 0 : index
    %c0_3 = arith.constant 0 : index
    %2 = vector.load %arg3[%c0_2, %c0_3] : memref<144x64xbf16, #tpu.memory_space<vmem>>, vector<16x64xbf16>
    %cst = arith.constant dense<0.000000e+00> : vector<8x64xf32>
    %3 = tpu.matmul %1, %2, %cst {dimension_numbers = #tpu.dot_dimension_numbers<[1], [0], [0], [1], [0, 0, 1, 1], [], []>} : vector<8x16xbf16>, vector<16x64xbf16>, vector<8x64xf32> -> vector<8x64xf32>
    %c0_4 = arith.constant 0 : index
    %c1 = arith.constant 1 : index
    %c0_5 = arith.constant 0 : index
    %4 = vector.load %arg2[%c0_4, %c1, %c0_5] : memref<1x20x16xbf16, #tpu.memory_space<vmem>>, vector<1x8x16xbf16>
    %5 = vector.shape_cast %4 : vector<1x8x16xbf16> to vector<8x16xbf16>
    %c16 = arith.constant 16 : index
    %c0_6 = arith.constant 0 : index
    %6 = vector.load %arg3[%c16, %c0_6] : memref<144x64xbf16, #tpu.memory_space<vmem>>, vector<16x64xbf16>
    %cst_7 = arith.constant dense<0.000000e+00> : vector<8x64xf32>
    %7 = tpu.matmul %5, %6, %cst_7 {dimension_numbers = #tpu.dot_dimension_numbers<[1], [0], [0], [1], [0, 0, 1, 1], [], []>} : vector<8x16xbf16>, vector<16x64xbf16>, vector<8x64xf32> -> vector<8x64xf32>
    %8 = arith.addf %3, %7 : vector<8x64xf32>
    %c0_8 = arith.constant 0 : index
    %c2 = arith.constant 2 : index
    %c0_9 = arith.constant 0 : index
    %9 = vector.load %arg2[%c0_8, %c2, %c0_9] : memref<1x20x16xbf16, #tpu.memory_space<vmem>>, vector<1x8x16xbf16>
    %10 = vector.shape_cast %9 : vector<1x8x16xbf16> to vector<8x16xbf16>
    %c32 = arith.constant 32 : index
    %c0_10 = arith.constant 0 : index
    %11 = vector.load %arg3[%c32, %c0_10] : memref<144x64xbf16, #tpu.memory_space<vmem>>, vector<16x64xbf16>
    %cst_11 = arith.constant dense<0.000000e+00> : vector<8x64xf32>
    %12 = tpu.matmul %10, %11, %cst_11 {dimension_numbers = #tpu.dot_dimension_numbers<[1], [0], [0], [1], [0, 0, 1, 1], [], []>} : vector<8x16xbf16>, vector<16x64xbf16>, vector<8x64xf32> -> vector<8x64xf32>
    %13 = arith.addf %8, %12 : vector<8x64xf32>
    %c0_12 = arith.constant 0 : index
    %c4 = arith.constant 4 : index
    %c0_13 = arith.constant 0 : index
    %14 = vector.load %arg2[%c0_12, %c4, %c0_13] : memref<1x20x16xbf16, #tpu.memory_space<vmem>>, vector<1x8x16xbf16>
    %15 = vector.shape_cast %14 : vector<1x8x16xbf16> to vector<8x16xbf16>
    %c48 = arith.constant 48 : index
    %c0_14 = arith.constant 0 : index
    %16 = vector.load %arg3[%c48, %c0_14] : memref<144x64xbf16, #tpu.memory_space<vmem>>, vector<16x64xbf16>
    %cst_15 = arith.constant dense<0.000000e+00> : vector<8x64xf32>
    %17 = tpu.matmul %15, %16, %cst_15 {dimension_numbers = #tpu.dot_dimension_numbers<[1], [0], [0], [1], [0, 0, 1, 1], [], []>} : vector<8x16xbf16>, vector<16x64xbf16>, vector<8x64xf32> -> vector<8x64xf32>
    %18 = arith.addf %13, %17 : vector<8x64xf32>
    %c0_16 = arith.constant 0 : index
    %c5 = arith.constant 5 : index
    %c0_17 = arith.constant 0 : index
    %19 = vector.load %arg2[%c0_16, %c5, %c0_17] : memref<1x20x16xbf16, #tpu.memory_space<vmem>>, vector<1x8x16xbf16>
    %20 = vector.shape_cast %19 : vector<1x8x16xbf16> to vector<8x16xbf16>
    %c64 = arith.constant 64 : index
    %c0_18 = arith.constant 0 : index
    %21 = vector.load %arg3[%c64, %c0_18] : memref<144x64xbf16, #tpu.memory_space<vmem>>, vector<16x64xbf16>
    %cst_19 = arith.constant dense<0.000000e+00> : vector<8x64xf32>
    %22 = tpu.matmul %20, %21, %cst_19 {dimension_numbers = #tpu.dot_dimension_numbers<[1], [0], [0], [1], [0, 0, 1, 1], [], []>} : vector<8x16xbf16>, vector<16x64xbf16>, vector<8x64xf32> -> vector<8x64xf32>
    %23 = arith.addf %18, %22 : vector<8x64xf32>
    %c0_20 = arith.constant 0 : index
    %c6 = arith.constant 6 : index
    %c0_21 = arith.constant 0 : index
    %24 = vector.load %arg2[%c0_20, %c6, %c0_21] : memref<1x20x16xbf16, #tpu.memory_space<vmem>>, vector<1x8x16xbf16>
    %25 = vector.shape_cast %24 : vector<1x8x16xbf16> to vector<8x16xbf16>
    %c80 = arith.constant 80 : index
    %c0_22 = arith.constant 0 : index
    %26 = vector.load %arg3[%c80, %c0_22] : memref<144x64xbf16, #tpu.memory_space<vmem>>, vector<16x64xbf16>
    %cst_23 = arith.constant dense<0.000000e+00> : vector<8x64xf32>
    %27 = tpu.matmul %25, %26, %cst_23 {dimension_numbers = #tpu.dot_dimension_numbers<[1], [0], [0], [1], [0, 0, 1, 1], [], []>} : vector<8x16xbf16>, vector<16x64xbf16>, vector<8x64xf32> -> vector<8x64xf32>
    %28 = arith.addf %23, %27 : vector<8x64xf32>
    %c0_24 = arith.constant 0 : index
    %c8 = arith.constant 8 : index
    %c0_25 = arith.constant 0 : index
    %29 = vector.load %arg2[%c0_24, %c8, %c0_25] : memref<1x20x16xbf16, #tpu.memory_space<vmem>>, vector<1x8x16xbf16>
    %30 = vector.shape_cast %29 : vector<1x8x16xbf16> to vector<8x16xbf16>
    %c96 = arith.constant 96 : index
    %c0_26 = arith.constant 0 : index
    %31 = vector.load %arg3[%c96, %c0_26] : memref<144x64xbf16, #tpu.memory_space<vmem>>, vector<16x64xbf16>
    %cst_27 = arith.constant dense<0.000000e+00> : vector<8x64xf32>
    %32 = tpu.matmul %30, %31, %cst_27 {dimension_numbers = #tpu.dot_dimension_numbers<[1], [0], [0], [1], [0, 0, 1, 1], [], []>} : vector<8x16xbf16>, vector<16x64xbf16>, vector<8x64xf32> -> vector<8x64xf32>
    %33 = arith.addf %28, %32 : vector<8x64xf32>
    %c0_28 = arith.constant 0 : index
    %c9 = arith.constant 9 : index
    %c0_29 = arith.constant 0 : index
    %34 = vector.load %arg2[%c0_28, %c9, %c0_29] : memref<1x20x16xbf16, #tpu.memory_space<vmem>>, vector<1x8x16xbf16>
    %35 = vector.shape_cast %34 : vector<1x8x16xbf16> to vector<8x16xbf16>
    %c112 = arith.constant 112 : index
    %c0_30 = arith.constant 0 : index
    %36 = vector.load %arg3[%c112, %c0_30] : memref<144x64xbf16, #tpu.memory_space<vmem>>, vector<16x64xbf16>
    %cst_31 = arith.constant dense<0.000000e+00> : vector<8x64xf32>
    %37 = tpu.matmul %35, %36, %cst_31 {dimension_numbers = #tpu.dot_dimension_numbers<[1], [0], [0], [1], [0, 0, 1, 1], [], []>} : vector<8x16xbf16>, vector<16x64xbf16>, vector<8x64xf32> -> vector<8x64xf32>
    %38 = arith.addf %33, %37 : vector<8x64xf32>
    %c0_32 = arith.constant 0 : index
    %c10 = arith.constant 10 : index
    %c0_33 = arith.constant 0 : index
    %39 = vector.load %arg2[%c0_32, %c10, %c0_33] : memref<1x20x16xbf16, #tpu.memory_space<vmem>>, vector<1x8x16xbf16>
    %40 = vector.shape_cast %39 : vector<1x8x16xbf16> to vector<8x16xbf16>
    %c128 = arith.constant 128 : index
    %c0_34 = arith.constant 0 : index
    %41 = vector.load %arg3[%c128, %c0_34] : memref<144x64xbf16, #tpu.memory_space<vmem>>, vector<16x64xbf16>
    %cst_35 = arith.constant dense<0.000000e+00> : vector<8x64xf32>
    %42 = tpu.matmul %40, %41, %cst_35 {dimension_numbers = #tpu.dot_dimension_numbers<[1], [0], [0], [1], [0, 0, 1, 1], [], []>} : vector<8x16xbf16>, vector<16x64xbf16>, vector<8x64xf32> -> vector<8x64xf32>
    %43 = arith.addf %38, %42 : vector<8x64xf32>
    %c0_36 = arith.constant 0 : index
    %c0_37 = arith.constant 0 : index
    %44 = vector.load %arg4[%c0_36, %c0_37] : memref<1x64xf32, #tpu.memory_space<vmem>>, vector<1x64xf32>
    %45 = vector.broadcast %44 : vector<1x64xf32> to vector<8x64xf32>
    %46 = arith.addf %43, %45 : vector<8x64xf32>
    %47 = arith.truncf %46 : vector<8x64xf32> to vector<8x64xbf16>
    %c0_38 = arith.constant 0 : index
    %c0_39 = arith.constant 0 : index
    %c0_40 = arith.constant 0 : index
    %48 = vector.load %arg5[%c0_38, %c0_39, %c0_40] : memref<1x8x64xbf16, #tpu.memory_space<vmem>>, vector<1x8x64xbf16>
    %49 = vector.shape_cast %48 : vector<1x8x64xbf16> to vector<8x64xbf16>
    %50 = vector.shape_cast %47 : vector<8x64xbf16> to vector<1x8x64xbf16>
    tpu.vector_store %arg5[%c0_38, %c0_39, %c0_40], %50 {strides = array<i32>} : memref<1x8x64xbf16, #tpu.memory_space<vmem>>, vector<1x8x64xbf16>,
    return
  }
  func.func @transform_0(%arg0: i32, %arg1: i32) -> (i32, i32, i32) {
    %c0_i32 = arith.constant 0 : i32
    %c0_i32_0 = arith.constant 0 : i32
    %c0_i32_1 = arith.constant 0 : i32
    return %arg0, %c0_i32, %c0_i32_0 : i32, i32, i32
  }
  func.func @transform_1(%arg0: i32, %arg1: i32) -> (i32, i32) {
    %c0_i32 = arith.constant 0 : i32
    %c0_i32_0 = arith.constant 0 : i32
    return %c0_i32, %arg1 : i32, i32
  }
  func.func @transform_2(%arg0: i32, %arg1: i32) -> (i32, i32) {
    %c0_i32 = arith.constant 0 : i32
    %c0_i32_0 = arith.constant 0 : i32
    return %c0_i32, %arg1 : i32, i32
  }
  func.func @transform_3(%arg0: i32, %arg1: i32) -> (i32, i32, i32) {
    %c0_i32 = arith.constant 0 : i32
    %c0_i32_0 = arith.constant 0 : i32
    return %arg0, %c0_i32, %arg1 : i32, i32, i32
  }
}

module attributes {stable_mosaic.version = 11 : i64} {
  func.func @_conv_kernel(%arg0: i32, %arg1: i32, %arg2: memref<1x42x32xbf16, #tpu.memory_space<vmem>>, %arg3: memref<288x64xbf16, #tpu.memory_space<vmem>>, %arg4: memref<1x64xf32, #tpu.memory_space<vmem>>, %arg5: memref<1x24x64xbf16, #tpu.memory_space<vmem>>) attributes {dimension_semantics = [#tpu.dimension_semantics<parallel>, #tpu.dimension_semantics<parallel>], iteration_bounds = array<i64: 2, 1>, scalar_prefetch = 0 : i64, scratch_operands = 0 : i64, tpu.core_type = #tpu.core_type<tc>, window_params = [{transform_indices = @transform_0, window_bounds = array<i64: 1, 42, 32>}, {transform_indices = @transform_1, window_bounds = array<i64: 288, 64>}, {transform_indices = @transform_2, window_bounds = array<i64: 1, 64>}, {transform_indices = @transform_3, window_bounds = array<i64: 1, 24, 64>}]} {
    %c0 = arith.constant 0 : index
    %c0_0 = arith.constant 0 : index
    %c0_1 = arith.constant 0 : index
    %0 = vector.load %arg2[%c0, %c0_0, %c0_1] : memref<1x42x32xbf16, #tpu.memory_space<vmem>>, vector<1x24x32xbf16>
    %1 = vector.shape_cast %0 : vector<1x24x32xbf16> to vector<24x32xbf16>
    %c0_2 = arith.constant 0 : index
    %c0_3 = arith.constant 0 : index
    %2 = vector.load %arg3[%c0_2, %c0_3] : memref<288x64xbf16, #tpu.memory_space<vmem>>, vector<32x64xbf16>
    %cst = arith.constant dense<0.000000e+00> : vector<24x64xf32>
    %3 = tpu.matmul %1, %2, %cst {dimension_numbers = #tpu.dot_dimension_numbers<[1], [0], [0], [1], [0, 0, 1, 1], [], []>} : vector<24x32xbf16>, vector<32x64xbf16>, vector<24x64xf32> -> vector<24x64xf32>
    %c0_4 = arith.constant 0 : index
    %c1 = arith.constant 1 : index
    %c0_5 = arith.constant 0 : index
    %4 = vector.load %arg2[%c0_4, %c1, %c0_5] : memref<1x42x32xbf16, #tpu.memory_space<vmem>>, vector<1x24x32xbf16>
    %5 = vector.shape_cast %4 : vector<1x24x32xbf16> to vector<24x32xbf16>
    %c32 = arith.constant 32 : index
    %c0_6 = arith.constant 0 : index
    %6 = vector.load %arg3[%c32, %c0_6] : memref<288x64xbf16, #tpu.memory_space<vmem>>, vector<32x64xbf16>
    %cst_7 = arith.constant dense<0.000000e+00> : vector<24x64xf32>
    %7 = tpu.matmul %5, %6, %cst_7 {dimension_numbers = #tpu.dot_dimension_numbers<[1], [0], [0], [1], [0, 0, 1, 1], [], []>} : vector<24x32xbf16>, vector<32x64xbf16>, vector<24x64xf32> -> vector<24x64xf32>
    %8 = arith.addf %3, %7 : vector<24x64xf32>
    %c0_8 = arith.constant 0 : index
    %c2 = arith.constant 2 : index
    %c0_9 = arith.constant 0 : index
    %9 = vector.load %arg2[%c0_8, %c2, %c0_9] : memref<1x42x32xbf16, #tpu.memory_space<vmem>>, vector<1x24x32xbf16>
    %10 = vector.shape_cast %9 : vector<1x24x32xbf16> to vector<24x32xbf16>
    %c64 = arith.constant 64 : index
    %c0_10 = arith.constant 0 : index
    %11 = vector.load %arg3[%c64, %c0_10] : memref<288x64xbf16, #tpu.memory_space<vmem>>, vector<32x64xbf16>
    %cst_11 = arith.constant dense<0.000000e+00> : vector<24x64xf32>
    %12 = tpu.matmul %10, %11, %cst_11 {dimension_numbers = #tpu.dot_dimension_numbers<[1], [0], [0], [1], [0, 0, 1, 1], [], []>} : vector<24x32xbf16>, vector<32x64xbf16>, vector<24x64xf32> -> vector<24x64xf32>
    %13 = arith.addf %8, %12 : vector<24x64xf32>
    %c0_12 = arith.constant 0 : index
    %c6 = arith.constant 6 : index
    %c0_13 = arith.constant 0 : index
    %14 = vector.load %arg2[%c0_12, %c6, %c0_13] : memref<1x42x32xbf16, #tpu.memory_space<vmem>>, vector<1x24x32xbf16>
    %15 = vector.shape_cast %14 : vector<1x24x32xbf16> to vector<24x32xbf16>
    %c96 = arith.constant 96 : index
    %c0_14 = arith.constant 0 : index
    %16 = vector.load %arg3[%c96, %c0_14] : memref<288x64xbf16, #tpu.memory_space<vmem>>, vector<32x64xbf16>
    %cst_15 = arith.constant dense<0.000000e+00> : vector<24x64xf32>
    %17 = tpu.matmul %15, %16, %cst_15 {dimension_numbers = #tpu.dot_dimension_numbers<[1], [0], [0], [1], [0, 0, 1, 1], [], []>} : vector<24x32xbf16>, vector<32x64xbf16>, vector<24x64xf32> -> vector<24x64xf32>
    %18 = arith.addf %13, %17 : vector<24x64xf32>
    %c0_16 = arith.constant 0 : index
    %c7 = arith.constant 7 : index
    %c0_17 = arith.constant 0 : index
    %19 = vector.load %arg2[%c0_16, %c7, %c0_17] : memref<1x42x32xbf16, #tpu.memory_space<vmem>>, vector<1x24x32xbf16>
    %20 = vector.shape_cast %19 : vector<1x24x32xbf16> to vector<24x32xbf16>
    %c128 = arith.constant 128 : index
    %c0_18 = arith.constant 0 : index
    %21 = vector.load %arg3[%c128, %c0_18] : memref<288x64xbf16, #tpu.memory_space<vmem>>, vector<32x64xbf16>
    %cst_19 = arith.constant dense<0.000000e+00> : vector<24x64xf32>
    %22 = tpu.matmul %20, %21, %cst_19 {dimension_numbers = #tpu.dot_dimension_numbers<[1], [0], [0], [1], [0, 0, 1, 1], [], []>} : vector<24x32xbf16>, vector<32x64xbf16>, vector<24x64xf32> -> vector<24x64xf32>
    %23 = arith.addf %18, %22 : vector<24x64xf32>
    %c0_20 = arith.constant 0 : index
    %c8 = arith.constant 8 : index
    %c0_21 = arith.constant 0 : index
    %24 = vector.load %arg2[%c0_20, %c8, %c0_21] : memref<1x42x32xbf16, #tpu.memory_space<vmem>>, vector<1x24x32xbf16>
    %25 = vector.shape_cast %24 : vector<1x24x32xbf16> to vector<24x32xbf16>
    %c160 = arith.constant 160 : index
    %c0_22 = arith.constant 0 : index
    %26 = vector.load %arg3[%c160, %c0_22] : memref<288x64xbf16, #tpu.memory_space<vmem>>, vector<32x64xbf16>
    %cst_23 = arith.constant dense<0.000000e+00> : vector<24x64xf32>
    %27 = tpu.matmul %25, %26, %cst_23 {dimension_numbers = #tpu.dot_dimension_numbers<[1], [0], [0], [1], [0, 0, 1, 1], [], []>} : vector<24x32xbf16>, vector<32x64xbf16>, vector<24x64xf32> -> vector<24x64xf32>
    %28 = arith.addf %23, %27 : vector<24x64xf32>
    %c0_24 = arith.constant 0 : index
    %c12 = arith.constant 12 : index
    %c0_25 = arith.constant 0 : index
    %29 = vector.load %arg2[%c0_24, %c12, %c0_25] : memref<1x42x32xbf16, #tpu.memory_space<vmem>>, vector<1x24x32xbf16>
    %30 = vector.shape_cast %29 : vector<1x24x32xbf16> to vector<24x32xbf16>
    %c192 = arith.constant 192 : index
    %c0_26 = arith.constant 0 : index
    %31 = vector.load %arg3[%c192, %c0_26] : memref<288x64xbf16, #tpu.memory_space<vmem>>, vector<32x64xbf16>
    %cst_27 = arith.constant dense<0.000000e+00> : vector<24x64xf32>
    %32 = tpu.matmul %30, %31, %cst_27 {dimension_numbers = #tpu.dot_dimension_numbers<[1], [0], [0], [1], [0, 0, 1, 1], [], []>} : vector<24x32xbf16>, vector<32x64xbf16>, vector<24x64xf32> -> vector<24x64xf32>
    %33 = arith.addf %28, %32 : vector<24x64xf32>
    %c0_28 = arith.constant 0 : index
    %c13 = arith.constant 13 : index
    %c0_29 = arith.constant 0 : index
    %34 = vector.load %arg2[%c0_28, %c13, %c0_29] : memref<1x42x32xbf16, #tpu.memory_space<vmem>>, vector<1x24x32xbf16>
    %35 = vector.shape_cast %34 : vector<1x24x32xbf16> to vector<24x32xbf16>
    %c224 = arith.constant 224 : index
    %c0_30 = arith.constant 0 : index
    %36 = vector.load %arg3[%c224, %c0_30] : memref<288x64xbf16, #tpu.memory_space<vmem>>, vector<32x64xbf16>
    %cst_31 = arith.constant dense<0.000000e+00> : vector<24x64xf32>
    %37 = tpu.matmul %35, %36, %cst_31 {dimension_numbers = #tpu.dot_dimension_numbers<[1], [0], [0], [1], [0, 0, 1, 1], [], []>} : vector<24x32xbf16>, vector<32x64xbf16>, vector<24x64xf32> -> vector<24x64xf32>
    %38 = arith.addf %33, %37 : vector<24x64xf32>
    %c0_32 = arith.constant 0 : index
    %c14 = arith.constant 14 : index
    %c0_33 = arith.constant 0 : index
    %39 = vector.load %arg2[%c0_32, %c14, %c0_33] : memref<1x42x32xbf16, #tpu.memory_space<vmem>>, vector<1x24x32xbf16>
    %40 = vector.shape_cast %39 : vector<1x24x32xbf16> to vector<24x32xbf16>
    %c256 = arith.constant 256 : index
    %c0_34 = arith.constant 0 : index
    %41 = vector.load %arg3[%c256, %c0_34] : memref<288x64xbf16, #tpu.memory_space<vmem>>, vector<32x64xbf16>
    %cst_35 = arith.constant dense<0.000000e+00> : vector<24x64xf32>
    %42 = tpu.matmul %40, %41, %cst_35 {dimension_numbers = #tpu.dot_dimension_numbers<[1], [0], [0], [1], [0, 0, 1, 1], [], []>} : vector<24x32xbf16>, vector<32x64xbf16>, vector<24x64xf32> -> vector<24x64xf32>
    %43 = arith.addf %38, %42 : vector<24x64xf32>
    %c0_36 = arith.constant 0 : index
    %c0_37 = arith.constant 0 : index
    %44 = vector.load %arg4[%c0_36, %c0_37] : memref<1x64xf32, #tpu.memory_space<vmem>>, vector<1x64xf32>
    %45 = vector.broadcast %44 : vector<1x64xf32> to vector<24x64xf32>
    %46 = arith.addf %43, %45 : vector<24x64xf32>
    %cst_38 = arith.constant 0.000000e+00 : f32
    %47 = vector.broadcast %cst_38 : f32 to vector<24x64xf32>
    %48 = arith.maximumf %46, %47 : vector<24x64xf32>
    %49 = arith.truncf %48 : vector<24x64xf32> to vector<24x64xbf16>
    %c0_39 = arith.constant 0 : index
    %c0_40 = arith.constant 0 : index
    %c0_41 = arith.constant 0 : index
    %50 = vector.load %arg5[%c0_39, %c0_40, %c0_41] : memref<1x24x64xbf16, #tpu.memory_space<vmem>>, vector<1x24x64xbf16>
    %51 = vector.shape_cast %50 : vector<1x24x64xbf16> to vector<24x64xbf16>
    %52 = vector.shape_cast %49 : vector<24x64xbf16> to vector<1x24x64xbf16>
    tpu.vector_store %arg5[%c0_39, %c0_40, %c0_41], %52 {strides = array<i32>} : memref<1x24x64xbf16, #tpu.memory_space<vmem>>, vector<1x24x64xbf16>,
    return
  }
  func.func @transform_0(%arg0: i32, %arg1: i32) -> (i32, i32, i32) {
    %c0_i32 = arith.constant 0 : i32
    %c0_i32_0 = arith.constant 0 : i32
    %c0_i32_1 = arith.constant 0 : i32
    return %arg0, %c0_i32, %c0_i32_0 : i32, i32, i32
  }
  func.func @transform_1(%arg0: i32, %arg1: i32) -> (i32, i32) {
    %c0_i32 = arith.constant 0 : i32
    %c0_i32_0 = arith.constant 0 : i32
    return %c0_i32, %arg1 : i32, i32
  }
  func.func @transform_2(%arg0: i32, %arg1: i32) -> (i32, i32) {
    %c0_i32 = arith.constant 0 : i32
    %c0_i32_0 = arith.constant 0 : i32
    return %c0_i32, %arg1 : i32, i32
  }
  func.func @transform_3(%arg0: i32, %arg1: i32) -> (i32, i32, i32) {
    %c0_i32 = arith.constant 0 : i32
    %c0_i32_0 = arith.constant 0 : i32
    return %arg0, %c0_i32, %arg1 : i32, i32, i32
  }
}

module attributes {stable_mosaic.version = 11 : i64} {
  func.func @_conv_kernel(%arg0: i32, %arg1: i32, %arg2: memref<1x110x16xbf16, #tpu.memory_space<vmem>>, %arg3: memref<144x4xbf16, #tpu.memory_space<vmem>>, %arg4: memref<1x4xf32, #tpu.memory_space<vmem>>, %arg5: memref<1x80x4xf32, #tpu.memory_space<vmem>>) attributes {dimension_semantics = [#tpu.dimension_semantics<parallel>, #tpu.dimension_semantics<parallel>], iteration_bounds = array<i64: 2, 1>, scalar_prefetch = 0 : i64, scratch_operands = 0 : i64, tpu.core_type = #tpu.core_type<tc>, window_params = [{transform_indices = @transform_0, window_bounds = array<i64: 1, 110, 16>}, {transform_indices = @transform_1, window_bounds = array<i64: 144, 4>}, {transform_indices = @transform_2, window_bounds = array<i64: 1, 4>}, {transform_indices = @transform_3, window_bounds = array<i64: 1, 80, 4>}]} {
    %c0 = arith.constant 0 : index
    %c0_0 = arith.constant 0 : index
    %c0_1 = arith.constant 0 : index
    %0 = vector.load %arg2[%c0, %c0_0, %c0_1] : memref<1x110x16xbf16, #tpu.memory_space<vmem>>, vector<1x80x16xbf16>
    %1 = vector.shape_cast %0 : vector<1x80x16xbf16> to vector<80x16xbf16>
    %c0_2 = arith.constant 0 : index
    %c0_3 = arith.constant 0 : index
    %2 = vector.load %arg3[%c0_2, %c0_3] : memref<144x4xbf16, #tpu.memory_space<vmem>>, vector<16x4xbf16>
    %cst = arith.constant dense<0.000000e+00> : vector<80x4xf32>
    %3 = tpu.matmul %1, %2, %cst {dimension_numbers = #tpu.dot_dimension_numbers<[1], [0], [0], [1], [0, 0, 1, 1], [], []>} : vector<80x16xbf16>, vector<16x4xbf16>, vector<80x4xf32> -> vector<80x4xf32>
    %c0_4 = arith.constant 0 : index
    %c1 = arith.constant 1 : index
    %c0_5 = arith.constant 0 : index
    %4 = vector.load %arg2[%c0_4, %c1, %c0_5] : memref<1x110x16xbf16, #tpu.memory_space<vmem>>, vector<1x80x16xbf16>
    %5 = vector.shape_cast %4 : vector<1x80x16xbf16> to vector<80x16xbf16>
    %c16 = arith.constant 16 : index
    %c0_6 = arith.constant 0 : index
    %6 = vector.load %arg3[%c16, %c0_6] : memref<144x4xbf16, #tpu.memory_space<vmem>>, vector<16x4xbf16>
    %cst_7 = arith.constant dense<0.000000e+00> : vector<80x4xf32>
    %7 = tpu.matmul %5, %6, %cst_7 {dimension_numbers = #tpu.dot_dimension_numbers<[1], [0], [0], [1], [0, 0, 1, 1], [], []>} : vector<80x16xbf16>, vector<16x4xbf16>, vector<80x4xf32> -> vector<80x4xf32>
    %8 = arith.addf %3, %7 : vector<80x4xf32>
    %c0_8 = arith.constant 0 : index
    %c2 = arith.constant 2 : index
    %c0_9 = arith.constant 0 : index
    %9 = vector.load %arg2[%c0_8, %c2, %c0_9] : memref<1x110x16xbf16, #tpu.memory_space<vmem>>, vector<1x80x16xbf16>
    %10 = vector.shape_cast %9 : vector<1x80x16xbf16> to vector<80x16xbf16>
    %c32 = arith.constant 32 : index
    %c0_10 = arith.constant 0 : index
    %11 = vector.load %arg3[%c32, %c0_10] : memref<144x4xbf16, #tpu.memory_space<vmem>>, vector<16x4xbf16>
    %cst_11 = arith.constant dense<0.000000e+00> : vector<80x4xf32>
    %12 = tpu.matmul %10, %11, %cst_11 {dimension_numbers = #tpu.dot_dimension_numbers<[1], [0], [0], [1], [0, 0, 1, 1], [], []>} : vector<80x16xbf16>, vector<16x4xbf16>, vector<80x4xf32> -> vector<80x4xf32>
    %13 = arith.addf %8, %12 : vector<80x4xf32>
    %c0_12 = arith.constant 0 : index
    %c10 = arith.constant 10 : index
    %c0_13 = arith.constant 0 : index
    %14 = vector.load %arg2[%c0_12, %c10, %c0_13] : memref<1x110x16xbf16, #tpu.memory_space<vmem>>, vector<1x80x16xbf16>
    %15 = vector.shape_cast %14 : vector<1x80x16xbf16> to vector<80x16xbf16>
    %c48 = arith.constant 48 : index
    %c0_14 = arith.constant 0 : index
    %16 = vector.load %arg3[%c48, %c0_14] : memref<144x4xbf16, #tpu.memory_space<vmem>>, vector<16x4xbf16>
    %cst_15 = arith.constant dense<0.000000e+00> : vector<80x4xf32>
    %17 = tpu.matmul %15, %16, %cst_15 {dimension_numbers = #tpu.dot_dimension_numbers<[1], [0], [0], [1], [0, 0, 1, 1], [], []>} : vector<80x16xbf16>, vector<16x4xbf16>, vector<80x4xf32> -> vector<80x4xf32>
    %18 = arith.addf %13, %17 : vector<80x4xf32>
    %c0_16 = arith.constant 0 : index
    %c11 = arith.constant 11 : index
    %c0_17 = arith.constant 0 : index
    %19 = vector.load %arg2[%c0_16, %c11, %c0_17] : memref<1x110x16xbf16, #tpu.memory_space<vmem>>, vector<1x80x16xbf16>
    %20 = vector.shape_cast %19 : vector<1x80x16xbf16> to vector<80x16xbf16>
    %c64 = arith.constant 64 : index
    %c0_18 = arith.constant 0 : index
    %21 = vector.load %arg3[%c64, %c0_18] : memref<144x4xbf16, #tpu.memory_space<vmem>>, vector<16x4xbf16>
    %cst_19 = arith.constant dense<0.000000e+00> : vector<80x4xf32>
    %22 = tpu.matmul %20, %21, %cst_19 {dimension_numbers = #tpu.dot_dimension_numbers<[1], [0], [0], [1], [0, 0, 1, 1], [], []>} : vector<80x16xbf16>, vector<16x4xbf16>, vector<80x4xf32> -> vector<80x4xf32>
    %23 = arith.addf %18, %22 : vector<80x4xf32>
    %c0_20 = arith.constant 0 : index
    %c12 = arith.constant 12 : index
    %c0_21 = arith.constant 0 : index
    %24 = vector.load %arg2[%c0_20, %c12, %c0_21] : memref<1x110x16xbf16, #tpu.memory_space<vmem>>, vector<1x80x16xbf16>
    %25 = vector.shape_cast %24 : vector<1x80x16xbf16> to vector<80x16xbf16>
    %c80 = arith.constant 80 : index
    %c0_22 = arith.constant 0 : index
    %26 = vector.load %arg3[%c80, %c0_22] : memref<144x4xbf16, #tpu.memory_space<vmem>>, vector<16x4xbf16>
    %cst_23 = arith.constant dense<0.000000e+00> : vector<80x4xf32>
    %27 = tpu.matmul %25, %26, %cst_23 {dimension_numbers = #tpu.dot_dimension_numbers<[1], [0], [0], [1], [0, 0, 1, 1], [], []>} : vector<80x16xbf16>, vector<16x4xbf16>, vector<80x4xf32> -> vector<80x4xf32>
    %28 = arith.addf %23, %27 : vector<80x4xf32>
    %c0_24 = arith.constant 0 : index
    %c20 = arith.constant 20 : index
    %c0_25 = arith.constant 0 : index
    %29 = vector.load %arg2[%c0_24, %c20, %c0_25] : memref<1x110x16xbf16, #tpu.memory_space<vmem>>, vector<1x80x16xbf16>
    %30 = vector.shape_cast %29 : vector<1x80x16xbf16> to vector<80x16xbf16>
    %c96 = arith.constant 96 : index
    %c0_26 = arith.constant 0 : index
    %31 = vector.load %arg3[%c96, %c0_26] : memref<144x4xbf16, #tpu.memory_space<vmem>>, vector<16x4xbf16>
    %cst_27 = arith.constant dense<0.000000e+00> : vector<80x4xf32>
    %32 = tpu.matmul %30, %31, %cst_27 {dimension_numbers = #tpu.dot_dimension_numbers<[1], [0], [0], [1], [0, 0, 1, 1], [], []>} : vector<80x16xbf16>, vector<16x4xbf16>, vector<80x4xf32> -> vector<80x4xf32>
    %33 = arith.addf %28, %32 : vector<80x4xf32>
    %c0_28 = arith.constant 0 : index
    %c21 = arith.constant 21 : index
    %c0_29 = arith.constant 0 : index
    %34 = vector.load %arg2[%c0_28, %c21, %c0_29] : memref<1x110x16xbf16, #tpu.memory_space<vmem>>, vector<1x80x16xbf16>
    %35 = vector.shape_cast %34 : vector<1x80x16xbf16> to vector<80x16xbf16>
    %c112 = arith.constant 112 : index
    %c0_30 = arith.constant 0 : index
    %36 = vector.load %arg3[%c112, %c0_30] : memref<144x4xbf16, #tpu.memory_space<vmem>>, vector<16x4xbf16>
    %cst_31 = arith.constant dense<0.000000e+00> : vector<80x4xf32>
    %37 = tpu.matmul %35, %36, %cst_31 {dimension_numbers = #tpu.dot_dimension_numbers<[1], [0], [0], [1], [0, 0, 1, 1], [], []>} : vector<80x16xbf16>, vector<16x4xbf16>, vector<80x4xf32> -> vector<80x4xf32>
    %38 = arith.addf %33, %37 : vector<80x4xf32>
    %c0_32 = arith.constant 0 : index
    %c22 = arith.constant 22 : index
    %c0_33 = arith.constant 0 : index
    %39 = vector.load %arg2[%c0_32, %c22, %c0_33] : memref<1x110x16xbf16, #tpu.memory_space<vmem>>, vector<1x80x16xbf16>
    %40 = vector.shape_cast %39 : vector<1x80x16xbf16> to vector<80x16xbf16>
    %c128 = arith.constant 128 : index
    %c0_34 = arith.constant 0 : index
    %41 = vector.load %arg3[%c128, %c0_34] : memref<144x4xbf16, #tpu.memory_space<vmem>>, vector<16x4xbf16>
    %cst_35 = arith.constant dense<0.000000e+00> : vector<80x4xf32>
    %42 = tpu.matmul %40, %41, %cst_35 {dimension_numbers = #tpu.dot_dimension_numbers<[1], [0], [0], [1], [0, 0, 1, 1], [], []>} : vector<80x16xbf16>, vector<16x4xbf16>, vector<80x4xf32> -> vector<80x4xf32>
    %43 = arith.addf %38, %42 : vector<80x4xf32>
    %c0_36 = arith.constant 0 : index
    %c0_37 = arith.constant 0 : index
    %44 = vector.load %arg4[%c0_36, %c0_37] : memref<1x4xf32, #tpu.memory_space<vmem>>, vector<1x4xf32>
    %45 = vector.broadcast %44 : vector<1x4xf32> to vector<80x4xf32>
    %46 = arith.addf %43, %45 : vector<80x4xf32>
    %c0_38 = arith.constant 0 : index
    %c0_39 = arith.constant 0 : index
    %c0_40 = arith.constant 0 : index
    %47 = vector.load %arg5[%c0_38, %c0_39, %c0_40] : memref<1x80x4xf32, #tpu.memory_space<vmem>>, vector<1x80x4xf32>
    %48 = vector.shape_cast %47 : vector<1x80x4xf32> to vector<80x4xf32>
    %49 = vector.shape_cast %46 : vector<80x4xf32> to vector<1x80x4xf32>
    tpu.vector_store %arg5[%c0_38, %c0_39, %c0_40], %49 {strides = array<i32>} : memref<1x80x4xf32, #tpu.memory_space<vmem>>, vector<1x80x4xf32>,
    return
  }
  func.func @transform_0(%arg0: i32, %arg1: i32) -> (i32, i32, i32) {
    %c0_i32 = arith.constant 0 : i32
    %c0_i32_0 = arith.constant 0 : i32
    %c0_i32_1 = arith.constant 0 : i32
    return %arg0, %c0_i32, %c0_i32_0 : i32, i32, i32
  }
  func.func @transform_1(%arg0: i32, %arg1: i32) -> (i32, i32) {
    %c0_i32 = arith.constant 0 : i32
    %c0_i32_0 = arith.constant 0 : i32
    return %c0_i32, %arg1 : i32, i32
  }
  func.func @transform_2(%arg0: i32, %arg1: i32) -> (i32, i32) {
    %c0_i32 = arith.constant 0 : i32
    %c0_i32_0 = arith.constant 0 : i32
    return %c0_i32, %arg1 : i32, i32
  }
  func.func @transform_3(%arg0: i32, %arg1: i32) -> (i32, i32, i32) {
    %c0_i32 = arith.constant 0 : i32
    %c0_i32_0 = arith.constant 0 : i32
    return %arg0, %c0_i32, %arg1 : i32, i32, i32
  }
}

</mosaic_0001>

<bundles_post_ra>
// kernel: _lambda_.23
= control target key start
LH: loop header
LB: loop body
LE: loop exit
PB: predicated region body
PF: predicated region fallthrough
CT: control target
= control target key end

     0   :  { %s1216_s12 = smov 0   ;;  %s1218_s13 = smov 0   ;;  %s1412_s0 = inlined_call_operand.vmem [shape: bf16[2,90,4], index: 0, kind: input, shape index: {}]   ;;  %s1413_s1 = inlined_call_operand.vmem [shape: bf16[16,16], index: 1, kind: input, shape index: {}]   ;;  %s1414_s2 = inlined_call_operand.vmem [shape: f32[1,16], index: 2, kind: input, shape index: {}]   ;;  %s1415_s3 = inlined_call_operand.vmem [shape: bf16[2,72,16], index: 3, kind: output, shape index: {}]  }
   0x1   :  { %s1220_s14 = smov 0  }
   0x2 LB: > { %s25_s15 = sadd.s32 1, %s1188_s13  ;;  %p958_p0 = scmp.ge.s32.totalorder %s1192_s14, 1  ;;  %s1192_s14 = sphi %s1220_s14, %s13_s14   ;;  %s1188_s13 = sphi %s1218_s13, %s1417_s13   ;;  %s1184_s12 = sphi %s1216_s12, %s1416_s12  }
   0x3   : > { %p27_p1 = scmp.ge.s32.totalorder %s25_s15, 2  ;;  %p168_p2 = scmp.lt.s32.totalorder %s1192_s14, 3 }
   0x5   : > { %s1419_s15 = smov (%p27_p1, %s25_s15), 0  ;;  %p169_p3 = pnand %p958_p0, %p168_p2 }
   0x6   : > { %v1156_v0 = vld [vmem:[%s1413_s1] ss:$0 sps:$4 sm:$0xcc] (!%p169_p3)   ;;  %v1194_v1 = vmov (!%p169_p3), 0.0   ;;  %vm320_vm0 = vcmask (!%p169_p3), 1041408   ;;  %p202_p4 = scmp.lt.s32.totalorder (!%p169_p3), %s1184_s12, 1 }
   0x7   : > { %172 = sbr.rel (%p169_p3) target bundleno = 321 (0x141), region = 32  ;;  %1040 = vmatprep.subr.bf16.mxu0 (!%p169_p3), %v1194_v1  ;;  %1062 = vmatprep.subr.bf16.mxu1 (!%p169_p3), %v1194_v1  ;;  %v232_v2 = vld [vmem:[%s1413_s1] sm:$0x3] (!%p169_p3)  ;;  %v303_v3 = vrot.slane (!%p169_p3), %v1156_v0, 2  ;;  %vm1195_vm1 = vmmov (!%p169_p3), 0   ;;  %vm304_vm2 = vcmask (!%p169_p3), 31744  }
   0x8   : > { %v409_v4 = vsel (!%p169_p3), %vm320_vm0, %v232_v2, 0  ;;  %1064 = vmatprep.mubr.msk.bf16.mxu1 (!%p169_p3), %vm1195_vm1, %v1194_v1  ;;  %1042 = vmatprep.mubr.msk.bf16.mxu0 (!%p169_p3), %vm1195_vm1, %v1194_v1  ;;  %v1159_v6 = vld [vmem:[%s1413_s1 + $0x4] ss:$0 sps:$4 sm:$0xcc] (!%p169_p3)   ;;  %vm260_vm3 = vsmask.f32 (!%p169_p3), 7424 }
   0x9   : > { %1063 = vmatpush3.bf16.msra.mxu1 (!%p169_p3), %v409_v4  ;;  %v322_v5 = vsel (!%p169_p3), %vm320_vm0, %v303_v3, 0  ;;  %v675_v7 = vrot.slane (!%p169_p3), %v1159_v6, 2  ;;  %v493_v16 = vld [vmem:[%s1413_s1 + $0x4] sm:$0x3] (!%p169_p3)  ;;  %vm662_vm4 = vcmask (!%p169_p3), 1046528   ;;  %vm837_vm5 = vcmask (!%p169_p3), 125952  }
   0xa   : > { %1106 = vmatprep.subr.bf16.mxu1 (!%p169_p3), %v1194_v1  ;;  %1041 = vmatpush3.bf16.msra.mxu0 (!%p169_p3), %v322_v5  ;;  %v574_v21 = vsel (!%p169_p3), %vm320_vm0, %v493_v16, 0 }
   0xb   : > { %1084 = vmatprep.subr.bf16.mxu0 (!%p169_p3), %v1194_v1  ;;  %v692_v9 = vsel (!%p169_p3), %vm320_vm0, %v675_v7, 0 }
   0xe   : > { %s1421_s12 = smov (!%p202_p4, %s1184_s12), 1 }
   0xf   : > { %s1128_s22 = smul.u32 48, %s1421_s12 }
  0x10   : > { %s1129_s30 = smul.u32 36, %s1421_s12 }
  0x11   : > { %s1259_s25 = scalar_lea.vmem %s1412_s0, %s1128_s22 }
  0x12   : > { %v1157_v8 = vld [vmem:[%s1259_s25] sm:$0xff]   ;;  %v1158_v10 = vld [vmem:[%s1259_s25 + $0x8] sm:$0xff]   ;;  %v1160_v14 = vld [vmem:[%s1259_s25 + $0x10] sm:$0xff]   ;;  %s1370_s6 = scalar_lea.vmem %s1415_s3, %s1129_s30 }
  0x13   : > { %1065 = vmatmul.mubr.msk.bf16.vlgmr.msra.gmra.mrb[0].mxu1 %vm304_vm2, %v1157_v8  ;;  %v262_v11 = vshrl.u32 %v1157_v8, 16  ;;  %v264_v12 = vshll.u32 %v1157_v8, 16  ;;  %v269_v13 = vshll.u32 %v1158_v10, 16  ;;  %v273_v19 = vshrl.u32 %v1158_v10, 16  ;;  %v1161_v25 = vld [vmem:[%s1259_s25 + $0x18] sm:$0xff]   ;;  %v1165_v45 = vld [vmem:[%s1259_s25 + $0xc] sm:$0xff]  }
  0x14   : > { %1107 = vmatpush3.bf16.msra.mxu1 %v692_v9  ;;  %1068 = vmatprep.mubr.msk.bf16.mxu1 %vm1195_vm1, %v1194_v1  ;;  %v277_v20 = vshll.u32 %v1160_v14, 16  ;;  %v281_v27 = vshrl.u32 %v1160_v14, 16  ;;  %v285_v28 = vshll.u32 %v1161_v25, 16  ;;  %v231_v29 = vld [vmem:[%s1259_s25 + $0x20] sm:$0xf]  ;;  %v289_v35 = vshrl.u32 %v1161_v25, 16 }
  0x15   : > { %v266_v15 = vrot.slane %v264_v12, 1  ;;  %v271_v17 = vrot.slane %v269_v13, 1  ;;  %v233_v30 = vld [vmem:[%s1259_s25 + $0x24] sm:$0x1]  ;;  %v484_v40 = vld [vmem:[%s1259_s25 + $0x8] sm:$0xf]  ;;  %v972_v44 = vcombine.low %v231_v29, %v231_v29 }
  0x16   : > { %v279_v24 = vrot.slane %v277_v20, 1  ;;  %v287_v32 = vrot.slane %v285_v28, 1  ;;  %v965_v33 = vcombine.low %v231_v29, %v233_v30  ;;  %v483_v39 = vld [vmem:[%s1259_s25 + $0x4] sm:$0xf]  ;;  %v664_v50 = vrot.slane %v1165_v45, 1  ;;  %v1167_v56 = vld [vmem:[%s1259_s25 + $0x14] sm:$0xff]  }
  0x17   : > { %v267_v18 = vor.u32 %v266_v15, %v262_v11  ;;  %v275_v23 = vor.u32 %v273_v19, %v271_v17  ;;  %v657_v41 = vld [vmem:[%s1259_s25 + $0x4] sm:$0xe]  ;;  %v978_v43 = vcombine.low %v483_v39, %v484_v40  ;;  %v527_v54 = vshll.u32 %v1165_v45, 16  ;;  %v1168_v0 = vld [vmem:[%s1259_s25 + $0x1c] sm:$0xff]  }
  0x18   : > { %v283_v31 = vor.u32 %v281_v27, %v279_v24  ;;  %v293_v36 = vshll.u32 %v965_v33, 16  ;;  %v291_v37 = vor.u32 %v289_v35, %v287_v32  ;;  %v988_v46 = vcombine.low %v657_v41, %v484_v40  ;;  %v1169_v9 = vld [vmem:[%s1259_s25 + $0x24] sm:$0x1f]  }
  0x19   : > { %v272_v22 = vsel %vm260_vm3, %v267_v18, %v271_v17  ;;  %v280_v26 = vsel %vm260_vm3, %v275_v23, %v279_v24  ;;  %v297_v47 = vshrl.u32 %v965_v33, 16  ;;  %v522_v48 = vshll.u32 %v978_v43, 16 }
  0x1a   : > { %1043 = vmatmul.mubr.msk.bf16.vlgmr.msra.gmra.mrb[0].mxu0 %vm304_vm2, %v272_v22  ;;  %v288_v34 = vsel %vm260_vm3, %v283_v31, %v287_v32  ;;  %v295_v38 = vrot.slane %v293_v36, 1  ;;  %v663_v49 = vrot.slane %v988_v46, 1  ;;  %v520_v52 = vshrl.u32 %v978_v43, 16 }
  0x1b   : > { %1085 = vmatpush3.bf16.msra.mxu0 %v574_v21  ;;  %1046 = vmatprep.mubr.msk.bf16.mxu0 %vm1195_vm1, %v1194_v1  ;;  %v524_v53 = vrot.slane %v522_v48, 1  ;;  %v529_v58 = vrot.slane %v527_v54, 1  ;;  %v666_v59 = vrot.slane %v1167_v56, 1  ;;  %v531_v61 = vshrl.u32 %v1165_v45, 16 }
  0x1c   : > { %1069 = vmatmul.mubr.msk.bf16.gmra.mrb[4].mxu1 %vm304_vm2, %v1158_v10  ;;  %v296_v42 = vsel %vm260_vm3, %v291_v37, %v295_v38  ;;  %v299_v51 = vor.u32 %v297_v47, %v295_v38  ;;  %v665_v55 = vsel %vm662_vm4, %v663_v49, %v664_v50  ;;  %v535_v62 = vshll.u32 %v1167_v56, 16 }
  0x1d   : > { %1072 = vmatprep.mubr.msk.bf16.mxu1 %vm1195_vm1, %v1194_v1  ;;  %v525_v57 = vor.u32 %v524_v53, %v520_v52  ;;  %v667_v63 = vsel %vm662_vm4, %v664_v50, %v666_v59  ;;  %v533_v2 = vor.u32 %v531_v61, %v529_v58  ;;  %v668_v4 = vrot.slane %v1168_v0, 1 }
  0x1e   : > { %v537_v3 = vrot.slane %v535_v62, 1  ;;  %v539_v6 = vshrl.u32 %v1167_v56, 16  ;;  %v543_v7 = vshll.u32 %v1168_v0, 16  ;;  %v670_v12 = vrot.slane %v1169_v9, 1 }
  0x1f   : > { %v530_v60 = vsel %vm260_vm3, %v525_v57, %v529_v58  ;;  %v669_v8 = vsel %vm662_vm4, %v666_v59, %v668_v4  ;;  %v551_v15 = vshll.u32 %v1169_v9, 16  ;;  %v555_v20 = vshrl.u32 %v1169_v9, 16 }
  0x20   : > { %v538_v5 = vsel %vm260_vm3, %v533_v2, %v537_v3  ;;  %v541_v10 = vor.u32 %v539_v6, %v537_v3  ;;  %v545_v11 = vrot.slane %v543_v7, 1  ;;  %v671_v16 = vsel %vm662_vm4, %v668_v4, %v670_v12 }
  0x21   : > { %v553_v18 = vrot.slane %v551_v15, 1 }
  0x22   : > { %1047 = vmatmul.mubr.msk.bf16.gmra.mrb[4].mxu0 %vm304_vm2, %v280_v26  ;;  %v546_v13 = vsel %vm260_vm3, %v541_v10, %v545_v11 }
  0x23   : > { %1050 = vmatprep.mubr.msk.bf16.mxu0 %vm1195_vm1, %v1194_v1  ;;  %v557_v21 = vor.u32 %v555_v20, %v553_v18 }
  0x24   : > { %1073 = vmatmul.mubr.msk.bf16.gmra.mrb[8].mxu1 %vm304_vm2, %v1160_v14  ;;  %v547_v14 = vshrl.u32 %v1168_v0, 16 }
  0x25   : > { %1076 = vmatprep.mubr.msk.bf16.mxu1 %vm1195_vm1, %v1194_v1 }
  0x26   : > { %v549_v17 = vor.u32 %v547_v14, %v545_v11  ;;  %v1362_v14 = vld [vmem:[%s1414_s2] ss:$0 sm:$0xff] }
  0x28   : > { %v554_v19 = vsel %vm260_vm3, %v549_v17, %v553_v18 }
  0x2a   : > { %1051 = vmatmul.mubr.msk.bf16.gmra.mrb[8].mxu0 %vm304_vm2, %v288_v34 }
  0x2b   : > { %1054 = vmatprep.mubr.msk.bf16.mxu0 %vm1195_vm1, %v1194_v1 }
  0x2c   : > { %1077 = vmatmul.mubr.msk.bf16.gmra.mrb[12].mxu1 %vm304_vm2, %v1161_v25 }
  0x2d   : > { %1080 = vmatprep.mubr.msk.bf16.mxu1 %vm1195_vm1, %v1194_v1 }
  0x32   : > { %1055 = vmatmul.mubr.msk.bf16.gmra.mrb[12].mxu0 %vm304_vm2, %v296_v42 }
  0x33   : > { %1058 = vmatprep.mubr.msk.bf16.mxu0 %vm1195_vm1, %v1194_v1 }
  0x34   : > { %1081 = vmatmul.mubr.msk.bf16.gmra.mrb[16].mxu1 %vm304_vm2, %v972_v44 }
  0x35   : > { %1108 = vmatprep.mubr.msk.bf16.mxu1 %vm1195_vm1, %v1194_v1 }
  0x3a   : > { %1059 = vmatmul.mubr.msk.bf16.gmra.mrb[16].mxu0 %vm304_vm2, %v299_v51 }
  0x3b   : > { %1086 = vmatprep.mubr.msk.bf16.mxu0 %vm1195_vm1, %v1194_v1 }
  0x3c   : > { %1109 = vmatmul.mubr.msk.bf16.vlgmr.msra.gmra.mrb[20].mxu1 %vm304_vm2, %v665_v55 }
  0x3d   : > { %1112 = vmatprep.mubr.msk.bf16.mxu1 %vm1195_vm1, %v1194_v1 }
  0x42   : > { %1087 = vmatmul.mubr.msk.bf16.vlgmr.msra.gmra.mrb[20].mxu0 %vm304_vm2, %v530_v60 }
  0x43   : > { %1090 = vmatprep.mubr.msk.bf16.mxu0 %vm1195_vm1, %v1194_v1 }
  0x44   : > { %1113 = vmatmul.mubr.msk.bf16.gmra.mrb[24].mxu1 %vm304_vm2, %v667_v63 }
  0x45   : > { %1116 = vmatprep.mubr.msk.bf16.mxu1 %vm1195_vm1, %v1194_v1 }
  0x4a   : > { %1091 = vmatmul.mubr.msk.bf16.gmra.mrb[24].mxu0 %vm304_vm2, %v538_v5 }
  0x4b   : > { %1094 = vmatprep.mubr.msk.bf16.mxu0 %vm1195_vm1, %v1194_v1 }
  0x4c   : > { %1117 = vmatmul.mubr.msk.bf16.gmra.mrb[28].mxu1 %vm304_vm2, %v669_v8 }
  0x4d   : > { %1120 = vmatprep.mubr.msk.bf16.mxu1 %vm1195_vm1, %v1194_v1 }
  0x52   : > { %1095 = vmatmul.mubr.msk.bf16.gmra.mrb[28].mxu0 %vm304_vm2, %v546_v13 }
  0x53   : > { %1098 = vmatprep.mubr.msk.bf16.mxu0 %vm1195_vm1, %v1194_v1 }
  0x54   : > { %1121 = vmatmul.mubr.msk.bf16.gmra.mrb[32].mxu1 %vm304_vm2, %v671_v16 }
  0x55   : > { %1124 = vmatprep.mubr.msk.bf16.mxu1 %vm1195_vm1, %v1194_v1 }
  0x5a   : > { %1099 = vmatmul.mubr.msk.bf16.gmra.mrb[32].mxu0 %vm304_vm2, %v554_v19 }
  0x5b   : > { %1102 = vmatprep.mubr.msk.bf16.mxu0 %vm1195_vm1, %v1194_v1 }
  0x5c   : > { %1125 = vmatmul.mubr.msk.bf16.gmra.mrb[36].mxu1 %vm304_vm2, %v670_v12 }
  0x62   : > { %1103 = vmatmul.mubr.msk.bf16.gmra.mrb[36].mxu0 %vm304_vm2, %v557_v21 }
  0xe6   : > { %v445_v22 = vpop.f32.mrb[0].mxu1 }
  0xe7   : > { %v1066_v23 = vpop.f32.mrb[1].mxu1 }
  0xe8   : > { %v448_v24 = vpop.f32.mrb[2].mxu1 }
  0xe9   : > { %v1067_v25 = vpop.f32.mrb[3].mxu1 }
  0xed   : > { %v358_v26 = vpop.f32.mrb[0].mxu0 }
  0xee   : > { %v446_v27 = vadd.f32 %v445_v22, %v358_v26  ;;  %v1044_v28 = vpop.f32.mrb[1].mxu0 }
  0xef   : > { %v361_v29 = vpop.f32.mrb[2].mxu0  ;;  %v453_v30 = vpop.f32.mrb[4].mxu1 }
  0xf0   : > { %v449_v31 = vadd.f32 %v448_v24, %v361_v29  ;;  %v1045_v32 = vpop.f32.mrb[3].mxu0  ;;  %v1070_v33 = vpop.f32.mrb[5].mxu1 }
  0xf1   : > { %v456_v34 = vpop.f32.mrb[6].mxu1 }
  0xf2   : > { %v1071_v35 = vpop.f32.mrb[7].mxu1 }
  0xf5   : > { %v366_v1 = vpop.f32.mrb[4].mxu0 }
  0xf6   : > { %v454_v36 = vadd.f32 %v453_v30, %v366_v1  ;;  %v1048_v37 = vpop.f32.mrb[5].mxu0 }
  0xf7   : > { %v369_v38 = vpop.f32.mrb[6].mxu0  ;;  %v461_v39 = vpop.f32.mrb[8].mxu1 }
  0xf8   : > { %v1347_v40 = vadd.f32 %v456_v34, %v369_v38  ;;  %v1049_v41 = vpop.f32.mrb[7].mxu0  ;;  %v1074_v42 = vpop.f32.mrb[9].mxu1 }
  0xf9   : > { %v464_v43 = vpop.f32.mrb[10].mxu1 }
  0xfa   : > { %v1075_v44 = vpop.f32.mrb[11].mxu1 }
  0xfd   : > { %v374_v45 = vpop.f32.mrb[8].mxu0 }
  0xfe   : > { %v1349_v46 = vadd.f32 %v461_v39, %v374_v45  ;;  %v1052_v47 = vpop.f32.mrb[9].mxu0 }
  0xff   : > { %v377_v48 = vpop.f32.mrb[10].mxu0  ;;  %v469_v49 = vpop.f32.mrb[12].mxu1 }
 0x100   : > { %v1351_v50 = vadd.f32 %v464_v43, %v377_v48  ;;  %v1053_v51 = vpop.f32.mrb[11].mxu0  ;;  %v1078_v52 = vpop.f32.mrb[13].mxu1 }
 0x101   : > { %v472_v53 = vpop.f32.mrb[14].mxu1 }
 0x102   : > { %v1079_v54 = vpop.f32.mrb[15].mxu1 }
 0x105   : > { %v382_v55 = vpop.f32.mrb[12].mxu0 }
 0x106   : > { %v1353_v56 = vadd.f32 %v469_v49, %v382_v55  ;;  %v1056_v57 = vpop.f32.mrb[13].mxu0 }
 0x107   : > { %v385_v58 = vpop.f32.mrb[14].mxu0  ;;  %v477_v59 = vpop.f32.mrb[16].mxu1 }
 0x108   : > { %v1355_v60 = vadd.f32 %v472_v53, %v385_v58  ;;  %v1057_v61 = vpop.f32.mrb[15].mxu0  ;;  %v1082_v62 = vpop.f32.mrb[17].mxu1 }
 0x109   : > { %v480_v63 = vpop.f32.mrb[18].mxu1 }
 0x10a   : > { %v1083_v0 = vpop.f32.mrb[19].mxu1 }
 0x10d   : > { %v390_v2 = vpop.f32.mrb[16].mxu0 }
 0x10e   : > { %v1357_v3 = vadd.f32 %v477_v59, %v390_v2  ;;  %v1060_v4 = vpop.f32.mrb[17].mxu0 }
 0x10f   : > { %v393_v5 = vpop.f32.mrb[18].mxu0  ;;  %v728_v6 = vpop.f32.mrb[20].mxu1 }
 0x110   : > { %v1061_v7 = vpop.f32.mrb[19].mxu0  ;;  %v1110_v8 = vpop.f32.mrb[21].mxu1 }
 0x111   : > { %v731_v9 = vpop.f32.mrb[22].mxu1 }
 0x112   : > { %v1111_v10 = vpop.f32.mrb[23].mxu1 }
 0x115   : > { %v610_v11 = vpop.f32.mrb[20].mxu0 }
 0x116   : > { %v648_v12 = vadd.f32 %v610_v11, %v446_v27  ;;  %v1088_v13 = vpop.f32.mrb[21].mxu0 }
 0x117   : > { %v613_v15 = vpop.f32.mrb[22].mxu0  ;;  %v736_v16 = vpop.f32.mrb[24].mxu1 }
 0x118   : > { %v766_v17 = vadd.f32 %v728_v6, %v648_v12  ;;  %v649_v18 = vadd.f32 %v613_v15, %v449_v31  ;;  %v1089_v19 = vpop.f32.mrb[23].mxu0  ;;  %v1114_v20 = vpop.f32.mrb[25].mxu1 }
 0x119   : > { %v739_v21 = vpop.f32.mrb[26].mxu1 }
 0x11a   : > { %v782_v22 = vadd.f32 %v1362_v14, %v766_v17  ;;  %v767_v23 = vadd.f32 %v731_v9, %v649_v18  ;;  %v1115_v24 = vpop.f32.mrb[27].mxu1 }
 0x11c   : > { %v791_v25 = vmax.f32 %v782_v22, 0.0  ;;  %v783_v26 = vadd.f32 %v1362_v14, %v767_v23 }
 0x11d   : > { %v618_v27 = vpop.f32.mrb[24].mxu0 }
 0x11e   : > { %v1007_v28 = vpack.c.bf16 %v791_v25, %v791_v25  ;;  %v792_v29 = vmax.f32 %v783_v26, 0.0  ;;  %v650_v30 = vadd.f32 %v618_v27, %v454_v36  ;;  %v1092_v31 = vpop.f32.mrb[25].mxu0 }
 0x11f   : > { %v621_v32 = vpop.f32.mrb[26].mxu0  ;;  %v744_v33 = vpop.f32.mrb[28].mxu1 }
 0x120   : > { %838 = vst.msk [vmem:[%s1370_s6] sm:$0xf] %vm837_vm5, %v1007_v28  ;;  %v1008_v34 = vpack.c.bf16 %v792_v29, %v792_v29  ;;  %v768_v35 = vadd.f32 %v736_v16, %v650_v30  ;;  %v651_v1 = vadd.f32 %v621_v32, %v1347_v40  ;;  %v1093_v37 = vpop.f32.mrb[27].mxu0  ;;  %v1118_v38 = vpop.f32.mrb[29].mxu1 }
 0x121   : > { %v747_v39 = vpop.f32.mrb[30].mxu1 }
 0x122   : > { %839 = vst.msk [vmem:[%s1370_s6 + $0x4] sm:$0xf] %vm837_vm5, %v1008_v34  ;;  %v784_v41 = vadd.f32 %v1362_v14, %v768_v35  ;;  %v769_v42 = vadd.f32 %v739_v21, %v651_v1  ;;  %v1119_v43 = vpop.f32.mrb[31].mxu1 }
 0x124   : > { %v793_v36 = vmax.f32 %v784_v41, 0.0  ;;  %v785_v44 = vadd.f32 %v1362_v14, %v769_v42 }
 0x125   : > { %v626_v45 = vpop.f32.mrb[28].mxu0 }
 0x126   : > { %v1009_v47 = vpack.c.bf16 %v793_v36, %v793_v36  ;;  %v794_v48 = vmax.f32 %v785_v44, 0.0  ;;  %v652_v49 = vadd.f32 %v626_v45, %v1349_v46  ;;  %v1096_v40 = vpop.f32.mrb[29].mxu0 }
 0x127   : > { %v629_v51 = vpop.f32.mrb[30].mxu0  ;;  %v752_v52 = vpop.f32.mrb[32].mxu1 }
 0x128   : > { %840 = vst.msk [vmem:[%s1370_s6 + $0x8] sm:$0xf] %vm837_vm5, %v1009_v47  ;;  %v1010_v53 = vpack.c.bf16 %v794_v48, %v794_v48  ;;  %v770_v54 = vadd.f32 %v744_v33, %v652_v49  ;;  %v653_v55 = vadd.f32 %v629_v51, %v1351_v50  ;;  %v1097_v57 = vpop.f32.mrb[31].mxu0  ;;  %v1122_v58 = vpop.f32.mrb[33].mxu1 }
 0x129   : > { %v755_v59 = vpop.f32.mrb[34].mxu1 }
 0x12a   : > { %841 = vst.msk [vmem:[%s1370_s6 + $0xc] sm:$0xf] %vm837_vm5, %v1010_v53  ;;  %v786_v61 = vadd.f32 %v1362_v14, %v770_v54  ;;  %v771_v62 = vadd.f32 %v747_v39, %v653_v55  ;;  %v1123_v63 = vpop.f32.mrb[35].mxu1 }
 0x12c   : > { %v795_v46 = vmax.f32 %v786_v61, 0.0  ;;  %v787_v0 = vadd.f32 %v1362_v14, %v771_v62 }
 0x12d   : > { %v634_v2 = vpop.f32.mrb[32].mxu0 }
 0x12e   : > { %v1011_v4 = vpack.c.bf16 %v795_v46, %v795_v46  ;;  %v796_v5 = vmax.f32 %v787_v0, 0.0  ;;  %v654_v6 = vadd.f32 %v634_v2, %v1353_v56  ;;  %v1100_v50 = vpop.f32.mrb[33].mxu0 }
 0x12f   : > { %v637_v7 = vpop.f32.mrb[34].mxu0  ;;  %v760_v8 = vpop.f32.mrb[36].mxu1 }
 0x130   : > { %842 = vst.msk [vmem:[%s1370_s6 + $0x10] sm:$0xf] %vm837_vm5, %v1011_v4  ;;  %v1012_v9 = vpack.c.bf16 %v796_v5, %v796_v5  ;;  %v772_v10 = vadd.f32 %v752_v52, %v654_v6  ;;  %v655_v11 = vadd.f32 %v637_v7, %v1355_v60  ;;  %v1101_v12 = vpop.f32.mrb[35].mxu0  ;;  %v1126_v13 = vpop.f32.mrb[37].mxu1 }
 0x131   : > { %v763_v15 = vpop.f32.mrb[38].mxu1 }
 0x132   : > { %843 = vst.msk [vmem:[%s1370_s6 + $0x14] sm:$0xf] %vm837_vm5, %v1012_v9  ;;  %v788_v16 = vadd.f32 %v1362_v14, %v772_v10  ;;  %v773_v17 = vadd.f32 %v755_v59, %v655_v11  ;;  %v1127_v56 = vpop.f32.mrb[39].mxu1 }
 0x134   : > { %v797_v18 = vmax.f32 %v788_v16, 0.0  ;;  %v789_v19 = vadd.f32 %v1362_v14, %v773_v17 }
 0x135   : > { %v642_v20 = vpop.f32.mrb[36].mxu0 }
 0x136   : > { %v1013_v21 = vpack.c.bf16 %v797_v18, %v797_v18  ;;  %v798_v22 = vmax.f32 %v789_v19, 0.0  ;;  %v656_v60 = vadd.f32 %v642_v20, %v1357_v3  ;;  %v1104_v23 = vpop.f32.mrb[37].mxu0 }
 0x137   : > { %v645_v24 = vpop.f32.mrb[38].mxu0 }
 0x138   : > { %844 = vst.msk [vmem:[%s1370_s6 + $0x18] sm:$0xf] %vm837_vm5, %v1013_v21  ;;  %v1014_v25 = vpack.c.bf16 %v798_v22, %v798_v22  ;;  %v774_v26 = vadd.f32 %v760_v8, %v656_v60  ;;  %v1105_v27 = vpop.f32.mrb[39].mxu0 }
 0x13a   : > { %845 = vst.msk [vmem:[%s1370_s6 + $0x1c] sm:$0xf] %vm837_vm5, %v1014_v25  ;;  %v790_v28 = vadd.f32 %v1362_v14, %v774_v26 }
 0x13c   : > { %v799_v29 = vmax.f32 %v790_v28, 0.0 }
 0x13e   : > { %v1015_v30 = vpack.c.bf16 %v799_v29, %v799_v29 }
 0x140   : > { %846 = vst.msk [vmem:[%s1370_s6 + $0x20] sm:$0xf] %vm837_vm5, %v1015_v30 }
 0x141 PF: > { %s13_s14 = sadd.s32 1, %s1192_s14   ;;  %s1416_s12 = smov %s1188_s13 }
 0x142   : > { %p10_p5 = scmp.ge.s32.totalorder %s13_s14, 4   ;;  %s1417_s13 = smov %s1419_s15 }
 0x144   :  { %12 = sbr.rel (!%p10_p5) target bundleno = 2 (0x2), region = 68 }

// kernel: _lambda_.24
= control target key start
LH: loop header
LB: loop body
LE: loop exit
PB: predicated region body
PF: predicated region fallthrough
CT: control target
= control target key end

     0   :  { %s993_s12 = smov 0   ;;  %s995_s13 = smov 0   ;;  %s1100_s0 = inlined_call_operand.vmem [shape: bf16[2,30,64], index: 0, kind: input, shape index: {}]   ;;  %s1101_s1 = inlined_call_operand.vmem [shape: bf16[256,32], index: 1, kind: input, shape index: {}]   ;;  %s1102_s2 = inlined_call_operand.vmem [shape: f32[1,32], index: 2, kind: input, shape index: {}]   ;;  %s1103_s3 = inlined_call_operand.vmem [shape: bf16[2,20,32], index: 3, kind: output, shape index: {}]  }
   0x1   :  { %s997_s14 = smov 0  }
   0x2 LB: > { %s25_s15 = sadd.s32 1, %s967_s13  ;;  %p786_p0 = scmp.ge.s32.totalorder %s971_s14, 1  ;;  %s971_s14 = sphi %s997_s14, %s13_s14   ;;  %s967_s13 = sphi %s995_s13, %s1105_s13   ;;  %s963_s12 = sphi %s993_s12, %s1104_s12  }
   0x3   : > { %p27_p1 = scmp.ge.s32.totalorder %s25_s15, 2  ;;  %p168_p2 = scmp.lt.s32.totalorder %s971_s14, 3 }
   0x5   : > { %s1107_s15 = smov (%p27_p1, %s25_s15), 0  ;;  %p169_p3 = pnand %p786_p0, %p168_p2 }
   0x6   : > { %v927_v0 = vld [vmem:[%s1101_s1 + $0x20] sm:$0xff] (!%p169_p3)   ;;  %p202_p4 = scmp.lt.s32.totalorder (!%p169_p3), %s963_s12, 1  ;;  %v929_v2 = vld [vmem:[%s1101_s1 + $0x28] sm:$0xff] (!%p169_p3)   ;;  %v931_v4 = vld [vmem:[%s1101_s1 + $0x30] sm:$0xff] (!%p169_p3)   ;;  %vm291_vm0 = vcmask (!%p169_p3), 523264   ;;  %vm559_vm2 = vcmask (!%p169_p3), 1044480  }
   0x7   : > { %172 = sbr.rel (%p169_p3) target bundleno = 268 (0x10c), region = 32  ;;  %v928_v1 = vld [vmem:[%s1101_s1] sm:$0xff] (!%p169_p3)   ;;  %854 = vmatprep.subr.bf16.mxu0 (!%p169_p3), %v927_v0  ;;  %v930_v3 = vld [vmem:[%s1101_s1 + $0x8] sm:$0xff] (!%p169_p3)   ;;  %v932_v5 = vld [vmem:[%s1101_s1 + $0x10] sm:$0xff] (!%p169_p3)   ;;  %vm251_vm1 = vsmask.f32 (!%p169_p3), 7424 }
   0x8   : > { %866 = vmatprep.subr.bf16.mxu1 (!%p169_p3), %v928_v1  ;;  %855 = vmatpush3.bf16.msra.mxu0 (!%p169_p3), %v927_v0  ;;  %v933_v6 = vld [vmem:[%s1101_s1 + $0x38] sm:$0xff] (!%p169_p3)   ;;  %v938_v10 = vld [vmem:[%s1101_s1 + $0x40] sm:$0xff] (!%p169_p3)   ;;  %v940_v21 = vld [vmem:[%s1101_s1 + $0x48] sm:$0xff] (!%p169_p3)   ;;  %vm448_vm3 = vsmask.f32 (!%p169_p3), 5376  ;;  %vm673_vm4 = vcmask (!%p169_p3), 254976  }
   0x9   : > { %867 = vmatpush3.bf16.msra.mxu1 (!%p169_p3), %v928_v1  ;;  %856 = vmatprep.subr.bf16.mxu0 (!%p169_p3), %v929_v2  ;;  %v934_v7 = vld [vmem:[%s1101_s1 + $0x18] sm:$0xff] (!%p169_p3)   ;;  %v939_v18 = vld [vmem:[%s1101_s1 + $0x60] sm:$0xff] (!%p169_p3)   ;;  %v941_v23 = vld [vmem:[%s1101_s1 + $0x68] sm:$0xff] (!%p169_p3)   ;;  %vm670_vm5 = vcmask (!%p169_p3), 257024  }
   0xa   : > { %868 = vmatprep.subr.bf16.mxu1 (!%p169_p3), %v930_v3  ;;  %v942_v28 = vld [vmem:[%s1101_s1 + $0x50] sm:$0xff] (!%p169_p3)   ;;  %v944_v41 = vld [vmem:[%s1101_s1 + $0x58] sm:$0xff] (!%p169_p3)   ;;  %v820_v0 = vld [vmem:[%s1102_s2] ss:$0 sm:$0xff] (!%p169_p3) }
   0xb   : > { %v943_v29 = vld [vmem:[%s1101_s1 + $0x70] sm:$0xff] (!%p169_p3)   ;;  %v945_v42 = vld [vmem:[%s1101_s1 + $0x78] sm:$0xff] (!%p169_p3)  }
   0xc   : > { %857 = vmatpush3.bf16.msra.mxu0 (!%p169_p3), %v929_v2 }
   0xd   : > { %869 = vmatpush3.bf16.msra.mxu1 (!%p169_p3), %v930_v3  ;;  %858 = vmatprep.subr.bf16.mxu0 (!%p169_p3), %v931_v4 }
   0xe   : > { %s1109_s12 = smov (!%p202_p4, %s963_s12), 1  ;;  %870 = vmatprep.subr.bf16.mxu1 %v932_v5 }
   0xf   : > { %s826_s26 = sshll.u32 %s1109_s12, 4 }
  0x10   : > { %s1035_s4 = scalar_lea.vmem %s1100_s0, %s826_s26  ;;  %859 = vmatpush3.bf16.msra.mxu0 %v931_v4 }
  0x11   : > { %v935_v8 = vld [vmem:[%s1035_s4] sm:$0xff]   ;;  %v936_v9 = vld [vmem:[%s1035_s4 + $0x8] ss:$0 sps:$4 sm:$0x77]   ;;  %871 = vmatpush3.bf16.msra.mxu1 %v932_v5  ;;  %860 = vmatprep.subr.bf16.mxu0 %v933_v6 }
  0x12   : > { %v253_v11 = vshrl.u32 %v935_v8, 16  ;;  %v255_v12 = vshll.u32 %v935_v8, 16  ;;  %v260_v13 = vshll.u32 %v936_v9, 16  ;;  %v264_v14 = vshrl.u32 %v936_v9, 16  ;;  %874 = vmatprep.mubr.msk.bf16.mxu1 %vm291_vm0, %v935_v8  ;;  %872 = vmatprep.subr.bf16.mxu1 %v934_v7  ;;  %v426_v24 = vld [vmem:[%s1035_s4] sm:$0xc] }
  0x13   : > { %v937_v17 = vld [vmem:[%s1035_s4 + $0x8] ss:$0 sps:$4 sm:$0x33]   ;;  %v427_v25 = vld [vmem:[%s1035_s4 + $0x4] sm:$0xf] }
  0x14   : > { %v257_v15 = vrot.slane %v255_v12, 1  ;;  %v262_v16 = vrot.slane %v260_v13, 1  ;;  %861 = vmatpush3.bf16.msra.mxu0 %v933_v6  ;;  %v805_v26 = vcombine.low %v426_v24, %v427_v25  ;;  %v947_v27 = vld [vmem:[%s1035_s4 + $0x8] sm:$0x1f]   ;;  %v547_v30 = vld [vmem:[%s1035_s4] sm:$0x8] }
  0x15   : > { %873 = vmatpush3.bf16.msra.mxu1 %v934_v7  ;;  %878 = vmatprep.subr.bf16.mxu0 %v938_v10  ;;  %v458_v33 = vshrl.u32 %v947_v27, 16  ;;  %v461_v34 = vshll.u32 %v947_v27, 16  ;;  %v813_v35 = vcombine.low %v547_v30, %v427_v25  ;;  %v561_v36 = vrot.slane %v947_v27, 3  ;;  %s902_s4 = smul.u32 12, %s1109_s12 }
  0x16   : > { %v258_v19 = vor.u32 %v257_v15, %v253_v11  ;;  %v266_v20 = vor.u32 %v264_v14, %v262_v16  ;;  %890 = vmatprep.subr.bf16.mxu1 %v939_v18  ;;  %v450_v31 = vshrl.u32 %v805_v26, 16  ;;  %v453_v32 = vshll.u32 %v805_v26, 16 }
  0x17   : > { %v460_v39 = vrot.slane %v458_v33, 2  ;;  %v463_v40 = vrot.slane %v461_v34, 3  ;;  %v560_v43 = vrot.slane %v813_v35, 3  ;;  %s221_s7 = scalar_lea.vmem %s1103_s3, %s902_s4 }
  0x18   : > { %v263_v22 = vsel %vm251_vm1, %v258_v19, %v262_v16  ;;  %875 = vmatmul.mubr.msk.bf16.vlgmr.msra.gmra.mrb[0].mxu1 %vm291_vm0, %v937_v17  ;;  %v452_v37 = vrot.slane %v450_v31, 2  ;;  %v455_v38 = vrot.slane %v453_v32, 3 }
  0x19   : > { %862 = vmatprep.mubr.msk.bf16.mxu0 %vm291_vm0, %v263_v22  ;;  %891 = vmatpush3.bf16.msra.mxu1 %v939_v18  ;;  %v464_v45 = vor.u32 %v463_v40, %v460_v39  ;;  %v562_v46 = vsel %vm559_vm2, %v560_v43, %v561_v36 }
  0x1a   : > { %863 = vmatmul.mubr.msk.bf16.vlgmr.msra.gmra.mrb[0].mxu0 %vm291_vm0, %v266_v20  ;;  %892 = vmatprep.subr.bf16.mxu1 %v941_v23  ;;  %v456_v44 = vor.u32 %v455_v38, %v452_v37 }
  0x1b   : > { %879 = vmatpush3.bf16.msra.mxu0 %v938_v10  ;;  %898 = vmatprep.mubr.msk.bf16.mxu1 %vm291_vm0, %v562_v46 }
  0x1c   : > { %880 = vmatprep.subr.bf16.mxu0 %v940_v21  ;;  %v465_v47 = vsel %vm448_vm3, %v456_v44, %v464_v45 }
  0x1d   : > { %893 = vmatpush3.bf16.msra.mxu1 %v941_v23  ;;  %886 = vmatprep.mubr.msk.bf16.mxu0 %vm291_vm0, %v465_v47 }
  0x1e   : > { %894 = vmatprep.subr.bf16.mxu1 %v943_v29 }
  0x1f   : > { %881 = vmatpush3.bf16.msra.mxu0 %v940_v21 }
  0x20   : > { %882 = vmatprep.subr.bf16.mxu0 %v942_v28 }
  0x21   : > { %895 = vmatpush3.bf16.msra.mxu1 %v943_v29 }
  0x22   : > { %896 = vmatprep.subr.bf16.mxu1 %v945_v42 }
  0x23   : > { %883 = vmatpush3.bf16.msra.mxu0 %v942_v28 }
  0x24   : > { %884 = vmatprep.subr.bf16.mxu0 %v944_v41 }
  0x25   : > { %897 = vmatpush3.bf16.msra.mxu1 %v945_v42 }
  0x27   : > { %885 = vmatpush3.bf16.msra.mxu0 %v944_v41 }
  0x28   : > { %899 = vmatmul.mubr.msk.bf16.vlgmr.msra.gmra.mrb[4].mxu1 %vm291_vm0, %v561_v36 }
  0x2a   : > { %887 = vmatmul.mubr.msk.bf16.vlgmr.msra.gmra.mrb[4].mxu0 %vm291_vm0, %v464_v45 }
  0xeb   : > { %v876_v49 = vpop.f32.mrb[0].mxu1 }
  0xec   : > { %v412_v52 = vpop.f32.mrb[1].mxu1 }
  0xed   : > { %v864_v48 = vpop.f32.mrb[0].mxu0  ;;  %v877_v55 = vpop.f32.mrb[2].mxu1 }
  0xee   : > { %v421_v50 = vadd.f32 %v876_v49, %v864_v48  ;;  %v332_v51 = vpop.f32.mrb[1].mxu0  ;;  %v415_v57 = vpop.f32.mrb[3].mxu1 }
  0xef   : > { %v413_v53 = vadd.f32 %v412_v52, %v332_v51  ;;  %v865_v54 = vpop.f32.mrb[2].mxu0 }
  0xf0   : > { %v335_v56 = vpop.f32.mrb[3].mxu0 }
  0xf1   : > { %v416_v58 = vadd.f32 %v415_v57, %v335_v56 }
  0xfb   : > { %v900_v60 = vpop.f32.mrb[4].mxu1 }
  0xfc   : > { %v627_v63 = vpop.f32.mrb[5].mxu1 }
  0xfd   : > { %v888_v59 = vpop.f32.mrb[4].mxu0  ;;  %v901_v3 = vpop.f32.mrb[6].mxu1 }
  0xfe   : > { %v546_v61 = vadd.f32 %v888_v59, %v421_v50  ;;  %v530_v62 = vpop.f32.mrb[5].mxu0  ;;  %v630_v6 = vpop.f32.mrb[7].mxu1 }
  0xff   : > { %v544_v1 = vadd.f32 %v530_v62, %v413_v53  ;;  %v889_v2 = vpop.f32.mrb[6].mxu0 }
 0x100   : > { %v643_v4 = vadd.f32 %v900_v60, %v546_v61  ;;  %v533_v5 = vpop.f32.mrb[7].mxu0 }
 0x101   : > { %v641_v7 = vadd.f32 %v627_v63, %v544_v1  ;;  %v545_v8 = vadd.f32 %v533_v5, %v416_v58 }
 0x102   : > { %v653_v9 = vadd.f32 %v820_v0, %v643_v4 }
 0x103   : > { %v651_v10 = vadd.f32 %v820_v0, %v641_v7  ;;  %v642_v11 = vadd.f32 %v630_v6, %v545_v8 }
 0x104   : > { %v656_v12 = vmax.f32 %v653_v9, 0.0 }
 0x105   : > { %v654_v13 = vmax.f32 %v651_v10, 0.0  ;;  %v652_v14 = vadd.f32 %v820_v0, %v642_v11 }
 0x106   : > { %v829_v15 = vpack.c.bf16 %v656_v12, %v656_v12 }
 0x107   : > { %v827_v16 = vpack.c.bf16 %v654_v13, %v654_v13  ;;  %v655_v17 = vmax.f32 %v652_v14, 0.0 }
 0x108   : > { %674 = vst.msk [vmem:[%s221_s7 + $0x8] sm:$0x3] %vm673_vm4, %v829_v15 }
 0x109   : > { %671 = vst.msk [vmem:[%s221_s7] sm:$0xf] %vm670_vm5, %v827_v16  ;;  %v828_v18 = vpack.c.bf16 %v655_v17, %v655_v17 }
 0x10b   : > { %672 = vst.msk [vmem:[%s221_s7 + $0x4] sm:$0xf] %vm670_vm5, %v828_v18 }
 0x10c PF: > { %s13_s14 = sadd.s32 1, %s971_s14   ;;  %s1104_s12 = smov %s967_s13 }
 0x10d   : > { %p10_p5 = scmp.ge.s32.totalorder %s13_s14, 4   ;;  %s1105_s13 = smov %s1107_s15 }
 0x10f   :  { %12 = sbr.rel (!%p10_p5) target bundleno = 2 (0x2), region = 68 }

// kernel: _lambda_.27
= control target key start
LH: loop header
LB: loop body
LE: loop exit
PB: predicated region body
PF: predicated region fallthrough
CT: control target
= control target key end

     0   :  { %s607_s15 = smov 0   ;;  %s609_s16 = smov 0   ;;  %s649_s0 = inlined_call_operand.vmem [shape: bf16[2,16,16], index: 0, kind: input, shape index: {}]   ;;  %s650_s1 = inlined_call_operand.vmem [shape: bf16[16,32], index: 1, kind: input, shape index: {}]   ;;  %s651_s2 = inlined_call_operand.vmem [shape: f32[1,32], index: 2, kind: input, shape index: {}]   ;;  %s652_s3 = inlined_call_operand.vmem [shape: bf16[2,16,32], index: 3, kind: input, shape index: {}]   ;;  %s653_s4 = inlined_call_operand.vmem [shape: bf16[2,16,32], index: 4, kind: output, shape index: {}]  }
   0x1   :  { %s611_s17 = smov 0  }
   0x2 LB: > { %s26_s18 = sadd.s32 1, %s574_s16  ;;  %p496_p0 = scmp.ge.s32.totalorder %s578_s17, 1  ;;  %s578_s17 = sphi %s611_s17, %s14_s17   ;;  %s574_s16 = sphi %s609_s16, %s655_s16   ;;  %s570_s15 = sphi %s607_s15, %s654_s15  }
   0x3   : > { %p28_p1 = scmp.ge.s32.totalorder %s26_s18, 2  ;;  %p208_p2 = scmp.lt.s32.totalorder %s578_s17, 3 }
   0x5   : > { %s657_s18 = smov (%p28_p1, %s26_s18), 0  ;;  %p209_p3 = pnand %p496_p0, %p208_p2 }
   0x6   : > { %v554_v0 = vld [vmem:[%s650_s1] sm:$0xff] (!%p209_p3)   ;;  %v580_v1 = vmov (!%p209_p3), 0.0   ;;  %p252_p4 = scmp.lt.s32.totalorder (!%p209_p3), %s570_s15, 1  ;;  %vm581_vm0 = vmmov (!%p209_p3), 0   ;;  %vm303_vm1 = vcmask (!%p209_p3), 130048   ;;  %vm364_vm2 = vcmask (!%p209_p3), 257024  }
   0x7   : > { %212 = sbr.rel (%p209_p3) target bundleno = 241 (0xf1), region = 36  ;;  %522 = vmatprep.subr.bf16.mxu0 (!%p209_p3), %v580_v1  ;;  %524 = vmatprep.mubr.msk.bf16.mxu0 (!%p209_p3), %vm581_vm0, %v580_v1  ;;  %v503_v4 = vld [vmem:[%s651_s2] ss:$0 sm:$0xff] (!%p209_p3) }
   0x8   : > { %523 = vmatpush3.bf16.msra.mxu0 (!%p209_p3), %v554_v0 }
   0xe   : > { %s659_s15 = smov (!%p252_p4, %s570_s15), 1 }
   0xf   : > { %s511_s21 = sshll.u32 %s659_s15, 3 }
  0x10   : > { %s256_s24 = scalar_lea.vmem %s649_s0, %s511_s21  ;;  %s271_s27 = scalar_lea.vmem %s652_s3, %s511_s21 }
  0x11   : > { %v555_v2 = vld [vmem:[%s256_s24] sm:$0xff]   ;;  %s279_s6 = scalar_lea.vmem %s653_s4, %s511_s21 }
  0x12   : > { %525 = vmatmul.mubr.msk.bf16.vlgmr.msra.gmra.mrb[0].mxu0 %vm303_vm1, %v555_v2  ;;  %v517_v3 = vld [vmem:[%s271_s27] sm:$0xff]  }
  0x13   : > { %v518_v5 = vunpack.c.l.bf16 %v517_v3  ;;  %v519_v9 = vunpack.c.h.bf16 %v517_v3 }
  0xe5   : > { %v341_v6 = vpop.f32.mrb[0].mxu0 }
  0xe6   : > { %v342_v7 = vadd.f32 %v503_v4, %v341_v6  ;;  %v526_v8 = vpop.f32.mrb[1].mxu0 }
  0xe7   : > { %v344_v10 = vpop.f32.mrb[2].mxu0 }
  0xe8   : > { %v352_v11 = vadd.f32 %v518_v5, %v342_v7  ;;  %v345_v12 = vadd.f32 %v503_v4, %v344_v10  ;;  %v527_v13 = vpop.f32.mrb[3].mxu0 }
  0xea   : > { %v354_v14 = vmax.f32 %v352_v11, 0.0  ;;  %v353_v15 = vadd.f32 %v519_v9, %v345_v12 }
  0xec   : > { %v514_v16 = vpack.c.bf16 %v354_v14, %v354_v14  ;;  %v355_v17 = vmax.f32 %v353_v15, 0.0 }
  0xee   : > { %365 = vst.msk [vmem:[%s279_s6] sm:$0xf] %vm364_vm2, %v514_v16  ;;  %v515_v18 = vpack.c.bf16 %v355_v17, %v355_v17 }
  0xf0   : > { %366 = vst.msk [vmem:[%s279_s6 + $0x4] sm:$0xf] %vm364_vm2, %v515_v18 }
  0xf1 PF: > { %s14_s17 = sadd.s32 1, %s578_s17   ;;  %s654_s15 = smov %s574_s16 }
  0xf2   : > { %p11_p5 = scmp.ge.s32.totalorder %s14_s17, 4   ;;  %s655_s16 = smov %s657_s18 }
  0xf4   :  { %13 = sbr.rel (!%p11_p5) target bundleno = 2 (0x2), region = 75 }

// kernel: _lambda_.26
= control target key start
LH: loop header
LB: loop body
LE: loop exit
PB: predicated region body
PF: predicated region fallthrough
CT: control target
= control target key end

     0   :  { %s1410_s12 = smov 0   ;;  %s1412_s13 = smov 0   ;;  %s1588_s0 = inlined_call_operand.vmem [shape: bf16[2,42,32], index: 0, kind: input, shape index: {}]   ;;  %s1589_s1 = inlined_call_operand.vmem [shape: bf16[288,16], index: 1, kind: input, shape index: {}]   ;;  %s1590_s2 = inlined_call_operand.vmem [shape: f32[1,16], index: 2, kind: input, shape index: {}]   ;;  %s1591_s3 = inlined_call_operand.vmem [shape: bf16[2,24,16], index: 3, kind: output, shape index: {}]  }
   0x1   :  { %s1414_s14 = smov 0  }
   0x2 LB: > { %s25_s15 = sadd.s32 1, %s1383_s13  ;;  %p1151_p0 = scmp.ge.s32.totalorder %s1387_s14, 1  ;;  %s1387_s14 = sphi %s1414_s14, %s13_s14   ;;  %s1383_s13 = sphi %s1412_s13, %s1593_s13   ;;  %s1379_s12 = sphi %s1410_s12, %s1592_s12  }
   0x3   : > { %p27_p1 = scmp.ge.s32.totalorder %s25_s15, 2  ;;  %p168_p2 = scmp.lt.s32.totalorder %s1387_s14, 3 }
   0x5   : > { %s1595_s15 = smov (%p27_p1, %s25_s15), 0  ;;  %p169_p3 = pnand %p1151_p0, %p168_p2 }
   0x6   : > { %v1347_v0 = vld [vmem:[%s1589_s1 + $0x10] sm:$0xff] (!%p169_p3)   ;;  %p202_p4 = scmp.lt.s32.totalorder (!%p169_p3), %s1379_s12, 1  ;;  %v1348_v1 = vld [vmem:[%s1589_s1] sm:$0xff] (!%p169_p3)   ;;  %v1349_v2 = vld [vmem:[%s1589_s1 + $0x18] sm:$0xff] (!%p169_p3)   ;;  %v1389_v9 = vmov (!%p169_p3), 0   ;;  %vm277_vm0 = vcmask (!%p169_p3), 261120  }
   0x7   : > { %172 = sbr.rel (%p169_p3) target bundleno = 287 (0x11f), region = 32  ;;  %1248 = vmatprep.subr.bf16.mxu0 (!%p169_p3), %v1347_v0  ;;  %1256 = vmatprep.subr.bf16.mxu1 (!%p169_p3), %v1348_v1  ;;  %v1350_v3 = vld [vmem:[%s1589_s1 + $0x8] sm:$0xff] (!%p169_p3)   ;;  %v1446_v4 = vld [vmem:[%s1589_s1 + $0x20] sm:$0xff] (!%p169_p3)   ;;  %v1352_v5 = vld [vmem:[%s1589_s1 + $0x30] sm:$0xff] (!%p169_p3)   ;;  %vm249_vm1 = vsmask.f32 (!%p169_p3), 7424 }
   0x8   : > { %1249 = vmatpush3.bf16.msra.mxu0 (!%p169_p3), %v1347_v0  ;;  %1257 = vmatpush3.bf16.msra.mxu1 (!%p169_p3), %v1348_v1  ;;  %v1354_v18 = vld [vmem:[%s1589_s1 + $0x38] sm:$0xff] (!%p169_p3)   ;;  %vm407_vm2 = vcmask (!%p169_p3), 1046528   ;;  %v1356_v36 = vld [vmem:[%s1589_s1 + $0x50] sm:$0xff] (!%p169_p3)   ;;  %vm494_vm3 = vcmask (!%p169_p3), 1044480   ;;  %v1353_v45 = vld [vmem:[%s1589_s1 + $0x28] sm:$0xff] (!%p169_p3)   ;;  %vm760_vm5 = vcmask (!%p169_p3), 1045504  }
   0x9   : > { %1250 = vmatprep.subr.bf16.mxu0 (!%p169_p3), %v1349_v2  ;;  %1258 = vmatprep.subr.bf16.mxu1 (!%p169_p3), %v1350_v3  ;;  %v1355_v52 = vld [vmem:[%s1589_s1 + $0x40] sm:$0xff] (!%p169_p3)   ;;  %v1358_v53 = vld [vmem:[%s1589_s1 + $0x58] sm:$0xff] (!%p169_p3)   ;;  %vm576_vm4 = vsmask.f32 (!%p169_p3), 4352  ;;  %vm842_vm6 = vsmask.f32 (!%p169_p3), 5376 }
   0xa   : > { %vm1036_vm7 = vcmask (!%p169_p3), 125952  }
   0xc   : > { %1251 = vmatpush3.bf16.msra.mxu0 (!%p169_p3), %v1349_v2  ;;  %1259 = vmatpush3.bf16.msra.mxu1 (!%p169_p3), %v1350_v3 }
   0xd   : > { %1264 = vmatprep.subr.bf16.mxu0 (!%p169_p3), %v1446_v4  ;;  %1272 = vmatprep.subr.bf16.mxu1 (!%p169_p3), %v1352_v5 }
   0xe   : > { %s1597_s12 = smov (!%p202_p4, %s1379_s12), 1 }
   0xf   : > { %s1320_s24 = smul.u32 24, %s1597_s12 }
  0x10   : > { %s1321_s8 = smul.u32 12, %s1597_s12 }
  0x11   : > { %s1451_s29 = scalar_lea.vmem %s1588_s0, %s1320_s24 }
  0x12   : > { %v223_v6 = vld [vmem:[%s1451_s29] sm:$0xf]  ;;  %v224_v7 = vld [vmem:[%s1451_s29 + $0x4] sm:$0xf]  ;;  %v225_v8 = vld [vmem:[%s1451_s29 + $0x8] sm:$0xf]  ;;  %s221_s11 = scalar_lea.vmem %s1591_s3, %s1321_s8 }
  0x13   : > { %v226_v10 = vmax.bf16 %v1389_v9, %v223_v6  ;;  %v1461_v11 = vmax.bf16 %v1389_v9, %v224_v7  ;;  %v1464_v12 = vmax.bf16 %v1389_v9, %v225_v8  ;;  %v233_v13 = vld [vmem:[%s1451_s29 + $0xc] sm:$0x1]  ;;  %v398_v15 = vld [vmem:[%s1451_s29] sm:$0xe]  ;;  %v738_v57 = vld [vmem:[%s1451_s29 + $0x4] sm:$0xc] }
  0x14   : > { %v234_v14 = vmax.bf16 %v1389_v9, %v233_v13  ;;  %v399_v19 = vmax.bf16 %v1389_v9, %v398_v15  ;;  %v480_v21 = vld [vmem:[%s1451_s29] sm:$0x8]  ;;  %v481_v22 = vld [vmem:[%s1451_s29 + $0xc] sm:$0x7]  ;;  %v739_v58 = vld [vmem:[%s1451_s29 + $0x8] sm:$0xf]  ;;  %v742_v0 = vmax.bf16 %v1389_v9, %v738_v57 }
  0x15   : > { %v1154_v16 = vcombine.low %v226_v10, %v1461_v11  ;;  %v1160_v17 = vcombine.low %v1464_v12, %v1464_v12  ;;  %v482_v26 = vmax.bf16 %v1389_v9, %v480_v21  ;;  %v483_v30 = vmax.bf16 %v1389_v9, %v481_v22  ;;  %v567_v37 = vld [vmem:[%s1451_s29 + $0xc] sm:$0xf]  ;;  %v741_v63 = vld [vmem:[%s1451_s29 + $0x10] sm:$0x3]  ;;  %v929_v15 = vld [vmem:[%s1451_s29 + $0x4] sm:$0x8] }
  0x16   : > { %v1478_v20 = vcombine.low %v1464_v12, %v234_v14  ;;  %v1165_v25 = vcombine.low %v399_v19, %v1461_v11  ;;  %v1497_v40 = vmax.bf16 %v1389_v9, %v567_v37  ;;  %v1181_v51 = vcombine.low %v1461_v11, %v1464_v12  ;;  %v740_v59 = vld [vmem:[%s1451_s29 + $0xc] sm:$0xf]  ;;  %v833_v1 = vld [vmem:[%s1451_s29 + $0x10] sm:$0x7] }
  0x17   : > { %v251_v23 = vshrl.u32 %v1154_v16, 16  ;;  %v253_v24 = vshll.u32 %v1154_v16, 16  ;;  %1260 = vmatprep.mubr.msk.bf16.mxu1 %vm277_vm0, %v1154_v16  ;;  %v1170_v33 = vcombine.low %v482_v26, %v1461_v11  ;;  %v1171_v35 = vcombine.low %v1464_v12, %v483_v30  ;;  %v1360_v6 = vld [vmem:[%s1589_s1 + $0x70] sm:$0xff]   ;;  %v1357_v10 = vld [vmem:[%s1589_s1 + $0x48] sm:$0xff]  }
  0x18   : > { %v258_v27 = vshll.u32 %v1478_v20, 16  ;;  %v262_v28 = vshrl.u32 %v1478_v20, 16  ;;  %1261 = vmatmul.mubr.msk.bf16.vlgmr.msra.gmra.mrb[0].mxu1 %vm277_vm0, %v1160_v17  ;;  %v409_v29 = vrot.slane %v1478_v20, 1  ;;  %v408_v32 = vrot.slane %v1165_v25, 1  ;;  %v1359_v20 = vld [vmem:[%s1589_s1 + $0x60] sm:$0xff]   ;;  %v1364_v37 = vld [vmem:[%s1589_s1 + $0x88] sm:$0xff]  }
  0x19   : > { %v255_v31 = vrot.slane %v253_v24, 1  ;;  %1273 = vmatpush3.bf16.msra.mxu1 %v1352_v5  ;;  %v495_v39 = vrot.slane %v1170_v33, 3  ;;  %v496_v42 = vrot.slane %v1171_v35, 3  ;;  %v578_v43 = vshrl.u32 %v1170_v33, 16 }
  0x1a   : > { %v260_v34 = vrot.slane %v258_v27, 1  ;;  %1274 = vmatprep.subr.bf16.mxu1 %v1354_v18  ;;  %v410_v46 = vsel %vm407_vm2, %v408_v32, %v409_v29  ;;  %v1176_v47 = vcombine.low %v1464_v12, %v1497_v40  ;;  %v581_v48 = vshll.u32 %v1170_v33, 16 }
  0x1b   : > { %v256_v38 = vor.u32 %v255_v31, %v251_v23  ;;  %v497_v49 = vsel %vm494_vm3, %v495_v39, %v496_v42  ;;  %v580_v50 = vrot.slane %v578_v43, 3  ;;  %v743_v2 = vmax.bf16 %v1389_v9, %v739_v58 }
  0x1c   : > { %v264_v41 = vor.u32 %v262_v28, %v260_v34  ;;  %1276 = vmatprep.mubr.msk.bf16.mxu1 %vm277_vm0, %v497_v49  ;;  %v583_v54 = vrot.slane %v581_v48, 4  ;;  %v586_v55 = vshrl.u32 %v1176_v47, 16  ;;  %v589_v56 = vshll.u32 %v1176_v47, 16 }
  0x1d   : > { %v261_v44 = vsel %vm249_vm1, %v256_v38, %v260_v34  ;;  %1275 = vmatpush3.bf16.msra.mxu1 %v1354_v18  ;;  %v744_v3 = vmax.bf16 %v1389_v9, %v740_v59  ;;  %v834_v7 = vmax.bf16 %v1389_v9, %v833_v1  ;;  %v1187_v8 = vcombine.low %v742_v0, %v743_v2  ;;  %v1362_v18 = vld [vmem:[%s1589_s1 + $0x78] sm:$0xff]   ;;  %v1363_v34 = vld [vmem:[%s1589_s1 + $0x80] sm:$0xff]  }
  0x1e   : > { %1252 = vmatprep.mubr.msk.bf16.mxu0 %vm277_vm0, %v261_v44  ;;  %1288 = vmatprep.subr.bf16.mxu1 %v1356_v36  ;;  %v584_v60 = vor.u32 %v583_v54, %v580_v50  ;;  %v588_v61 = vrot.slane %v586_v55, 3  ;;  %v591_v62 = vrot.slane %v589_v56, 4  ;;  %v1182_v12 = vcombine.low %v1497_v40, %v1497_v40 }
  0x1f   : > { %1253 = vmatmul.mubr.msk.bf16.vlgmr.msra.gmra.mrb[0].mxu0 %vm277_vm0, %v264_v41  ;;  %v1193_v14 = vcombine.low %v744_v3, %v834_v7  ;;  %v844_v16 = vshrl.u32 %v1187_v8, 16  ;;  %v847_v17 = vshll.u32 %v1187_v8, 16  ;;  %v930_v24 = vmax.bf16 %v1389_v9, %v929_v15 }
  0x20   : > { %1265 = vmatpush3.bf16.msra.mxu0 %v1446_v4  ;;  %1268 = vmatprep.mubr.msk.bf16.mxu0 %vm277_vm0, %v410_v46  ;;  %v745_v4 = vmax.bf16 %v1389_v9, %v741_v63  ;;  %v592_v5 = vor.u32 %v591_v62, %v588_v61  ;;  %v761_v25 = vrot.slane %v1187_v8, 2  ;;  %v1361_v9 = vld [vmem:[%s1589_s1 + $0x68] sm:$0xff]  }
  0x21   : > { %1266 = vmatprep.subr.bf16.mxu0 %v1353_v45  ;;  %1277 = vmatmul.mubr.msk.bf16.vlgmr.msra.gmra.mrb[4].mxu1 %vm277_vm0, %v496_v42  ;;  %v852_v19 = vshrl.u32 %v1193_v14, 16  ;;  %v855_v21 = vshll.u32 %v1193_v14, 16  ;;  %v846_v22 = vrot.slane %v844_v16, 2  ;;  %v849_v23 = vrot.slane %v847_v17, 3 }
  0x22   : > { %1289 = vmatpush3.bf16.msra.mxu1 %v1356_v36  ;;  %1292 = vmatprep.mubr.msk.bf16.mxu1 %vm277_vm0, %v1181_v51  ;;  %v593_v11 = vsel %vm576_vm4, %v584_v60, %v592_v5  ;;  %v1188_v13 = vcombine.low %v744_v3, %v745_v4  ;;  %v1198_v33 = vcombine.low %v930_v24, %v743_v2  ;;  %v939_v36 = vrot.slane %v1193_v14, 3 }
  0x23   : > { %1290 = vmatprep.subr.bf16.mxu1 %v1358_v53  ;;  %v854_v27 = vrot.slane %v852_v19, 2  ;;  %v857_v28 = vrot.slane %v855_v21, 3 }
  0x24   : > { %1267 = vmatpush3.bf16.msra.mxu0 %v1353_v45  ;;  %v762_v26 = vrot.slane %v1188_v13, 2  ;;  %v938_v35 = vrot.slane %v1198_v33, 3 }
  0x25   : > { %1280 = vmatprep.subr.bf16.mxu0 %v1355_v52  ;;  %v858_v30 = vor.u32 %v857_v28, %v854_v27 }
  0x26   : > { %1291 = vmatpush3.bf16.msra.mxu1 %v1358_v53  ;;  %v763_v31 = vsel %vm760_vm5, %v761_v25, %v762_v26  ;;  %v940_v38 = vsel %vm494_vm3, %v938_v35, %v939_v36 }
  0x27   : > { %1269 = vmatmul.mubr.msk.bf16.vlgmr.msra.gmra.mrb[4].mxu0 %vm277_vm0, %v409_v29  ;;  %1304 = vmatprep.subr.bf16.mxu1 %v1360_v6  ;;  %v850_v29 = vor.u32 %v849_v23, %v846_v22 }
  0x28   : > { %1281 = vmatpush3.bf16.msra.mxu0 %v1355_v52  ;;  %1284 = vmatprep.mubr.msk.bf16.mxu0 %vm277_vm0, %v593_v11 }
  0x29   : > { %1282 = vmatprep.subr.bf16.mxu0 %v1357_v10  ;;  %1293 = vmatmul.mubr.msk.bf16.vlgmr.msra.gmra.mrb[8].mxu1 %vm277_vm0, %v1182_v12  ;;  %v859_v32 = vsel %vm842_vm6, %v850_v29, %v858_v30 }
  0x2a   : > { %1305 = vmatpush3.bf16.msra.mxu1 %v1360_v6  ;;  %1308 = vmatprep.mubr.msk.bf16.mxu1 %vm277_vm0, %v859_v32 }
  0x2b   : > { %1306 = vmatprep.subr.bf16.mxu1 %v1362_v18 }
  0x2c   : > { %1283 = vmatpush3.bf16.msra.mxu0 %v1357_v10 }
  0x2d   : > { %1296 = vmatprep.subr.bf16.mxu0 %v1359_v20 }
  0x2e   : > { %1307 = vmatpush3.bf16.msra.mxu1 %v1362_v18 }
  0x2f   : > { %1285 = vmatmul.mubr.msk.bf16.vlgmr.msra.gmra.mrb[8].mxu0 %vm277_vm0, %v592_v5 }
  0x30   : > { %1297 = vmatpush3.bf16.msra.mxu0 %v1359_v20  ;;  %1300 = vmatprep.mubr.msk.bf16.mxu0 %vm277_vm0, %v763_v31 }
  0x31   : > { %1298 = vmatprep.subr.bf16.mxu0 %v1361_v9  ;;  %1309 = vmatmul.mubr.msk.bf16.vlgmr.msra.gmra.mrb[12].mxu1 %vm277_vm0, %v858_v30  ;;  %v1203_v30 = vld [vmem:[%s1590_s2] ss:$0 sm:$0xff] }
  0x34   : > { %1299 = vmatpush3.bf16.msra.mxu0 %v1361_v9 }
  0x35   : > { %1312 = vmatprep.subr.bf16.mxu0 %v1363_v34 }
  0x37   : > { %1301 = vmatmul.mubr.msk.bf16.vlgmr.msra.gmra.mrb[12].mxu0 %vm277_vm0, %v762_v26 }
  0x38   : > { %1313 = vmatpush3.bf16.msra.mxu0 %v1363_v34  ;;  %1316 = vmatprep.mubr.msk.bf16.mxu0 %vm277_vm0, %v940_v38 }
  0x39   : > { %1314 = vmatprep.subr.bf16.mxu0 %v1364_v37 }
  0x3c   : > { %1315 = vmatpush3.bf16.msra.mxu0 %v1364_v37 }
  0x3f   : > { %1317 = vmatmul.mubr.msk.bf16.vlgmr.msra.gmra.mrb[16].mxu0 %vm277_vm0, %v939_v36 }
  0xeb   : > { %v1262_v39 = vpop.f32.mrb[0].mxu1 }
  0xec   : > { %v384_v40 = vpop.f32.mrb[1].mxu1 }
  0xed   : > { %v1263_v41 = vpop.f32.mrb[2].mxu1 }
  0xee   : > { %v387_v42 = vpop.f32.mrb[3].mxu1 }
  0xf2   : > { %v1254_v43 = vpop.f32.mrb[0].mxu0 }
  0xf3   : > { %v393_v44 = vadd.f32 %v1262_v39, %v1254_v43  ;;  %v318_v45 = vpop.f32.mrb[1].mxu0 }
  0xf4   : > { %v385_v46 = vadd.f32 %v384_v40, %v318_v45  ;;  %v1255_v47 = vpop.f32.mrb[2].mxu0  ;;  %v1278_v48 = vpop.f32.mrb[4].mxu1 }
  0xf5   : > { %v321_v49 = vpop.f32.mrb[3].mxu0  ;;  %v550_v50 = vpop.f32.mrb[5].mxu1 }
  0xf6   : > { %v388_v51 = vadd.f32 %v387_v42, %v321_v49  ;;  %v1279_v52 = vpop.f32.mrb[6].mxu1 }
  0xf7   : > { %v553_v53 = vpop.f32.mrb[7].mxu1 }
  0xfa   : > { %v1270_v54 = vpop.f32.mrb[4].mxu0 }
  0xfb   : > { %v479_v55 = vadd.f32 %v1270_v54, %v393_v44  ;;  %v463_v56 = vpop.f32.mrb[5].mxu0 }
  0xfc   : > { %v477_v57 = vadd.f32 %v463_v56, %v385_v46  ;;  %v1271_v58 = vpop.f32.mrb[6].mxu0  ;;  %v1294_v59 = vpop.f32.mrb[8].mxu1 }
  0xfd   : > { %v566_v60 = vadd.f32 %v1278_v48, %v479_v55  ;;  %v466_v61 = vpop.f32.mrb[7].mxu0  ;;  %v721_v62 = vpop.f32.mrb[9].mxu1 }
  0xfe   : > { %v478_v63 = vadd.f32 %v466_v61, %v388_v51  ;;  %v564_v0 = vadd.f32 %v550_v50, %v477_v57  ;;  %v1295_v1 = vpop.f32.mrb[10].mxu1 }
  0xff   : > { %v724_v2 = vpop.f32.mrb[11].mxu1 }
 0x100   : > { %v565_v3 = vadd.f32 %v553_v53, %v478_v63 }
 0x102   : > { %v1286_v4 = vpop.f32.mrb[8].mxu0 }
 0x103   : > { %v662_v5 = vadd.f32 %v1286_v4, %v566_v60  ;;  %v646_v6 = vpop.f32.mrb[9].mxu0 }
 0x104   : > { %v660_v7 = vadd.f32 %v646_v6, %v564_v0  ;;  %v1287_v8 = vpop.f32.mrb[10].mxu0  ;;  %v1310_v10 = vpop.f32.mrb[12].mxu1 }
 0x105   : > { %v737_v11 = vadd.f32 %v1294_v59, %v662_v5  ;;  %v649_v12 = vpop.f32.mrb[11].mxu0  ;;  %v912_v13 = vpop.f32.mrb[13].mxu1 }
 0x106   : > { %v661_v14 = vadd.f32 %v649_v12, %v565_v3  ;;  %v735_v15 = vadd.f32 %v721_v62, %v660_v7  ;;  %v1311_v16 = vpop.f32.mrb[14].mxu1 }
 0x107   : > { %v915_v17 = vpop.f32.mrb[15].mxu1 }
 0x108   : > { %v736_v18 = vadd.f32 %v724_v2, %v661_v14 }
 0x10a   : > { %v1302_v19 = vpop.f32.mrb[12].mxu0 }
 0x10b   : > { %v832_v21 = vadd.f32 %v1302_v19, %v737_v11  ;;  %v816_v22 = vpop.f32.mrb[13].mxu0 }
 0x10c   : > { %v830_v23 = vadd.f32 %v816_v22, %v735_v15  ;;  %v1303_v24 = vpop.f32.mrb[14].mxu0 }
 0x10d   : > { %v928_v20 = vadd.f32 %v1310_v10, %v832_v21  ;;  %v819_v25 = vpop.f32.mrb[15].mxu0 }
 0x10e   : > { %v831_v26 = vadd.f32 %v819_v25, %v736_v18  ;;  %v926_v27 = vadd.f32 %v912_v13, %v830_v23 }
 0x110   : > { %v927_v28 = vadd.f32 %v915_v17, %v831_v26 }
 0x112   : > { %v1318_v29 = vpop.f32.mrb[16].mxu0 }
 0x113   : > { %v1009_v9 = vadd.f32 %v1318_v29, %v928_v20  ;;  %v993_v31 = vpop.f32.mrb[17].mxu0 }
 0x114   : > { %v1007_v32 = vadd.f32 %v993_v31, %v926_v27  ;;  %v1319_v33 = vpop.f32.mrb[18].mxu0 }
 0x115   : > { %v1019_v34 = vadd.f32 %v1203_v30, %v1009_v9  ;;  %v996_v35 = vpop.f32.mrb[19].mxu0 }
 0x116   : > { %v1017_v36 = vadd.f32 %v1203_v30, %v1007_v32  ;;  %v1008_v37 = vadd.f32 %v996_v35, %v927_v28 }
 0x117   : > { %v1022_v38 = vmax.f32 %v1019_v34, 0.0 }
 0x118   : > { %v1020_v39 = vmax.f32 %v1017_v36, 0.0  ;;  %v1018_v40 = vadd.f32 %v1203_v30, %v1008_v37 }
 0x119   : > { %v1211_v41 = vpack.c.bf16 %v1022_v38, %v1022_v38 }
 0x11a   : > { %v1209_v42 = vpack.c.bf16 %v1020_v39, %v1020_v39  ;;  %v1021_v43 = vmax.f32 %v1018_v40, 0.0 }
 0x11b   : > { %1039 = vst.msk [vmem:[%s221_s11 + $0x8] sm:$0xf] %vm1036_vm7, %v1211_v41 }
 0x11c   : > { %1037 = vst.msk [vmem:[%s221_s11] sm:$0xf] %vm1036_vm7, %v1209_v42  ;;  %v1210_v44 = vpack.c.bf16 %v1021_v43, %v1021_v43 }
 0x11e   : > { %1038 = vst.msk [vmem:[%s221_s11 + $0x4] sm:$0xf] %vm1036_vm7, %v1210_v44 }
 0x11f PF: > { %s13_s14 = sadd.s32 1, %s1387_s14   ;;  %s1592_s12 = smov %s1383_s13 }
 0x120   : > { %p10_p5 = scmp.ge.s32.totalorder %s13_s14, 4   ;;  %s1593_s13 = smov %s1595_s15 }
 0x122   :  { %12 = sbr.rel (!%p10_p5) target bundleno = 2 (0x2), region = 68 }

// kernel: _lambda_.25
= control target key start
LH: loop header
LB: loop body
LE: loop exit
PB: predicated region body
PF: predicated region fallthrough
CT: control target
= control target key end

     0   :  { %s1404_s12 = smov 0   ;;  %s1406_s13 = smov 0   ;;  %s1560_s0 = inlined_call_operand.vmem [shape: bf16[2,42,32], index: 0, kind: input, shape index: {}]   ;;  %s1561_s1 = inlined_call_operand.vmem [shape: bf16[288,32], index: 1, kind: input, shape index: {}]   ;;  %s1562_s2 = inlined_call_operand.vmem [shape: f32[1,32], index: 2, kind: input, shape index: {}]   ;;  %s1563_s3 = inlined_call_operand.vmem [shape: bf16[2,24,32], index: 3, kind: output, shape index: {}]  }
   0x1   :  { %s1408_s14 = smov 0  }
   0x2 LB: > { %s25_s15 = sadd.s32 1, %s1378_s13  ;;  %p1134_p0 = scmp.ge.s32.totalorder %s1382_s14, 1  ;;  %s1382_s14 = sphi %s1408_s14, %s13_s14   ;;  %s1378_s13 = sphi %s1406_s13, %s1565_s13   ;;  %s1374_s12 = sphi %s1404_s12, %s1564_s12  }
   0x3   : > { %p27_p1 = scmp.ge.s32.totalorder %s25_s15, 2  ;;  %p168_p2 = scmp.lt.s32.totalorder %s1382_s14, 3 }
   0x5   : > { %s1567_s15 = smov (%p27_p1, %s25_s15), 0  ;;  %p169_p3 = pnand %p1134_p0, %p168_p2 }
   0x6   : > { %v1329_v0 = vld [vmem:[%s1561_s1 + $0x10] sm:$0xff] (!%p169_p3)   ;;  %p202_p4 = scmp.lt.s32.totalorder (!%p169_p3), %s1374_s12, 1  ;;  %v1330_v1 = vld [vmem:[%s1561_s1] sm:$0xff] (!%p169_p3)   ;;  %v1331_v2 = vld [vmem:[%s1561_s1 + $0x18] sm:$0xff] (!%p169_p3)   ;;  %vm273_vm0 = vcmask (!%p169_p3), 261120   ;;  %vm402_vm2 = vcmask (!%p169_p3), 1046528  }
   0x7   : > { %172 = sbr.rel (%p169_p3) target bundleno = 283 (0x11b), region = 32  ;;  %1231 = vmatprep.subr.bf16.mxu0 (!%p169_p3), %v1329_v0  ;;  %1239 = vmatprep.subr.bf16.mxu1 (!%p169_p3), %v1330_v1  ;;  %v1332_v3 = vld [vmem:[%s1561_s1 + $0x8] sm:$0xff] (!%p169_p3)   ;;  %v1335_v4 = vld [vmem:[%s1561_s1 + $0x20] sm:$0xff] (!%p169_p3)   ;;  %v1337_v5 = vld [vmem:[%s1561_s1 + $0x30] sm:$0xff] (!%p169_p3)   ;;  %vm245_vm1 = vsmask.f32 (!%p169_p3), 7424 }
   0x8   : > { %1232 = vmatpush3.bf16.msra.mxu0 (!%p169_p3), %v1329_v0  ;;  %1240 = vmatpush3.bf16.msra.mxu1 (!%p169_p3), %v1330_v1  ;;  %v1339_v13 = vld [vmem:[%s1561_s1 + $0x38] sm:$0xff] (!%p169_p3)   ;;  %v1344_v28 = vld [vmem:[%s1561_s1 + $0x50] sm:$0xff] (!%p169_p3)   ;;  %vm487_vm3 = vcmask (!%p169_p3), 1044480   ;;  %v1338_v36 = vld [vmem:[%s1561_s1 + $0x28] sm:$0xff] (!%p169_p3)   ;;  %vm568_vm4 = vsmask.f32 (!%p169_p3), 4352 }
   0x9   : > { %1233 = vmatprep.subr.bf16.mxu0 (!%p169_p3), %v1331_v2  ;;  %1241 = vmatprep.subr.bf16.mxu1 (!%p169_p3), %v1332_v3  ;;  %v1346_v42 = vld [vmem:[%s1561_s1 + $0x58] sm:$0xff] (!%p169_p3)   ;;  %v1341_v46 = vld [vmem:[%s1561_s1 + $0x40] sm:$0xff] (!%p169_p3)   ;;  %v1351_v50 = vld [vmem:[%s1561_s1 + $0x70] sm:$0xff] (!%p169_p3)   ;;  %vm829_vm5 = vsmask.f32 (!%p169_p3), 5376  ;;  %vm748_vm6 = vcmask (!%p169_p3), 1045504  }
   0xa   : > { %v1345_v61 = vld [vmem:[%s1561_s1 + $0x48] sm:$0xff] (!%p169_p3)   ;;  %vm1019_vm7 = vcmask (!%p169_p3), 257024  }
   0xc   : > { %1234 = vmatpush3.bf16.msra.mxu0 (!%p169_p3), %v1331_v2  ;;  %1242 = vmatpush3.bf16.msra.mxu1 (!%p169_p3), %v1332_v3 }
   0xd   : > { %1247 = vmatprep.subr.bf16.mxu0 (!%p169_p3), %v1335_v4  ;;  %1255 = vmatprep.subr.bf16.mxu1 (!%p169_p3), %v1337_v5 }
   0xe   : > { %s1569_s12 = smov (!%p202_p4, %s1374_s12), 1 }
   0xf   : > { %s1303_s24 = smul.u32 24, %s1569_s12 }
  0x10   : > { %s1304_s6 = smul.u32 12, %s1569_s12 }
  0x11   : > { %s1443_s29 = scalar_lea.vmem %s1560_s0, %s1303_s24 }
  0x12   : > { %v223_v6 = vld [vmem:[%s1443_s29] sm:$0xf]  ;;  %v1450_v7 = vld [vmem:[%s1443_s29 + $0x4] sm:$0xf]  ;;  %v1453_v8 = vld [vmem:[%s1443_s29 + $0x8] sm:$0xf]  ;;  %s221_s11 = scalar_lea.vmem %s1563_s3, %s1304_s6 }
  0x13   : > { %v230_v9 = vld [vmem:[%s1443_s29 + $0xc] sm:$0x1]  ;;  %v1137_v10 = vcombine.low %v223_v6, %v1450_v7  ;;  %v1143_v11 = vcombine.low %v1453_v8, %v1453_v8  ;;  %v394_v14 = vld [vmem:[%s1443_s29] sm:$0xe]  ;;  %v1164_v41 = vcombine.low %v1450_v7, %v1453_v8  ;;  %v730_v52 = vld [vmem:[%s1443_s29 + $0x4] sm:$0xc] }
  0x14   : > { %v1460_v12 = vcombine.low %v1453_v8, %v230_v9  ;;  %v1148_v17 = vcombine.low %v394_v14, %v1450_v7  ;;  %v475_v21 = vld [vmem:[%s1443_s29] sm:$0x8]  ;;  %v476_v24 = vld [vmem:[%s1443_s29 + $0xc] sm:$0x7]  ;;  %v731_v53 = vld [vmem:[%s1443_s29 + $0x8] sm:$0xf] }
  0x15   : > { %v247_v15 = vshrl.u32 %v1137_v10, 16  ;;  %v249_v16 = vshll.u32 %v1137_v10, 16  ;;  %1243 = vmatprep.mubr.msk.bf16.mxu1 %vm273_vm0, %v1137_v10  ;;  %v1153_v25 = vcombine.low %v475_v21, %v1450_v7  ;;  %v1154_v27 = vcombine.low %v1453_v8, %v476_v24  ;;  %v560_v34 = vld [vmem:[%s1443_s29 + $0xc] sm:$0xf]  ;;  %v733_v56 = vld [vmem:[%s1443_s29 + $0x10] sm:$0x3] }
  0x16   : > { %v254_v18 = vshll.u32 %v1460_v12, 16  ;;  %v258_v19 = vshrl.u32 %v1460_v12, 16  ;;  %1244 = vmatmul.mubr.msk.bf16.vlgmr.msra.gmra.mrb[0].mxu1 %vm273_vm0, %v1143_v11  ;;  %v404_v20 = vrot.slane %v1460_v12, 1  ;;  %v403_v23 = vrot.slane %v1148_v17, 1  ;;  %v732_v54 = vld [vmem:[%s1443_s29 + $0xc] sm:$0xf] }
  0x17   : > { %v251_v22 = vrot.slane %v249_v16, 1  ;;  %1256 = vmatpush3.bf16.msra.mxu1 %v1337_v5  ;;  %v488_v30 = vrot.slane %v1153_v25, 3  ;;  %v489_v33 = vrot.slane %v1154_v27, 3  ;;  %v1159_v37 = vcombine.low %v1453_v8, %v560_v34  ;;  %v821_v58 = vld [vmem:[%s1443_s29 + $0x10] sm:$0x7]  ;;  %v1348_v9 = vld [vmem:[%s1561_s1 + $0x60] sm:$0xff]  }
  0x18   : > { %v256_v26 = vrot.slane %v254_v18, 1  ;;  %1257 = vmatprep.subr.bf16.mxu1 %v1339_v13  ;;  %v405_v32 = vsel %vm402_vm2, %v403_v23, %v404_v20  ;;  %v570_v38 = vshrl.u32 %v1153_v25, 16  ;;  %v573_v40 = vshll.u32 %v1153_v25, 16  ;;  %v916_v14 = vld [vmem:[%s1443_s29 + $0x4] sm:$0x8]  ;;  %v1352_v16 = vld [vmem:[%s1561_s1 + $0x68] sm:$0xff]  }
  0x19   : > { %v252_v29 = vor.u32 %v251_v22, %v247_v15  ;;  %v490_v39 = vsel %vm487_vm3, %v488_v30, %v489_v33  ;;  %v578_v44 = vshrl.u32 %v1159_v37, 16  ;;  %v581_v45 = vshll.u32 %v1159_v37, 16  ;;  %v1358_v22 = vld [vmem:[%s1561_s1 + $0x88] sm:$0xff]  }
  0x1a   : > { %v260_v31 = vor.u32 %v258_v19, %v256_v26  ;;  %1259 = vmatprep.mubr.msk.bf16.mxu1 %vm273_vm0, %v490_v39  ;;  %v572_v43 = vrot.slane %v570_v38, 3  ;;  %v575_v47 = vrot.slane %v573_v40, 4  ;;  %v1170_v57 = vcombine.low %v730_v52, %v731_v53  ;;  %v1357_v19 = vld [vmem:[%s1561_s1 + $0x80] sm:$0xff]  }
  0x1b   : > { %v257_v35 = vsel %vm245_vm1, %v252_v29, %v256_v26  ;;  %1258 = vmatpush3.bf16.msra.mxu1 %v1339_v13  ;;  %v580_v48 = vrot.slane %v578_v44, 3  ;;  %v583_v49 = vrot.slane %v581_v45, 4  ;;  %v1165_v59 = vcombine.low %v560_v34, %v560_v34 }
  0x1c   : > { %1235 = vmatprep.mubr.msk.bf16.mxu0 %vm273_vm0, %v257_v35  ;;  %1271 = vmatprep.subr.bf16.mxu1 %v1344_v28  ;;  %v576_v51 = vor.u32 %v575_v47, %v572_v43  ;;  %v1176_v60 = vcombine.low %v732_v54, %v821_v58  ;;  %v1171_v63 = vcombine.low %v732_v54, %v733_v56  ;;  %v831_v0 = vshrl.u32 %v1170_v57, 16 }
  0x1d   : > { %1236 = vmatmul.mubr.msk.bf16.vlgmr.msra.gmra.mrb[0].mxu0 %vm273_vm0, %v260_v31  ;;  %v584_v55 = vor.u32 %v583_v49, %v580_v48  ;;  %v834_v1 = vshll.u32 %v1170_v57, 16  ;;  %v749_v10 = vrot.slane %v1170_v57, 2  ;;  %v1181_v18 = vcombine.low %v916_v14, %v731_v53  ;;  %v1186_v14 = vld [vmem:[%s1562_s2] ss:$0 sm:$0xff] }
  0x1e   : > { %1248 = vmatpush3.bf16.msra.mxu0 %v1335_v4  ;;  %1251 = vmatprep.mubr.msk.bf16.mxu0 %vm273_vm0, %v405_v32  ;;  %v839_v2 = vshrl.u32 %v1176_v60, 16  ;;  %v842_v3 = vshll.u32 %v1176_v60, 16  ;;  %v1353_v4 = vld [vmem:[%s1561_s1 + $0x78] sm:$0xff]   ;;  %v833_v5 = vrot.slane %v831_v0, 2  ;;  %v750_v11 = vrot.slane %v1171_v63, 2 }
  0x1f   : > { %1249 = vmatprep.subr.bf16.mxu0 %v1338_v36  ;;  %1260 = vmatmul.mubr.msk.bf16.vlgmr.msra.gmra.mrb[4].mxu1 %vm273_vm0, %v489_v33  ;;  %v585_v62 = vsel %vm568_vm4, %v576_v51, %v584_v55  ;;  %v836_v6 = vrot.slane %v834_v1, 3  ;;  %v925_v21 = vrot.slane %v1176_v60, 3 }
  0x20   : > { %1272 = vmatpush3.bf16.msra.mxu1 %v1344_v28  ;;  %1275 = vmatprep.mubr.msk.bf16.mxu1 %vm273_vm0, %v1164_v41  ;;  %v841_v7 = vrot.slane %v839_v2, 2  ;;  %v844_v8 = vrot.slane %v842_v3, 3  ;;  %v751_v17 = vsel %vm748_vm6, %v749_v10, %v750_v11 }
  0x21   : > { %1273 = vmatprep.subr.bf16.mxu1 %v1346_v42  ;;  %v837_v12 = vor.u32 %v836_v6, %v833_v5 }
  0x22   : > { %1250 = vmatpush3.bf16.msra.mxu0 %v1338_v36  ;;  %v845_v13 = vor.u32 %v844_v8, %v841_v7 }
  0x23   : > { %1263 = vmatprep.subr.bf16.mxu0 %v1341_v46 }
  0x24   : > { %1274 = vmatpush3.bf16.msra.mxu1 %v1346_v42  ;;  %v846_v15 = vsel %vm829_vm5, %v837_v12, %v845_v13 }
  0x25   : > { %1252 = vmatmul.mubr.msk.bf16.vlgmr.msra.gmra.mrb[4].mxu0 %vm273_vm0, %v404_v20  ;;  %1287 = vmatprep.subr.bf16.mxu1 %v1351_v50  ;;  %v924_v20 = vrot.slane %v1181_v18, 3 }
  0x26   : > { %1264 = vmatpush3.bf16.msra.mxu0 %v1341_v46  ;;  %1267 = vmatprep.mubr.msk.bf16.mxu0 %vm273_vm0, %v585_v62 }
  0x27   : > { %1265 = vmatprep.subr.bf16.mxu0 %v1345_v61  ;;  %1276 = vmatmul.mubr.msk.bf16.vlgmr.msra.gmra.mrb[8].mxu1 %vm273_vm0, %v1165_v59  ;;  %v926_v23 = vsel %vm487_vm3, %v924_v20, %v925_v21 }
  0x28   : > { %1288 = vmatpush3.bf16.msra.mxu1 %v1351_v50  ;;  %1291 = vmatprep.mubr.msk.bf16.mxu1 %vm273_vm0, %v846_v15 }
  0x29   : > { %1289 = vmatprep.subr.bf16.mxu1 %v1353_v4 }
  0x2a   : > { %1266 = vmatpush3.bf16.msra.mxu0 %v1345_v61 }
  0x2b   : > { %1279 = vmatprep.subr.bf16.mxu0 %v1348_v9 }
  0x2c   : > { %1290 = vmatpush3.bf16.msra.mxu1 %v1353_v4 }
  0x2d   : > { %1268 = vmatmul.mubr.msk.bf16.vlgmr.msra.gmra.mrb[8].mxu0 %vm273_vm0, %v584_v55 }
  0x2e   : > { %1280 = vmatpush3.bf16.msra.mxu0 %v1348_v9  ;;  %1283 = vmatprep.mubr.msk.bf16.mxu0 %vm273_vm0, %v751_v17 }
  0x2f   : > { %1281 = vmatprep.subr.bf16.mxu0 %v1352_v16  ;;  %1292 = vmatmul.mubr.msk.bf16.vlgmr.msra.gmra.mrb[12].mxu1 %vm273_vm0, %v845_v13 }
  0x32   : > { %1282 = vmatpush3.bf16.msra.mxu0 %v1352_v16 }
  0x33   : > { %1295 = vmatprep.subr.bf16.mxu0 %v1357_v19 }
  0x35   : > { %1284 = vmatmul.mubr.msk.bf16.vlgmr.msra.gmra.mrb[12].mxu0 %vm273_vm0, %v750_v11 }
  0x36   : > { %1296 = vmatpush3.bf16.msra.mxu0 %v1357_v19  ;;  %1299 = vmatprep.mubr.msk.bf16.mxu0 %vm273_vm0, %v926_v23 }
  0x37   : > { %1297 = vmatprep.subr.bf16.mxu0 %v1358_v22 }
  0x3a   : > { %1298 = vmatpush3.bf16.msra.mxu0 %v1358_v22 }
  0x3d   : > { %1300 = vmatmul.mubr.msk.bf16.vlgmr.msra.gmra.mrb[16].mxu0 %vm273_vm0, %v925_v21 }
  0xe9   : > { %v1245_v24 = vpop.f32.mrb[0].mxu1 }
  0xea   : > { %v380_v25 = vpop.f32.mrb[1].mxu1 }
  0xeb   : > { %v1246_v26 = vpop.f32.mrb[2].mxu1 }
  0xec   : > { %v383_v27 = vpop.f32.mrb[3].mxu1 }
  0xf0   : > { %v1237_v28 = vpop.f32.mrb[0].mxu0 }
  0xf1   : > { %v389_v29 = vadd.f32 %v1245_v24, %v1237_v28  ;;  %v314_v30 = vpop.f32.mrb[1].mxu0 }
  0xf2   : > { %v381_v31 = vadd.f32 %v380_v25, %v314_v30  ;;  %v1238_v32 = vpop.f32.mrb[2].mxu0  ;;  %v1261_v33 = vpop.f32.mrb[4].mxu1 }
  0xf3   : > { %v317_v34 = vpop.f32.mrb[3].mxu0  ;;  %v543_v35 = vpop.f32.mrb[5].mxu1 }
  0xf4   : > { %v384_v36 = vadd.f32 %v383_v27, %v317_v34  ;;  %v1262_v37 = vpop.f32.mrb[6].mxu1 }
  0xf5   : > { %v546_v38 = vpop.f32.mrb[7].mxu1 }
  0xf8   : > { %v1253_v39 = vpop.f32.mrb[4].mxu0 }
  0xf9   : > { %v474_v40 = vadd.f32 %v1253_v39, %v389_v29  ;;  %v458_v41 = vpop.f32.mrb[5].mxu0 }
  0xfa   : > { %v472_v42 = vadd.f32 %v458_v41, %v381_v31  ;;  %v1254_v43 = vpop.f32.mrb[6].mxu0  ;;  %v1277_v44 = vpop.f32.mrb[8].mxu1 }
  0xfb   : > { %v559_v45 = vadd.f32 %v1261_v33, %v474_v40  ;;  %v461_v46 = vpop.f32.mrb[7].mxu0  ;;  %v713_v47 = vpop.f32.mrb[9].mxu1 }
  0xfc   : > { %v473_v48 = vadd.f32 %v461_v46, %v384_v36  ;;  %v557_v49 = vadd.f32 %v543_v35, %v472_v42  ;;  %v1278_v50 = vpop.f32.mrb[10].mxu1 }
  0xfd   : > { %v716_v51 = vpop.f32.mrb[11].mxu1 }
  0xfe   : > { %v558_v52 = vadd.f32 %v546_v38, %v473_v48 }
 0x100   : > { %v1269_v53 = vpop.f32.mrb[8].mxu0 }
 0x101   : > { %v654_v54 = vadd.f32 %v1269_v53, %v559_v45  ;;  %v638_v55 = vpop.f32.mrb[9].mxu0 }
 0x102   : > { %v652_v56 = vadd.f32 %v638_v55, %v557_v49  ;;  %v1270_v57 = vpop.f32.mrb[10].mxu0  ;;  %v1293_v58 = vpop.f32.mrb[12].mxu1 }
 0x103   : > { %v729_v59 = vadd.f32 %v1277_v44, %v654_v54  ;;  %v641_v60 = vpop.f32.mrb[11].mxu0  ;;  %v899_v61 = vpop.f32.mrb[13].mxu1 }
 0x104   : > { %v653_v62 = vadd.f32 %v641_v60, %v558_v52  ;;  %v727_v63 = vadd.f32 %v713_v47, %v652_v56  ;;  %v1294_v0 = vpop.f32.mrb[14].mxu1 }
 0x105   : > { %v902_v1 = vpop.f32.mrb[15].mxu1 }
 0x106   : > { %v728_v2 = vadd.f32 %v716_v51, %v653_v62 }
 0x108   : > { %v1285_v3 = vpop.f32.mrb[12].mxu0 }
 0x109   : > { %v820_v4 = vadd.f32 %v1285_v3, %v729_v59  ;;  %v804_v5 = vpop.f32.mrb[13].mxu0 }
 0x10a   : > { %v818_v6 = vadd.f32 %v804_v5, %v727_v63  ;;  %v1286_v7 = vpop.f32.mrb[14].mxu0 }
 0x10b   : > { %v915_v8 = vadd.f32 %v1293_v58, %v820_v4  ;;  %v807_v9 = vpop.f32.mrb[15].mxu0 }
 0x10c   : > { %v819_v10 = vadd.f32 %v807_v9, %v728_v2  ;;  %v913_v11 = vadd.f32 %v899_v61, %v818_v6 }
 0x10e   : > { %v914_v12 = vadd.f32 %v902_v1, %v819_v10 }
 0x110   : > { %v1301_v13 = vpop.f32.mrb[16].mxu0 }
 0x111   : > { %v995_v15 = vadd.f32 %v1301_v13, %v915_v8  ;;  %v979_v16 = vpop.f32.mrb[17].mxu0 }
 0x112   : > { %v993_v17 = vadd.f32 %v979_v16, %v913_v11  ;;  %v1302_v18 = vpop.f32.mrb[18].mxu0 }
 0x113   : > { %v1005_v19 = vadd.f32 %v1186_v14, %v995_v15  ;;  %v982_v20 = vpop.f32.mrb[19].mxu0 }
 0x114   : > { %v1003_v21 = vadd.f32 %v1186_v14, %v993_v17  ;;  %v994_v22 = vadd.f32 %v982_v20, %v914_v12 }
 0x115   : > { %v1194_v23 = vpack.c.bf16 %v1005_v19, %v1005_v19 }
 0x116   : > { %v1192_v24 = vpack.c.bf16 %v1003_v21, %v1003_v21  ;;  %v1004_v25 = vadd.f32 %v1186_v14, %v994_v22 }
 0x117   : > { %1022 = vst.msk [vmem:[%s221_s11 + $0x8] sm:$0xf] %vm1019_vm7, %v1194_v23 }
 0x118   : > { %1020 = vst.msk [vmem:[%s221_s11] sm:$0xf] %vm1019_vm7, %v1192_v24  ;;  %v1193_v26 = vpack.c.bf16 %v1004_v25, %v1004_v25 }
 0x11a   : > { %1021 = vst.msk [vmem:[%s221_s11 + $0x4] sm:$0xf] %vm1019_vm7, %v1193_v26 }
 0x11b PF: > { %s13_s14 = sadd.s32 1, %s1382_s14   ;;  %s1564_s12 = smov %s1378_s13 }
 0x11c   : > { %p10_p5 = scmp.ge.s32.totalorder %s13_s14, 4   ;;  %s1565_s13 = smov %s1567_s15 }
 0x11e   :  { %12 = sbr.rel (!%p10_p5) target bundleno = 2 (0x2), region = 68 }

// kernel: _lambda_.31
= control target key start
LH: loop header
LB: loop body
LE: loop exit
PB: predicated region body
PF: predicated region fallthrough
CT: control target
= control target key end

     0   :  { %s555_s15 = smov 0   ;;  %s557_s16 = smov 0   ;;  %s597_s0 = inlined_call_operand.vmem [shape: bf16[2,4,16], index: 0, kind: input, shape index: {}]   ;;  %s598_s1 = inlined_call_operand.vmem [shape: bf16[16,32], index: 1, kind: input, shape index: {}]   ;;  %s599_s2 = inlined_call_operand.vmem [shape: f32[1,32], index: 2, kind: input, shape index: {}]   ;;  %s600_s3 = inlined_call_operand.vmem [shape: bf16[2,4,32], index: 3, kind: input, shape index: {}]   ;;  %s601_s4 = inlined_call_operand.vmem [shape: bf16[2,4,32], index: 4, kind: output, shape index: {}]  }
   0x1   :  { %s559_s17 = smov 0  }
   0x2 LB: > { %s26_s18 = sadd.s32 1, %s522_s16  ;;  %p460_p0 = scmp.ge.s32.totalorder %s526_s17, 1  ;;  %s526_s17 = sphi %s559_s17, %s14_s17   ;;  %s522_s16 = sphi %s557_s16, %s603_s16   ;;  %s518_s15 = sphi %s555_s15, %s602_s15  }
   0x3   : > { %p28_p1 = scmp.ge.s32.totalorder %s26_s18, 2  ;;  %p206_p2 = scmp.lt.s32.totalorder %s526_s17, 3 }
   0x5   : > { %s605_s18 = smov (%p28_p1, %s26_s18), 0  ;;  %p207_p3 = pnand %p460_p0, %p206_p2 }
   0x6   : > { %v503_v0 = vld [vmem:[%s598_s1] sm:$0xff] (!%p207_p3)   ;;  %v528_v1 = vmov (!%p207_p3), 0.0   ;;  %p247_p4 = scmp.lt.s32.totalorder (!%p207_p3), %s518_s15, 1  ;;  %vm529_vm0 = vmmov (!%p207_p3), 0   ;;  %vm289_vm1 = vcmask (!%p207_p3), 130048   ;;  %vm338_vm2 = vcmask (!%p207_p3), 254976  }
   0x7   : > { %210 = sbr.rel (%p207_p3) target bundleno = 239 (0xef), region = 36  ;;  %471 = vmatprep.subr.bf16.mxu0 (!%p207_p3), %v528_v1  ;;  %473 = vmatprep.mubr.msk.bf16.mxu0 (!%p207_p3), %vm529_vm0, %v528_v1  ;;  %v464_v4 = vld [vmem:[%s599_s2] ss:$0 sm:$0xff] (!%p207_p3) }
   0x8   : > { %472 = vmatpush3.bf16.msra.mxu0 (!%p207_p3), %v503_v0 }
   0xe   : > { %s607_s15 = smov (!%p247_p4, %s518_s15), 1 }
   0xf   : > { %s461_s21 = sshll.u32 %s607_s15, 1 }
  0x10   : > { %s250_s24 = scalar_lea.vmem %s597_s0, %s461_s21  ;;  %s264_s27 = scalar_lea.vmem %s600_s3, %s461_s21 }
  0x11   : > { %v273_v2 = vld [vmem:[%s250_s24] sm:$0x3]  ;;  %s271_s6 = scalar_lea.vmem %s601_s4, %s461_s21 }
  0x12   : > { %474 = vmatmul.mubr.msk.bf16.vlgmr.msra.gmra.mrb[0].mxu0 %vm289_vm1, %v273_v2  ;;  %v333_v3 = vld [vmem:[%s264_s27] sm:$0x3] }
  0x13   : > { %v334_v5 = vunpack.c.l.bf16 %v333_v3 }
  0xe5   : > { %v327_v6 = vpop.f32.mrb[0].mxu0 }
  0xe6   : > { %v328_v7 = vadd.f32 %v464_v4, %v327_v6  ;;  %v475_v8 = vpop.f32.mrb[1].mxu0 }
  0xe7   : > { %v330_v9 = vpop.f32.mrb[2].mxu0 }
  0xe8   : > { %v335_v10 = vadd.f32 %v334_v5, %v328_v7  ;;  %v476_v11 = vpop.f32.mrb[3].mxu0 }
  0xea   : > { %v336_v12 = vmax.f32 %v335_v10, 0.0 }
  0xec   : > { %v337_v13 = vpack.c.bf16 %v336_v12, %v336_v12 }
  0xee   : > { %339 = vst.msk [vmem:[%s271_s6] sm:$0x3] %vm338_vm2, %v337_v13 }
  0xef PF: > { %s14_s17 = sadd.s32 1, %s526_s17   ;;  %s602_s15 = smov %s522_s16 }
  0xf0   : > { %p11_p5 = scmp.ge.s32.totalorder %s14_s17, 4   ;;  %s603_s16 = smov %s605_s18 }
  0xf2   :  { %13 = sbr.rel (!%p11_p5) target bundleno = 2 (0x2), region = 75 }

// kernel: _lambda_.28
= control target key start
LH: loop header
LB: loop body
LE: loop exit
PB: predicated region body
PF: predicated region fallthrough
CT: control target
= control target key end

     0   :  { %s1057_s12 = smov 0   ;;  %s1059_s13 = smov 0   ;;  %s1244_s0 = inlined_call_operand.vmem [shape: bf16[2,12,128], index: 0, kind: input, shape index: {}]   ;;  %s1245_s1 = inlined_call_operand.vmem [shape: bf16[512,16], index: 1, kind: input, shape index: {}]   ;;  %s1246_s2 = inlined_call_operand.vmem [shape: f32[1,16], index: 2, kind: input, shape index: {}]   ;;  %s1247_s3 = inlined_call_operand.vmem [shape: bf16[2,6,16], index: 3, kind: output, shape index: {}]  }
   0x1   :  { %s1061_s14 = smov 0  }
   0x2 LB: > { %s25_s15 = sadd.s32 1, %s1029_s13  ;;  %p791_p0 = scmp.ge.s32.totalorder %s1033_s14, 1  ;;  %s1033_s14 = sphi %s1061_s14, %s13_s14   ;;  %s1029_s13 = sphi %s1059_s13, %s1249_s13   ;;  %s1025_s12 = sphi %s1057_s12, %s1248_s12  }
   0x3   : > { %p27_p1 = scmp.ge.s32.totalorder %s25_s15, 2  ;;  %p168_p2 = scmp.lt.s32.totalorder %s1033_s14, 3 }
   0x5   : > { %s1251_s15 = smov (%p27_p1, %s25_s15), 0  ;;  %p169_p3 = pnand %p791_p0, %p168_p2 }
   0x6   : > { %v976_v0 = vld [vmem:[%s1245_s1 + $0x40] sm:$0xff] (!%p169_p3)   ;;  %v1035_v1 = vmov (!%p169_p3), 0.0   ;;  %v978_v3 = vld [vmem:[%s1245_s1 + $0x48] sm:$0xff] (!%p169_p3)   ;;  %vm1036_vm0 = vmmov (!%p169_p3), 0   ;;  %p201_p4 = scmp.lt.s32.totalorder (!%p169_p3), %s1025_s12, 1  ;;  %v980_v5 = vld [vmem:[%s1245_s1 + $0x50] sm:$0xff] (!%p169_p3)  }
   0x7   : > { %172 = sbr.rel (%p169_p3) target bundleno = 294 (0x126), region = 32  ;;  %870 = vmatprep.subr.bf16.mxu0 (!%p169_p3), %v1035_v1  ;;  %890 = vmatprep.subr.bf16.mxu1 (!%p169_p3), %v1035_v1  ;;  %v977_v2 = vld [vmem:[%s1245_s1] sm:$0xff] (!%p169_p3)   ;;  %v979_v4 = vld [vmem:[%s1245_s1 + $0x8] sm:$0xff] (!%p169_p3)   ;;  %v981_v6 = vld [vmem:[%s1245_s1 + $0x10] sm:$0xff] (!%p169_p3)   ;;  %vm684_vm1 = vcmask (!%p169_p3), 124928  }
   0x8   : > { %871 = vmatpush3.bf16.msra.mxu0 (!%p169_p3), %v976_v0  ;;  %886 = vmatprep.mubr.msk.bf16.mxu0 (!%p169_p3), %vm1036_vm0, %v1035_v1  ;;  %v982_v7 = vld [vmem:[%s1245_s1 + $0x58] sm:$0xff] (!%p169_p3)   ;;  %v984_v9 = vld [vmem:[%s1245_s1 + $0x60] sm:$0xff] (!%p169_p3)   ;;  %v986_v12 = vld [vmem:[%s1245_s1 + $0x68] sm:$0xff] (!%p169_p3)  }
   0x9   : > { %891 = vmatpush3.bf16.msra.mxu1 (!%p169_p3), %v977_v2  ;;  %872 = vmatprep.subr.bf16.mxu0 (!%p169_p3), %v1035_v1  ;;  %v983_v8 = vld [vmem:[%s1245_s1 + $0x18] sm:$0xff] (!%p169_p3)   ;;  %v985_v10 = vld [vmem:[%s1245_s1 + $0x20] sm:$0xff] (!%p169_p3)   ;;  %v987_v13 = vld [vmem:[%s1245_s1 + $0x28] sm:$0xff] (!%p169_p3)  }
   0xa   : > { %892 = vmatprep.subr.bf16.mxu1 (!%p169_p3), %v1035_v1  ;;  %906 = vmatprep.mubr.msk.bf16.mxu1 (!%p169_p3), %vm1036_vm0, %v1035_v1  ;;  %v988_v15 = vld [vmem:[%s1245_s1 + $0x70] sm:$0xff] (!%p169_p3)   ;;  %v990_v19 = vld [vmem:[%s1245_s1 + $0x78] sm:$0xff] (!%p169_p3)   ;;  %v993_v23 = vld [vmem:[%s1245_s1 + $0x80] sm:$0xff] (!%p169_p3)  }
   0xb   : > { %v989_v16 = vld [vmem:[%s1245_s1 + $0x30] sm:$0xff] (!%p169_p3)   ;;  %v991_v20 = vld [vmem:[%s1245_s1 + $0x38] sm:$0xff] (!%p169_p3)   ;;  %v994_v24 = vld [vmem:[%s1245_s1 + $0xc0] sm:$0xff] (!%p169_p3)  }
   0xc   : > { %873 = vmatpush3.bf16.msra.mxu0 (!%p169_p3), %v978_v3  ;;  %v995_v25 = vld [vmem:[%s1245_s1 + $0x88] sm:$0xff] (!%p169_p3)   ;;  %v997_v27 = vld [vmem:[%s1245_s1 + $0x90] sm:$0xff] (!%p169_p3)   ;;  %v999_v29 = vld [vmem:[%s1245_s1 + $0x98] sm:$0xff] (!%p169_p3)  }
   0xd   : > { %893 = vmatpush3.bf16.msra.mxu1 (!%p169_p3), %v979_v4  ;;  %874 = vmatprep.subr.bf16.mxu0 (!%p169_p3), %v1035_v1  ;;  %v996_v26 = vld [vmem:[%s1245_s1 + $0xc8] sm:$0xff] (!%p169_p3)   ;;  %v998_v28 = vld [vmem:[%s1245_s1 + $0xd0] sm:$0xff] (!%p169_p3)   ;;  %v1000_v30 = vld [vmem:[%s1245_s1 + $0xd8] sm:$0xff] (!%p169_p3)  }
   0xe   : > { %s1253_s12 = smov (!%p201_p4, %s1025_s12), 1  ;;  %894 = vmatprep.subr.bf16.mxu1 %v1035_v1  ;;  %v1001_v31 = vld [vmem:[%s1245_s1 + $0xa0] sm:$0xff]   ;;  %v1003_v36 = vld [vmem:[%s1245_s1 + $0xa8] sm:$0xff]   ;;  %v1005_v40 = vld [vmem:[%s1245_s1 + $0xb0] sm:$0xff]  }
   0xf   : > { %s833_s5 = sshll.u32 %s1253_s12, 3  ;;  %v1002_v34 = vld [vmem:[%s1245_s1 + $0xe0] sm:$0xff]   ;;  %v1004_v37 = vld [vmem:[%s1245_s1 + $0xe8] sm:$0xff]   ;;  %v1006_v41 = vld [vmem:[%s1245_s1 + $0xf0] sm:$0xff]   ;;  %s794_s18 = sshll.u32 %s1253_s12, 2 }
  0x10   : > { %875 = vmatpush3.bf16.msra.mxu0 %v980_v5  ;;  %s1124_s10 = scalar_lea.vmem %s1244_s0, %s833_s5  ;;  %v1007_v45 = vld [vmem:[%s1245_s1 + $0xb8] sm:$0xff]   ;;  %v830_v63 = vld [vmem:[%s1246_s2] ss:$0 sm:$0xff]  ;;  %s219_s21 = scalar_lea.vmem %s1247_s3, %s794_s18 }
  0x11   : > { %895 = vmatpush3.bf16.msra.mxu1 %v981_v6  ;;  %876 = vmatprep.subr.bf16.mxu0 %v1035_v1  ;;  %v992_v11 = vld [vmem:[%s1124_s10] ss:$0 sps:$4 sm:$0xff]   ;;  %v442_v32 = vld [vmem:[%s1124_s10] sm:$0xe]  ;;  %v443_v33 = vld [vmem:[%s1124_s10 + $0x4] sm:$0x1] }
  0x12   : > { %896 = vmatprep.subr.bf16.mxu1 %v1035_v1  ;;  %v261_v14 = vshll.u32 %v992_v11, 16  ;;  %v259_v17 = vshrl.u32 %v992_v11, 16  ;;  %v221_v22 = vld [vmem:[%s1124_s10] sm:$0x7]  ;;  %v812_v35 = vcombine.low %v442_v32, %v443_v33  ;;  %v1008_v47 = vld [vmem:[%s1245_s1 + $0xf8] sm:$0xff]  }
  0x13   : > { %v563_v42 = vld [vmem:[%s1124_s10] sm:$0xc] }
  0x14   : > { %877 = vmatpush3.bf16.msra.mxu0 %v982_v7  ;;  %v263_v18 = vrot.slane %v261_v14, 1  ;;  %v466_v38 = vshrl.u32 %v812_v35, 16  ;;  %v469_v39 = vshll.u32 %v812_v35, 16  ;;  %v821_v46 = vcombine.low %v563_v42, %v443_v33 }
  0x15   : > { %897 = vmatpush3.bf16.msra.mxu1 %v983_v8  ;;  %878 = vmatprep.subr.bf16.mxu0 %v1035_v1 }
  0x16   : > { %898 = vmatprep.subr.bf16.mxu1 %v1035_v1  ;;  %v264_v21 = vor.u32 %v263_v18, %v259_v17  ;;  %v468_v43 = vrot.slane %v466_v38, 1  ;;  %v471_v44 = vrot.slane %v469_v39, 2  ;;  %v583_v49 = vrot.slane %v821_v46, 2 }
  0x18   : > { %879 = vmatpush3.bf16.msra.mxu0 %v984_v9  ;;  %v472_v48 = vor.u32 %v471_v44, %v468_v43 }
  0x19   : > { %899 = vmatpush3.bf16.msra.mxu1 %v985_v10  ;;  %880 = vmatprep.subr.bf16.mxu0 %v1035_v1 }
  0x1a   : > { %900 = vmatprep.subr.bf16.mxu1 %v1035_v1 }
  0x1c   : > { %881 = vmatpush3.bf16.msra.mxu0 %v986_v12 }
  0x1d   : > { %901 = vmatpush3.bf16.msra.mxu1 %v987_v13  ;;  %882 = vmatprep.subr.bf16.mxu0 %v1035_v1 }
  0x1e   : > { %902 = vmatprep.subr.bf16.mxu1 %v1035_v1 }
  0x20   : > { %883 = vmatpush3.bf16.msra.mxu0 %v988_v15 }
  0x21   : > { %903 = vmatpush3.bf16.msra.mxu1 %v989_v16  ;;  %884 = vmatprep.subr.bf16.mxu0 %v1035_v1 }
  0x22   : > { %904 = vmatprep.subr.bf16.mxu1 %v1035_v1 }
  0x24   : > { %885 = vmatpush3.bf16.msra.mxu0 %v990_v19 }
  0x25   : > { %905 = vmatpush3.bf16.msra.mxu1 %v991_v20  ;;  %910 = vmatprep.subr.bf16.mxu0 %v1035_v1 }
  0x26   : > { %930 = vmatprep.subr.bf16.mxu1 %v1035_v1 }
  0x27   : > { %887 = vmatmul.mubr.bf16.vlgmr.msra.gmra.mrb[0].mxu0 %v264_v21 }
  0x28   : > { %907 = vmatmul.mubr.bf16.vlgmr.msra.gmra.mrb[0].mxu1 %v221_v22  ;;  %911 = vmatpush3.bf16.msra.mxu0 %v993_v23 }
  0x29   : > { %931 = vmatpush3.bf16.msra.mxu1 %v994_v24  ;;  %912 = vmatprep.subr.bf16.mxu0 %v1035_v1 }
  0x2a   : > { %932 = vmatprep.subr.bf16.mxu1 %v1035_v1  ;;  %926 = vmatprep.mubr.msk.bf16.mxu0 %vm1036_vm0, %v1035_v1 }
  0x2b   : > { %946 = vmatprep.mubr.msk.bf16.mxu1 %vm1036_vm0, %v1035_v1 }
  0x2c   : > { %913 = vmatpush3.bf16.msra.mxu0 %v995_v25 }
  0x2d   : > { %933 = vmatpush3.bf16.msra.mxu1 %v996_v26  ;;  %914 = vmatprep.subr.bf16.mxu0 %v1035_v1 }
  0x2e   : > { %934 = vmatprep.subr.bf16.mxu1 %v1035_v1 }
  0x30   : > { %915 = vmatpush3.bf16.msra.mxu0 %v997_v27 }
  0x31   : > { %935 = vmatpush3.bf16.msra.mxu1 %v998_v28  ;;  %916 = vmatprep.subr.bf16.mxu0 %v1035_v1 }
  0x32   : > { %936 = vmatprep.subr.bf16.mxu1 %v1035_v1 }
  0x34   : > { %917 = vmatpush3.bf16.msra.mxu0 %v999_v29 }
  0x35   : > { %937 = vmatpush3.bf16.msra.mxu1 %v1000_v30  ;;  %918 = vmatprep.subr.bf16.mxu0 %v1035_v1 }
  0x36   : > { %938 = vmatprep.subr.bf16.mxu1 %v1035_v1 }
  0x38   : > { %919 = vmatpush3.bf16.msra.mxu0 %v1001_v31 }
  0x39   : > { %939 = vmatpush3.bf16.msra.mxu1 %v1002_v34  ;;  %920 = vmatprep.subr.bf16.mxu0 %v1035_v1 }
  0x3a   : > { %940 = vmatprep.subr.bf16.mxu1 %v1035_v1 }
  0x3c   : > { %921 = vmatpush3.bf16.msra.mxu0 %v1003_v36 }
  0x3d   : > { %941 = vmatpush3.bf16.msra.mxu1 %v1004_v37  ;;  %922 = vmatprep.subr.bf16.mxu0 %v1035_v1 }
  0x3e   : > { %942 = vmatprep.subr.bf16.mxu1 %v1035_v1 }
  0x40   : > { %923 = vmatpush3.bf16.msra.mxu0 %v1005_v40 }
  0x41   : > { %943 = vmatpush3.bf16.msra.mxu1 %v1006_v41  ;;  %924 = vmatprep.subr.bf16.mxu0 %v1035_v1 }
  0x42   : > { %944 = vmatprep.subr.bf16.mxu1 %v1035_v1 }
  0x44   : > { %925 = vmatpush3.bf16.msra.mxu0 %v1007_v45 }
  0x45   : > { %945 = vmatpush3.bf16.msra.mxu1 %v1008_v47 }
  0x47   : > { %927 = vmatmul.mubr.bf16.vlgmr.msra.gmra.mrb[4].mxu0 %v472_v48 }
  0x48   : > { %947 = vmatmul.mubr.bf16.vlgmr.msra.gmra.mrb[4].mxu1 %v583_v49 }
  0xfa   : > { %v348_v50 = vpop.f32.mrb[0].mxu0 }
  0xfb   : > { %v436_v51 = vpop.f32.mrb[0].mxu1  ;;  %v888_v52 = vpop.f32.mrb[1].mxu0 }
  0xfc   : > { %v437_v53 = vadd.f32 %v436_v51, %v348_v50  ;;  %v908_v54 = vpop.f32.mrb[1].mxu1  ;;  %v351_v55 = vpop.f32.mrb[2].mxu0 }
  0xfd   : > { %v439_v56 = vpop.f32.mrb[2].mxu1  ;;  %v889_v57 = vpop.f32.mrb[3].mxu0 }
  0xfe   : > { %v909_v58 = vpop.f32.mrb[3].mxu1 }
 0x11a   : > { %v556_v59 = vpop.f32.mrb[4].mxu0 }
 0x11b   : > { %v562_v60 = vadd.f32 %v556_v59, %v437_v53  ;;  %v667_v61 = vpop.f32.mrb[4].mxu1  ;;  %v928_v62 = vpop.f32.mrb[5].mxu0 }
 0x11c   : > { %v948_v0 = vpop.f32.mrb[5].mxu1  ;;  %v559_v1 = vpop.f32.mrb[6].mxu0 }
 0x11d   : > { %v673_v2 = vadd.f32 %v667_v61, %v562_v60  ;;  %v670_v3 = vpop.f32.mrb[6].mxu1  ;;  %v929_v4 = vpop.f32.mrb[7].mxu0 }
 0x11e   : > { %v949_v5 = vpop.f32.mrb[7].mxu1 }
 0x11f   : > { %v681_v6 = vadd.f32 %v830_v63, %v673_v2 }
 0x121   : > { %v682_v7 = vmax.f32 %v681_v6, 0.0 }
 0x123   : > { %v683_v8 = vpack.c.bf16 %v682_v7, %v682_v7 }
 0x125   : > { %685 = vst.msk [vmem:[%s219_s21] sm:$0x7] %vm684_vm1, %v683_v8 }
 0x126 PF: > { %s13_s14 = sadd.s32 1, %s1033_s14   ;;  %s1248_s12 = smov %s1029_s13 }
 0x127   : > { %p10_p5 = scmp.ge.s32.totalorder %s13_s14, 4   ;;  %s1249_s13 = smov %s1251_s15 }
 0x129   :  { %12 = sbr.rel (!%p10_p5) target bundleno = 2 (0x2), region = 68 }

// kernel: _lambda_.29
= control target key start
LH: loop header
LB: loop body
LE: loop exit
PB: predicated region body
PF: predicated region fallthrough
CT: control target
= control target key end

     0   :  { %s1060_s12 = smov 0   ;;  %s1062_s13 = smov 0   ;;  %s1176_s0 = inlined_call_operand.vmem [shape: bf16[2,20,16], index: 0, kind: input, shape index: {}]   ;;  %s1177_s1 = inlined_call_operand.vmem [shape: bf16[144,32], index: 1, kind: input, shape index: {}]   ;;  %s1178_s2 = inlined_call_operand.vmem [shape: f32[1,32], index: 2, kind: input, shape index: {}]   ;;  %s1179_s3 = inlined_call_operand.vmem [shape: bf16[2,8,32], index: 3, kind: output, shape index: {}]  }
   0x1   :  { %s1064_s14 = smov 0  }
   0x2 LB: > { %s25_s15 = sadd.s32 1, %s1032_s13  ;;  %p868_p0 = scmp.ge.s32.totalorder %s1036_s14, 1  ;;  %s1036_s14 = sphi %s1064_s14, %s13_s14   ;;  %s1032_s13 = sphi %s1062_s13, %s1181_s13   ;;  %s1028_s12 = sphi %s1060_s12, %s1180_s12  }
   0x3   : > { %p27_p1 = scmp.ge.s32.totalorder %s25_s15, 2  ;;  %p168_p2 = scmp.lt.s32.totalorder %s1036_s14, 3 }
   0x5   : > { %s1183_s15 = smov (%p27_p1, %s25_s15), 0  ;;  %p169_p3 = pnand %p868_p0, %p168_p2 }
   0x6   : > { %v998_v0 = vld [vmem:[%s1177_s1 + $0x8] sm:$0xff] (!%p169_p3)   ;;  %v1038_v1 = vmov (!%p169_p3), 0.0   ;;  %v999_v2 = vld [vmem:[%s1177_s1] sm:$0xff] (!%p169_p3)   ;;  %vm1039_vm0 = vmmov (!%p169_p3), 0   ;;  %p201_p4 = scmp.lt.s32.totalorder (!%p169_p3), %s1028_s12, 1  ;;  %vm245_vm1 = vcmask (!%p169_p3), 130048  }
   0x7   : > { %172 = sbr.rel (%p169_p3) target bundleno = 278 (0x116), region = 32  ;;  %917 = vmatprep.subr.bf16.mxu0 (!%p169_p3), %v1038_v1  ;;  %923 = vmatprep.subr.bf16.mxu1 (!%p169_p3), %v1038_v1  ;;  %v1002_v3 = vld [vmem:[%s1177_s1 + $0x18] sm:$0xff] (!%p169_p3)   ;;  %v1001_v12 = vld [vmem:[%s1177_s1 + $0x10] sm:$0xff] (!%p169_p3)   ;;  %v1007_v21 = vld [vmem:[%s1177_s1 + $0x28] sm:$0xff] (!%p169_p3)   ;;  %vm761_vm2 = vcmask (!%p169_p3), 257024  }
   0x8   : > { %918 = vmatpush3.bf16.msra.mxu0 (!%p169_p3), %v998_v0  ;;  %919 = vmatprep.mubr.msk.bf16.mxu0 (!%p169_p3), %vm1039_vm0, %v1038_v1  ;;  %v1004_v31 = vld [vmem:[%s1177_s1 + $0x20] sm:$0xff] (!%p169_p3)   ;;  %v1010_v32 = vld [vmem:[%s1177_s1 + $0x38] sm:$0xff] (!%p169_p3)   ;;  %v1008_v39 = vld [vmem:[%s1177_s1 + $0x30] sm:$0xff] (!%p169_p3)  }
   0x9   : > { %924 = vmatpush3.bf16.msra.mxu1 (!%p169_p3), %v999_v2  ;;  %925 = vmatprep.mubr.msk.bf16.mxu1 (!%p169_p3), %vm1039_vm0, %v1038_v1  ;;  %v1011_v41 = vld [vmem:[%s1177_s1 + $0x40] sm:$0xff] (!%p169_p3)  }
   0xa   : > { %929 = vmatprep.subr.bf16.mxu0 (!%p169_p3), %v1038_v1  ;;  %935 = vmatprep.subr.bf16.mxu1 (!%p169_p3), %v1038_v1 }
   0xe   : > { %s1185_s12 = smov (!%p201_p4, %s1028_s12), 1 }
   0xf   : > { %s971_s20 = smul.u32 12, %s1185_s12  ;;  %s870_s17 = sshll.u32 %s1185_s12, 2 }
  0x11   : > { %s1101_s25 = scalar_lea.vmem %s1176_s0, %s971_s20  ;;  %s219_s20 = scalar_lea.vmem %s1179_s3, %s870_s17 }
  0x12   : > { %v221_v4 = vld [vmem:[%s1101_s25] sm:$0xf]  ;;  %v224_v5 = vld [vmem:[%s1101_s25 + $0x4] sm:$0x1]  ;;  %v630_v19 = vld [vmem:[%s1101_s25 + $0x8] sm:$0x1] }
  0x13   : > { %v871_v6 = vcombine.low %v221_v4, %v224_v5  ;;  %926 = vmatmul.mubr.msk.bf16.vlgmr.msra.gmra.mrb[0].mxu1 %vm245_vm1, %v221_v4  ;;  %v395_v7 = vld [vmem:[%s1101_s25] sm:$0xc]  ;;  %v396_v8 = vld [vmem:[%s1101_s25 + $0x4] sm:$0x3] }
  0x14   : > { %936 = vmatpush3.bf16.msra.mxu1 %v1002_v3  ;;  %937 = vmatprep.mubr.msk.bf16.mxu1 %vm1039_vm0, %v1038_v1  ;;  %v879_v9 = vcombine.low %v395_v7, %v396_v8  ;;  %v338_v14 = vld [vmem:[%s1101_s25] sm:$0xe]  ;;  %v455_v16 = vld [vmem:[%s1101_s25 + $0x4] sm:$0x7] }
  0x15   : > { %v233_v10 = vshrl.u32 %v871_v6, 16  ;;  %v235_v11 = vshll.u32 %v871_v6, 16  ;;  %947 = vmatprep.subr.bf16.mxu1 %v1038_v1  ;;  %v519_v17 = vld [vmem:[%s1101_s25] sm:$0x8]  ;;  %v629_v18 = vld [vmem:[%s1101_s25 + $0x4] sm:$0xf]  ;;  %v876_v22 = vcombine.low %v338_v14, %v224_v5  ;;  %v882_v23 = vcombine.low %v395_v7, %v455_v16 }
  0x16   : > { %v404_v15 = vrot.slane %v879_v9, 2  ;;  %v885_v24 = vcombine.low %v519_v17, %v455_v16  ;;  %v890_v25 = vcombine.low %v629_v18, %v630_v19  ;;  %v576_v40 = vld [vmem:[%s1101_s25 + $0x4] sm:$0xf] }
  0x17   : > { %v237_v13 = vrot.slane %v235_v11, 1  ;;  %v344_v26 = vrot.slane %v876_v22, 1  ;;  %v462_v27 = vshrl.u32 %v882_v23, 16  ;;  %v465_v28 = vshll.u32 %v882_v23, 16  ;;  %v695_v42 = vld [vmem:[%s1101_s25 + $0x4] sm:$0xe] }
  0x18   : > { %v525_v29 = vrot.slane %v885_v24, 3  ;;  %v641_v30 = vshll.u32 %v890_v25, 16  ;;  %v639_v35 = vshrl.u32 %v890_v25, 16  ;;  %v893_v43 = vcombine.low %v695_v42, %v630_v19 }
  0x19   : > { %v238_v20 = vor.u32 %v237_v13, %v233_v10  ;;  %v464_v33 = vrot.slane %v462_v27, 2  ;;  %v467_v34 = vrot.slane %v465_v28, 3 }
  0x1a   : > { %v643_v36 = vrot.slane %v641_v30, 1  ;;  %v701_v44 = vrot.slane %v893_v43, 1 }
  0x1b   : > { %920 = vmatmul.mubr.msk.bf16.vlgmr.msra.gmra.mrb[0].mxu0 %vm245_vm1, %v238_v20  ;;  %938 = vmatmul.mubr.msk.bf16.vlgmr.msra.gmra.mrb[4].mxu1 %vm245_vm1, %v404_v15  ;;  %v468_v37 = vor.u32 %v467_v34, %v464_v33 }
  0x1c   : > { %930 = vmatpush3.bf16.msra.mxu0 %v1001_v12  ;;  %931 = vmatprep.mubr.msk.bf16.mxu0 %vm1039_vm0, %v1038_v1  ;;  %v644_v38 = vor.u32 %v643_v36, %v639_v35 }
  0x1d   : > { %941 = vmatprep.subr.bf16.mxu0 %v1038_v1  ;;  %948 = vmatpush3.bf16.msra.mxu1 %v1007_v21  ;;  %v896_v21 = vld [vmem:[%s1178_s2] ss:$0 sm:$0xff] }
  0x1e   : > { %949 = vmatprep.mubr.msk.bf16.mxu1 %vm1039_vm0, %v1038_v1  ;;  %959 = vmatprep.subr.bf16.mxu1 %v1038_v1 }
  0x23   : > { %932 = vmatmul.mubr.msk.bf16.vlgmr.msra.gmra.mrb[4].mxu0 %vm245_vm1, %v344_v26  ;;  %950 = vmatmul.mubr.msk.bf16.vlgmr.msra.gmra.mrb[8].mxu1 %vm245_vm1, %v525_v29 }
  0x24   : > { %942 = vmatpush3.bf16.msra.mxu0 %v1004_v31  ;;  %943 = vmatprep.mubr.msk.bf16.mxu0 %vm1039_vm0, %v1038_v1 }
  0x25   : > { %953 = vmatprep.subr.bf16.mxu0 %v1038_v1  ;;  %960 = vmatpush3.bf16.msra.mxu1 %v1010_v32 }
  0x26   : > { %961 = vmatprep.mubr.msk.bf16.mxu1 %vm1039_vm0, %v1038_v1 }
  0x2b   : > { %944 = vmatmul.mubr.msk.bf16.vlgmr.msra.gmra.mrb[8].mxu0 %vm245_vm1, %v468_v37  ;;  %962 = vmatmul.mubr.msk.bf16.vlgmr.msra.gmra.mrb[12].mxu1 %vm245_vm1, %v644_v38 }
  0x2c   : > { %954 = vmatpush3.bf16.msra.mxu0 %v1008_v39  ;;  %955 = vmatprep.mubr.msk.bf16.mxu0 %vm1039_vm0, %v1038_v1 }
  0x2d   : > { %965 = vmatprep.subr.bf16.mxu0 %v1038_v1 }
  0x33   : > { %956 = vmatmul.mubr.msk.bf16.vlgmr.msra.gmra.mrb[12].mxu0 %vm245_vm1, %v576_v40 }
  0x34   : > { %966 = vmatpush3.bf16.msra.mxu0 %v1011_v41  ;;  %967 = vmatprep.mubr.msk.bf16.mxu0 %vm1039_vm0, %v1038_v1 }
  0x3b   : > { %968 = vmatmul.mubr.msk.bf16.vlgmr.msra.gmra.mrb[16].mxu0 %vm245_vm1, %v701_v44 }
  0xe6   : > { %v332_v45 = vpop.f32.mrb[0].mxu1 }
  0xe7   : > { %v927_v46 = vpop.f32.mrb[1].mxu1 }
  0xe8   : > { %v335_v47 = vpop.f32.mrb[2].mxu1 }
  0xe9   : > { %v928_v48 = vpop.f32.mrb[3].mxu1 }
  0xee   : > { %v283_v49 = vpop.f32.mrb[0].mxu0  ;;  %v448_v50 = vpop.f32.mrb[4].mxu1 }
  0xef   : > { %v333_v51 = vadd.f32 %v332_v45, %v283_v49  ;;  %v921_v52 = vpop.f32.mrb[1].mxu0  ;;  %v939_v53 = vpop.f32.mrb[5].mxu1 }
  0xf0   : > { %v286_v54 = vpop.f32.mrb[2].mxu0  ;;  %v451_v55 = vpop.f32.mrb[6].mxu1 }
  0xf1   : > { %v922_v56 = vpop.f32.mrb[3].mxu0  ;;  %v940_v57 = vpop.f32.mrb[7].mxu1 }
  0xf6   : > { %v388_v58 = vpop.f32.mrb[4].mxu0  ;;  %v569_v59 = vpop.f32.mrb[8].mxu1 }
  0xf7   : > { %v394_v60 = vadd.f32 %v388_v58, %v333_v51  ;;  %v933_v61 = vpop.f32.mrb[5].mxu0  ;;  %v951_v62 = vpop.f32.mrb[9].mxu1 }
  0xf8   : > { %v391_v63 = vpop.f32.mrb[6].mxu0  ;;  %v572_v0 = vpop.f32.mrb[10].mxu1 }
  0xf9   : > { %v454_v1 = vadd.f32 %v448_v50, %v394_v60  ;;  %v934_v2 = vpop.f32.mrb[7].mxu0  ;;  %v952_v3 = vpop.f32.mrb[11].mxu1 }
  0xfe   : > { %v512_v4 = vpop.f32.mrb[8].mxu0  ;;  %v688_v5 = vpop.f32.mrb[12].mxu1 }
  0xff   : > { %v518_v6 = vadd.f32 %v512_v4, %v454_v1  ;;  %v945_v7 = vpop.f32.mrb[9].mxu0  ;;  %v963_v8 = vpop.f32.mrb[13].mxu1 }
 0x100   : > { %v515_v9 = vpop.f32.mrb[10].mxu0  ;;  %v691_v10 = vpop.f32.mrb[14].mxu1 }
 0x101   : > { %v575_v11 = vadd.f32 %v569_v59, %v518_v6  ;;  %v946_v12 = vpop.f32.mrb[11].mxu0  ;;  %v964_v13 = vpop.f32.mrb[15].mxu1 }
 0x106   : > { %v622_v14 = vpop.f32.mrb[12].mxu0 }
 0x107   : > { %v628_v15 = vadd.f32 %v622_v14, %v575_v11  ;;  %v957_v16 = vpop.f32.mrb[13].mxu0 }
 0x108   : > { %v625_v17 = vpop.f32.mrb[14].mxu0 }
 0x109   : > { %v694_v18 = vadd.f32 %v688_v5, %v628_v15  ;;  %v958_v19 = vpop.f32.mrb[15].mxu0 }
 0x10e   : > { %v745_v20 = vpop.f32.mrb[16].mxu0 }
 0x10f   : > { %v751_v22 = vadd.f32 %v745_v20, %v694_v18  ;;  %v969_v23 = vpop.f32.mrb[17].mxu0 }
 0x110   : > { %v748_v24 = vpop.f32.mrb[18].mxu0 }
 0x111   : > { %v759_v25 = vadd.f32 %v896_v21, %v751_v22  ;;  %v970_v26 = vpop.f32.mrb[19].mxu0 }
 0x113   : > { %v760_v27 = vpack.c.bf16 %v759_v25, %v759_v25 }
 0x115   : > { %762 = vst.msk [vmem:[%s219_s20] sm:$0xf] %vm761_vm2, %v760_v27 }
 0x116 PF: > { %s13_s14 = sadd.s32 1, %s1036_s14   ;;  %s1180_s12 = smov %s1032_s13 }
 0x117   : > { %p10_p5 = scmp.ge.s32.totalorder %s13_s14, 4   ;;  %s1181_s13 = smov %s1183_s15 }
 0x119   :  { %12 = sbr.rel (!%p10_p5) target bundleno = 2 (0x2), region = 68 }

// kernel: _lambda_.30
= control target key start
LH: loop header
LB: loop body
LE: loop exit
PB: predicated region body
PF: predicated region fallthrough
CT: control target
= control target key end

     0   :  { %s1184_s12 = smov 0   ;;  %s1186_s13 = smov 0   ;;  %s1347_s0 = inlined_call_operand.vmem [shape: bf16[2,20,32], index: 0, kind: input, shape index: {}]   ;;  %s1348_s1 = inlined_call_operand.vmem [shape: bf16[288,16], index: 1, kind: input, shape index: {}]   ;;  %s1349_s2 = inlined_call_operand.vmem [shape: f32[1,16], index: 2, kind: input, shape index: {}]   ;;  %s1350_s3 = inlined_call_operand.vmem [shape: bf16[2,8,16], index: 3, kind: output, shape index: {}]  }
   0x1   :  { %s1188_s14 = smov 0  }
   0x2 LB: > { %s25_s15 = sadd.s32 1, %s1155_s13  ;;  %p952_p0 = scmp.ge.s32.totalorder %s1159_s14, 1  ;;  %s1159_s14 = sphi %s1188_s14, %s13_s14   ;;  %s1155_s13 = sphi %s1186_s13, %s1352_s13   ;;  %s1151_s12 = sphi %s1184_s12, %s1351_s12  }
   0x3   : > { %p27_p1 = scmp.ge.s32.totalorder %s25_s15, 2  ;;  %p168_p2 = scmp.lt.s32.totalorder %s1159_s14, 3 }
   0x5   : > { %s1354_s15 = smov (%p27_p1, %s25_s15), 0  ;;  %p169_p3 = pnand %p952_p0, %p168_p2 }
   0x6   : > { %v1119_v0 = vld [vmem:[%s1348_s1 + $0x10] sm:$0xff] (!%p169_p3)   ;;  %v1161_v1 = vmov (!%p169_p3), 0.0   ;;  %v1120_v2 = vld [vmem:[%s1348_s1] sm:$0xff] (!%p169_p3)   ;;  %v1121_v3 = vld [vmem:[%s1348_s1 + $0x18] sm:$0xff] (!%p169_p3)   ;;  %vm1162_vm0 = vmmov (!%p169_p3), 0   ;;  %p201_p4 = scmp.lt.s32.totalorder (!%p169_p3), %s1151_s12, 1 }
   0x7   : > { %172 = sbr.rel (%p169_p3) target bundleno = 282 (0x11a), region = 32  ;;  %1019 = vmatprep.subr.bf16.mxu0 (!%p169_p3), %v1161_v1  ;;  %1027 = vmatprep.subr.bf16.mxu1 (!%p169_p3), %v1161_v1  ;;  %v1122_v4 = vld [vmem:[%s1348_s1 + $0x8] sm:$0xff] (!%p169_p3)   ;;  %vm257_vm1 = vcmask (!%p169_p3), 261120   ;;  %v1124_v7 = vld [vmem:[%s1348_s1 + $0x30] sm:$0xff] (!%p169_p3)   ;;  %v1163_v8 = vmov (!%p169_p3), 0   ;;  %v1126_v16 = vld [vmem:[%s1348_s1 + $0x38] sm:$0xff] (!%p169_p3)  }
   0x8   : > { %1020 = vmatpush3.bf16.msra.mxu0 (!%p169_p3), %v1119_v0  ;;  %1023 = vmatprep.mubr.msk.bf16.mxu0 (!%p169_p3), %vm1162_vm0, %v1161_v1  ;;  %v1123_v22 = vld [vmem:[%s1348_s1 + $0x20] sm:$0xff] (!%p169_p3)   ;;  %v1128_v29 = vld [vmem:[%s1348_s1 + $0x50] sm:$0xff] (!%p169_p3)   ;;  %v1125_v34 = vld [vmem:[%s1348_s1 + $0x28] sm:$0xff] (!%p169_p3)   ;;  %vm845_vm2 = vcmask (!%p169_p3), 125952  }
   0x9   : > { %1028 = vmatpush3.bf16.msra.mxu1 (!%p169_p3), %v1120_v2  ;;  %1021 = vmatprep.subr.bf16.mxu0 (!%p169_p3), %v1161_v1  ;;  %v1130_v37 = vld [vmem:[%s1348_s1 + $0x58] sm:$0xff] (!%p169_p3)   ;;  %v1127_v44 = vld [vmem:[%s1348_s1 + $0x40] sm:$0xff] (!%p169_p3)   ;;  %v1132_v47 = vld [vmem:[%s1348_s1 + $0x70] sm:$0xff] (!%p169_p3)  }
   0xa   : > { %1029 = vmatprep.subr.bf16.mxu1 (!%p169_p3), %v1161_v1  ;;  %1031 = vmatprep.mubr.msk.bf16.mxu1 (!%p169_p3), %vm1162_vm0, %v1161_v1  ;;  %v1129_v50 = vld [vmem:[%s1348_s1 + $0x48] sm:$0xff] (!%p169_p3)   ;;  %v1134_v53 = vld [vmem:[%s1348_s1 + $0x78] sm:$0xff] (!%p169_p3)   ;;  %v1131_v55 = vld [vmem:[%s1348_s1 + $0x60] sm:$0xff] (!%p169_p3)  }
   0xb   : > { %v1133_v57 = vld [vmem:[%s1348_s1 + $0x68] sm:$0xff] (!%p169_p3)   ;;  %v1135_v62 = vld [vmem:[%s1348_s1 + $0x80] sm:$0xff] (!%p169_p3)  }
   0xc   : > { %1022 = vmatpush3.bf16.msra.mxu0 (!%p169_p3), %v1121_v3  ;;  %v1136_v0 = vld [vmem:[%s1348_s1 + $0x88] sm:$0xff] (!%p169_p3)  }
   0xd   : > { %1030 = vmatpush3.bf16.msra.mxu1 (!%p169_p3), %v1122_v4  ;;  %1035 = vmatprep.subr.bf16.mxu0 (!%p169_p3), %v1161_v1 }
   0xe   : > { %s1356_s12 = smov (!%p201_p4, %s1151_s12), 1  ;;  %1043 = vmatprep.subr.bf16.mxu1 %v1161_v1 }
   0xf   : > { %s1091_s24 = smul.u32 12, %s1356_s12  ;;  %s954_s8 = sshll.u32 %s1356_s12, 2 }
  0x10   : > { %s219_s11 = scalar_lea.vmem %s1350_s3, %s954_s8 }
  0x11   : > { %s1229_s27 = scalar_lea.vmem %s1347_s0, %s1091_s24 }
  0x12   : > { %v221_v5 = vld [vmem:[%s1229_s27] sm:$0xf]  ;;  %v227_v6 = vld [vmem:[%s1229_s27 + $0x4] sm:$0x1]  ;;  %v694_v35 = vld [vmem:[%s1229_s27 + $0x8] sm:$0x1] }
  0x13   : > { %v222_v9 = vmax.bf16 %v1163_v8, %v221_v5  ;;  %v228_v10 = vmax.bf16 %v1163_v8, %v227_v6  ;;  %v422_v11 = vld [vmem:[%s1229_s27] sm:$0xc]  ;;  %v423_v12 = vld [vmem:[%s1229_s27 + $0x4] sm:$0x3]  ;;  %v696_v39 = vmax.bf16 %v1163_v8, %v694_v35 }
  0x14   : > { %v424_v13 = vmax.bf16 %v1163_v8, %v422_v11  ;;  %v425_v14 = vmax.bf16 %v1163_v8, %v423_v12  ;;  %v356_v17 = vld [vmem:[%s1229_s27] sm:$0xe]  ;;  %v492_v21 = vld [vmem:[%s1229_s27 + $0x4] sm:$0x7] }
  0x15   : > { %v955_v15 = vcombine.low %v222_v9, %v228_v10  ;;  %1032 = vmatmul.mubr.msk.bf16.vlgmr.msra.gmra.mrb[0].mxu1 %vm257_vm1, %v222_v9  ;;  %v357_v24 = vmax.bf16 %v1163_v8, %v356_v17  ;;  %v493_v26 = vmax.bf16 %v1163_v8, %v492_v21  ;;  %v565_v27 = vld [vmem:[%s1229_s27] sm:$0x8]  ;;  %v693_v33 = vld [vmem:[%s1229_s27 + $0x4] sm:$0xf] }
  0x16   : > { %1044 = vmatpush3.bf16.msra.mxu1 %v1124_v7  ;;  %1047 = vmatprep.mubr.msk.bf16.mxu1 %vm1162_vm0, %v1161_v1  ;;  %v966_v18 = vcombine.low %v424_v13, %v425_v14  ;;  %v566_v30 = vmax.bf16 %v1163_v8, %v565_v27  ;;  %v695_v36 = vmax.bf16 %v1163_v8, %v693_v33  ;;  %v631_v58 = vld [vmem:[%s1229_s27 + $0x4] sm:$0xf] }
  0x17   : > { %v239_v19 = vshrl.u32 %v955_v15, 16  ;;  %v241_v20 = vshll.u32 %v955_v15, 16  ;;  %1045 = vmatprep.subr.bf16.mxu1 %v1161_v1  ;;  %v962_v31 = vcombine.low %v357_v24, %v228_v10  ;;  %v970_v32 = vcombine.low %v424_v13, %v493_v26  ;;  %v769_v59 = vld [vmem:[%s1229_s27 + $0x4] sm:$0xe] }
  0x18   : > { %v435_v25 = vrot.slane %v966_v18, 2  ;;  %v974_v38 = vcombine.low %v566_v30, %v493_v26  ;;  %v981_v43 = vcombine.low %v695_v36, %v696_v39  ;;  %v632_v60 = vmax.bf16 %v1163_v8, %v631_v58 }
  0x19   : > { %v243_v23 = vrot.slane %v241_v20, 1  ;;  %v365_v40 = vrot.slane %v962_v31, 1  ;;  %v502_v41 = vshrl.u32 %v970_v32, 16  ;;  %v505_v42 = vshll.u32 %v970_v32, 16 }
  0x1a   : > { %1046 = vmatpush3.bf16.msra.mxu1 %v1126_v16  ;;  %v574_v45 = vrot.slane %v974_v38, 3  ;;  %v709_v46 = vshll.u32 %v981_v43, 16  ;;  %v707_v51 = vshrl.u32 %v981_v43, 16  ;;  %v770_v61 = vmax.bf16 %v1163_v8, %v769_v59 }
  0x1b   : > { %v244_v28 = vor.u32 %v243_v23, %v239_v19  ;;  %1059 = vmatprep.subr.bf16.mxu1 %v1161_v1  ;;  %v504_v48 = vrot.slane %v502_v41, 2  ;;  %v507_v49 = vrot.slane %v505_v42, 3  ;;  %v989_v42 = vld [vmem:[%s1349_s2] ss:$0 sm:$0xff] }
  0x1c   : > { %v711_v52 = vrot.slane %v709_v46, 1  ;;  %v985_v63 = vcombine.low %v770_v61, %v696_v39 }
  0x1d   : > { %1024 = vmatmul.mubr.msk.bf16.vlgmr.msra.gmra.mrb[0].mxu0 %vm257_vm1, %v244_v28  ;;  %1048 = vmatmul.mubr.msk.bf16.vlgmr.msra.gmra.mrb[4].mxu1 %vm257_vm1, %v435_v25  ;;  %v508_v54 = vor.u32 %v507_v49, %v504_v48 }
  0x1e   : > { %1036 = vmatpush3.bf16.msra.mxu0 %v1123_v22  ;;  %1039 = vmatprep.mubr.msk.bf16.mxu0 %vm1162_vm0, %v1161_v1  ;;  %v712_v56 = vor.u32 %v711_v52, %v707_v51  ;;  %v778_v2 = vrot.slane %v985_v63, 1 }
  0x1f   : > { %1037 = vmatprep.subr.bf16.mxu0 %v1161_v1  ;;  %1060 = vmatpush3.bf16.msra.mxu1 %v1128_v29 }
  0x20   : > { %1061 = vmatprep.subr.bf16.mxu1 %v1161_v1  ;;  %1063 = vmatprep.mubr.msk.bf16.mxu1 %vm1162_vm0, %v1161_v1 }
  0x22   : > { %1038 = vmatpush3.bf16.msra.mxu0 %v1125_v34 }
  0x23   : > { %1051 = vmatprep.subr.bf16.mxu0 %v1161_v1  ;;  %1062 = vmatpush3.bf16.msra.mxu1 %v1130_v37 }
  0x24   : > { %1075 = vmatprep.subr.bf16.mxu1 %v1161_v1 }
  0x25   : > { %1040 = vmatmul.mubr.msk.bf16.vlgmr.msra.gmra.mrb[4].mxu0 %vm257_vm1, %v365_v40 }
  0x26   : > { %1052 = vmatpush3.bf16.msra.mxu0 %v1127_v44  ;;  %1055 = vmatprep.mubr.msk.bf16.mxu0 %vm1162_vm0, %v1161_v1 }
  0x27   : > { %1053 = vmatprep.subr.bf16.mxu0 %v1161_v1  ;;  %1064 = vmatmul.mubr.msk.bf16.vlgmr.msra.gmra.mrb[8].mxu1 %vm257_vm1, %v574_v45 }
  0x28   : > { %1076 = vmatpush3.bf16.msra.mxu1 %v1132_v47  ;;  %1079 = vmatprep.mubr.msk.bf16.mxu1 %vm1162_vm0, %v1161_v1 }
  0x29   : > { %1077 = vmatprep.subr.bf16.mxu1 %v1161_v1 }
  0x2a   : > { %1054 = vmatpush3.bf16.msra.mxu0 %v1129_v50 }
  0x2b   : > { %1067 = vmatprep.subr.bf16.mxu0 %v1161_v1 }
  0x2c   : > { %1078 = vmatpush3.bf16.msra.mxu1 %v1134_v53 }
  0x2d   : > { %1056 = vmatmul.mubr.msk.bf16.vlgmr.msra.gmra.mrb[8].mxu0 %vm257_vm1, %v508_v54 }
  0x2e   : > { %1068 = vmatpush3.bf16.msra.mxu0 %v1131_v55  ;;  %1071 = vmatprep.mubr.msk.bf16.mxu0 %vm1162_vm0, %v1161_v1 }
  0x2f   : > { %1069 = vmatprep.subr.bf16.mxu0 %v1161_v1  ;;  %1080 = vmatmul.mubr.msk.bf16.vlgmr.msra.gmra.mrb[12].mxu1 %vm257_vm1, %v712_v56 }
  0x32   : > { %1070 = vmatpush3.bf16.msra.mxu0 %v1133_v57 }
  0x33   : > { %1083 = vmatprep.subr.bf16.mxu0 %v1161_v1 }
  0x35   : > { %1072 = vmatmul.mubr.msk.bf16.vlgmr.msra.gmra.mrb[12].mxu0 %vm257_vm1, %v632_v60 }
  0x36   : > { %1084 = vmatpush3.bf16.msra.mxu0 %v1135_v62  ;;  %1087 = vmatprep.mubr.msk.bf16.mxu0 %vm1162_vm0, %v1161_v1 }
  0x37   : > { %1085 = vmatprep.subr.bf16.mxu0 %v1161_v1 }
  0x3a   : > { %1086 = vmatpush3.bf16.msra.mxu0 %v1136_v0 }
  0x3d   : > { %1088 = vmatmul.mubr.msk.bf16.vlgmr.msra.gmra.mrb[16].mxu0 %vm257_vm1, %v778_v2 }
  0xe8   : > { %v350_v3 = vpop.f32.mrb[0].mxu1 }
  0xe9   : > { %v1033_v4 = vpop.f32.mrb[1].mxu1 }
  0xea   : > { %v353_v5 = vpop.f32.mrb[2].mxu1 }
  0xeb   : > { %v1034_v6 = vpop.f32.mrb[3].mxu1 }
  0xf0   : > { %v295_v7 = vpop.f32.mrb[0].mxu0  ;;  %v485_v8 = vpop.f32.mrb[4].mxu1 }
  0xf1   : > { %v351_v9 = vadd.f32 %v350_v3, %v295_v7  ;;  %v1025_v10 = vpop.f32.mrb[1].mxu0  ;;  %v1049_v11 = vpop.f32.mrb[5].mxu1 }
  0xf2   : > { %v298_v12 = vpop.f32.mrb[2].mxu0  ;;  %v488_v13 = vpop.f32.mrb[6].mxu1 }
  0xf3   : > { %v1026_v14 = vpop.f32.mrb[3].mxu0  ;;  %v1050_v15 = vpop.f32.mrb[7].mxu1 }
  0xf8   : > { %v415_v16 = vpop.f32.mrb[4].mxu0 }
  0xf9   : > { %v421_v17 = vadd.f32 %v415_v16, %v351_v9  ;;  %v1041_v1 = vpop.f32.mrb[5].mxu0 }
  0xfa   : > { %v418_v18 = vpop.f32.mrb[6].mxu0  ;;  %v624_v19 = vpop.f32.mrb[8].mxu1 }
  0xfb   : > { %v491_v20 = vadd.f32 %v485_v8, %v421_v17  ;;  %v1042_v21 = vpop.f32.mrb[7].mxu0  ;;  %v1065_v22 = vpop.f32.mrb[9].mxu1 }
  0xfc   : > { %v627_v23 = vpop.f32.mrb[10].mxu1 }
  0xfd   : > { %v1066_v24 = vpop.f32.mrb[11].mxu1 }
 0x100   : > { %v558_v25 = vpop.f32.mrb[8].mxu0 }
 0x101   : > { %v564_v26 = vadd.f32 %v558_v25, %v491_v20  ;;  %v1057_v27 = vpop.f32.mrb[9].mxu0 }
 0x102   : > { %v561_v28 = vpop.f32.mrb[10].mxu0  ;;  %v762_v29 = vpop.f32.mrb[12].mxu1 }
 0x103   : > { %v630_v30 = vadd.f32 %v624_v19, %v564_v26  ;;  %v1058_v31 = vpop.f32.mrb[11].mxu0  ;;  %v1081_v32 = vpop.f32.mrb[13].mxu1 }
 0x104   : > { %v765_v33 = vpop.f32.mrb[14].mxu1 }
 0x105   : > { %v1082_v34 = vpop.f32.mrb[15].mxu1 }
 0x108   : > { %v686_v35 = vpop.f32.mrb[12].mxu0 }
 0x109   : > { %v692_v36 = vadd.f32 %v686_v35, %v630_v30  ;;  %v1073_v37 = vpop.f32.mrb[13].mxu0 }
 0x10a   : > { %v689_v38 = vpop.f32.mrb[14].mxu0 }
 0x10b   : > { %v768_v39 = vadd.f32 %v762_v29, %v692_v36  ;;  %v1074_v40 = vpop.f32.mrb[15].mxu0 }
 0x110   : > { %v828_v41 = vpop.f32.mrb[16].mxu0 }
 0x111   : > { %v834_v43 = vadd.f32 %v828_v41, %v768_v39  ;;  %v1089_v44 = vpop.f32.mrb[17].mxu0 }
 0x112   : > { %v831_v45 = vpop.f32.mrb[18].mxu0 }
 0x113   : > { %v842_v46 = vadd.f32 %v989_v42, %v834_v43  ;;  %v1090_v47 = vpop.f32.mrb[19].mxu0 }
 0x115   : > { %v843_v48 = vmax.f32 %v842_v46, 0.0 }
 0x117   : > { %v844_v49 = vpack.c.bf16 %v843_v48, %v843_v48 }
 0x119   : > { %846 = vst.msk [vmem:[%s219_s11] sm:$0xf] %vm845_vm2, %v844_v49 }
 0x11a PF: > { %s13_s14 = sadd.s32 1, %s1159_s14   ;;  %s1351_s12 = smov %s1155_s13 }
 0x11b   : > { %p10_p5 = scmp.ge.s32.totalorder %s13_s14, 4   ;;  %s1352_s13 = smov %s1354_s15 }
 0x11d   :  { %12 = sbr.rel (!%p10_p5) target bundleno = 2 (0x2), region = 68 }

// kernel: tile.14
= control target key start
LH: loop header
LB: loop body
LE: loop exit
PB: predicated region body
PF: predicated region fallthrough
CT: control target
= control target key end

     0   :  { %s22_s0 = inlined_call_operand.vmem [shape: f32[16], index: 0, kind: input, shape index: {}]   ;;  %s23_s1 = inlined_call_operand.vmem [shape: f32[4,16], index: 1, kind: output, shape index: {}]  }
   0x1   :  { %v4_v0 = vld [vmem:[%s22_s0] ss:$0 sm:$0xff] }
   0x2   :  { %5 = vst [vmem:[%s23_s1] sm:$0xf] %v4_v0 }

// kernel: tile.15
= control target key start
LH: loop header
LB: loop body
LE: loop exit
PB: predicated region body
PF: predicated region fallthrough
CT: control target
= control target key end

     0   :  { %vm7_vm0 = vcmask 130048   ;;  %s37_s8 = smov 16   ;;  %s38_s9 = smov 32   ;;  %vm13_vm1 = vcmask 523648   ;;  %vm19_vm2 = vcmask 392448   ;;  %vm25_vm3 = vcmask 261248   ;;  %s55_s0 = inlined_call_operand.vmem [shape: f32[4,16], index: 0, kind: input, shape index: {}]   ;;  %s56_s1 = inlined_call_operand.vmem [shape: f32[1,64], index: 1, kind: output, shape index: {}]  }
   0x1   :  { %v4_v0 = vld [vmem:[%s55_s0] sm:$0xf]  ;;  %s36_s0 = smov 48  }
   0x2   :  { %5 = vst [vmem:[#allocation1] sm:$0xf] %v4_v0 }
   0x9   :  { %v10_v1 = vld [vmem:[#allocation1 + $0x3] sm:$0x1]   ;;  %v22_v2 = vld [vmem:[#allocation1 + $0x1] sm:$0x1]   ;;  %v6_v3 = vld [vmem:[#allocation1] sm:$0x1]  }
   0xa   :  { %11 = vrot.lane.b32.xlu0 %v10_v1, %s36_s0  ;;  %23 = vrot.lane.b32.xlu1 %v22_v2, %s37_s8  ;;  %v16_v4 = vld [vmem:[#allocation1 + $0x2] sm:$0x1]   ;;  %8 = vst.msk [vmem:[#allocation0] sm:$0x1] %vm7_vm0, %v6_v3  }
   0xe   :  { %17 = vrot.lane.b32.xlu0 %v16_v4, %s38_s9 }
  0x7c   :  { %v12_v5 = vpop.permute.xlu0 %11   ;;  %v24_v6 = vpop.permute.xlu1 %23  }
  0x7d   :  { %14 = vst.msk [vmem:[#allocation0] sm:$0x1] %vm13_vm1, %v12_v5  }
  0x80   :  { %v18_v7 = vpop.permute.xlu0 %17  }
  0x81   :  { %20 = vst.msk [vmem:[#allocation0] sm:$0x1] %vm19_vm2, %v18_v7  }
  0x82   :  { %26 = vst.msk [vmem:[#allocation0] sm:$0x1] %vm25_vm3, %v24_v6  }
  0x89   :  { %v30_v8 = vld [vmem:[#allocation0] sm:$0x1] }
  0x8a   :  { %32 = vst [vmem:[%s56_s1] sm:$0x1] %v30_v8 }

// kernel: _lambda_.32
= control target key start
LH: loop header
LB: loop body
LE: loop exit
PB: predicated region body
PF: predicated region fallthrough
CT: control target
= control target key end

     0   :  { %s487_s12 = smov 0   ;;  %s489_s13 = smov 0   ;;  %s529_s0 = inlined_call_operand.vmem [shape: bf16[2,4,32], index: 0, kind: input, shape index: {}]   ;;  %s530_s1 = inlined_call_operand.vmem [shape: bf16[32,16], index: 1, kind: input, shape index: {}]   ;;  %s531_s2 = inlined_call_operand.vmem [shape: f32[1,16], index: 2, kind: input, shape index: {}]   ;;  %s532_s3 = inlined_call_operand.vmem [shape: f32[2,4,16], index: 3, kind: output, shape index: {}]  }
   0x1   :  { %s491_s14 = smov 0  }
   0x2 LB: > { %s25_s15 = sadd.s32 1, %s459_s13  ;;  %p393_p0 = scmp.ge.s32.totalorder %s463_s14, 1  ;;  %s463_s14 = sphi %s491_s14, %s13_s14   ;;  %s459_s13 = sphi %s489_s13, %s534_s13   ;;  %s455_s12 = sphi %s487_s12, %s533_s12  }
   0x3   : > { %p27_p1 = scmp.ge.s32.totalorder %s25_s15, 2  ;;  %p167_p2 = scmp.lt.s32.totalorder %s463_s14, 3 }
   0x5   : > { %s536_s15 = smov (%p27_p1, %s25_s15), 0  ;;  %p168_p3 = pnand %p393_p0, %p167_p2 }
   0x6   : > { %v439_v0 = vld [vmem:[%s530_s1] sm:$0xff] (!%p168_p3)   ;;  %v465_v1 = vmov (!%p168_p3), 0.0   ;;  %v440_v2 = vld [vmem:[%s530_s1 + $0x8] sm:$0xff] (!%p168_p3)   ;;  %vm466_vm0 = vmmov (!%p168_p3), 0   ;;  %p199_p4 = scmp.lt.s32.totalorder (!%p168_p3), %s455_s12, 1  ;;  %vm242_vm1 = vcmask (!%p168_p3), 261120  }
   0x7   : > { %171 = sbr.rel (%p168_p3) target bundleno = 233 (0xe9), region = 32  ;;  %405 = vmatprep.subr.bf16.mxu0 (!%p168_p3), %v465_v1  ;;  %409 = vmatprep.mubr.msk.bf16.mxu0 (!%p168_p3), %vm466_vm0, %v465_v1  ;;  %v396_v4 = vld [vmem:[%s531_s2] ss:$0 sm:$0xff] (!%p168_p3)  ;;  %vm286_vm2 = vcmask (!%p168_p3), 125952  }
   0x8   : > { %406 = vmatpush3.bf16.msra.mxu0 (!%p168_p3), %v439_v0 }
   0x9   : > { %407 = vmatprep.subr.bf16.mxu0 (!%p168_p3), %v465_v1 }
   0xc   : > { %408 = vmatpush3.bf16.msra.mxu0 (!%p168_p3), %v440_v2 }
   0xe   : > { %s538_s12 = smov (!%p199_p4, %s455_s12), 1 }
   0xf   : > { %s394_s20 = sshll.u32 %s538_s12, 1  ;;  %s395_s24 = sshll.u32 %s538_s12, 2 }
  0x10   : > { %s202_s23 = scalar_lea.vmem %s529_s0, %s394_s20  ;;  %s216_s29 = scalar_lea.vmem %s532_s3, %s395_s24 }
  0x11   : > { %v218_v3 = vld [vmem:[%s202_s23] sm:$0x3] }
  0x12   : > { %410 = vmatmul.mubr.msk.bf16.vlgmr.msra.gmra.mrb[0].mxu0 %vm242_vm1, %v218_v3 }
  0xe5   : > { %v280_v5 = vpop.f32.mrb[0].mxu0 }
  0xe6   : > { %v281_v6 = vadd.f32 %v396_v4, %v280_v5  ;;  %v411_v7 = vpop.f32.mrb[1].mxu0 }
  0xe7   : > { %v283_v8 = vpop.f32.mrb[2].mxu0 }
  0xe8   : > { %287 = vst.msk [vmem:[%s216_s29] sm:$0xf] %vm286_vm2, %v281_v6  ;;  %v412_v9 = vpop.f32.mrb[3].mxu0 }
  0xe9 PF: > { %s13_s14 = sadd.s32 1, %s463_s14   ;;  %s533_s12 = smov %s459_s13 }
  0xea   : > { %p10_p5 = scmp.ge.s32.totalorder %s13_s14, 4   ;;  %s534_s13 = smov %s536_s15 }
  0xec   :  { %12 = sbr.rel (!%p10_p5) target bundleno = 2 (0x2), region = 68 }

// kernel: _lambda_.33
= control target key start
LH: loop header
LB: loop body
LE: loop exit
PB: predicated region body
PF: predicated region fallthrough
CT: control target
= control target key end

     0   :  { %v186_v0 = vmov 0.0   ;;  %vm187_vm0 = vmmov 0   ;;  %vm28_vm1 = vcmask 130048   ;;  %vm81_vm2 = vcmask 261120   ;;  %s233_s1 = inlined_call_operand.vmem [shape: bf16[16,32], index: 1, kind: input, shape index: {}]   ;;  %s234_s0 = inlined_call_operand.vmem [shape: f32[8,16], index: 0, kind: input, shape index: {}]   ;;  %s235_s2 = inlined_call_operand.vmem [shape: bf16[32,16], index: 2, kind: input, shape index: {}]   ;;  %s236_s3 = inlined_call_operand.vmem [shape: f32[1,32], index: 3, kind: input, shape index: {}]   ;;  %s237_s4 = inlined_call_operand.vmem [shape: f32[8,16], index: 4, kind: output, shape index: {}]  }
   0x1   :  { %167 = vmatprep.subr.bf16.mxu0 %v186_v0  ;;  %v183_v1 = vld [vmem:[%s233_s1] sm:$0xff]   ;;  %169 = vmatprep.mubr.msk.bf16.mxu0 %vm187_vm0, %v186_v0  ;;  %v185_v13 = vld [vmem:[%s235_s2 + $0x8] sm:$0xff]   ;;  %v85_v14 = vlaneseq }
   0x2   :  { %v18_v2 = vld [vmem:[%s234_s0] sm:$0xff]  ;;  %173 = vmatprep.subr.bf16.mxu1 %v186_v0  ;;  %177 = vmatprep.mubr.msk.bf16.mxu1 %vm187_vm0, %v186_v0 }
   0x3   :  { %168 = vmatpush3.bf16.msra.mxu0 %v183_v1  ;;  %v19_v3 = vpack.c.bf16 %v18_v2, %v18_v2  ;;  %v184_v4 = vld [vmem:[%s235_s2] sm:$0xff]   ;;  %v86_v15 = vand.u32 127, %v85_v14 }
   0x4   :  { %174 = vmatpush3.bf16.msra.mxu1 %v184_v4  ;;  %v157_v6 = vld [vmem:[%s236_s3] ss:$0 sm:$0xff] }
   0x5   :  { %175 = vmatprep.subr.bf16.mxu1 %v186_v0 }
   0x6   :  { %170 = vmatmul.mubr.msk.bf16.vlgmr.msra.gmra.mrb[0].mxu0 %vm28_vm1, %v19_v3 }
   0x8   :  { %176 = vmatpush3.bf16.msra.mxu1 %v185_v13 }
  0xd9   :  { %v66_v5 = vpop.f32.mrb[0].mxu0 }
  0xda   :  { %v73_v7 = vmul.f32 2.0, %v66_v5  ;;  %v171_v8 = vpop.f32.mrb[1].mxu0 }
  0xdb   :  { %v69_v9 = vpop.f32.mrb[2].mxu0 }
  0xdc   :  { %v172_v10 = vpop.f32.mrb[3].mxu0  ;;  %v80_v11 = vsub.f32 %v157_v6, %v73_v7 }
  0xde   :  { %v82_v12 = vsel %vm81_vm2, %v80_v11, inf }
  0xdf   :  { %83 = vmin.index.xlane.f32.xlu0 %v82_v12 }
 0x16c   :  { %v84_v16 = vpop.xlane.xlu0 %83 }
 0x16d   :  { %vm87_vm3 = vcmp.eq.s32.totalorder %v86_v15, %v84_v16 }
 0x16e   :  { %v158_v17 = vsel %vm87_vm3, 1.0, %v186_v0 }
 0x16f   :  { %v90_v18 = vpack.c.bf16 %v158_v17, %v158_v17 }
 0x171   :  { %178 = vmatmul.mubr.msk.bf16.vlgmr.msra.gmra.mrb[0].mxu1 %vm81_vm2, %v90_v18 }
 0x244   :  { %v144_v19 = vpop.f32.mrb[0].mxu1 }
 0x245   :  { %150 = vst.msk [vmem:[%s237_s4] sm:$0xff] %vm28_vm1, %v144_v19  ;;  %v179_v20 = vpop.f32.mrb[1].mxu1 }
 0x246   :  { %v147_v21 = vpop.f32.mrb[2].mxu1 }
 0x247   :  { %v180_v22 = vpop.f32.mrb[3].mxu1 }

// kernel: _lambda_.37
= control target key start
LH: loop header
LB: loop body
LE: loop exit
PB: predicated region body
PF: predicated region fallthrough
CT: control target
= control target key end

     0   :  { %s1177_s12 = smov 0   ;;  %s1179_s13 = smov 0   ;;  %s1329_s0 = inlined_call_operand.vmem [shape: bf16[2,20,32], index: 0, kind: input, shape index: {}]   ;;  %s1330_s1 = inlined_call_operand.vmem [shape: bf16[288,64], index: 1, kind: input, shape index: {}]   ;;  %s1331_s2 = inlined_call_operand.vmem [shape: f32[1,64], index: 2, kind: input, shape index: {}]   ;;  %s1332_s3 = inlined_call_operand.vmem [shape: bf16[2,8,64], index: 3, kind: output, shape index: {}]  }
   0x1   :  { %s1181_s14 = smov 0  }
   0x2 LB: > { %s25_s15 = sadd.s32 1, %s1149_s13  ;;  %p940_p0 = scmp.ge.s32.totalorder %s1153_s14, 1  ;;  %s1153_s14 = sphi %s1181_s14, %s13_s14   ;;  %s1149_s13 = sphi %s1179_s13, %s1334_s13   ;;  %s1145_s12 = sphi %s1177_s12, %s1333_s12  }
   0x3   : > { %p27_p1 = scmp.ge.s32.totalorder %s25_s15, 2  ;;  %p168_p2 = scmp.lt.s32.totalorder %s1153_s14, 3 }
   0x5   : > { %s1336_s15 = smov (%p27_p1, %s25_s15), 0  ;;  %p169_p3 = pnand %p940_p0, %p168_p2 }
   0x6   : > { %v1106_v0 = vld [vmem:[%s1330_s1 + $0x10] sm:$0xff] (!%p169_p3)   ;;  %v1155_v1 = vmov (!%p169_p3), 0.0   ;;  %v1107_v2 = vld [vmem:[%s1330_s1] sm:$0xff] (!%p169_p3)   ;;  %v1108_v3 = vld [vmem:[%s1330_s1 + $0x18] sm:$0xff] (!%p169_p3)   ;;  %vm1156_vm0 = vmmov (!%p169_p3), 0   ;;  %p201_p4 = scmp.lt.s32.totalorder (!%p169_p3), %s1145_s12, 1 }
   0x7   : > { %172 = sbr.rel (%p169_p3) target bundleno = 278 (0x116), region = 32  ;;  %1007 = vmatprep.subr.bf16.mxu0 (!%p169_p3), %v1155_v1  ;;  %1015 = vmatprep.subr.bf16.mxu1 (!%p169_p3), %v1155_v1  ;;  %v1109_v4 = vld [vmem:[%s1330_s1 + $0x8] sm:$0xff] (!%p169_p3)   ;;  %vm255_vm1 = vcmask (!%p169_p3), 261120   ;;  %v1112_v5 = vld [vmem:[%s1330_s1 + $0x30] sm:$0xff] (!%p169_p3)   ;;  %v1114_v11 = vld [vmem:[%s1330_s1 + $0x38] sm:$0xff] (!%p169_p3)   ;;  %vm833_vm2 = vcmask (!%p169_p3), 519168  }
   0x8   : > { %1008 = vmatpush3.bf16.msra.mxu0 (!%p169_p3), %v1106_v0  ;;  %1011 = vmatprep.mubr.msk.bf16.mxu0 (!%p169_p3), %vm1156_vm0, %v1155_v1  ;;  %v1111_v15 = vld [vmem:[%s1330_s1 + $0x20] sm:$0xff] (!%p169_p3)   ;;  %v1119_v21 = vld [vmem:[%s1330_s1 + $0x50] sm:$0xff] (!%p169_p3)   ;;  %v1113_v25 = vld [vmem:[%s1330_s1 + $0x28] sm:$0xff] (!%p169_p3)  }
   0x9   : > { %1016 = vmatpush3.bf16.msra.mxu1 (!%p169_p3), %v1107_v2  ;;  %1009 = vmatprep.subr.bf16.mxu0 (!%p169_p3), %v1155_v1  ;;  %v1121_v26 = vld [vmem:[%s1330_s1 + $0x58] sm:$0xff] (!%p169_p3)   ;;  %v1116_v34 = vld [vmem:[%s1330_s1 + $0x40] sm:$0xff] (!%p169_p3)   ;;  %v1124_v37 = vld [vmem:[%s1330_s1 + $0x70] sm:$0xff] (!%p169_p3)  }
   0xa   : > { %1017 = vmatprep.subr.bf16.mxu1 (!%p169_p3), %v1155_v1  ;;  %1019 = vmatprep.mubr.msk.bf16.mxu1 (!%p169_p3), %vm1156_vm0, %v1155_v1  ;;  %v1120_v40 = vld [vmem:[%s1330_s1 + $0x48] sm:$0xff] (!%p169_p3)   ;;  %v1126_v43 = vld [vmem:[%s1330_s1 + $0x78] sm:$0xff] (!%p169_p3)   ;;  %v1122_v45 = vld [vmem:[%s1330_s1 + $0x60] sm:$0xff] (!%p169_p3)  }
   0xb   : > { %v1125_v47 = vld [vmem:[%s1330_s1 + $0x68] sm:$0xff] (!%p169_p3)   ;;  %v1127_v49 = vld [vmem:[%s1330_s1 + $0x80] sm:$0xff] (!%p169_p3)  }
   0xc   : > { %1010 = vmatpush3.bf16.msra.mxu0 (!%p169_p3), %v1108_v3  ;;  %v1129_v52 = vld [vmem:[%s1330_s1 + $0x88] sm:$0xff] (!%p169_p3)  }
   0xd   : > { %1018 = vmatpush3.bf16.msra.mxu1 (!%p169_p3), %v1109_v4  ;;  %1023 = vmatprep.subr.bf16.mxu0 (!%p169_p3), %v1155_v1 }
   0xe   : > { %s1338_s12 = smov (!%p201_p4, %s1145_s12), 1  ;;  %1031 = vmatprep.subr.bf16.mxu1 %v1155_v1 }
   0xf   : > { %s1079_s24 = smul.u32 12, %s1338_s12  ;;  %s942_s8 = sshll.u32 %s1338_s12, 2 }
  0x10   : > { %s219_s11 = scalar_lea.vmem %s1332_s3, %s942_s8 }
  0x11   : > { %s1225_s29 = scalar_lea.vmem %s1329_s0, %s1079_s24 }
  0x12   : > { %v221_v6 = vld [vmem:[%s1225_s29] sm:$0xf]  ;;  %v226_v7 = vld [vmem:[%s1225_s29 + $0x4] sm:$0x1]  ;;  %v686_v29 = vld [vmem:[%s1225_s29 + $0x8] sm:$0x1] }
  0x13   : > { %v943_v8 = vcombine.low %v221_v6, %v226_v7  ;;  %1020 = vmatmul.mubr.msk.bf16.vlgmr.msra.gmra.mrb[0].mxu1 %vm255_vm1, %v221_v6  ;;  %v419_v9 = vld [vmem:[%s1225_s29] sm:$0xc]  ;;  %v420_v10 = vld [vmem:[%s1225_s29 + $0x4] sm:$0x3] }
  0x14   : > { %1032 = vmatpush3.bf16.msra.mxu1 %v1112_v5  ;;  %1035 = vmatprep.mubr.msk.bf16.mxu1 %vm1156_vm0, %v1155_v1  ;;  %v954_v12 = vcombine.low %v419_v9, %v420_v10  ;;  %v354_v17 = vld [vmem:[%s1225_s29] sm:$0xe]  ;;  %v487_v19 = vld [vmem:[%s1225_s29 + $0x4] sm:$0x7] }
  0x15   : > { %v237_v13 = vshrl.u32 %v943_v8, 16  ;;  %v239_v14 = vshll.u32 %v943_v8, 16  ;;  %1033 = vmatprep.subr.bf16.mxu1 %v1155_v1  ;;  %v559_v22 = vld [vmem:[%s1225_s29] sm:$0x8]  ;;  %v950_v23 = vcombine.low %v354_v17, %v226_v7  ;;  %v958_v24 = vcombine.low %v419_v9, %v487_v19  ;;  %v685_v28 = vld [vmem:[%s1225_s29 + $0x4] sm:$0xf] }
  0x16   : > { %v430_v18 = vrot.slane %v954_v12, 2  ;;  %v962_v27 = vcombine.low %v559_v22, %v487_v19  ;;  %v969_v33 = vcombine.low %v685_v28, %v686_v29  ;;  %v624_v48 = vld [vmem:[%s1225_s29 + $0x4] sm:$0xf] }
  0x17   : > { %v241_v16 = vrot.slane %v239_v14, 1  ;;  %v362_v30 = vrot.slane %v950_v23, 1  ;;  %v496_v31 = vshrl.u32 %v958_v24, 16  ;;  %v499_v32 = vshll.u32 %v958_v24, 16  ;;  %v759_v50 = vld [vmem:[%s1225_s29 + $0x4] sm:$0xe] }
  0x18   : > { %1034 = vmatpush3.bf16.msra.mxu1 %v1114_v11  ;;  %v567_v35 = vrot.slane %v962_v27, 3  ;;  %v699_v36 = vshll.u32 %v969_v33, 16  ;;  %v697_v41 = vshrl.u32 %v969_v33, 16  ;;  %v973_v51 = vcombine.low %v759_v50, %v686_v29 }
  0x19   : > { %v242_v20 = vor.u32 %v241_v16, %v237_v13  ;;  %1047 = vmatprep.subr.bf16.mxu1 %v1155_v1  ;;  %v498_v38 = vrot.slane %v496_v31, 2  ;;  %v501_v39 = vrot.slane %v499_v32, 3 }
  0x1a   : > { %v701_v42 = vrot.slane %v699_v36, 1  ;;  %v767_v53 = vrot.slane %v973_v51, 1 }
  0x1b   : > { %1012 = vmatmul.mubr.msk.bf16.vlgmr.msra.gmra.mrb[0].mxu0 %vm255_vm1, %v242_v20  ;;  %1036 = vmatmul.mubr.msk.bf16.vlgmr.msra.gmra.mrb[4].mxu1 %vm255_vm1, %v430_v18  ;;  %v502_v44 = vor.u32 %v501_v39, %v498_v38 }
  0x1c   : > { %1024 = vmatpush3.bf16.msra.mxu0 %v1111_v15  ;;  %1027 = vmatprep.mubr.msk.bf16.mxu0 %vm1156_vm0, %v1155_v1  ;;  %v702_v46 = vor.u32 %v701_v42, %v697_v41 }
  0x1d   : > { %1025 = vmatprep.subr.bf16.mxu0 %v1155_v1  ;;  %1048 = vmatpush3.bf16.msra.mxu1 %v1119_v21 }
  0x1e   : > { %1049 = vmatprep.subr.bf16.mxu1 %v1155_v1  ;;  %1051 = vmatprep.mubr.msk.bf16.mxu1 %vm1156_vm0, %v1155_v1 }
  0x20   : > { %1026 = vmatpush3.bf16.msra.mxu0 %v1113_v25 }
  0x21   : > { %1039 = vmatprep.subr.bf16.mxu0 %v1155_v1  ;;  %1050 = vmatpush3.bf16.msra.mxu1 %v1121_v26 }
  0x22   : > { %1063 = vmatprep.subr.bf16.mxu1 %v1155_v1 }
  0x23   : > { %1028 = vmatmul.mubr.msk.bf16.vlgmr.msra.gmra.mrb[4].mxu0 %vm255_vm1, %v362_v30  ;;  %v977_v30 = vld [vmem:[%s1331_s2] ss:$0 sm:$0xff] }
  0x24   : > { %1040 = vmatpush3.bf16.msra.mxu0 %v1116_v34  ;;  %1043 = vmatprep.mubr.msk.bf16.mxu0 %vm1156_vm0, %v1155_v1 }
  0x25   : > { %1041 = vmatprep.subr.bf16.mxu0 %v1155_v1  ;;  %1052 = vmatmul.mubr.msk.bf16.vlgmr.msra.gmra.mrb[8].mxu1 %vm255_vm1, %v567_v35 }
  0x26   : > { %1064 = vmatpush3.bf16.msra.mxu1 %v1124_v37  ;;  %1067 = vmatprep.mubr.msk.bf16.mxu1 %vm1156_vm0, %v1155_v1 }
  0x27   : > { %1065 = vmatprep.subr.bf16.mxu1 %v1155_v1 }
  0x28   : > { %1042 = vmatpush3.bf16.msra.mxu0 %v1120_v40 }
  0x29   : > { %1055 = vmatprep.subr.bf16.mxu0 %v1155_v1 }
  0x2a   : > { %1066 = vmatpush3.bf16.msra.mxu1 %v1126_v43 }
  0x2b   : > { %1044 = vmatmul.mubr.msk.bf16.vlgmr.msra.gmra.mrb[8].mxu0 %vm255_vm1, %v502_v44 }
  0x2c   : > { %1056 = vmatpush3.bf16.msra.mxu0 %v1122_v45  ;;  %1059 = vmatprep.mubr.msk.bf16.mxu0 %vm1156_vm0, %v1155_v1 }
  0x2d   : > { %1057 = vmatprep.subr.bf16.mxu0 %v1155_v1  ;;  %1068 = vmatmul.mubr.msk.bf16.vlgmr.msra.gmra.mrb[12].mxu1 %vm255_vm1, %v702_v46 }
  0x30   : > { %1058 = vmatpush3.bf16.msra.mxu0 %v1125_v47 }
  0x31   : > { %1071 = vmatprep.subr.bf16.mxu0 %v1155_v1 }
  0x33   : > { %1060 = vmatmul.mubr.msk.bf16.vlgmr.msra.gmra.mrb[12].mxu0 %vm255_vm1, %v624_v48 }
  0x34   : > { %1072 = vmatpush3.bf16.msra.mxu0 %v1127_v49  ;;  %1075 = vmatprep.mubr.msk.bf16.mxu0 %vm1156_vm0, %v1155_v1 }
  0x35   : > { %1073 = vmatprep.subr.bf16.mxu0 %v1155_v1 }
  0x38   : > { %1074 = vmatpush3.bf16.msra.mxu0 %v1129_v52 }
  0x3b   : > { %1076 = vmatmul.mubr.msk.bf16.vlgmr.msra.gmra.mrb[16].mxu0 %vm255_vm1, %v767_v53 }
  0xe6   : > { %v348_v54 = vpop.f32.mrb[0].mxu1 }
  0xe7   : > { %v1021_v55 = vpop.f32.mrb[1].mxu1 }
  0xe8   : > { %v351_v56 = vpop.f32.mrb[2].mxu1 }
  0xe9   : > { %v1022_v57 = vpop.f32.mrb[3].mxu1 }
  0xee   : > { %v293_v58 = vpop.f32.mrb[0].mxu0  ;;  %v480_v59 = vpop.f32.mrb[4].mxu1 }
  0xef   : > { %v349_v60 = vadd.f32 %v348_v54, %v293_v58  ;;  %v1013_v61 = vpop.f32.mrb[1].mxu0  ;;  %v1037_v62 = vpop.f32.mrb[5].mxu1 }
  0xf0   : > { %v296_v63 = vpop.f32.mrb[2].mxu0  ;;  %v483_v0 = vpop.f32.mrb[6].mxu1 }
  0xf1   : > { %v1014_v2 = vpop.f32.mrb[3].mxu0  ;;  %v1038_v3 = vpop.f32.mrb[7].mxu1 }
  0xf6   : > { %v412_v4 = vpop.f32.mrb[4].mxu0 }
  0xf7   : > { %v418_v5 = vadd.f32 %v412_v4, %v349_v60  ;;  %v1029_v1 = vpop.f32.mrb[5].mxu0 }
  0xf8   : > { %v415_v6 = vpop.f32.mrb[6].mxu0  ;;  %v617_v7 = vpop.f32.mrb[8].mxu1 }
  0xf9   : > { %v486_v8 = vadd.f32 %v480_v59, %v418_v5  ;;  %v1030_v9 = vpop.f32.mrb[7].mxu0  ;;  %v1053_v10 = vpop.f32.mrb[9].mxu1 }
  0xfa   : > { %v620_v11 = vpop.f32.mrb[10].mxu1 }
  0xfb   : > { %v1054_v12 = vpop.f32.mrb[11].mxu1 }
  0xfe   : > { %v552_v13 = vpop.f32.mrb[8].mxu0 }
  0xff   : > { %v558_v14 = vadd.f32 %v552_v13, %v486_v8  ;;  %v1045_v15 = vpop.f32.mrb[9].mxu0 }
 0x100   : > { %v555_v16 = vpop.f32.mrb[10].mxu0  ;;  %v752_v17 = vpop.f32.mrb[12].mxu1 }
 0x101   : > { %v623_v18 = vadd.f32 %v617_v7, %v558_v14  ;;  %v1046_v19 = vpop.f32.mrb[11].mxu0  ;;  %v1069_v20 = vpop.f32.mrb[13].mxu1 }
 0x102   : > { %v755_v21 = vpop.f32.mrb[14].mxu1 }
 0x103   : > { %v1070_v22 = vpop.f32.mrb[15].mxu1 }
 0x106   : > { %v678_v23 = vpop.f32.mrb[12].mxu0 }
 0x107   : > { %v684_v24 = vadd.f32 %v678_v23, %v623_v18  ;;  %v1061_v25 = vpop.f32.mrb[13].mxu0 }
 0x108   : > { %v681_v26 = vpop.f32.mrb[14].mxu0 }
 0x109   : > { %v758_v27 = vadd.f32 %v752_v17, %v684_v24  ;;  %v1062_v28 = vpop.f32.mrb[15].mxu0 }
 0x10e   : > { %v817_v29 = vpop.f32.mrb[16].mxu0 }
 0x10f   : > { %v823_v31 = vadd.f32 %v817_v29, %v758_v27  ;;  %v1077_v32 = vpop.f32.mrb[17].mxu0 }
 0x110   : > { %v820_v33 = vpop.f32.mrb[18].mxu0 }
 0x111   : > { %v831_v34 = vadd.f32 %v977_v30, %v823_v31  ;;  %v1078_v35 = vpop.f32.mrb[19].mxu0 }
 0x113   : > { %v832_v36 = vpack.c.bf16 %v831_v34, %v831_v34 }
 0x115   : > { %834 = vst.msk [vmem:[%s219_s11] sm:$0xf] %vm833_vm2, %v832_v36 }
 0x116 PF: > { %s13_s14 = sadd.s32 1, %s1153_s14   ;;  %s1333_s12 = smov %s1149_s13 }
 0x117   : > { %p10_p5 = scmp.ge.s32.totalorder %s13_s14, 4   ;;  %s1334_s13 = smov %s1336_s15 }
 0x119   :  { %12 = sbr.rel (!%p10_p5) target bundleno = 2 (0x2), region = 68 }

// kernel: _lambda_.38
= control target key start
LH: loop header
LB: loop body
LE: loop exit
PB: predicated region body
PF: predicated region fallthrough
CT: control target
= control target key end

     0   :  { %s525_s12 = smov 0   ;;  %s527_s13 = smov 0   ;;  %s570_s0 = inlined_call_operand.vmem [shape: bf16[2,16,48], index: 0, kind: input, shape index: {}]   ;;  %s571_s1 = inlined_call_operand.vmem [shape: bf16[48,16], index: 1, kind: input, shape index: {}]   ;;  %s572_s2 = inlined_call_operand.vmem [shape: f32[1,16], index: 2, kind: input, shape index: {}]   ;;  %s573_s3 = inlined_call_operand.vmem [shape: f32[2,16,16], index: 3, kind: output, shape index: {}]  }
   0x1   :  { %s529_s14 = smov 0  }
   0x2 LB: > { %s25_s15 = sadd.s32 1, %s497_s13  ;;  %p420_p0 = scmp.ge.s32.totalorder %s501_s14, 1  ;;  %s501_s14 = sphi %s529_s14, %s13_s14   ;;  %s497_s13 = sphi %s527_s13, %s575_s13   ;;  %s493_s12 = sphi %s525_s12, %s574_s12  }
   0x3   : > { %p27_p1 = scmp.ge.s32.totalorder %s25_s15, 2  ;;  %p168_p2 = scmp.lt.s32.totalorder %s501_s14, 3 }
   0x5   : > { %s577_s15 = smov (%p27_p1, %s25_s15), 0  ;;  %p169_p3 = pnand %p420_p0, %p168_p2 }
   0x6   : > { %v475_v0 = vld [vmem:[%s571_s1] sm:$0xff] (!%p169_p3)   ;;  %v503_v1 = vmov (!%p169_p3), 0.0   ;;  %v476_v2 = vld [vmem:[%s571_s1 + $0x8] sm:$0xff] (!%p169_p3)   ;;  %vm504_vm0 = vmmov (!%p169_p3), 0   ;;  %p202_p4 = scmp.lt.s32.totalorder (!%p169_p3), %s493_s12, 1  ;;  %v477_v3 = vld [vmem:[%s571_s1 + $0x10] sm:$0xff] (!%p169_p3)  }
   0x7   : > { %172 = sbr.rel (%p169_p3) target bundleno = 236 (0xec), region = 32  ;;  %439 = vmatprep.subr.bf16.mxu0 (!%p169_p3), %v503_v1  ;;  %445 = vmatprep.mubr.msk.bf16.mxu0 (!%p169_p3), %vm504_vm0, %v503_v1  ;;  %vm261_vm1 = vcmask (!%p169_p3), 392192   ;;  %v425_v5 = vld [vmem:[%s572_s2] ss:$0 sm:$0xff] (!%p169_p3)  ;;  %vm306_vm2 = vcmask (!%p169_p3), 130048  }
   0x8   : > { %440 = vmatpush3.bf16.msra.mxu0 (!%p169_p3), %v475_v0 }
   0x9   : > { %441 = vmatprep.subr.bf16.mxu0 (!%p169_p3), %v503_v1 }
   0xc   : > { %442 = vmatpush3.bf16.msra.mxu0 (!%p169_p3), %v476_v2 }
   0xd   : > { %443 = vmatprep.subr.bf16.mxu0 (!%p169_p3), %v503_v1 }
   0xe   : > { %s579_s12 = smov (!%p202_p4, %s493_s12), 1 }
   0xf   : > { %s433_s22 = sshll.u32 %s579_s12, 3  ;;  %s434_s26 = sshll.u32 %s579_s12, 4 }
  0x10   : > { %s206_s25 = scalar_lea.vmem %s570_s0, %s433_s22  ;;  %444 = vmatpush3.bf16.msra.mxu0 %v477_v3  ;;  %s221_s4 = scalar_lea.vmem %s573_s3, %s434_s26 }
  0x11   : > { %v478_v4 = vld [vmem:[%s206_s25] sm:$0xff]  }
  0x13   : > { %446 = vmatmul.mubr.msk.bf16.vlgmr.msra.gmra.mrb[0].mxu0 %vm261_vm1, %v478_v4 }
  0xe6   : > { %v299_v6 = vpop.f32.mrb[0].mxu0 }
  0xe7   : > { %v300_v7 = vadd.f32 %v425_v5, %v299_v6  ;;  %v447_v8 = vpop.f32.mrb[1].mxu0 }
  0xe8   : > { %v302_v9 = vpop.f32.mrb[2].mxu0 }
  0xe9   : > { %307 = vst.msk [vmem:[%s221_s4] sm:$0xff] %vm306_vm2, %v300_v7  ;;  %v303_v10 = vadd.f32 %v425_v5, %v302_v9  ;;  %v448_v11 = vpop.f32.mrb[3].mxu0 }
  0xeb   : > { %308 = vst.msk [vmem:[%s221_s4 + $0x8] sm:$0xff] %vm306_vm2, %v303_v10 }
  0xec PF: > { %s13_s14 = sadd.s32 1, %s501_s14   ;;  %s574_s12 = smov %s497_s13 }
  0xed   : > { %p10_p5 = scmp.ge.s32.totalorder %s13_s14, 4   ;;  %s575_s13 = smov %s577_s15 }
  0xef   :  { %12 = sbr.rel (!%p10_p5) target bundleno = 2 (0x2), region = 68 }

// kernel: _lambda_.39
= control target key start
LH: loop header
LB: loop body
LE: loop exit
PB: predicated region body
PF: predicated region fallthrough
CT: control target
= control target key end

     0   :  { %s489_s15 = smov 0   ;;  %s531_s0 = inlined_call_operand.vmem [shape: f32[32,16], index: 0, kind: input, shape index: {}]   ;;  %s532_s1 = inlined_call_operand.vmem [shape: bf16[16,32], index: 1, kind: input, shape index: {}]   ;;  %s533_s2 = inlined_call_operand.vmem [shape: bf16[32,16], index: 2, kind: input, shape index: {}]   ;;  %s534_s3 = inlined_call_operand.vmem [shape: f32[1,32], index: 3, kind: input, shape index: {}]   ;;  %s535_s4 = inlined_call_operand.vmem [shape: f32[32,16], index: 4, kind: output, shape index: {}]  }
   0x1 LB: > { %s403_s16 = sadd.s32 4294967295, %s460_s15   ;;  %p407_p0 = scmp.ge.s32.totalorder %s460_s15, 1  ;;  %s460_s15 = sphi %s489_s15, %s14_s15  }
   0x2   : > { %p163_p1 = scmp.lt.s32.totalorder %s460_s15, 3 }
   0x4   : > { %p164_p2 = pnand %p407_p0, %p163_p1 }
   0x5   : > { %v451_v0 = vld [vmem:[%s532_s1] sm:$0xff] (!%p164_p2)   ;;  %v462_v1 = vmov (!%p164_p2), 0.0   ;;  %s408_s19 = sshll.u32 (!%p164_p2), %s403_s16, 1  ;;  %vm463_vm0 = vmmov (!%p164_p2), 0   ;;  %vm213_vm1 = vcmask (!%p164_p2), 130048   ;;  %vm269_vm2 = vcmask (!%p164_p2), 261120  }
   0x6   : > { %167 = sbr.rel (%p164_p2) target bundleno = 601 (0x259), region = 36  ;;  %427 = vmatprep.subr.bf16.mxu0 (!%p164_p2), %v462_v1  ;;  %433 = vmatprep.subr.bf16.mxu1 (!%p164_p2), %v462_v1  ;;  %p190_p3 = scmp.lt.s32.totalorder (!%p164_p2), %s408_s19, 3  ;;  %v414_v6 = vld [vmem:[%s534_s3] ss:$0 sm:$0xff] (!%p164_p2)  ;;  %v453_v17 = vld [vmem:[%s533_s2 + $0x8] sm:$0xff] (!%p164_p2)   ;;  %v276_v18 = vlaneseq (!%p164_p2) }
   0x7   : > { %428 = vmatpush3.bf16.msra.mxu0 (!%p164_p2), %v451_v0  ;;  %429 = vmatprep.mubr.msk.bf16.mxu0 (!%p164_p2), %vm463_vm0, %v462_v1  ;;  %v452_v16 = vld [vmem:[%s533_s2] sm:$0xff] (!%p164_p2)  }
   0x8   : > { %437 = vmatprep.mubr.msk.bf16.mxu1 (!%p164_p2), %vm463_vm0, %v462_v1  ;;  %434 = vmatpush3.bf16.msra.mxu1 (!%p164_p2), %v452_v16  ;;  %v277_v19 = vand.u32 (!%p164_p2), 127, %v276_v18 }
   0x9   : > { %435 = vmatprep.subr.bf16.mxu1 (!%p164_p2), %v462_v1 }
   0xc   : > { %436 = vmatpush3.bf16.msra.mxu1 (!%p164_p2), %v453_v17 }
   0xd   : > { %s537_s19 = smov (!%p190_p3, %s408_s19), 3 }
   0xe   : > { %s409_s20 = sshll.u32 %s537_s19, 3 }
   0xf   : > { %s193_s23 = scalar_lea.vmem %s531_s0, %s409_s20  ;;  %s199_s6 = scalar_lea.vmem %s535_s4, %s409_s20 }
  0x10   : > { %v202_v2 = vld [vmem:[%s193_s23] sm:$0xff]  ;;  %v203_v3 = vld [vmem:[%s193_s23 + $0x8] sm:$0xff] }
  0x11   : > { %v204_v4 = vpack.c.bf16 %v203_v3, %v202_v2 }
  0x13   : > { %430 = vmatmul.mubr.msk.bf16.vlgmr.msra.gmra.mrb[0].mxu0 %vm213_vm1, %v204_v4 }
  0xe6   : > { %v251_v5 = vpop.f32.mrb[0].mxu0 }
  0xe7   : > { %v259_v7 = vmul.f32 2.0, %v251_v5  ;;  %v431_v8 = vpop.f32.mrb[1].mxu0 }
  0xe8   : > { %v254_v9 = vpop.f32.mrb[2].mxu0 }
  0xe9   : > { %v260_v10 = vmul.f32 2.0, %v254_v9  ;;  %v432_v11 = vpop.f32.mrb[3].mxu0  ;;  %v267_v12 = vsub.f32 %v414_v6, %v259_v7 }
  0xeb   : > { %v270_v13 = vsel %vm269_vm2, %v267_v12, inf  ;;  %v268_v14 = vsub.f32 %v414_v6, %v260_v10 }
  0xec   : > { %271 = vmin.index.xlane.f32.xlu0 %v270_v13 }
  0xed   : > { %v273_v15 = vsel %vm269_vm2, %v268_v14, inf }
  0xf0   : > { %274 = vmin.index.xlane.f32.xlu0 %v273_v15 }
 0x179   : > { %v272_v20 = vpop.xlane.xlu0 %271 }
 0x17a   : > { %vm278_vm3 = vcmp.eq.s32.totalorder %v277_v19, %v272_v20 }
 0x17b   : > { %v415_v22 = vsel %vm278_vm3, 1.0, %v462_v1 }
 0x17d   : > { %v275_v21 = vpop.xlane.xlu0 %274 }
 0x17e   : > { %vm279_vm4 = vcmp.eq.s32.totalorder %v277_v19, %v275_v21 }
 0x17f   : > { %v416_v23 = vsel %vm279_vm4, 1.0, %v462_v1 }
 0x180   : > { %v284_v24 = vpack.c.bf16 %v416_v23, %v415_v22 }
 0x182   : > { %438 = vmatmul.mubr.msk.bf16.vlgmr.msra.gmra.mrb[0].mxu1 %vm269_vm2, %v284_v24 }
 0x255   : > { %v338_v25 = vpop.f32.mrb[0].mxu1 }
 0x256   : > { %345 = vst.msk [vmem:[%s199_s6] sm:$0xff] %vm213_vm1, %v338_v25  ;;  %v439_v26 = vpop.f32.mrb[1].mxu1 }
 0x257   : > { %v341_v27 = vpop.f32.mrb[2].mxu1 }
 0x258   : > { %346 = vst.msk [vmem:[%s199_s6 + $0x8] sm:$0xff] %vm213_vm1, %v341_v27  ;;  %v440_v28 = vpop.f32.mrb[3].mxu1 }
 0x259 PF: > { %s14_s15 = sadd.s32 1, %s460_s15  }
 0x25a   : > { %p11_p4 = scmp.ge.s32.totalorder %s14_s15, 4  }
 0x25c   :  { %13 = sbr.rel (!%p11_p4) target bundleno = 1 (0x1), region = 66 }

// kernel: _lambda_.40
= control target key start
LH: loop header
LB: loop body
LE: loop exit
PB: predicated region body
PF: predicated region fallthrough
CT: control target
= control target key end

     0   :  { %s1060_s12 = smov 0   ;;  %s1062_s13 = smov 0   ;;  %s1176_s0 = inlined_call_operand.vmem [shape: bf16[2,20,16], index: 0, kind: input, shape index: {}]   ;;  %s1177_s1 = inlined_call_operand.vmem [shape: bf16[144,64], index: 1, kind: input, shape index: {}]   ;;  %s1178_s2 = inlined_call_operand.vmem [shape: f32[1,64], index: 2, kind: input, shape index: {}]   ;;  %s1179_s3 = inlined_call_operand.vmem [shape: bf16[2,8,64], index: 3, kind: output, shape index: {}]  }
   0x1   :  { %s1064_s14 = smov 0  }
   0x2 LB: > { %s25_s15 = sadd.s32 1, %s1032_s13  ;;  %p868_p0 = scmp.ge.s32.totalorder %s1036_s14, 1  ;;  %s1036_s14 = sphi %s1064_s14, %s13_s14   ;;  %s1032_s13 = sphi %s1062_s13, %s1181_s13   ;;  %s1028_s12 = sphi %s1060_s12, %s1180_s12  }
   0x3   : > { %p27_p1 = scmp.ge.s32.totalorder %s25_s15, 2  ;;  %p168_p2 = scmp.lt.s32.totalorder %s1036_s14, 3 }
   0x5   : > { %s1183_s15 = smov (%p27_p1, %s25_s15), 0  ;;  %p169_p3 = pnand %p868_p0, %p168_p2 }
   0x6   : > { %v998_v0 = vld [vmem:[%s1177_s1 + $0x8] sm:$0xff] (!%p169_p3)   ;;  %v1038_v1 = vmov (!%p169_p3), 0.0   ;;  %v999_v2 = vld [vmem:[%s1177_s1] sm:$0xff] (!%p169_p3)   ;;  %vm1039_vm0 = vmmov (!%p169_p3), 0   ;;  %p201_p4 = scmp.lt.s32.totalorder (!%p169_p3), %s1028_s12, 1  ;;  %vm245_vm1 = vcmask (!%p169_p3), 130048  }
   0x7   : > { %172 = sbr.rel (%p169_p3) target bundleno = 278 (0x116), region = 32  ;;  %917 = vmatprep.subr.bf16.mxu0 (!%p169_p3), %v1038_v1  ;;  %923 = vmatprep.subr.bf16.mxu1 (!%p169_p3), %v1038_v1  ;;  %v1002_v3 = vld [vmem:[%s1177_s1 + $0x18] sm:$0xff] (!%p169_p3)   ;;  %v1001_v12 = vld [vmem:[%s1177_s1 + $0x10] sm:$0xff] (!%p169_p3)   ;;  %v1007_v21 = vld [vmem:[%s1177_s1 + $0x28] sm:$0xff] (!%p169_p3)   ;;  %vm761_vm2 = vcmask (!%p169_p3), 519168  }
   0x8   : > { %918 = vmatpush3.bf16.msra.mxu0 (!%p169_p3), %v998_v0  ;;  %919 = vmatprep.mubr.msk.bf16.mxu0 (!%p169_p3), %vm1039_vm0, %v1038_v1  ;;  %v1004_v31 = vld [vmem:[%s1177_s1 + $0x20] sm:$0xff] (!%p169_p3)   ;;  %v1010_v32 = vld [vmem:[%s1177_s1 + $0x38] sm:$0xff] (!%p169_p3)   ;;  %v1008_v39 = vld [vmem:[%s1177_s1 + $0x30] sm:$0xff] (!%p169_p3)  }
   0x9   : > { %924 = vmatpush3.bf16.msra.mxu1 (!%p169_p3), %v999_v2  ;;  %925 = vmatprep.mubr.msk.bf16.mxu1 (!%p169_p3), %vm1039_vm0, %v1038_v1  ;;  %v1011_v41 = vld [vmem:[%s1177_s1 + $0x40] sm:$0xff] (!%p169_p3)  }
   0xa   : > { %929 = vmatprep.subr.bf16.mxu0 (!%p169_p3), %v1038_v1  ;;  %935 = vmatprep.subr.bf16.mxu1 (!%p169_p3), %v1038_v1 }
   0xe   : > { %s1185_s12 = smov (!%p201_p4, %s1028_s12), 1 }
   0xf   : > { %s971_s20 = smul.u32 12, %s1185_s12  ;;  %s870_s17 = sshll.u32 %s1185_s12, 2 }
  0x11   : > { %s1101_s25 = scalar_lea.vmem %s1176_s0, %s971_s20  ;;  %s219_s20 = scalar_lea.vmem %s1179_s3, %s870_s17 }
  0x12   : > { %v221_v4 = vld [vmem:[%s1101_s25] sm:$0xf]  ;;  %v224_v5 = vld [vmem:[%s1101_s25 + $0x4] sm:$0x1]  ;;  %v630_v19 = vld [vmem:[%s1101_s25 + $0x8] sm:$0x1] }
  0x13   : > { %v871_v6 = vcombine.low %v221_v4, %v224_v5  ;;  %926 = vmatmul.mubr.msk.bf16.vlgmr.msra.gmra.mrb[0].mxu1 %vm245_vm1, %v221_v4  ;;  %v395_v7 = vld [vmem:[%s1101_s25] sm:$0xc]  ;;  %v396_v8 = vld [vmem:[%s1101_s25 + $0x4] sm:$0x3] }
  0x14   : > { %936 = vmatpush3.bf16.msra.mxu1 %v1002_v3  ;;  %937 = vmatprep.mubr.msk.bf16.mxu1 %vm1039_vm0, %v1038_v1  ;;  %v879_v9 = vcombine.low %v395_v7, %v396_v8  ;;  %v338_v14 = vld [vmem:[%s1101_s25] sm:$0xe]  ;;  %v455_v16 = vld [vmem:[%s1101_s25 + $0x4] sm:$0x7] }
  0x15   : > { %v233_v10 = vshrl.u32 %v871_v6, 16  ;;  %v235_v11 = vshll.u32 %v871_v6, 16  ;;  %947 = vmatprep.subr.bf16.mxu1 %v1038_v1  ;;  %v519_v17 = vld [vmem:[%s1101_s25] sm:$0x8]  ;;  %v629_v18 = vld [vmem:[%s1101_s25 + $0x4] sm:$0xf]  ;;  %v876_v22 = vcombine.low %v338_v14, %v224_v5  ;;  %v882_v23 = vcombine.low %v395_v7, %v455_v16 }
  0x16   : > { %v404_v15 = vrot.slane %v879_v9, 2  ;;  %v885_v24 = vcombine.low %v519_v17, %v455_v16  ;;  %v890_v25 = vcombine.low %v629_v18, %v630_v19  ;;  %v576_v40 = vld [vmem:[%s1101_s25 + $0x4] sm:$0xf] }
  0x17   : > { %v237_v13 = vrot.slane %v235_v11, 1  ;;  %v344_v26 = vrot.slane %v876_v22, 1  ;;  %v462_v27 = vshrl.u32 %v882_v23, 16  ;;  %v465_v28 = vshll.u32 %v882_v23, 16  ;;  %v695_v42 = vld [vmem:[%s1101_s25 + $0x4] sm:$0xe] }
  0x18   : > { %v525_v29 = vrot.slane %v885_v24, 3  ;;  %v641_v30 = vshll.u32 %v890_v25, 16  ;;  %v639_v35 = vshrl.u32 %v890_v25, 16  ;;  %v893_v43 = vcombine.low %v695_v42, %v630_v19 }
  0x19   : > { %v238_v20 = vor.u32 %v237_v13, %v233_v10  ;;  %v464_v33 = vrot.slane %v462_v27, 2  ;;  %v467_v34 = vrot.slane %v465_v28, 3 }
  0x1a   : > { %v643_v36 = vrot.slane %v641_v30, 1  ;;  %v701_v44 = vrot.slane %v893_v43, 1 }
  0x1b   : > { %920 = vmatmul.mubr.msk.bf16.vlgmr.msra.gmra.mrb[0].mxu0 %vm245_vm1, %v238_v20  ;;  %938 = vmatmul.mubr.msk.bf16.vlgmr.msra.gmra.mrb[4].mxu1 %vm245_vm1, %v404_v15  ;;  %v468_v37 = vor.u32 %v467_v34, %v464_v33 }
  0x1c   : > { %930 = vmatpush3.bf16.msra.mxu0 %v1001_v12  ;;  %931 = vmatprep.mubr.msk.bf16.mxu0 %vm1039_vm0, %v1038_v1  ;;  %v644_v38 = vor.u32 %v643_v36, %v639_v35 }
  0x1d   : > { %941 = vmatprep.subr.bf16.mxu0 %v1038_v1  ;;  %948 = vmatpush3.bf16.msra.mxu1 %v1007_v21  ;;  %v896_v21 = vld [vmem:[%s1178_s2] ss:$0 sm:$0xff] }
  0x1e   : > { %949 = vmatprep.mubr.msk.bf16.mxu1 %vm1039_vm0, %v1038_v1  ;;  %959 = vmatprep.subr.bf16.mxu1 %v1038_v1 }
  0x23   : > { %932 = vmatmul.mubr.msk.bf16.vlgmr.msra.gmra.mrb[4].mxu0 %vm245_vm1, %v344_v26  ;;  %950 = vmatmul.mubr.msk.bf16.vlgmr.msra.gmra.mrb[8].mxu1 %vm245_vm1, %v525_v29 }
  0x24   : > { %942 = vmatpush3.bf16.msra.mxu0 %v1004_v31  ;;  %943 = vmatprep.mubr.msk.bf16.mxu0 %vm1039_vm0, %v1038_v1 }
  0x25   : > { %953 = vmatprep.subr.bf16.mxu0 %v1038_v1  ;;  %960 = vmatpush3.bf16.msra.mxu1 %v1010_v32 }
  0x26   : > { %961 = vmatprep.mubr.msk.bf16.mxu1 %vm1039_vm0, %v1038_v1 }
  0x2b   : > { %944 = vmatmul.mubr.msk.bf16.vlgmr.msra.gmra.mrb[8].mxu0 %vm245_vm1, %v468_v37  ;;  %962 = vmatmul.mubr.msk.bf16.vlgmr.msra.gmra.mrb[12].mxu1 %vm245_vm1, %v644_v38 }
  0x2c   : > { %954 = vmatpush3.bf16.msra.mxu0 %v1008_v39  ;;  %955 = vmatprep.mubr.msk.bf16.mxu0 %vm1039_vm0, %v1038_v1 }
  0x2d   : > { %965 = vmatprep.subr.bf16.mxu0 %v1038_v1 }
  0x33   : > { %956 = vmatmul.mubr.msk.bf16.vlgmr.msra.gmra.mrb[12].mxu0 %vm245_vm1, %v576_v40 }
  0x34   : > { %966 = vmatpush3.bf16.msra.mxu0 %v1011_v41  ;;  %967 = vmatprep.mubr.msk.bf16.mxu0 %vm1039_vm0, %v1038_v1 }
  0x3b   : > { %968 = vmatmul.mubr.msk.bf16.vlgmr.msra.gmra.mrb[16].mxu0 %vm245_vm1, %v701_v44 }
  0xe6   : > { %v332_v45 = vpop.f32.mrb[0].mxu1 }
  0xe7   : > { %v927_v46 = vpop.f32.mrb[1].mxu1 }
  0xe8   : > { %v335_v47 = vpop.f32.mrb[2].mxu1 }
  0xe9   : > { %v928_v48 = vpop.f32.mrb[3].mxu1 }
  0xee   : > { %v283_v49 = vpop.f32.mrb[0].mxu0  ;;  %v448_v50 = vpop.f32.mrb[4].mxu1 }
  0xef   : > { %v333_v51 = vadd.f32 %v332_v45, %v283_v49  ;;  %v921_v52 = vpop.f32.mrb[1].mxu0  ;;  %v939_v53 = vpop.f32.mrb[5].mxu1 }
  0xf0   : > { %v286_v54 = vpop.f32.mrb[2].mxu0  ;;  %v451_v55 = vpop.f32.mrb[6].mxu1 }
  0xf1   : > { %v922_v56 = vpop.f32.mrb[3].mxu0  ;;  %v940_v57 = vpop.f32.mrb[7].mxu1 }
  0xf6   : > { %v388_v58 = vpop.f32.mrb[4].mxu0  ;;  %v569_v59 = vpop.f32.mrb[8].mxu1 }
  0xf7   : > { %v394_v60 = vadd.f32 %v388_v58, %v333_v51  ;;  %v933_v61 = vpop.f32.mrb[5].mxu0  ;;  %v951_v62 = vpop.f32.mrb[9].mxu1 }
  0xf8   : > { %v391_v63 = vpop.f32.mrb[6].mxu0  ;;  %v572_v0 = vpop.f32.mrb[10].mxu1 }
  0xf9   : > { %v454_v1 = vadd.f32 %v448_v50, %v394_v60  ;;  %v934_v2 = vpop.f32.mrb[7].mxu0  ;;  %v952_v3 = vpop.f32.mrb[11].mxu1 }
  0xfe   : > { %v512_v4 = vpop.f32.mrb[8].mxu0  ;;  %v688_v5 = vpop.f32.mrb[12].mxu1 }
  0xff   : > { %v518_v6 = vadd.f32 %v512_v4, %v454_v1  ;;  %v945_v7 = vpop.f32.mrb[9].mxu0  ;;  %v963_v8 = vpop.f32.mrb[13].mxu1 }
 0x100   : > { %v515_v9 = vpop.f32.mrb[10].mxu0  ;;  %v691_v10 = vpop.f32.mrb[14].mxu1 }
 0x101   : > { %v575_v11 = vadd.f32 %v569_v59, %v518_v6  ;;  %v946_v12 = vpop.f32.mrb[11].mxu0  ;;  %v964_v13 = vpop.f32.mrb[15].mxu1 }
 0x106   : > { %v622_v14 = vpop.f32.mrb[12].mxu0 }
 0x107   : > { %v628_v15 = vadd.f32 %v622_v14, %v575_v11  ;;  %v957_v16 = vpop.f32.mrb[13].mxu0 }
 0x108   : > { %v625_v17 = vpop.f32.mrb[14].mxu0 }
 0x109   : > { %v694_v18 = vadd.f32 %v688_v5, %v628_v15  ;;  %v958_v19 = vpop.f32.mrb[15].mxu0 }
 0x10e   : > { %v745_v20 = vpop.f32.mrb[16].mxu0 }
 0x10f   : > { %v751_v22 = vadd.f32 %v745_v20, %v694_v18  ;;  %v969_v23 = vpop.f32.mrb[17].mxu0 }
 0x110   : > { %v748_v24 = vpop.f32.mrb[18].mxu0 }
 0x111   : > { %v759_v25 = vadd.f32 %v896_v21, %v751_v22  ;;  %v970_v26 = vpop.f32.mrb[19].mxu0 }
 0x113   : > { %v760_v27 = vpack.c.bf16 %v759_v25, %v759_v25 }
 0x115   : > { %762 = vst.msk [vmem:[%s219_s20] sm:$0xf] %vm761_vm2, %v760_v27 }
 0x116 PF: > { %s13_s14 = sadd.s32 1, %s1036_s14   ;;  %s1180_s12 = smov %s1032_s13 }
 0x117   : > { %p10_p5 = scmp.ge.s32.totalorder %s13_s14, 4   ;;  %s1181_s13 = smov %s1183_s15 }
 0x119   :  { %12 = sbr.rel (!%p10_p5) target bundleno = 2 (0x2), region = 68 }

// kernel: _lambda_.44
= control target key start
LH: loop header
LB: loop body
LE: loop exit
PB: predicated region body
PF: predicated region fallthrough
CT: control target
= control target key end

     0   :  { %s1407_s12 = smov 0   ;;  %s1409_s13 = smov 0   ;;  %s1563_s0 = inlined_call_operand.vmem [shape: bf16[2,42,32], index: 0, kind: input, shape index: {}]   ;;  %s1564_s1 = inlined_call_operand.vmem [shape: bf16[288,64], index: 1, kind: input, shape index: {}]   ;;  %s1565_s2 = inlined_call_operand.vmem [shape: f32[1,64], index: 2, kind: input, shape index: {}]   ;;  %s1566_s3 = inlined_call_operand.vmem [shape: bf16[2,24,64], index: 3, kind: output, shape index: {}]  }
   0x1   :  { %s1411_s14 = smov 0  }
   0x2 LB: > { %s25_s15 = sadd.s32 1, %s1381_s13  ;;  %p1137_p0 = scmp.ge.s32.totalorder %s1385_s14, 1  ;;  %s1385_s14 = sphi %s1411_s14, %s13_s14   ;;  %s1381_s13 = sphi %s1409_s13, %s1568_s13   ;;  %s1377_s12 = sphi %s1407_s12, %s1567_s12  }
   0x3   : > { %p27_p1 = scmp.ge.s32.totalorder %s25_s15, 2  ;;  %p168_p2 = scmp.lt.s32.totalorder %s1385_s14, 3 }
   0x5   : > { %s1570_s15 = smov (%p27_p1, %s25_s15), 0  ;;  %p169_p3 = pnand %p1137_p0, %p168_p2 }
   0x6   : > { %v1332_v0 = vld [vmem:[%s1564_s1 + $0x10] sm:$0xff] (!%p169_p3)   ;;  %p202_p4 = scmp.lt.s32.totalorder (!%p169_p3), %s1377_s12, 1  ;;  %v1333_v1 = vld [vmem:[%s1564_s1] sm:$0xff] (!%p169_p3)   ;;  %v1334_v2 = vld [vmem:[%s1564_s1 + $0x18] sm:$0xff] (!%p169_p3)   ;;  %vm273_vm0 = vcmask (!%p169_p3), 261120   ;;  %vm402_vm2 = vcmask (!%p169_p3), 1046528  }
   0x7   : > { %172 = sbr.rel (%p169_p3) target bundleno = 285 (0x11d), region = 32  ;;  %1234 = vmatprep.subr.bf16.mxu0 (!%p169_p3), %v1332_v0  ;;  %1242 = vmatprep.subr.bf16.mxu1 (!%p169_p3), %v1333_v1  ;;  %v1335_v3 = vld [vmem:[%s1564_s1 + $0x8] sm:$0xff] (!%p169_p3)   ;;  %v1338_v4 = vld [vmem:[%s1564_s1 + $0x20] sm:$0xff] (!%p169_p3)   ;;  %v1340_v5 = vld [vmem:[%s1564_s1 + $0x30] sm:$0xff] (!%p169_p3)   ;;  %vm245_vm1 = vsmask.f32 (!%p169_p3), 7424 }
   0x8   : > { %1235 = vmatpush3.bf16.msra.mxu0 (!%p169_p3), %v1332_v0  ;;  %1243 = vmatpush3.bf16.msra.mxu1 (!%p169_p3), %v1333_v1  ;;  %v1342_v13 = vld [vmem:[%s1564_s1 + $0x38] sm:$0xff] (!%p169_p3)   ;;  %v1347_v28 = vld [vmem:[%s1564_s1 + $0x50] sm:$0xff] (!%p169_p3)   ;;  %vm487_vm3 = vcmask (!%p169_p3), 1044480   ;;  %v1341_v36 = vld [vmem:[%s1564_s1 + $0x28] sm:$0xff] (!%p169_p3)   ;;  %vm568_vm4 = vsmask.f32 (!%p169_p3), 4352 }
   0x9   : > { %1236 = vmatprep.subr.bf16.mxu0 (!%p169_p3), %v1334_v2  ;;  %1244 = vmatprep.subr.bf16.mxu1 (!%p169_p3), %v1335_v3  ;;  %v1349_v42 = vld [vmem:[%s1564_s1 + $0x58] sm:$0xff] (!%p169_p3)   ;;  %v1344_v46 = vld [vmem:[%s1564_s1 + $0x40] sm:$0xff] (!%p169_p3)   ;;  %v1354_v50 = vld [vmem:[%s1564_s1 + $0x70] sm:$0xff] (!%p169_p3)   ;;  %vm829_vm5 = vsmask.f32 (!%p169_p3), 5376  ;;  %vm748_vm6 = vcmask (!%p169_p3), 1045504  }
   0xa   : > { %v1348_v61 = vld [vmem:[%s1564_s1 + $0x48] sm:$0xff] (!%p169_p3)   ;;  %vm1022_vm7 = vcmask (!%p169_p3), 519168  }
   0xc   : > { %1237 = vmatpush3.bf16.msra.mxu0 (!%p169_p3), %v1334_v2  ;;  %1245 = vmatpush3.bf16.msra.mxu1 (!%p169_p3), %v1335_v3 }
   0xd   : > { %1250 = vmatprep.subr.bf16.mxu0 (!%p169_p3), %v1338_v4  ;;  %1258 = vmatprep.subr.bf16.mxu1 (!%p169_p3), %v1340_v5 }
   0xe   : > { %s1572_s12 = smov (!%p202_p4, %s1377_s12), 1 }
   0xf   : > { %s1306_s24 = smul.u32 24, %s1572_s12 }
  0x10   : > { %s1307_s8 = smul.u32 12, %s1572_s12 }
  0x11   : > { %s1446_s29 = scalar_lea.vmem %s1563_s0, %s1306_s24 }
  0x12   : > { %v223_v6 = vld [vmem:[%s1446_s29] sm:$0xf]  ;;  %v1453_v7 = vld [vmem:[%s1446_s29 + $0x4] sm:$0xf]  ;;  %v1456_v8 = vld [vmem:[%s1446_s29 + $0x8] sm:$0xf]  ;;  %s221_s11 = scalar_lea.vmem %s1566_s3, %s1307_s8 }
  0x13   : > { %v230_v9 = vld [vmem:[%s1446_s29 + $0xc] sm:$0x1]  ;;  %v1140_v10 = vcombine.low %v223_v6, %v1453_v7  ;;  %v1146_v11 = vcombine.low %v1456_v8, %v1456_v8  ;;  %v394_v14 = vld [vmem:[%s1446_s29] sm:$0xe]  ;;  %v1167_v41 = vcombine.low %v1453_v7, %v1456_v8  ;;  %v730_v52 = vld [vmem:[%s1446_s29 + $0x4] sm:$0xc] }
  0x14   : > { %v1463_v12 = vcombine.low %v1456_v8, %v230_v9  ;;  %v1151_v17 = vcombine.low %v394_v14, %v1453_v7  ;;  %v475_v21 = vld [vmem:[%s1446_s29] sm:$0x8]  ;;  %v476_v24 = vld [vmem:[%s1446_s29 + $0xc] sm:$0x7]  ;;  %v731_v53 = vld [vmem:[%s1446_s29 + $0x8] sm:$0xf] }
  0x15   : > { %v247_v15 = vshrl.u32 %v1140_v10, 16  ;;  %v249_v16 = vshll.u32 %v1140_v10, 16  ;;  %1246 = vmatprep.mubr.msk.bf16.mxu1 %vm273_vm0, %v1140_v10  ;;  %v1156_v25 = vcombine.low %v475_v21, %v1453_v7  ;;  %v1157_v27 = vcombine.low %v1456_v8, %v476_v24  ;;  %v560_v34 = vld [vmem:[%s1446_s29 + $0xc] sm:$0xf]  ;;  %v733_v56 = vld [vmem:[%s1446_s29 + $0x10] sm:$0x3] }
  0x16   : > { %v254_v18 = vshll.u32 %v1463_v12, 16  ;;  %v258_v19 = vshrl.u32 %v1463_v12, 16  ;;  %1247 = vmatmul.mubr.msk.bf16.vlgmr.msra.gmra.mrb[0].mxu1 %vm273_vm0, %v1146_v11  ;;  %v404_v20 = vrot.slane %v1463_v12, 1  ;;  %v403_v23 = vrot.slane %v1151_v17, 1  ;;  %v732_v54 = vld [vmem:[%s1446_s29 + $0xc] sm:$0xf] }
  0x17   : > { %v251_v22 = vrot.slane %v249_v16, 1  ;;  %1259 = vmatpush3.bf16.msra.mxu1 %v1340_v5  ;;  %v488_v30 = vrot.slane %v1156_v25, 3  ;;  %v489_v33 = vrot.slane %v1157_v27, 3  ;;  %v1162_v37 = vcombine.low %v1456_v8, %v560_v34  ;;  %v821_v58 = vld [vmem:[%s1446_s29 + $0x10] sm:$0x7]  ;;  %v1351_v9 = vld [vmem:[%s1564_s1 + $0x60] sm:$0xff]  }
  0x18   : > { %v256_v26 = vrot.slane %v254_v18, 1  ;;  %1260 = vmatprep.subr.bf16.mxu1 %v1342_v13  ;;  %v405_v32 = vsel %vm402_vm2, %v403_v23, %v404_v20  ;;  %v570_v38 = vshrl.u32 %v1156_v25, 16  ;;  %v573_v40 = vshll.u32 %v1156_v25, 16  ;;  %v916_v14 = vld [vmem:[%s1446_s29 + $0x4] sm:$0x8]  ;;  %v1355_v16 = vld [vmem:[%s1564_s1 + $0x68] sm:$0xff]  }
  0x19   : > { %v252_v29 = vor.u32 %v251_v22, %v247_v15  ;;  %v490_v39 = vsel %vm487_vm3, %v488_v30, %v489_v33  ;;  %v578_v44 = vshrl.u32 %v1162_v37, 16  ;;  %v581_v45 = vshll.u32 %v1162_v37, 16  ;;  %v1361_v22 = vld [vmem:[%s1564_s1 + $0x88] sm:$0xff]  }
  0x1a   : > { %v260_v31 = vor.u32 %v258_v19, %v256_v26  ;;  %1262 = vmatprep.mubr.msk.bf16.mxu1 %vm273_vm0, %v490_v39  ;;  %v572_v43 = vrot.slane %v570_v38, 3  ;;  %v575_v47 = vrot.slane %v573_v40, 4  ;;  %v1173_v57 = vcombine.low %v730_v52, %v731_v53  ;;  %v1360_v19 = vld [vmem:[%s1564_s1 + $0x80] sm:$0xff]  }
  0x1b   : > { %v257_v35 = vsel %vm245_vm1, %v252_v29, %v256_v26  ;;  %1261 = vmatpush3.bf16.msra.mxu1 %v1342_v13  ;;  %v580_v48 = vrot.slane %v578_v44, 3  ;;  %v583_v49 = vrot.slane %v581_v45, 4  ;;  %v1168_v59 = vcombine.low %v560_v34, %v560_v34 }
  0x1c   : > { %1238 = vmatprep.mubr.msk.bf16.mxu0 %vm273_vm0, %v257_v35  ;;  %1274 = vmatprep.subr.bf16.mxu1 %v1347_v28  ;;  %v576_v51 = vor.u32 %v575_v47, %v572_v43  ;;  %v1179_v60 = vcombine.low %v732_v54, %v821_v58  ;;  %v1174_v63 = vcombine.low %v732_v54, %v733_v56  ;;  %v831_v0 = vshrl.u32 %v1173_v57, 16 }
  0x1d   : > { %1239 = vmatmul.mubr.msk.bf16.vlgmr.msra.gmra.mrb[0].mxu0 %vm273_vm0, %v260_v31  ;;  %v584_v55 = vor.u32 %v583_v49, %v580_v48  ;;  %v834_v1 = vshll.u32 %v1173_v57, 16  ;;  %v749_v10 = vrot.slane %v1173_v57, 2  ;;  %v1184_v18 = vcombine.low %v916_v14, %v731_v53  ;;  %v1189_v14 = vld [vmem:[%s1565_s2] ss:$0 sm:$0xff] }
  0x1e   : > { %1251 = vmatpush3.bf16.msra.mxu0 %v1338_v4  ;;  %1254 = vmatprep.mubr.msk.bf16.mxu0 %vm273_vm0, %v405_v32  ;;  %v839_v2 = vshrl.u32 %v1179_v60, 16  ;;  %v842_v3 = vshll.u32 %v1179_v60, 16  ;;  %v1356_v4 = vld [vmem:[%s1564_s1 + $0x78] sm:$0xff]   ;;  %v833_v5 = vrot.slane %v831_v0, 2  ;;  %v750_v11 = vrot.slane %v1174_v63, 2 }
  0x1f   : > { %1252 = vmatprep.subr.bf16.mxu0 %v1341_v36  ;;  %1263 = vmatmul.mubr.msk.bf16.vlgmr.msra.gmra.mrb[4].mxu1 %vm273_vm0, %v489_v33  ;;  %v585_v62 = vsel %vm568_vm4, %v576_v51, %v584_v55  ;;  %v836_v6 = vrot.slane %v834_v1, 3  ;;  %v925_v21 = vrot.slane %v1179_v60, 3 }
  0x20   : > { %1275 = vmatpush3.bf16.msra.mxu1 %v1347_v28  ;;  %1278 = vmatprep.mubr.msk.bf16.mxu1 %vm273_vm0, %v1167_v41  ;;  %v841_v7 = vrot.slane %v839_v2, 2  ;;  %v844_v8 = vrot.slane %v842_v3, 3  ;;  %v751_v17 = vsel %vm748_vm6, %v749_v10, %v750_v11 }
  0x21   : > { %1276 = vmatprep.subr.bf16.mxu1 %v1349_v42  ;;  %v837_v12 = vor.u32 %v836_v6, %v833_v5 }
  0x22   : > { %1253 = vmatpush3.bf16.msra.mxu0 %v1341_v36  ;;  %v845_v13 = vor.u32 %v844_v8, %v841_v7 }
  0x23   : > { %1266 = vmatprep.subr.bf16.mxu0 %v1344_v46 }
  0x24   : > { %1277 = vmatpush3.bf16.msra.mxu1 %v1349_v42  ;;  %v846_v15 = vsel %vm829_vm5, %v837_v12, %v845_v13 }
  0x25   : > { %1255 = vmatmul.mubr.msk.bf16.vlgmr.msra.gmra.mrb[4].mxu0 %vm273_vm0, %v404_v20  ;;  %1290 = vmatprep.subr.bf16.mxu1 %v1354_v50  ;;  %v924_v20 = vrot.slane %v1184_v18, 3 }
  0x26   : > { %1267 = vmatpush3.bf16.msra.mxu0 %v1344_v46  ;;  %1270 = vmatprep.mubr.msk.bf16.mxu0 %vm273_vm0, %v585_v62 }
  0x27   : > { %1268 = vmatprep.subr.bf16.mxu0 %v1348_v61  ;;  %1279 = vmatmul.mubr.msk.bf16.vlgmr.msra.gmra.mrb[8].mxu1 %vm273_vm0, %v1168_v59  ;;  %v926_v23 = vsel %vm487_vm3, %v924_v20, %v925_v21 }
  0x28   : > { %1291 = vmatpush3.bf16.msra.mxu1 %v1354_v50  ;;  %1294 = vmatprep.mubr.msk.bf16.mxu1 %vm273_vm0, %v846_v15 }
  0x29   : > { %1292 = vmatprep.subr.bf16.mxu1 %v1356_v4 }
  0x2a   : > { %1269 = vmatpush3.bf16.msra.mxu0 %v1348_v61 }
  0x2b   : > { %1282 = vmatprep.subr.bf16.mxu0 %v1351_v9 }
  0x2c   : > { %1293 = vmatpush3.bf16.msra.mxu1 %v1356_v4 }
  0x2d   : > { %1271 = vmatmul.mubr.msk.bf16.vlgmr.msra.gmra.mrb[8].mxu0 %vm273_vm0, %v584_v55 }
  0x2e   : > { %1283 = vmatpush3.bf16.msra.mxu0 %v1351_v9  ;;  %1286 = vmatprep.mubr.msk.bf16.mxu0 %vm273_vm0, %v751_v17 }
  0x2f   : > { %1284 = vmatprep.subr.bf16.mxu0 %v1355_v16  ;;  %1295 = vmatmul.mubr.msk.bf16.vlgmr.msra.gmra.mrb[12].mxu1 %vm273_vm0, %v845_v13 }
  0x32   : > { %1285 = vmatpush3.bf16.msra.mxu0 %v1355_v16 }
  0x33   : > { %1298 = vmatprep.subr.bf16.mxu0 %v1360_v19 }
  0x35   : > { %1287 = vmatmul.mubr.msk.bf16.vlgmr.msra.gmra.mrb[12].mxu0 %vm273_vm0, %v750_v11 }
  0x36   : > { %1299 = vmatpush3.bf16.msra.mxu0 %v1360_v19  ;;  %1302 = vmatprep.mubr.msk.bf16.mxu0 %vm273_vm0, %v926_v23 }
  0x37   : > { %1300 = vmatprep.subr.bf16.mxu0 %v1361_v22 }
  0x3a   : > { %1301 = vmatpush3.bf16.msra.mxu0 %v1361_v22 }
  0x3d   : > { %1303 = vmatmul.mubr.msk.bf16.vlgmr.msra.gmra.mrb[16].mxu0 %vm273_vm0, %v925_v21 }
  0xe9   : > { %v1248_v24 = vpop.f32.mrb[0].mxu1 }
  0xea   : > { %v380_v25 = vpop.f32.mrb[1].mxu1 }
  0xeb   : > { %v1249_v26 = vpop.f32.mrb[2].mxu1 }
  0xec   : > { %v383_v27 = vpop.f32.mrb[3].mxu1 }
  0xf0   : > { %v1240_v28 = vpop.f32.mrb[0].mxu0 }
  0xf1   : > { %v389_v29 = vadd.f32 %v1248_v24, %v1240_v28  ;;  %v314_v30 = vpop.f32.mrb[1].mxu0 }
  0xf2   : > { %v381_v31 = vadd.f32 %v380_v25, %v314_v30  ;;  %v1241_v32 = vpop.f32.mrb[2].mxu0  ;;  %v1264_v33 = vpop.f32.mrb[4].mxu1 }
  0xf3   : > { %v317_v34 = vpop.f32.mrb[3].mxu0  ;;  %v543_v35 = vpop.f32.mrb[5].mxu1 }
  0xf4   : > { %v384_v36 = vadd.f32 %v383_v27, %v317_v34  ;;  %v1265_v37 = vpop.f32.mrb[6].mxu1 }
  0xf5   : > { %v546_v38 = vpop.f32.mrb[7].mxu1 }
  0xf8   : > { %v1256_v39 = vpop.f32.mrb[4].mxu0 }
  0xf9   : > { %v474_v40 = vadd.f32 %v1256_v39, %v389_v29  ;;  %v458_v41 = vpop.f32.mrb[5].mxu0 }
  0xfa   : > { %v472_v42 = vadd.f32 %v458_v41, %v381_v31  ;;  %v1257_v43 = vpop.f32.mrb[6].mxu0  ;;  %v1280_v44 = vpop.f32.mrb[8].mxu1 }
  0xfb   : > { %v559_v45 = vadd.f32 %v1264_v33, %v474_v40  ;;  %v461_v46 = vpop.f32.mrb[7].mxu0  ;;  %v713_v47 = vpop.f32.mrb[9].mxu1 }
  0xfc   : > { %v473_v48 = vadd.f32 %v461_v46, %v384_v36  ;;  %v557_v49 = vadd.f32 %v543_v35, %v472_v42  ;;  %v1281_v50 = vpop.f32.mrb[10].mxu1 }
  0xfd   : > { %v716_v51 = vpop.f32.mrb[11].mxu1 }
  0xfe   : > { %v558_v52 = vadd.f32 %v546_v38, %v473_v48 }
 0x100   : > { %v1272_v53 = vpop.f32.mrb[8].mxu0 }
 0x101   : > { %v654_v54 = vadd.f32 %v1272_v53, %v559_v45  ;;  %v638_v55 = vpop.f32.mrb[9].mxu0 }
 0x102   : > { %v652_v56 = vadd.f32 %v638_v55, %v557_v49  ;;  %v1273_v57 = vpop.f32.mrb[10].mxu0  ;;  %v1296_v58 = vpop.f32.mrb[12].mxu1 }
 0x103   : > { %v729_v59 = vadd.f32 %v1280_v44, %v654_v54  ;;  %v641_v60 = vpop.f32.mrb[11].mxu0  ;;  %v899_v61 = vpop.f32.mrb[13].mxu1 }
 0x104   : > { %v653_v62 = vadd.f32 %v641_v60, %v558_v52  ;;  %v727_v63 = vadd.f32 %v713_v47, %v652_v56  ;;  %v1297_v0 = vpop.f32.mrb[14].mxu1 }
 0x105   : > { %v902_v1 = vpop.f32.mrb[15].mxu1 }
 0x106   : > { %v728_v2 = vadd.f32 %v716_v51, %v653_v62 }
 0x108   : > { %v1288_v3 = vpop.f32.mrb[12].mxu0 }
 0x109   : > { %v820_v4 = vadd.f32 %v1288_v3, %v729_v59  ;;  %v804_v5 = vpop.f32.mrb[13].mxu0 }
 0x10a   : > { %v818_v6 = vadd.f32 %v804_v5, %v727_v63  ;;  %v1289_v7 = vpop.f32.mrb[14].mxu0 }
 0x10b   : > { %v915_v8 = vadd.f32 %v1296_v58, %v820_v4  ;;  %v807_v9 = vpop.f32.mrb[15].mxu0 }
 0x10c   : > { %v819_v10 = vadd.f32 %v807_v9, %v728_v2  ;;  %v913_v11 = vadd.f32 %v899_v61, %v818_v6 }
 0x10e   : > { %v914_v12 = vadd.f32 %v902_v1, %v819_v10 }
 0x110   : > { %v1304_v13 = vpop.f32.mrb[16].mxu0 }
 0x111   : > { %v995_v15 = vadd.f32 %v1304_v13, %v915_v8  ;;  %v979_v16 = vpop.f32.mrb[17].mxu0 }
 0x112   : > { %v993_v17 = vadd.f32 %v979_v16, %v913_v11  ;;  %v1305_v18 = vpop.f32.mrb[18].mxu0 }
 0x113   : > { %v1005_v19 = vadd.f32 %v1189_v14, %v995_v15  ;;  %v982_v20 = vpop.f32.mrb[19].mxu0 }
 0x114   : > { %v1003_v21 = vadd.f32 %v1189_v14, %v993_v17  ;;  %v994_v22 = vadd.f32 %v982_v20, %v914_v12 }
 0x115   : > { %v1008_v23 = vmax.f32 %v1005_v19, 0.0 }
 0x116   : > { %v1006_v24 = vmax.f32 %v1003_v21, 0.0  ;;  %v1004_v25 = vadd.f32 %v1189_v14, %v994_v22 }
 0x117   : > { %v1197_v26 = vpack.c.bf16 %v1008_v23, %v1008_v23 }
 0x118   : > { %v1195_v27 = vpack.c.bf16 %v1006_v24, %v1006_v24  ;;  %v1007_v28 = vmax.f32 %v1004_v25, 0.0 }
 0x119   : > { %1025 = vst.msk [vmem:[%s221_s11 + $0x8] sm:$0xf] %vm1022_vm7, %v1197_v26 }
 0x11a   : > { %1023 = vst.msk [vmem:[%s221_s11] sm:$0xf] %vm1022_vm7, %v1195_v27  ;;  %v1196_v29 = vpack.c.bf16 %v1007_v28, %v1007_v28 }
 0x11c   : > { %1024 = vst.msk [vmem:[%s221_s11 + $0x4] sm:$0xf] %vm1022_vm7, %v1196_v29 }
 0x11d PF: > { %s13_s14 = sadd.s32 1, %s1385_s14   ;;  %s1567_s12 = smov %s1381_s13 }
 0x11e   : > { %p10_p5 = scmp.ge.s32.totalorder %s13_s14, 4   ;;  %s1568_s13 = smov %s1570_s15 }
 0x120   :  { %12 = sbr.rel (!%p10_p5) target bundleno = 2 (0x2), region = 68 }

// kernel: _lambda_.45
= control target key start
LH: loop header
LB: loop body
LE: loop exit
PB: predicated region body
PF: predicated region fallthrough
CT: control target
= control target key end

     0   :  { %s2083_s12 = smov 0   ;;  %s2085_s13 = smov 0   ;;  %s2505_s0 = inlined_call_operand.vmem [shape: bf16[2,110,16], index: 0, kind: input, shape index: {}]   ;;  %s2506_s1 = inlined_call_operand.vmem [shape: bf16[144,4], index: 1, kind: input, shape index: {}]   ;;  %s2507_s2 = inlined_call_operand.vmem [shape: f32[1,4], index: 2, kind: input, shape index: {}]   ;;  %s2508_s3 = inlined_call_operand.vmem [shape: f32[2,80,4], index: 3, kind: output, shape index: {}]  }
   0x1   :  { %s2087_s14 = smov 0  }
   0x2 LB: > { %s25_s15 = sadd.s32 1, %s2055_s13  ;;  %p1640_p0 = scmp.ge.s32.totalorder %s2059_s14, 1  ;;  %s2059_s14 = sphi %s2087_s14, %s13_s14   ;;  %s2055_s13 = sphi %s2085_s13, %s2510_s13   ;;  %s2051_s12 = sphi %s2083_s12, %s2509_s12  }
   0x3   : > { %p27_p1 = scmp.ge.s32.totalorder %s25_s15, 2  ;;  %p168_p2 = scmp.lt.s32.totalorder %s2059_s14, 3 }
   0x5   : > { %s2512_s15 = smov (%p27_p1, %s25_s15), 0  ;;  %p169_p3 = pnand %p1640_p0, %p168_p2 }
   0x6   : > { %v2005_v0 = vld [vmem:[%s2506_s1 + $0x8] sm:$0xff] (!%p169_p3)   ;;  %v2061_v1 = vmov (!%p169_p3), 0.0   ;;  %p202_p4 = scmp.lt.s32.totalorder (!%p169_p3), %s2051_s12, 1  ;;  %vm2062_vm0 = vmmov (!%p169_p3), 0   ;;  %vm266_vm1 = vsmask.f32 (!%p169_p3), 7424 }
   0x7   : > { %172 = sbr.rel (%p169_p3) target bundleno = 423 (0x1a7), region = 32  ;;  %1777 = vmatprep.subr.bf16.mxu0 (!%p169_p3), %v2061_v1  ;;  %1975 = vmatprep.subr.bf16.mxu1 (!%p169_p3), %v2061_v1  ;;  %vm317_vm2 = vcmask (!%p169_p3), 130048   ;;  %v2010_v20 = vld [vmem:[%s2506_s1 + $0x10] sm:$0xff] (!%p169_p3)   ;;  %v2011_v24 = vld [vmem:[%s2506_s1] sm:$0xff] (!%p169_p3)   ;;  %vm501_vm3 = vcmask (!%p169_p3), 1046528   ;;  %v2014_v46 = vld [vmem:[%s2506_s1 + $0x18] sm:$0xff] (!%p169_p3)  }
   0x8   : > { %1778 = vmatpush3.bf16.msra.mxu0 (!%p169_p3), %v2005_v0  ;;  %1976 = vmatpush3.bf16.msra.mxu1 (!%p169_p3), %v2005_v0  ;;  %v2016_v50 = vld [vmem:[%s2506_s1 + $0x20] sm:$0xff] (!%p169_p3)   ;;  %vm779_vm4 = vsmask.f32 (!%p169_p3), 6400  ;;  %vm943_vm5 = vcmask (!%p169_p3), 1045504   ;;  %vm1221_vm6 = vsmask.f32 (!%p169_p3), 5376 }
   0x9   : > { %1779 = vmatprep.mubr.msk.bf16.mxu0 (!%p169_p3), %vm2062_vm0, %v2061_v1  ;;  %1791 = vmatprep.mubr.msk.bf16.mxu1 (!%p169_p3), %vm2062_vm0, %v2061_v1  ;;  %vm1385_vm7 = vcmask (!%p169_p3), 1044480   ;;  %vm1518_vm8 = vcmask (!%p169_p3), 31744  }
   0xa   : > { %1821 = vmatprep.subr.bf16.mxu0 (!%p169_p3), %v2061_v1  ;;  %1799 = vmatprep.subr.bf16.mxu1 (!%p169_p3), %v2061_v1 }
   0xe   : > { %s2514_s12 = smov (!%p202_p4, %s2051_s12), 1 }
   0xf   : > { %s1977_s18 = smul.u32 56, %s2514_s12 }
  0x10   : > { %s1978_s11 = smul.u32 80, %s2514_s12 }
  0x11   : > { %s2118_s21 = scalar_lea.vmem %s2505_s0, %s1977_s18 }
  0x12   : > { %v223_v2 = vld [vmem:[%s2118_s21] sm:$0xf]  ;;  %v224_v3 = vld [vmem:[%s2118_s21 + $0x4] sm:$0xf]  ;;  %v2123_v5 = vld [vmem:[%s2118_s21 + $0x8] sm:$0xff]   ;;  %s2460_s20 = scalar_lea.vmem %s2508_s3, %s1978_s11 }
  0x13   : > { %v1643_v4 = vcombine.low %v223_v2, %v224_v3  ;;  %v275_v8 = vshll.u32 %v2123_v5, 16  ;;  %v2127_v9 = vld [vmem:[%s2118_s21 + $0x18] sm:$0xff]   ;;  %v2130_v10 = vld [vmem:[%s2118_s21 + $0x20] sm:$0xff]   ;;  %v2133_v11 = vld [vmem:[%s2118_s21 + $0x10] sm:$0xff]   ;;  %v279_v21 = vshrl.u32 %v2123_v5, 16  ;;  %v503_v48 = vrot.slane %v2123_v5, 1 }
  0x14   : > { %v291_v14 = vshll.u32 %v2127_v9, 16  ;;  %v295_v15 = vshrl.u32 %v2127_v9, 16  ;;  %v299_v16 = vshll.u32 %v2130_v10, 16  ;;  %v2139_v17 = vld [vmem:[%s2118_s21 + $0x28] ss:$0 sps:$4 sm:$0x11]  }
  0x15   : > { %v268_v6 = vshrl.u32 %v1643_v4, 16  ;;  %v270_v7 = vshll.u32 %v1643_v4, 16  ;;  %v277_v13 = vrot.slane %v275_v8, 1  ;;  %v283_v22 = vshll.u32 %v2133_v11, 16  ;;  %v2164_v36 = vld [vmem:[%s2118_s21 + $0x24] sm:$0xff]   ;;  %v2231_v60 = vld [vmem:[%s2118_s21 + $0xc] sm:$0xff]  }
  0x16   : > { %v293_v19 = vrot.slane %v291_v14, 1  ;;  %v301_v23 = vrot.slane %v299_v16, 1  ;;  %v303_v27 = vshrl.u32 %v2130_v10, 16  ;;  %v307_v28 = vshll.u32 %v2139_v17, 16  ;;  %v495_v40 = vld [vmem:[%s2118_s21] sm:$0xe] }
  0x17   : > { %v272_v12 = vrot.slane %v270_v7, 1  ;;  %v281_v30 = vor.u32 %v279_v21, %v277_v13  ;;  %v285_v31 = vrot.slane %v283_v22, 1  ;;  %v287_v35 = vshrl.u32 %v2133_v11, 16  ;;  %v2024_v37 = vld [vmem:[%s2118_s21 + $0x2c] ss:$0 sps:$4 sm:$0x11]  }
  0x18   : > { %v297_v26 = vor.u32 %v295_v15, %v293_v19  ;;  %v305_v32 = vor.u32 %v303_v27, %v301_v23  ;;  %v309_v33 = vrot.slane %v307_v28, 1  ;;  %v665_v41 = vrot.slane %v2164_v36, 1  ;;  %v617_v56 = vld [vmem:[%s2118_s21 + $0x4] sm:$0xe]  ;;  %v2226_v57 = vld [vmem:[%s2118_s21 + $0x8] sm:$0xf] }
  0x19   : > { %v273_v18 = vor.u32 %v272_v12, %v268_v6  ;;  %v286_v34 = vsel %vm266_vm1, %v281_v30, %v285_v31  ;;  %v289_v39 = vor.u32 %v287_v35, %v285_v31  ;;  %v667_v42 = vrot.slane %v2024_v37, 1  ;;  %v2019_v12 = vld [vmem:[%s2506_s1 + $0x28] sm:$0xff]  }
  0x1a   : > { %v302_v29 = vsel %vm266_vm1, %v297_v26, %v301_v23  ;;  %v310_v38 = vsel %vm266_vm1, %v305_v32, %v309_v33  ;;  %v1661_v45 = vcombine.low %v495_v40, %v224_v3  ;;  %v505_v51 = vrot.slane %v2133_v11, 1  ;;  %v2268_v23 = vld [vmem:[%s2118_s21 + $0x1c] sm:$0xff]  }
  0x1b   : > { %v278_v25 = vsel %vm266_vm1, %v273_v18, %v277_v13  ;;  %1792 = vmatmul.mubr.msk.bf16.vlgmr.msra.gmra.mrb[0].mxu1 %vm317_vm2, %v302_v29  ;;  %v2179_v43 = vsel %vm501_vm3, %v665_v41, %v667_v42  ;;  %v294_v44 = vsel %vm266_vm1, %v289_v39, %v293_v19  ;;  %v507_v53 = vrot.slane %v2127_v9, 1  ;;  %v2250_v13 = vld [vmem:[%s2118_s21 + $0x14] sm:$0xff]   ;;  %v2292_v39 = vld [vmem:[%s2118_s21 + $0x2c] ss:$0 sps:$4 sm:$0x33]  }
  0x1c   : > { %1780 = vmatmul.mubr.msk.bf16.vlgmr.msra.gmra.mrb[0].mxu0 %vm317_vm2, %v278_v25  ;;  %1800 = vmatpush3.bf16.msra.mxu1 %v2011_v24  ;;  %v502_v47 = vrot.slane %v1661_v45, 1  ;;  %v506_v52 = vsel %vm501_vm3, %v503_v48, %v505_v51  ;;  %v509_v55 = vrot.slane %v2130_v10, 1  ;;  %v1668_v59 = vcombine.low %v617_v56, %v2226_v57  ;;  %v2021_v19 = vld [vmem:[%s2506_s1 + $0x30] sm:$0xff]  }
  0x1d   : > { %1822 = vmatpush3.bf16.msra.mxu0 %v2010_v20  ;;  %1783 = vmatprep.mubr.msk.bf16.mxu0 %vm2062_vm0, %v2061_v1  ;;  %v508_v54 = vsel %vm501_vm3, %v505_v51, %v507_v53  ;;  %v511_v61 = vrot.slane %v2139_v17, 1  ;;  %v789_v0 = vshrl.u32 %v2231_v60, 16  ;;  %v792_v2 = vshll.u32 %v2231_v60, 16  ;;  %v1059_v51 = vld [vmem:[%s2118_s21 + $0x8] sm:$0xc] }
  0x1e   : > { %1865 = vmatprep.subr.bf16.mxu0 %v2061_v1  ;;  %1795 = vmatprep.mubr.msk.bf16.mxu1 %vm2062_vm0, %v2061_v1  ;;  %v504_v49 = vsel %vm501_vm3, %v502_v47, %v503_v48  ;;  %v510_v58 = vsel %vm501_vm3, %v507_v53, %v509_v55  ;;  %v781_v62 = vshrl.u32 %v1668_v59, 16  ;;  %v784_v63 = vshll.u32 %v1668_v59, 16 }
  0x1f   : > { %1843 = vmatprep.subr.bf16.mxu1 %v2061_v1  ;;  %v658_v3 = vrot.slane %v1668_v59, 1  ;;  %v791_v8 = vrot.slane %v789_v0, 1  ;;  %v798_v15 = vshrl.u32 %v2250_v13, 16  ;;  %v801_v16 = vshll.u32 %v2250_v13, 16  ;;  %v2342_v0 = vld [vmem:[%s2118_s21 + $0x18] sm:$0xff]  }
  0x20   : > { %v783_v6 = vrot.slane %v781_v62, 1  ;;  %v786_v7 = vrot.slane %v784_v63, 2  ;;  %v661_v17 = vrot.slane %v2250_v13, 1  ;;  %v807_v25 = vshrl.u32 %v2268_v23, 16  ;;  %v2030_v63 = vld [vmem:[%s2506_s1 + $0x40] sm:$0xff]  }
  0x21   : > { %v800_v20 = vrot.slane %v798_v15, 1  ;;  %v803_v21 = vrot.slane %v801_v16, 2  ;;  %v810_v26 = vshll.u32 %v2268_v23, 16  ;;  %v663_v27 = vrot.slane %v2268_v23, 1 }
  0x22   : > { %v809_v29 = vrot.slane %v807_v25, 1  ;;  %v816_v33 = vshrl.u32 %v2164_v36, 16  ;;  %v828_v45 = vshll.u32 %v2292_v39, 16 }
  0x23   : > { %1796 = vmatmul.mubr.msk.bf16.gmra.mrb[4].mxu1 %vm317_vm2, %v310_v38  ;;  %v804_v24 = vor.u32 %v803_v21, %v800_v20  ;;  %v812_v30 = vrot.slane %v810_v26, 2  ;;  %v664_v31 = vsel %vm501_vm3, %v661_v17, %v663_v27  ;;  %v666_v40 = vsel %vm501_vm3, %v663_v27, %v665_v41  ;;  %v1379_v26 = vld [vmem:[%s2118_s21 + $0x8] sm:$0x8] }
  0x24   : > { %1784 = vmatmul.mubr.msk.bf16.gmra.mrb[4].mxu0 %vm317_vm2, %v286_v34  ;;  %1801 = vmatprep.mubr.msk.bf16.mxu1 %vm2062_vm0, %v2061_v1  ;;  %v819_v34 = vshll.u32 %v2164_v36, 16  ;;  %v818_v37 = vrot.slane %v816_v33, 1  ;;  %v830_v48 = vrot.slane %v828_v45, 2 }
  0x25   : > { %1787 = vmatprep.mubr.msk.bf16.mxu0 %vm2062_vm0, %v2061_v1  ;;  %v813_v32 = vor.u32 %v812_v30, %v809_v29  ;;  %v1240_v29 = vshrl.u32 %v2342_v0, 16  ;;  %v1243_v30 = vshll.u32 %v2342_v0, 16 }
  0x26   : > { %v821_v38 = vrot.slane %v819_v34, 2 }
  0x27   : > { %v814_v35 = vsel %vm779_vm4, %v804_v24, %v813_v32  ;;  %v1242_v34 = vrot.slane %v1240_v29, 2 }
  0x28   : > { %v822_v42 = vor.u32 %v821_v38, %v818_v37 }
  0x2a   : > { %v823_v41 = vsel %vm779_vm4, %v813_v32, %v822_v42 }
  0x2b   : > { %1802 = vmatmul.mubr.msk.bf16.vlgmr.msra.gmra.mrb[8].mxu1 %vm317_vm2, %v1643_v4  ;;  %v659_v4 = vrot.slane %v2231_v60, 1 }
  0x2c   : > { %1788 = vmatmul.mubr.msk.bf16.gmra.mrb[8].mxu0 %vm317_vm2, %v294_v44  ;;  %1844 = vmatpush3.bf16.msra.mxu1 %v2014_v46  ;;  %v825_v44 = vshrl.u32 %v2292_v39, 16  ;;  %v937_v46 = vld [vmem:[%s2118_s21 + $0x4] sm:$0xc] }
  0x2d   : > { %1823 = vmatprep.mubr.msk.bf16.mxu0 %vm2062_vm0, %v2061_v1  ;;  %1805 = vmatprep.mubr.msk.bf16.mxu1 %vm2062_vm0, %v2061_v1  ;;  %v662_v22 = vsel %vm501_vm3, %v659_v4, %v661_v17 }
  0x2e   : > { %1887 = vmatprep.subr.bf16.mxu1 %v2061_v1  ;;  %v827_v47 = vrot.slane %v825_v44, 1 }
  0x33   : > { %1806 = vmatmul.mubr.msk.bf16.gmra.mrb[12].mxu1 %vm317_vm2, %v2123_v5  ;;  %v512_v5 = vsel %vm501_vm3, %v509_v55, %v511_v61  ;;  %v947_v61 = vrot.slane %v2250_v13, 2 }
  0x34   : > { %1824 = vmatmul.mubr.msk.bf16.vlgmr.msra.gmra.mrb[12].mxu0 %vm317_vm2, %v504_v49  ;;  %1809 = vmatprep.mubr.msk.bf16.mxu1 %vm2062_vm0, %v2061_v1  ;;  %v1687_v49 = vcombine.low %v937_v46, %v2226_v57  ;;  %v2323_v57 = vld [vmem:[%s2118_s21 + $0x10] sm:$0xff]  }
  0x35   : > { %1866 = vmatpush3.bf16.msra.mxu0 %v2016_v50  ;;  %1827 = vmatprep.mubr.msk.bf16.mxu0 %vm2062_vm0, %v2061_v1  ;;  %v831_v50 = vor.u32 %v830_v48, %v827_v47  ;;  %v1231_v16 = vshrl.u32 %v2323_v57, 16  ;;  %v1234_v17 = vshll.u32 %v2323_v57, 16  ;;  %v1387_v38 = vrot.slane %v2323_v57, 3 }
  0x36   : > { %1909 = vmatprep.subr.bf16.mxu0 %v2061_v1  ;;  %v944_v53 = vrot.slane %v1687_v49, 2  ;;  %v1389_v47 = vrot.slane %v2342_v0, 3 }
  0x37   : > { %v832_v55 = vsel %vm779_vm4, %v822_v42, %v831_v50 }
  0x3b   : > { %1810 = vmatmul.mubr.msk.bf16.gmra.mrb[16].mxu1 %vm317_vm2, %v2133_v11  ;;  %v660_v11 = vsel %vm501_vm3, %v658_v3, %v659_v4  ;;  %v1103_v3 = vrot.slane %v2342_v0, 2  ;;  %v949_v4 = vrot.slane %v2268_v23, 2  ;;  %v1233_v23 = vrot.slane %v1231_v16, 2 }
  0x3c   : > { %1828 = vmatmul.mubr.msk.bf16.gmra.mrb[16].mxu0 %vm317_vm2, %v506_v52  ;;  %1813 = vmatprep.mubr.msk.bf16.mxu1 %vm2062_vm0, %v2061_v1  ;;  %v2315_v52 = vld [vmem:[%s2118_s21 + $0xc] sm:$0xf] }
  0x3d   : > { %1831 = vmatprep.mubr.msk.bf16.mxu0 %vm2062_vm0, %v2061_v1  ;;  %v1694_v56 = vcombine.low %v1059_v51, %v2315_v52  ;;  %v1713_v32 = vcombine.low %v1379_v26, %v2315_v52  ;;  %v1390_v51 = vsel %vm1385_vm7, %v1387_v38, %v1389_v47 }
  0x3f   : > { %v1100_v59 = vrot.slane %v1694_v56, 2  ;;  %v1226_v15 = vshll.u32 %v1694_v56, 16  ;;  %v1386_v37 = vrot.slane %v1713_v32, 3 }
  0x41   : > { %v1388_v44 = vsel %vm1385_vm7, %v1386_v37, %v1387_v38 }
  0x43   : > { %1814 = vmatmul.mubr.msk.bf16.gmra.mrb[20].mxu1 %vm317_vm2, %v2127_v9  ;;  %v794_v9 = vrot.slane %v792_v2, 2 }
  0x44   : > { %1832 = vmatmul.mubr.msk.bf16.gmra.mrb[20].mxu0 %vm317_vm2, %v508_v54  ;;  %1817 = vmatprep.mubr.msk.bf16.mxu1 %vm2062_vm0, %v2061_v1  ;;  %v945_v54 = vrot.slane %v2231_v60, 2  ;;  %v1101_v60 = vrot.slane %v2323_v57, 2 }
  0x45   : > { %1835 = vmatprep.mubr.msk.bf16.mxu0 %vm2062_vm0, %v2061_v1  ;;  %v795_v14 = vor.u32 %v794_v9, %v791_v8  ;;  %v951_v9 = vrot.slane %v2164_v36, 2  ;;  %v1223_v36 = vshrl.u32 %v1694_v56, 16 }
  0x46   : > { %v1102_v62 = vsel %vm943_vm5, %v1100_v59, %v1101_v60  ;;  %v948_v2 = vsel %vm943_vm5, %v945_v54, %v947_v61 }
  0x47   : > { %v805_v28 = vsel %vm779_vm4, %v795_v14, %v804_v24  ;;  %v952_v13 = vsel %vm943_vm5, %v949_v4, %v951_v9  ;;  %v1225_v21 = vrot.slane %v1223_v36, 2  ;;  %v1236_v24 = vrot.slane %v1234_v17, 3 }
  0x4b   : > { %1818 = vmatmul.mubr.msk.bf16.gmra.mrb[24].mxu1 %vm317_vm2, %v2130_v10  ;;  %v787_v10 = vor.u32 %v786_v7, %v783_v6  ;;  %v2355_v6 = vld [vmem:[%s2118_s21 + $0x20] sm:$0xff]   ;;  %v950_v7 = vsel %vm943_vm5, %v947_v61, %v949_v4 }
  0x4c   : > { %1836 = vmatmul.mubr.msk.bf16.gmra.mrb[24].mxu0 %vm317_vm2, %v510_v58  ;;  %1845 = vmatprep.mubr.msk.bf16.mxu1 %vm2062_vm0, %v2061_v1  ;;  %v946_v58 = vsel %vm943_vm5, %v944_v53, %v945_v54  ;;  %v1105_v8 = vrot.slane %v2355_v6, 2  ;;  %v1252_v42 = vshll.u32 %v2355_v6, 16  ;;  %v1391_v56 = vrot.slane %v2355_v6, 3 }
  0x4d   : > { %1839 = vmatprep.mubr.msk.bf16.mxu0 %vm2062_vm0, %v2061_v1  ;;  %v796_v18 = vsel %vm779_vm4, %v787_v10, %v795_v14  ;;  %v953_v14 = vrot.slane %v2292_v39, 2 }
  0x4e   : > { %v1392_v59 = vsel %vm1385_vm7, %v1389_v47, %v1391_v56 }
  0x4f   : > { %v954_v20 = vsel %vm943_vm5, %v951_v9, %v953_v14 }
  0x53   : > { %1846 = vmatmul.mubr.msk.bf16.vlgmr.msra.gmra.mrb[28].mxu1 %vm317_vm2, %v660_v11  ;;  %v1106_v11 = vsel %vm943_vm5, %v1103_v3, %v1105_v8 }
  0x54   : > { %1840 = vmatmul.mubr.msk.bf16.gmra.mrb[28].mxu0 %vm317_vm2, %v512_v5  ;;  %1888 = vmatpush3.bf16.msra.mxu1 %v2019_v12  ;;  %v1104_v5 = vsel %vm943_vm5, %v1101_v60, %v1103_v3  ;;  %v2368_v12 = vld [vmem:[%s2118_s21 + $0x28] sm:$0xff]  }
  0x55   : > { %1867 = vmatprep.mubr.msk.bf16.mxu0 %vm2062_vm0, %v2061_v1  ;;  %1849 = vmatprep.mubr.msk.bf16.mxu1 %vm2062_vm0, %v2061_v1  ;;  %v1107_v10 = vrot.slane %v2368_v12, 2  ;;  %v1258_v49 = vshrl.u32 %v2368_v12, 16  ;;  %v1261_v50 = vshll.u32 %v2368_v12, 16 }
  0x56   : > { %1931 = vmatprep.subr.bf16.mxu1 %v2061_v1 }
  0x57   : > { %v1260_v53 = vrot.slane %v1258_v49, 2  ;;  %v1263_v54 = vrot.slane %v1261_v50, 3 }
  0x59   : > { %v1264_v57 = vor.u32 %v1263_v54, %v1260_v53 }
  0x5b   : > { %1850 = vmatmul.mubr.msk.bf16.gmra.mrb[32].mxu1 %vm317_vm2, %v662_v22  ;;  %v1228_v22 = vrot.slane %v1226_v15, 3 }
  0x5c   : > { %1868 = vmatmul.mubr.msk.bf16.vlgmr.msra.gmra.mrb[32].mxu0 %vm317_vm2, %v796_v18  ;;  %1853 = vmatprep.mubr.msk.bf16.mxu1 %vm2062_vm0, %v2061_v1  ;;  %v1108_v18 = vsel %vm943_vm5, %v1105_v8, %v1107_v10 }
  0x5d   : > { %1910 = vmatpush3.bf16.msra.mxu0 %v2021_v19  ;;  %1871 = vmatprep.mubr.msk.bf16.mxu0 %vm2062_vm0, %v2061_v1  ;;  %v2034_v19 = vld [vmem:[%s2118_s21 + $0x30] ss:$0 sps:$4 sm:$0x33]   ;;  %v1229_v27 = vor.u32 %v1228_v22, %v1225_v21 }
  0x5e   : > { %1953 = vmatprep.subr.bf16.mxu0 %v2061_v1  ;;  %v1109_v25 = vrot.slane %v2034_v19, 2 }
  0x63   : > { %1854 = vmatmul.mubr.msk.bf16.gmra.mrb[36].mxu1 %vm317_vm2, %v664_v31  ;;  %v1110_v31 = vsel %vm943_vm5, %v1107_v10, %v1109_v25 }
  0x64   : > { %1872 = vmatmul.mubr.msk.bf16.gmra.mrb[36].mxu0 %vm317_vm2, %v805_v28  ;;  %1857 = vmatprep.mubr.msk.bf16.mxu1 %vm2062_vm0, %v2061_v1  ;;  %v1237_v28 = vor.u32 %v1236_v24, %v1233_v23 }
  0x65   : > { %1875 = vmatprep.mubr.msk.bf16.mxu0 %vm2062_vm0, %v2061_v1 }
  0x66   : > { %v1238_v33 = vsel %vm1221_vm6, %v1229_v27, %v1237_v28 }
  0x6b   : > { %1858 = vmatmul.mubr.msk.bf16.gmra.mrb[40].mxu1 %vm317_vm2, %v666_v40  ;;  %v1249_v40 = vshrl.u32 %v2355_v6, 16 }
  0x6c   : > { %1876 = vmatmul.mubr.msk.bf16.gmra.mrb[40].mxu0 %vm317_vm2, %v814_v35  ;;  %1861 = vmatprep.mubr.msk.bf16.mxu1 %vm2062_vm0, %v2061_v1  ;;  %v1245_v35 = vrot.slane %v1243_v30, 3 }
  0x6d   : > { %1879 = vmatprep.mubr.msk.bf16.mxu0 %vm2062_vm0, %v2061_v1  ;;  %v1251_v46 = vrot.slane %v1249_v40, 2 }
  0x6e   : > { %v1246_v39 = vor.u32 %v1245_v35, %v1242_v34 }
  0x70   : > { %v1247_v45 = vsel %vm1221_vm6, %v1237_v28, %v1246_v39 }
  0x73   : > { %1862 = vmatmul.mubr.msk.bf16.gmra.mrb[44].mxu1 %vm317_vm2, %v2179_v43  ;;  %v2027_v43 = vld [vmem:[%s2506_s1 + $0x38] sm:$0xff]  }
  0x74   : > { %1880 = vmatmul.mubr.msk.bf16.gmra.mrb[44].mxu0 %vm317_vm2, %v823_v41  ;;  %1889 = vmatprep.mubr.msk.bf16.mxu1 %vm2062_vm0, %v2061_v1  ;;  %v1254_v41 = vrot.slane %v1252_v42, 3 }
  0x75   : > { %1883 = vmatprep.mubr.msk.bf16.mxu0 %vm2062_vm0, %v2061_v1 }
  0x76   : > { %v1255_v48 = vor.u32 %v1254_v41, %v1251_v46 }
  0x78   : > { %v1256_v52 = vsel %vm1221_vm6, %v1246_v39, %v1255_v48  ;;  %v1265_v60 = vsel %vm1221_vm6, %v1255_v48, %v1264_v57 }
  0x7b   : > { %1890 = vmatmul.mubr.msk.bf16.vlgmr.msra.gmra.mrb[48].mxu1 %vm317_vm2, %v946_v58 }
  0x7c   : > { %1884 = vmatmul.mubr.msk.bf16.gmra.mrb[48].mxu0 %vm317_vm2, %v832_v55  ;;  %1932 = vmatpush3.bf16.msra.mxu1 %v2027_v43  ;;  %v2036_v55 = vld [vmem:[%s2118_s21 + $0x30] ss:$0 sps:$4 sm:$0x77]  }
  0x7d   : > { %1911 = vmatprep.mubr.msk.bf16.mxu0 %vm2062_vm0, %v2061_v1  ;;  %1893 = vmatprep.mubr.msk.bf16.mxu1 %vm2062_vm0, %v2061_v1  ;;  %v1267_v58 = vshrl.u32 %v2036_v55, 16  ;;  %v1270_v43 = vshll.u32 %v2036_v55, 16  ;;  %v1395_v4 = vrot.slane %v2036_v55, 3 }
  0x7f   : > { %v1269_v61 = vrot.slane %v1267_v58, 2 }
  0x83   : > { %1894 = vmatmul.mubr.msk.bf16.gmra.mrb[52].mxu1 %vm317_vm2, %v948_v2 }
  0x84   : > { %1912 = vmatmul.mubr.msk.bf16.vlgmr.msra.gmra.mrb[52].mxu0 %vm317_vm2, %v1102_v62  ;;  %1897 = vmatprep.mubr.msk.bf16.mxu1 %vm2062_vm0, %v2061_v1  ;;  %v1272_v62 = vrot.slane %v1270_v43, 3 }
  0x85   : > { %1954 = vmatpush3.bf16.msra.mxu0 %v2030_v63  ;;  %1915 = vmatprep.mubr.msk.bf16.mxu0 %vm2062_vm0, %v2061_v1  ;;  %v1393_v63 = vrot.slane %v2368_v12, 3 }
  0x86   : > { %v1273_v0 = vor.u32 %v1272_v62, %v1269_v61 }
  0x87   : > { %v1394_v2 = vsel %vm1385_vm7, %v1391_v56, %v1393_v63 }
  0x88   : > { %v1274_v3 = vsel %vm1221_vm6, %v1264_v57, %v1273_v0 }
  0x8b   : > { %1898 = vmatmul.mubr.msk.bf16.gmra.mrb[56].mxu1 %vm317_vm2, %v950_v7 }
  0x8c   : > { %1916 = vmatmul.mubr.msk.bf16.gmra.mrb[56].mxu0 %vm317_vm2, %v1104_v5  ;;  %1901 = vmatprep.mubr.msk.bf16.mxu1 %vm2062_vm0, %v2061_v1  ;;  %v1396_v5 = vsel %vm1385_vm7, %v1393_v63, %v1395_v4 }
  0x8d   : > { %1919 = vmatprep.mubr.msk.bf16.mxu0 %vm2062_vm0, %v2061_v1 }
  0x93   : > { %1902 = vmatmul.mubr.msk.bf16.gmra.mrb[60].mxu1 %vm317_vm2, %v952_v13 }
  0x94   : > { %1920 = vmatmul.mubr.msk.bf16.gmra.mrb[60].mxu0 %vm317_vm2, %v1106_v11  ;;  %1905 = vmatprep.mubr.msk.bf16.mxu1 %vm2062_vm0, %v2061_v1 }
  0x95   : > { %1923 = vmatprep.mubr.msk.bf16.mxu0 %vm2062_vm0, %v2061_v1 }
  0x9b   : > { %1906 = vmatmul.mubr.msk.bf16.gmra.mrb[64].mxu1 %vm317_vm2, %v954_v20 }
  0x9c   : > { %1924 = vmatmul.mubr.msk.bf16.gmra.mrb[64].mxu0 %vm317_vm2, %v1108_v18  ;;  %1933 = vmatprep.mubr.msk.bf16.mxu1 %vm2062_vm0, %v2061_v1 }
  0x9d   : > { %1927 = vmatprep.mubr.msk.bf16.mxu0 %vm2062_vm0, %v2061_v1 }
  0xa3   : > { %1934 = vmatmul.mubr.msk.bf16.vlgmr.msra.gmra.mrb[68].mxu1 %vm317_vm2, %v1238_v33 }
  0xa4   : > { %1928 = vmatmul.mubr.msk.bf16.gmra.mrb[68].mxu0 %vm317_vm2, %v1110_v31  ;;  %1937 = vmatprep.mubr.msk.bf16.mxu1 %vm2062_vm0, %v2061_v1 }
  0xa5   : > { %1955 = vmatprep.mubr.msk.bf16.mxu0 %vm2062_vm0, %v2061_v1 }
  0xab   : > { %1938 = vmatmul.mubr.msk.bf16.gmra.mrb[72].mxu1 %vm317_vm2, %v1247_v45 }
  0xac   : > { %1956 = vmatmul.mubr.msk.bf16.vlgmr.msra.gmra.mrb[72].mxu0 %vm317_vm2, %v1388_v44  ;;  %1941 = vmatprep.mubr.msk.bf16.mxu1 %vm2062_vm0, %v2061_v1 }
  0xad   : > { %1959 = vmatprep.mubr.msk.bf16.mxu0 %vm2062_vm0, %v2061_v1 }
  0xb3   : > { %1942 = vmatmul.mubr.msk.bf16.gmra.mrb[76].mxu1 %vm317_vm2, %v1256_v52 }
  0xb4   : > { %1960 = vmatmul.mubr.msk.bf16.gmra.mrb[76].mxu0 %vm317_vm2, %v1390_v51  ;;  %1945 = vmatprep.mubr.msk.bf16.mxu1 %vm2062_vm0, %v2061_v1 }
  0xb5   : > { %1963 = vmatprep.mubr.msk.bf16.mxu0 %vm2062_vm0, %v2061_v1 }
  0xbb   : > { %1946 = vmatmul.mubr.msk.bf16.gmra.mrb[80].mxu1 %vm317_vm2, %v1265_v60 }
  0xbc   : > { %1964 = vmatmul.mubr.msk.bf16.gmra.mrb[80].mxu0 %vm317_vm2, %v1392_v59  ;;  %1949 = vmatprep.mubr.msk.bf16.mxu1 %vm2062_vm0, %v2061_v1 }
  0xbd   : > { %1967 = vmatprep.mubr.msk.bf16.mxu0 %vm2062_vm0, %v2061_v1 }
  0xc3   : > { %1950 = vmatmul.mubr.msk.bf16.gmra.mrb[84].mxu1 %vm317_vm2, %v1274_v3 }
  0xc4   : > { %1968 = vmatmul.mubr.msk.bf16.gmra.mrb[84].mxu0 %vm317_vm2, %v1394_v2 }
  0xc5   : > { %1971 = vmatprep.mubr.msk.bf16.mxu0 %vm2062_vm0, %v2061_v1 }
  0xcc   : > { %1972 = vmatmul.mubr.msk.bf16.gmra.mrb[88].mxu0 %vm317_vm2, %v1396_v5 }
  0xee   : > { %v391_v9 = vpop.f32.mrb[0].mxu1 }
  0xef   : > { %v367_v6 = vpop.f32.mrb[0].mxu0  ;;  %v1793_v12 = vpop.f32.mrb[1].mxu1 }
  0xf0   : > { %v1781_v7 = vpop.f32.mrb[1].mxu0  ;;  %v394_v13 = vpop.f32.mrb[2].mxu1 }
  0xf1   : > { %v370_v8 = vpop.f32.mrb[2].mxu0  ;;  %v1794_v10 = vpop.f32.mrb[3].mxu1 }
  0xf2   : > { %v1782_v11 = vpop.f32.mrb[3].mxu0 }
  0xf6   : > { %v399_v16 = vpop.f32.mrb[4].mxu1 }
  0xf7   : > { %v375_v14 = vpop.f32.mrb[4].mxu0  ;;  %v1797_v17 = vpop.f32.mrb[5].mxu1 }
  0xf8   : > { %v1785_v36 = vpop.f32.mrb[5].mxu0  ;;  %v402_v18 = vpop.f32.mrb[6].mxu1 }
  0xf9   : > { %v378_v15 = vpop.f32.mrb[6].mxu0  ;;  %v1798_v19 = vpop.f32.mrb[7].mxu1 }
  0xfa   : > { %v1786_v1 = vpop.f32.mrb[7].mxu0 }
  0xfe   : > { %v456_v22 = vpop.f32.mrb[8].mxu1 }
  0xff   : > { %v383_v20 = vpop.f32.mrb[8].mxu0  ;;  %v457_v24 = vadd.f32 %v456_v22, %v367_v6  ;;  %v1803_v25 = vpop.f32.mrb[9].mxu1 }
 0x100   : > { %v1789_v21 = vpop.f32.mrb[9].mxu0  ;;  %v459_v27 = vpop.f32.mrb[10].mxu1 }
 0x101   : > { %v386_v23 = vpop.f32.mrb[10].mxu0  ;;  %v460_v28 = vadd.f32 %v459_v27, %v370_v8  ;;  %v1804_v29 = vpop.f32.mrb[11].mxu1 }
 0x102   : > { %v1790_v26 = vpop.f32.mrb[11].mxu0 }
 0x106   : > { %v464_v33 = vpop.f32.mrb[12].mxu1 }
 0x107   : > { %v568_v30 = vpop.f32.mrb[12].mxu0  ;;  %v465_v35 = vadd.f32 %v464_v33, %v375_v14  ;;  %v1807_v37 = vpop.f32.mrb[13].mxu1 }
 0x108   : > { %v607_v31 = vadd.f32 %v568_v30, %v457_v24  ;;  %v1825_v32 = vpop.f32.mrb[13].mxu0  ;;  %v467_v40 = vpop.f32.mrb[14].mxu1 }
 0x109   : > { %v571_v34 = vpop.f32.mrb[14].mxu0  ;;  %v468_v42 = vadd.f32 %v467_v40, %v378_v15  ;;  %v1808_v44 = vpop.f32.mrb[15].mxu1 }
 0x10a   : > { %v608_v38 = vadd.f32 %v571_v34, %v460_v28  ;;  %v1826_v39 = vpop.f32.mrb[15].mxu0 }
 0x10e   : > { %v472_v47 = vpop.f32.mrb[16].mxu1 }
 0x10f   : > { %v576_v45 = vpop.f32.mrb[16].mxu0  ;;  %v473_v49 = vadd.f32 %v472_v47, %v383_v20  ;;  %v1811_v50 = vpop.f32.mrb[17].mxu1 }
 0x110   : > { %v609_v46 = vadd.f32 %v576_v45, %v465_v35  ;;  %v1829_v41 = vpop.f32.mrb[17].mxu0  ;;  %v475_v53 = vpop.f32.mrb[18].mxu1 }
 0x111   : > { %v579_v48 = vpop.f32.mrb[18].mxu0  ;;  %v476_v54 = vadd.f32 %v475_v53, %v386_v23  ;;  %v1812_v55 = vpop.f32.mrb[19].mxu1 }
 0x112   : > { %v610_v51 = vadd.f32 %v579_v48, %v468_v42  ;;  %v1830_v52 = vpop.f32.mrb[19].mxu0 }
 0x116   : > { %v480_v43 = vpop.f32.mrb[20].mxu1 }
 0x117   : > { %v584_v56 = vpop.f32.mrb[20].mxu0  ;;  %v481_v60 = vadd.f32 %v480_v43, %v391_v9  ;;  %v1815_v61 = vpop.f32.mrb[21].mxu1 }
 0x118   : > { %v611_v57 = vadd.f32 %v584_v56, %v473_v49  ;;  %v1833_v58 = vpop.f32.mrb[21].mxu0  ;;  %v483_v0 = vpop.f32.mrb[22].mxu1 }
 0x119   : > { %v587_v59 = vpop.f32.mrb[22].mxu0  ;;  %v484_v2 = vadd.f32 %v483_v0, %v394_v13  ;;  %v1816_v3 = vpop.f32.mrb[23].mxu1 }
 0x11a   : > { %v612_v62 = vadd.f32 %v587_v59, %v476_v54  ;;  %v1834_v63 = vpop.f32.mrb[23].mxu0 }
 0x11e   : > { %v488_v7 = vpop.f32.mrb[24].mxu1 }
 0x11f   : > { %v592_v4 = vpop.f32.mrb[24].mxu0  ;;  %v489_v11 = vadd.f32 %v488_v7, %v399_v16  ;;  %v1819_v12 = vpop.f32.mrb[25].mxu1 }
 0x120   : > { %v613_v5 = vadd.f32 %v592_v4, %v481_v60  ;;  %v1837_v6 = vpop.f32.mrb[25].mxu0  ;;  %v491_v36 = vpop.f32.mrb[26].mxu1 }
 0x121   : > { %v595_v8 = vpop.f32.mrb[26].mxu0  ;;  %v492_v15 = vadd.f32 %v491_v36, %v402_v18  ;;  %v1820_v1 = vpop.f32.mrb[27].mxu1 }
 0x122   : > { %v614_v10 = vadd.f32 %v595_v8, %v484_v2  ;;  %v1838_v14 = vpop.f32.mrb[27].mxu0 }
 0x126   : > { %v724_v20 = vpop.f32.mrb[28].mxu1 }
 0x127   : > { %v600_v17 = vpop.f32.mrb[28].mxu0  ;;  %v763_v22 = vadd.f32 %v724_v20, %v607_v31  ;;  %v1847_v13 = vpop.f32.mrb[29].mxu1 }
 0x128   : > { %v615_v9 = vadd.f32 %v600_v17, %v489_v11  ;;  %v1841_v19 = vpop.f32.mrb[29].mxu0  ;;  %v727_v25 = vpop.f32.mrb[30].mxu1 }
 0x129   : > { %v603_v21 = vpop.f32.mrb[30].mxu0  ;;  %v764_v26 = vadd.f32 %v727_v25, %v608_v38  ;;  %v1848_v27 = vpop.f32.mrb[31].mxu1 }
 0x12a   : > { %v616_v23 = vadd.f32 %v603_v21, %v492_v15  ;;  %v1842_v24 = vpop.f32.mrb[31].mxu0 }
 0x12e   : > { %v732_v30 = vpop.f32.mrb[32].mxu1 }
 0x12f   : > { %v888_v28 = vpop.f32.mrb[32].mxu0  ;;  %v765_v33 = vadd.f32 %v732_v30, %v609_v46  ;;  %v1851_v18 = vpop.f32.mrb[33].mxu1 }
 0x130   : > { %v927_v16 = vadd.f32 %v888_v28, %v763_v22  ;;  %v1869_v29 = vpop.f32.mrb[33].mxu0  ;;  %v735_v37 = vpop.f32.mrb[34].mxu1 }
 0x131   : > { %v891_v32 = vpop.f32.mrb[34].mxu0  ;;  %v766_v39 = vadd.f32 %v735_v37, %v610_v51  ;;  %v1852_v40 = vpop.f32.mrb[35].mxu1 }
 0x132   : > { %v928_v34 = vadd.f32 %v891_v32, %v764_v26  ;;  %v1870_v35 = vpop.f32.mrb[35].mxu0 }
 0x136   : > { %v740_v45 = vpop.f32.mrb[36].mxu1 }
 0x137   : > { %v896_v42 = vpop.f32.mrb[36].mxu0  ;;  %v767_v47 = vadd.f32 %v740_v45, %v611_v57  ;;  %v1855_v38 = vpop.f32.mrb[37].mxu1 }
 0x138   : > { %v929_v31 = vadd.f32 %v896_v42, %v765_v33  ;;  %v1873_v44 = vpop.f32.mrb[37].mxu0  ;;  %v743_v50 = vpop.f32.mrb[38].mxu1 }
 0x139   : > { %v899_v41 = vpop.f32.mrb[38].mxu0  ;;  %v768_v52 = vadd.f32 %v743_v50, %v612_v62  ;;  %v1856_v53 = vpop.f32.mrb[39].mxu1 }
 0x13a   : > { %v930_v48 = vadd.f32 %v899_v41, %v766_v39  ;;  %v1874_v49 = vpop.f32.mrb[39].mxu0 }
 0x13e   : > { %v748_v56 = vpop.f32.mrb[40].mxu1 }
 0x13f   : > { %v904_v54 = vpop.f32.mrb[40].mxu0  ;;  %v769_v43 = vadd.f32 %v748_v56, %v613_v5  ;;  %v1859_v51 = vpop.f32.mrb[41].mxu1 }
 0x140   : > { %v931_v46 = vadd.f32 %v904_v54, %v767_v47  ;;  %v1877_v55 = vpop.f32.mrb[41].mxu0  ;;  %v751_v61 = vpop.f32.mrb[42].mxu1 }
 0x141   : > { %v907_v58 = vpop.f32.mrb[42].mxu0  ;;  %v770_v63 = vadd.f32 %v751_v61, %v614_v10  ;;  %v1860_v0 = vpop.f32.mrb[43].mxu1 }
 0x142   : > { %v932_v59 = vadd.f32 %v907_v58, %v768_v52  ;;  %v1878_v60 = vpop.f32.mrb[43].mxu0 }
 0x146   : > { %v756_v4 = vpop.f32.mrb[44].mxu1 }
 0x147   : > { %v912_v2 = vpop.f32.mrb[44].mxu0  ;;  %v771_v7 = vadd.f32 %v756_v4, %v615_v9  ;;  %v1863_v62 = vpop.f32.mrb[45].mxu1 }
 0x148   : > { %v933_v57 = vadd.f32 %v912_v2, %v769_v43  ;;  %v1881_v3 = vpop.f32.mrb[45].mxu0  ;;  %v759_v12 = vpop.f32.mrb[46].mxu1 }
 0x149   : > { %v915_v6 = vpop.f32.mrb[46].mxu0  ;;  %v772_v14 = vadd.f32 %v759_v12, %v616_v23  ;;  %v1864_v36 = vpop.f32.mrb[47].mxu1 }
 0x14a   : > { %v934_v8 = vadd.f32 %v915_v6, %v770_v63  ;;  %v1882_v11 = vpop.f32.mrb[47].mxu0 }
 0x14e   : > { %v1010_v17 = vpop.f32.mrb[48].mxu1 }
 0x14f   : > { %v920_v15 = vpop.f32.mrb[48].mxu0  ;;  %v1049_v20 = vadd.f32 %v1010_v17, %v927_v16  ;;  %v1891_v10 = vpop.f32.mrb[49].mxu1 }
 0x150   : > { %v935_v5 = vadd.f32 %v920_v15, %v771_v7  ;;  %v1885_v1 = vpop.f32.mrb[49].mxu0  ;;  %v1013_v13 = vpop.f32.mrb[50].mxu1 }
 0x151   : > { %v923_v19 = vpop.f32.mrb[50].mxu0  ;;  %v1050_v24 = vadd.f32 %v1013_v13, %v928_v34  ;;  %v1892_v25 = vpop.f32.mrb[51].mxu1 }
 0x152   : > { %v936_v21 = vadd.f32 %v923_v19, %v772_v14  ;;  %v1886_v22 = vpop.f32.mrb[51].mxu0 }
 0x156   : > { %v1018_v28 = vpop.f32.mrb[52].mxu1 }
 0x157   : > { %v1166_v26 = vpop.f32.mrb[52].mxu0  ;;  %v1051_v30 = vadd.f32 %v1018_v28, %v929_v31  ;;  %v1895_v23 = vpop.f32.mrb[53].mxu1 }
 0x158   : > { %v1205_v9 = vadd.f32 %v1166_v26, %v1049_v20  ;;  %v1913_v27 = vpop.f32.mrb[53].mxu0  ;;  %v1021_v18 = vpop.f32.mrb[54].mxu1 }
 0x159   : > { %v1169_v29 = vpop.f32.mrb[54].mxu0  ;;  %v1052_v35 = vadd.f32 %v1021_v18, %v930_v48  ;;  %v1896_v37 = vpop.f32.mrb[55].mxu1 }
 0x15a   : > { %v1206_v32 = vadd.f32 %v1169_v29, %v1050_v24  ;;  %v1914_v33 = vpop.f32.mrb[55].mxu0 }
 0x15e   : > { %v1026_v42 = vpop.f32.mrb[56].mxu1 }
 0x15f   : > { %v1174_v39 = vpop.f32.mrb[56].mxu0  ;;  %v1053_v45 = vadd.f32 %v1026_v42, %v931_v46  ;;  %v1899_v34 = vpop.f32.mrb[57].mxu1 }
 0x160   : > { %v1207_v16 = vadd.f32 %v1174_v39, %v1051_v30  ;;  %v1917_v40 = vpop.f32.mrb[57].mxu0  ;;  %v1029_v38 = vpop.f32.mrb[58].mxu1 }
 0x161   : > { %v1177_v44 = vpop.f32.mrb[58].mxu0  ;;  %v1054_v49 = vadd.f32 %v1029_v38, %v932_v59  ;;  %v1900_v50 = vpop.f32.mrb[59].mxu1 }
 0x162   : > { %v1208_v41 = vadd.f32 %v1177_v44, %v1052_v35  ;;  %v1918_v47 = vpop.f32.mrb[59].mxu0 }
 0x166   : > { %v1034_v54 = vpop.f32.mrb[60].mxu1 }
 0x167   : > { %v1182_v52 = vpop.f32.mrb[60].mxu0  ;;  %v1055_v56 = vadd.f32 %v1034_v54, %v933_v57  ;;  %v1903_v48 = vpop.f32.mrb[61].mxu1 }
 0x168   : > { %v1209_v31 = vadd.f32 %v1182_v52, %v1053_v45  ;;  %v1921_v53 = vpop.f32.mrb[61].mxu0  ;;  %v1037_v51 = vpop.f32.mrb[62].mxu1 }
 0x169   : > { %v1185_v55 = vpop.f32.mrb[62].mxu0  ;;  %v1056_v60 = vadd.f32 %v1037_v51, %v934_v8  ;;  %v1904_v61 = vpop.f32.mrb[63].mxu1 }
 0x16a   : > { %v1210_v58 = vadd.f32 %v1185_v55, %v1054_v49  ;;  %v1922_v43 = vpop.f32.mrb[63].mxu0 }
 0x16e   : > { %v1042_v2 = vpop.f32.mrb[64].mxu1 }
 0x16f   : > { %v1190_v63 = vpop.f32.mrb[64].mxu0  ;;  %v1057_v59 = vadd.f32 %v1042_v2, %v935_v5  ;;  %v1907_v4 = vpop.f32.mrb[65].mxu1 }
 0x170   : > { %v2443_v46 = vadd.f32 %v1190_v63, %v1055_v56  ;;  %v1925_v0 = vpop.f32.mrb[65].mxu0  ;;  %v1045_v62 = vpop.f32.mrb[66].mxu1 }
 0x171   : > { %v1193_v3 = vpop.f32.mrb[66].mxu0  ;;  %v1058_v57 = vadd.f32 %v1045_v62, %v936_v21  ;;  %v1908_v11 = vpop.f32.mrb[67].mxu1  ;;  %v2455_v21 = vld [vmem:[%s2507_s2] ss:$0 sm:$0xff] }
 0x172   : > { %v2445_v6 = vadd.f32 %v1193_v3, %v1056_v60  ;;  %v1926_v7 = vpop.f32.mrb[67].mxu0 }
 0x176   : > { %v1330_v36 = vpop.f32.mrb[68].mxu1 }
 0x177   : > { %v1198_v12 = vpop.f32.mrb[68].mxu0  ;;  %v1369_v1 = vadd.f32 %v1330_v36, %v1205_v9  ;;  %v1935_v17 = vpop.f32.mrb[69].mxu1 }
 0x178   : > { %v2447_v14 = vadd.f32 %v1198_v12, %v1057_v59  ;;  %v1929_v8 = vpop.f32.mrb[69].mxu0  ;;  %v1333_v5 = vpop.f32.mrb[70].mxu1 }
 0x179   : > { %v1201_v15 = vpop.f32.mrb[70].mxu0  ;;  %v1370_v10 = vadd.f32 %v1333_v5, %v1206_v32  ;;  %v1936_v22 = vpop.f32.mrb[71].mxu1 }
 0x17a   : > { %v2449_v19 = vadd.f32 %v1201_v15, %v1058_v57  ;;  %v1930_v20 = vpop.f32.mrb[71].mxu0 }
 0x17e   : > { %v1338_v26 = vpop.f32.mrb[72].mxu1 }
 0x17f   : > { %v1452_v13 = vpop.f32.mrb[72].mxu0  ;;  %v1371_v27 = vadd.f32 %v1338_v26, %v1207_v16  ;;  %v1939_v29 = vpop.f32.mrb[73].mxu1 }
 0x180   : > { %v1491_v24 = vadd.f32 %v1452_v13, %v1369_v1  ;;  %v1957_v25 = vpop.f32.mrb[73].mxu0  ;;  %v1341_v32 = vpop.f32.mrb[74].mxu1 }
 0x181   : > { %v1455_v9 = vpop.f32.mrb[74].mxu0  ;;  %v1372_v33 = vadd.f32 %v1341_v32, %v1208_v41  ;;  %v1940_v35 = vpop.f32.mrb[75].mxu1 }
 0x182   : > { %v1508_v28 = vadd.f32 %v2455_v21, %v1491_v24  ;;  %v1492_v30 = vadd.f32 %v1455_v9, %v1370_v10  ;;  %v1958_v23 = vpop.f32.mrb[75].mxu0 }
 0x184   : > { %1519 = vst.msk [vmem:[%s2460_s20] sm:$0xff] %vm1518_vm8, %v1508_v28  ;;  %v1509_v18 = vadd.f32 %v2455_v21, %v1492_v30 }
 0x186   : > { %1520 = vst.msk [vmem:[%s2460_s20 + $0x8] sm:$0xff] %vm1518_vm8, %v1509_v18  ;;  %v1346_v16 = vpop.f32.mrb[76].mxu1 }
 0x187   : > { %v1460_v37 = vpop.f32.mrb[76].mxu0  ;;  %v1373_v44 = vadd.f32 %v1346_v16, %v1209_v31  ;;  %v1943_v34 = vpop.f32.mrb[77].mxu1 }
 0x188   : > { %v1493_v39 = vadd.f32 %v1460_v37, %v1371_v27  ;;  %v1961_v40 = vpop.f32.mrb[77].mxu0  ;;  %v1349_v49 = vpop.f32.mrb[78].mxu1 }
 0x189   : > { %v1463_v42 = vpop.f32.mrb[78].mxu0  ;;  %v1374_v41 = vadd.f32 %v1349_v49, %v1210_v58  ;;  %v1944_v52 = vpop.f32.mrb[79].mxu1 }
 0x18a   : > { %v1510_v45 = vadd.f32 %v2455_v21, %v1493_v39  ;;  %v1494_v47 = vadd.f32 %v1463_v42, %v1372_v33  ;;  %v1962_v38 = vpop.f32.mrb[79].mxu0 }
 0x18c   : > { %1521 = vst.msk [vmem:[%s2460_s20 + $0x10] sm:$0xff] %vm1518_vm8, %v1510_v45  ;;  %v1511_v50 = vadd.f32 %v2455_v21, %v1494_v47 }
 0x18e   : > { %1522 = vst.msk [vmem:[%s2460_s20 + $0x18] sm:$0xff] %vm1518_vm8, %v1511_v50  ;;  %v1354_v31 = vpop.f32.mrb[80].mxu1 }
 0x18f   : > { %v1468_v53 = vpop.f32.mrb[80].mxu0  ;;  %v1375_v48 = vadd.f32 %v1354_v31, %v2443_v46  ;;  %v1947_v51 = vpop.f32.mrb[81].mxu1 }
 0x190   : > { %v1495_v54 = vadd.f32 %v1468_v53, %v1373_v44  ;;  %v1965_v55 = vpop.f32.mrb[81].mxu0  ;;  %v1357_v63 = vpop.f32.mrb[82].mxu1 }
 0x191   : > { %v1471_v56 = vpop.f32.mrb[82].mxu0  ;;  %v1376_v58 = vadd.f32 %v1357_v63, %v2445_v6  ;;  %v1948_v2 = vpop.f32.mrb[83].mxu1 }
 0x192   : > { %v1512_v43 = vadd.f32 %v2455_v21, %v1495_v54  ;;  %v1496_v60 = vadd.f32 %v1471_v56, %v1374_v41  ;;  %v1966_v61 = vpop.f32.mrb[83].mxu0 }
 0x194   : > { %1523 = vst.msk [vmem:[%s2460_s20 + $0x20] sm:$0xff] %vm1518_vm8, %v1512_v43  ;;  %v1513_v0 = vadd.f32 %v2455_v21, %v1496_v60 }
 0x196   : > { %1524 = vst.msk [vmem:[%s2460_s20 + $0x28] sm:$0xff] %vm1518_vm8, %v1513_v0  ;;  %v1362_v4 = vpop.f32.mrb[84].mxu1 }
 0x197   : > { %v1476_v3 = vpop.f32.mrb[84].mxu0  ;;  %v1377_v62 = vadd.f32 %v1362_v4, %v2447_v14  ;;  %v1951_v11 = vpop.f32.mrb[85].mxu1 }
 0x198   : > { %v1497_v59 = vadd.f32 %v1476_v3, %v1375_v48  ;;  %v1969_v46 = vpop.f32.mrb[85].mxu0  ;;  %v1365_v6 = vpop.f32.mrb[86].mxu1 }
 0x199   : > { %v1479_v7 = vpop.f32.mrb[86].mxu0  ;;  %v1378_v36 = vadd.f32 %v1365_v6, %v2449_v19  ;;  %v1952_v1 = vpop.f32.mrb[87].mxu1 }
 0x19a   : > { %v1514_v57 = vadd.f32 %v2455_v21, %v1497_v59  ;;  %v1498_v12 = vadd.f32 %v1479_v7, %v1376_v58  ;;  %v1970_v8 = vpop.f32.mrb[87].mxu0 }
 0x19c   : > { %1525 = vst.msk [vmem:[%s2460_s20 + $0x30] sm:$0xff] %vm1518_vm8, %v1514_v57  ;;  %v1515_v15 = vadd.f32 %v2455_v21, %v1498_v12 }
 0x19e   : > { %1526 = vst.msk [vmem:[%s2460_s20 + $0x38] sm:$0xff] %vm1518_vm8, %v1515_v15 }
 0x19f   : > { %v1484_v17 = vpop.f32.mrb[88].mxu0 }
 0x1a0   : > { %v1499_v20 = vadd.f32 %v1484_v17, %v1377_v62  ;;  %v1973_v14 = vpop.f32.mrb[89].mxu0 }
 0x1a1   : > { %v1487_v5 = vpop.f32.mrb[90].mxu0 }
 0x1a2   : > { %v1516_v10 = vadd.f32 %v2455_v21, %v1499_v20  ;;  %v1500_v22 = vadd.f32 %v1487_v5, %v1378_v36  ;;  %v1974_v13 = vpop.f32.mrb[91].mxu0 }
 0x1a4   : > { %1527 = vst.msk [vmem:[%s2460_s20 + $0x40] sm:$0xff] %vm1518_vm8, %v1516_v10  ;;  %v1517_v24 = vadd.f32 %v2455_v21, %v1500_v22 }
 0x1a6   : > { %1528 = vst.msk [vmem:[%s2460_s20 + $0x48] sm:$0xff] %vm1518_vm8, %v1517_v24 }
 0x1a7 PF: > { %s13_s14 = sadd.s32 1, %s2059_s14   ;;  %s2509_s12 = smov %s2055_s13 }
 0x1a8   : > { %p10_p5 = scmp.ge.s32.totalorder %s13_s14, 4   ;;  %s2510_s13 = smov %s2512_s15 }
 0x1aa   :  { %12 = sbr.rel (!%p10_p5) target bundleno = 2 (0x2), region = 68 }

</bundles_post_ra>
